<compile_context>
chip_gen: v5e
topology: v5e:2x2
jax: 0.10.0
libtpu: 0.0.40
codegen_flags: <defaults>
</compile_context>

<pallas_src>
import functools
import math

import jax
import jax.numpy as jnp
from jax.experimental import pallas as pl
from jax.experimental.pallas import tpu as pltpu

# ---------------- config ----------------
D_MODEL = 32
D_FFN = 64
N_HEADS = 4
D_HEAD = D_MODEL // N_HEADS
N_LEVELS = 2
N_POINTS = 2
EPS = 1e-5
NEG_INF = -1e30


def _ln(x, g_ref, b_ref):
    """LayerNorm over the last axis; gamma/beta refs are (1, C)."""
    mean = jnp.mean(x, axis=-1, keepdims=True)
    var = jnp.mean(jnp.square(x - mean), axis=-1, keepdims=True)
    y = (x - mean) * jax.lax.rsqrt(var + EPS)
    return y * g_ref[...] + b_ref[...]


# ---------------- fully fused decoder-layer kernel (one batch element) ----------------
def _decoder_layer_kernel(
    # per-batch activations
    tgt_ref, qpos_ref, qmask_ref, refv_ref, refa_ref, src_ref, pad_ref,
    # self-attention weights
    sa_wqk, sa_bqk, sa_wv, sa_bv, sa_wo, sa_bo, n2g, n2b,
    # deformable cross-attention weights (shared across modalities)
    val_w, val_b, ow_w, ow_b, out_w, out_b, n1g, n1b,
    # fusion + FFN weights
    n4g, n4b, lin3_w, lin3_b, lin1_w, lin1_b, lin2_w, lin2_b, n3g, n3b,
    # output
    o_ref,
    *, video_shapes, audio_shapes):
    H, dh, L, P = N_HEADS, D_HEAD, N_LEVELS, N_POINTS
    HLP = H * L * P
    D = D_MODEL
    Lv = sum(video_shapes)

    tgt = tgt_ref[0].astype(jnp.float32)          # (Nq, D)
    qpos = qpos_ref[0].astype(jnp.float32)        # (Nq, D)
    Nq = tgt.shape[0]

    # ---------------- self attention ----------------
    qk_in = tgt + qpos
    qk = jnp.dot(qk_in, sa_wqk[...], preferred_element_type=jnp.float32) + sa_bqk[...]   # (Nq, 2D)
    v = jnp.dot(tgt, sa_wv[...], preferred_element_type=jnp.float32) + sa_bv[...]        # (Nq, D)

    kbias = (1.0 - qmask_ref[0].astype(jnp.float32)) * NEG_INF      # (1, Nq) key-padding bias
    scale = 1.0 / math.sqrt(dh)
    q_all = qk[:, :D] * scale                                       # pre-scale q once

    heads = []
    for h in range(H):
        q_h = q_all[:, h * dh:(h + 1) * dh]
        k_h = qk[:, D + h * dh:D + (h + 1) * dh]
        v_h = v[:, h * dh:(h + 1) * dh]
        s = jax.lax.dot_general(q_h, k_h, (((1,), (1,)), ((), ())),
                                preferred_element_type=jnp.float32) + kbias
        s = s - jnp.max(s, axis=-1, keepdims=True)
        prob = jnp.exp(s)
        prob = prob * pl.reciprocal(jnp.sum(prob, axis=-1, keepdims=True), approx=True)
        heads.append(jnp.dot(prob, v_h, preferred_element_type=jnp.float32))
    attn = jnp.concatenate(heads, axis=-1)                          # (Nq, D)
    sa_out = jnp.dot(attn, sa_wo[...], preferred_element_type=jnp.float32) + sa_bo[...]
    tgt1 = _ln(tgt + sa_out, n2g, n2b)                              # norm2(tgt + self_attn)

    # ------- sampling offsets + attention weights (shared by video & audio) -------
    qpos2 = tgt1 + qpos
    offattw = jnp.dot(qpos2, ow_w[...], preferred_element_type=jnp.float32) + ow_b[...]  # (Nq, 2*HLP)
    # per-head softmax over (levels * points) attention logits
    attw = []
    for h in range(H):
        lg = offattw[:, HLP + h * L * P: HLP + (h + 1) * L * P]     # (Nq, L*P)
        lg = lg - jnp.max(lg, axis=-1, keepdims=True)
        e = jnp.exp(lg)
        attw.append(e * pl.reciprocal(jnp.sum(e, axis=-1, keepdims=True), approx=True))

    # ------- single shared value projection over concatenated (video || audio) sources -------
    src = src_ref[0].astype(jnp.float32)                            # (Lv+La, D)
    pad = pad_ref[0].astype(jnp.float32)                            # (Lv+La, 1), 1.0 = padded
    value_all = jnp.dot(src, val_w[...], preferred_element_type=jnp.float32) + val_b[...]
    value_all = value_all * (1.0 - pad)                             # zero padded tokens

    def deform_branch(value, refp, shapes):
        # 1D multi-scale deformable attention; the sampling gather is expressed
        # as a linear-interpolation one-hot matmul (MXU) built from an iota
        # comparison.  All P sampling points of a (head, level) pair are built
        # in one rank-3 pass (vectorized over points).
        head_outs = []
        for h in range(H):
            acc = jnp.zeros((Nq, dh), jnp.float32)
            start = 0
            for l, T_l in enumerate(shapes):
                v_l = value[start:start + T_l, h * dh:(h + 1) * dh]  # (T_l, dh)
                # loc = ref + off / T_l ; px = loc * T_l - 0.5 (grid_sample, align_corners=False)
                base = refp[:, l:l + 1] * float(T_l) - 0.5           # (Nq, 1)
                col0 = (h * L + l) * P
                off = offattw[:, col0:col0 + P]                      # (Nq, P) raw offsets
                px = base + off                                      # (Nq, P)
                x0 = jnp.floor(px)
                frac = (px - x0)[:, :, None]                         # (Nq, P, 1)
                x0i = x0.astype(jnp.int32)[:, :, None]               # (Nq, P, 1)
                w_pt = attw[h][:, l * P:(l + 1) * P][:, :, None]     # (Nq, P, 1) softmax weights
                it = jax.lax.broadcasted_iota(jnp.int32, (Nq, P, T_l), 2)
                interp = ((it == x0i).astype(jnp.float32) * (1.0 - frac)
                          + (it == (x0i + 1)).astype(jnp.float32) * frac)   # zeros-padding OOB
                m = jnp.sum(interp * w_pt, axis=1)                   # (Nq, T_l)
                acc = acc + jnp.dot(m, v_l, preferred_element_type=jnp.float32)
                start += T_l
            head_outs.append(acc)
        agg = jnp.concatenate(head_outs, axis=-1)                    # (Nq, D)
        return jnp.dot(agg, out_w[...], preferred_element_type=jnp.float32) + out_b[...]

    tv = deform_branch(value_all[:Lv], refv_ref[0].astype(jnp.float32), video_shapes)
    tgt_video = _ln(tgt1 + tv, n1g, n1b)
    ta = deform_branch(value_all[Lv:], refa_ref[0].astype(jnp.float32), audio_shapes)
    tgt_audio = _ln(tgt1 + ta, n1g, n1b)

    # ---------------- fusion: concat -> norm4 -> linear3 -> relu ----------------
    cat = jnp.concatenate([tgt_video, tgt_audio], axis=-1)           # (Nq, 2D)
    cat = _ln(cat, n4g, n4b)
    t = jnp.dot(cat, lin3_w[...], preferred_element_type=jnp.float32) + lin3_b[...]
    t = jnp.maximum(t, 0.0)

    # ---------------- FFN + residual + norm3 ----------------
    h1 = jnp.dot(t, lin1_w[...], preferred_element_type=jnp.float32) + lin1_b[...]
    h1 = jnp.maximum(h1, 0.0)
    t2 = jnp.dot(h1, lin2_w[...], preferred_element_type=jnp.float32) + lin2_b[...]
    out = _ln(t + t2, n3g, n3b)

    o_ref[0] = out.astype(o_ref.dtype)


# ---------------- wrapper ----------------
def decoder_layer_forward(params, tgt, query_pos,
                          reference_points_input_video, reference_points_input_audio,
                          query_mask,
                          video_src, video_temporal_shapes, video_level_start_index, video_src_padding_mask,
                          audio_src, audio_temporal_shapes, audio_level_start_index, audio_src_padding_mask):
    del video_level_start_index, audio_level_start_index   # implied by static temporal shapes
    B, Nq, D = tgt.shape
    Lv = video_src.shape[1]
    La = audio_src.shape[1]

    # trivial glue: squeeze reference last dim, bool masks -> float, concat modal sources
    refv = reference_points_input_video[..., 0]                      # (B, Nq, L)
    refa = reference_points_input_audio[..., 0]
    qmask = query_mask.astype(jnp.float32).reshape(B, 1, Nq)         # 1.0 = valid query
    src_cat = jnp.concatenate([video_src, audio_src], axis=1)        # (B, Lv+La, D)
    pad_cat = jnp.concatenate(
        [video_src_padding_mask.astype(jnp.float32).reshape(B, Lv, 1),
         audio_src_padding_mask.astype(jnp.float32).reshape(B, La, 1)], axis=1)  # 1.0 = padded

    p = params
    c = p["cross"]

    def row(x):                       # biases / LN params as lane-dense (1, N) rows
        return x.reshape(1, -1)

    def _bspec(shape):                # per-batch-element block of a (B, *shape) array
        n = len(shape)
        return pl.BlockSpec((1,) + tuple(shape), lambda b, _n=n: (b,) + (0,) * _n)

    def _wspec(arr):                  # whole-array (weight) block, constant index map
        n = arr.ndim
        return pl.BlockSpec(arr.shape, lambda b, _n=n: (0,) * _n)

    acts = [tgt, query_pos, qmask, refv, refa, src_cat, pad_cat]
    weights = [
        p["sa_wqk"], row(p["sa_bqk"]), p["sa_wv"], row(p["sa_bv"]),
        p["sa_wo"], row(p["sa_bo"]), row(p["norm2_g"]), row(p["norm2_b"]),
        c["value_w"], row(c["value_b"]), c["offattw_w"], row(c["offattw_b"]),
        c["out_w"], row(c["out_b"]), row(p["norm1_g"]), row(p["norm1_b"]),
        row(p["norm4_g"]), row(p["norm4_b"]), p["lin3_w"], row(p["lin3_b"]),
        p["lin1_w"], row(p["lin1_b"]), p["lin2_w"], row(p["lin2_b"]),
        row(p["norm3_g"]), row(p["norm3_b"]),
    ]
    in_specs = [_bspec(a.shape[1:]) for a in acts] + [_wspec(w) for w in weights]

    kernel = functools.partial(_decoder_layer_kernel,
                               video_shapes=tuple(video_temporal_shapes),
                               audio_shapes=tuple(audio_temporal_shapes))

    out = pl.pallas_call(
        kernel,
        out_shape=jax.ShapeDtypeStruct((B, Nq, D), tgt.dtype),
        grid=(B,),
        in_specs=in_specs,
        out_specs=_bspec((Nq, D)),
        compiler_params=pltpu.CompilerParams(
            dimension_semantics=("parallel",)),   # v7x: one batch element per TensorCore
    )(*acts, *weights)
    return out


# ---------------- deterministic parameter init ----------------
def init_params(key):
    D, F, H, L, P = D_MODEL, D_FFN, N_HEADS, N_LEVELS, N_POINTS
    HLP = H * L * P
    ks = iter(jax.random.split(key, 32))

    def w(shape, scale=0.05):
        return (scale * jax.random.normal(next(ks), shape)).astype(jnp.float32)

    return {
        # self-attention: q|k projections concatenated (query/key both use tgt+pos)
        "sa_wqk": w((D, 2 * D)), "sa_bqk": w((2 * D,)),
        "sa_wv": w((D, D)), "sa_bv": w((D,)),
        "sa_wo": w((D, D)), "sa_bo": w((D,)),
        "norm1_g": jnp.ones((D,), jnp.float32), "norm1_b": jnp.zeros((D,), jnp.float32),
        "norm2_g": jnp.ones((D,), jnp.float32), "norm2_b": jnp.zeros((D,), jnp.float32),
        "norm3_g": jnp.ones((D,), jnp.float32), "norm3_b": jnp.zeros((D,), jnp.float32),
        "norm4_g": jnp.ones((2 * D,), jnp.float32), "norm4_b": jnp.zeros((2 * D,), jnp.float32),
        "lin1_w": w((D, F)), "lin1_b": w((F,)),
        "lin2_w": w((F, D)), "lin2_b": w((D,)),
        "lin3_w": w((2 * D, D)), "lin3_b": w((D,)),
        "cross": {  # MSDeformAttn (shared for both modalities, as in the reference)
            "value_w": w((D, D)), "value_b": w((D,)),
            "out_w": w((D, D)), "out_b": w((D,)),
            # sampling_offsets | attention_weights concatenated
            "offattw_w": w((D, 2 * HLP)), "offattw_b": w((2 * HLP,)),
        },
    }


if __name__ == "__main__":
    key = jax.random.PRNGKey(0)
    kp, kt, kq, krv, kra, kv, ka = jax.random.split(key, 7)

    B, Nq, D = 2, 8, D_MODEL
    video_temporal_shapes = (16, 8)       # tokens per level
    audio_temporal_shapes = (12, 6)
    video_level_start_index = (0, 16)
    audio_level_start_index = (0, 12)
    Lv, La = sum(video_temporal_shapes), sum(audio_temporal_shapes)

    params = init_params(kp)
    tgt = jax.random.normal(kt, (B, Nq, D), jnp.float32)
    query_pos = jax.random.normal(kq, (B, Nq, D), jnp.float32)
    ref_video = jax.random.uniform(krv, (B, Nq, N_LEVELS, 1), jnp.float32)
    ref_audio = jax.random.uniform(kra, (B, Nq, N_LEVELS, 1), jnp.float32)
    query_mask = jnp.ones((B, Nq), dtype=bool).at[1, -1].set(False)
    video_src = jax.random.normal(kv, (B, Lv, D), jnp.float32)
    audio_src = jax.random.normal(ka, (B, La, D), jnp.float32)
    video_pad = jnp.zeros((B, Lv), dtype=bool).at[1, Lv - 2:].set(True)
    audio_pad = jnp.zeros((B, La), dtype=bool).at[1, La - 1:].set(True)

    fwd = jax.jit(decoder_layer_forward, static_argnums=(7, 8, 11, 12))
    out = fwd(params, tgt, query_pos, ref_video, ref_audio, query_mask,
              video_src, video_temporal_shapes, video_level_start_index, video_pad,
              audio_src, audio_temporal_shapes, audio_level_start_index, audio_pad)
    out = jax.block_until_ready(out)
    assert out.shape == (B, Nq, D)
    assert bool(jnp.all(jnp.isfinite(out)))
    print("KERNEL_OK")
</pallas_src>

<mosaic_0001>
module attributes {stable_mosaic.version = 11 : i64} {
  func.func @_decoder_layer_kernel(%arg0: i32, %arg1: memref<1x8x32xf32, #tpu.memory_space<vmem>>, %arg2: memref<1x8x32xf32, #tpu.memory_space<vmem>>, %arg3: memref<1x1x8xf32, #tpu.memory_space<vmem>>, %arg4: memref<1x8x2xf32, #tpu.memory_space<vmem>>, %arg5: memref<1x8x2xf32, #tpu.memory_space<vmem>>, %arg6: memref<1x42x32xf32, #tpu.memory_space<vmem>>, %arg7: memref<1x42x1xf32, #tpu.memory_space<vmem>>, %arg8: memref<32x64xf32, #tpu.memory_space<vmem>>, %arg9: memref<1x64xf32, #tpu.memory_space<vmem>>, %arg10: memref<32x32xf32, #tpu.memory_space<vmem>>, %arg11: memref<1x32xf32, #tpu.memory_space<vmem>>, %arg12: memref<32x32xf32, #tpu.memory_space<vmem>>, %arg13: memref<1x32xf32, #tpu.memory_space<vmem>>, %arg14: memref<1x32xf32, #tpu.memory_space<vmem>>, %arg15: memref<1x32xf32, #tpu.memory_space<vmem>>, %arg16: memref<32x32xf32, #tpu.memory_space<vmem>>, %arg17: memref<1x32xf32, #tpu.memory_space<vmem>>, %arg18: memref<32x32xf32, #tpu.memory_space<vmem>>, %arg19: memref<1x32xf32, #tpu.memory_space<vmem>>, %arg20: memref<32x32xf32, #tpu.memory_space<vmem>>, %arg21: memref<1x32xf32, #tpu.memory_space<vmem>>, %arg22: memref<1x32xf32, #tpu.memory_space<vmem>>, %arg23: memref<1x32xf32, #tpu.memory_space<vmem>>, %arg24: memref<1x64xf32, #tpu.memory_space<vmem>>, %arg25: memref<1x64xf32, #tpu.memory_space<vmem>>, %arg26: memref<64x32xf32, #tpu.memory_space<vmem>>, %arg27: memref<1x32xf32, #tpu.memory_space<vmem>>, %arg28: memref<32x64xf32, #tpu.memory_space<vmem>>, %arg29: memref<1x64xf32, #tpu.memory_space<vmem>>, %arg30: memref<64x32xf32, #tpu.memory_space<vmem>>, %arg31: memref<1x32xf32, #tpu.memory_space<vmem>>, %arg32: memref<1x32xf32, #tpu.memory_space<vmem>>, %arg33: memref<1x32xf32, #tpu.memory_space<vmem>>, %arg34: memref<1x8x32xf32, #tpu.memory_space<vmem>>) attributes {dimension_semantics = [#tpu.dimension_semantics<parallel>], iteration_bounds = array<i64: 2>, scalar_prefetch = 0 : i64, scratch_operands = 0 : i64, tpu.core_type = #tpu.core_type<tc>, window_params = [{transform_indices = @transform_0, window_bounds = array<i64: 1, 8, 32>}, {transform_indices = @transform_1, window_bounds = array<i64: 1, 8, 32>}, {transform_indices = @transform_2, window_bounds = array<i64: 1, 1, 8>}, {transform_indices = @transform_3, window_bounds = array<i64: 1, 8, 2>}, {transform_indices = @transform_4, window_bounds = array<i64: 1, 8, 2>}, {transform_indices = @transform_5, window_bounds = array<i64: 1, 42, 32>}, {transform_indices = @transform_6, window_bounds = array<i64: 1, 42, 1>}, {pipeline_mode = #tpu.pipeline_mode<synchronous>, transform_indices = @transform_7, window_bounds = array<i64: 32, 64>}, {pipeline_mode = #tpu.pipeline_mode<synchronous>, transform_indices = @transform_8, window_bounds = array<i64: 1, 64>}, {pipeline_mode = #tpu.pipeline_mode<synchronous>, transform_indices = @transform_9, window_bounds = array<i64: 32, 32>}, {pipeline_mode = #tpu.pipeline_mode<synchronous>, transform_indices = @transform_10, window_bounds = array<i64: 1, 32>}, {pipeline_mode = #tpu.pipeline_mode<synchronous>, transform_indices = @transform_11, window_bounds = array<i64: 32, 32>}, {pipeline_mode = #tpu.pipeline_mode<synchronous>, transform_indices = @transform_12, window_bounds = array<i64: 1, 32>}, {pipeline_mode = #tpu.pipeline_mode<synchronous>, transform_indices = @transform_13, window_bounds = array<i64: 1, 32>}, {pipeline_mode = #tpu.pipeline_mode<synchronous>, transform_indices = @transform_14, window_bounds = array<i64: 1, 32>}, {pipeline_mode = #tpu.pipeline_mode<synchronous>, transform_indices = @transform_15, window_bounds = array<i64: 32, 32>}, {pipeline_mode = #tpu.pipeline_mode<synchronous>, transform_indices = @transform_16, window_bounds = array<i64: 1, 32>}, {pipeline_mode = #tpu.pipeline_mode<synchronous>, transform_indices = @transform_17, window_bounds = array<i64: 32, 32>}, {pipeline_mode = #tpu.pipeline_mode<synchronous>, transform_indices = @transform_18, window_bounds = array<i64: 1, 32>}, {pipeline_mode = #tpu.pipeline_mode<synchronous>, transform_indices = @transform_19, window_bounds = array<i64: 32, 32>}, {pipeline_mode = #tpu.pipeline_mode<synchronous>, transform_indices = @transform_20, window_bounds = array<i64: 1, 32>}, {pipeline_mode = #tpu.pipeline_mode<synchronous>, transform_indices = @transform_21, window_bounds = array<i64: 1, 32>}, {pipeline_mode = #tpu.pipeline_mode<synchronous>, transform_indices = @transform_22, window_bounds = array<i64: 1, 32>}, {pipeline_mode = #tpu.pipeline_mode<synchronous>, transform_indices = @transform_23, window_bounds = array<i64: 1, 64>}, {pipeline_mode = #tpu.pipeline_mode<synchronous>, transform_indices = @transform_24, window_bounds = array<i64: 1, 64>}, {pipeline_mode = #tpu.pipeline_mode<synchronous>, transform_indices = @transform_25, window_bounds = array<i64: 64, 32>}, {pipeline_mode = #tpu.pipeline_mode<synchronous>, transform_indices = @transform_26, window_bounds = array<i64: 1, 32>}, {pipeline_mode = #tpu.pipeline_mode<synchronous>, transform_indices = @transform_27, window_bounds = array<i64: 32, 64>}, {pipeline_mode = #tpu.pipeline_mode<synchronous>, transform_indices = @transform_28, window_bounds = array<i64: 1, 64>}, {pipeline_mode = #tpu.pipeline_mode<synchronous>, transform_indices = @transform_29, window_bounds = array<i64: 64, 32>}, {pipeline_mode = #tpu.pipeline_mode<synchronous>, transform_indices = @transform_30, window_bounds = array<i64: 1, 32>}, {pipeline_mode = #tpu.pipeline_mode<synchronous>, transform_indices = @transform_31, window_bounds = array<i64: 1, 32>}, {pipeline_mode = #tpu.pipeline_mode<synchronous>, transform_indices = @transform_32, window_bounds = array<i64: 1, 32>}, {transform_indices = @transform_33, window_bounds = array<i64: 1, 8, 32>}]} {
    %c0 = arith.constant 0 : index
    %c0_0 = arith.constant 0 : index
    %c0_1 = arith.constant 0 : index
    %0 = vector.load %arg1[%c0, %c0_0, %c0_1] : memref<1x8x32xf32, #tpu.memory_space<vmem>>, vector<1x8x32xf32>
    %1 = vector.shape_cast %0 : vector<1x8x32xf32> to vector<8x32xf32>
    %c0_2 = arith.constant 0 : index
    %c0_3 = arith.constant 0 : index
    %c0_4 = arith.constant 0 : index
    %2 = vector.load %arg2[%c0_2, %c0_3, %c0_4] : memref<1x8x32xf32, #tpu.memory_space<vmem>>, vector<1x8x32xf32>
    %3 = vector.shape_cast %2 : vector<1x8x32xf32> to vector<8x32xf32>
    %4 = arith.addf %1, %3 : vector<8x32xf32>
    %c0_5 = arith.constant 0 : index
    %c0_6 = arith.constant 0 : index
    %5 = vector.load %arg8[%c0_5, %c0_6] : memref<32x64xf32, #tpu.memory_space<vmem>>, vector<32x64xf32>
    %cst = arith.constant dense<0.000000e+00> : vector<8x64xf32>
    %6 = tpu.matmul %4, %5, %cst {dimension_numbers = #tpu.dot_dimension_numbers<[1], [0], [0], [1], [0, 0, 1, 1], [], []>} : vector<8x32xf32>, vector<32x64xf32>, vector<8x64xf32> -> vector<8x64xf32>
    %c0_7 = arith.constant 0 : index
    %c0_8 = arith.constant 0 : index
    %7 = vector.load %arg9[%c0_7, %c0_8] : memref<1x64xf32, #tpu.memory_space<vmem>>, vector<1x64xf32>
    %8 = vector.broadcast %7 : vector<1x64xf32> to vector<8x64xf32>
    %9 = arith.addf %6, %8 : vector<8x64xf32>
    %c0_9 = arith.constant 0 : index
    %c0_10 = arith.constant 0 : index
    %10 = vector.load %arg10[%c0_9, %c0_10] : memref<32x32xf32, #tpu.memory_space<vmem>>, vector<32x32xf32>
    %cst_11 = arith.constant dense<0.000000e+00> : vector<8x32xf32>
    %11 = tpu.matmul %1, %10, %cst_11 {dimension_numbers = #tpu.dot_dimension_numbers<[1], [0], [0], [1], [0, 0, 1, 1], [], []>} : vector<8x32xf32>, vector<32x32xf32>, vector<8x32xf32> -> vector<8x32xf32>
    %c0_12 = arith.constant 0 : index
    %c0_13 = arith.constant 0 : index
    %12 = vector.load %arg11[%c0_12, %c0_13] : memref<1x32xf32, #tpu.memory_space<vmem>>, vector<1x32xf32>
    %13 = vector.broadcast %12 : vector<1x32xf32> to vector<8x32xf32>
    %14 = arith.addf %11, %13 : vector<8x32xf32>
    %c0_14 = arith.constant 0 : index
    %c0_15 = arith.constant 0 : index
    %c0_16 = arith.constant 0 : index
    %15 = vector.load %arg3[%c0_14, %c0_15, %c0_16] : memref<1x1x8xf32, #tpu.memory_space<vmem>>, vector<1x1x8xf32>
    %16 = vector.shape_cast %15 : vector<1x1x8xf32> to vector<1x8xf32>
    %cst_17 = arith.constant 1.000000e+00 : f32
    %17 = vector.broadcast %cst_17 : f32 to vector<1x8xf32>
    %18 = arith.subf %17, %16 : vector<1x8xf32>
    %cst_18 = arith.constant -1.000000e+30 : f32
    %19 = vector.broadcast %cst_18 : f32 to vector<1x8xf32>
    %20 = arith.mulf %18, %19 : vector<1x8xf32>
    %21 = vector.extract_strided_slice %9 {offsets = [0, 0], sizes = [8, 32], strides = [1, 1]} : vector<8x64xf32> to vector<8x32xf32>
    %cst_19 = arith.constant 0.353553385 : f32
    %22 = vector.broadcast %cst_19 : f32 to vector<8x32xf32>
    %23 = arith.mulf %21, %22 : vector<8x32xf32>
    %24 = vector.extract_strided_slice %23 {offsets = [0, 0], sizes = [8, 8], strides = [1, 1]} : vector<8x32xf32> to vector<8x8xf32>
    %25 = vector.extract_strided_slice %9 {offsets = [0, 32], sizes = [8, 8], strides = [1, 1]} : vector<8x64xf32> to vector<8x8xf32>
    %26 = vector.extract_strided_slice %14 {offsets = [0, 0], sizes = [8, 8], strides = [1, 1]} : vector<8x32xf32> to vector<8x8xf32>
    %cst_20 = arith.constant dense<0.000000e+00> : vector<8x8xf32>
    %27 = tpu.matmul %24, %25, %cst_20 {dimension_numbers = #tpu.dot_dimension_numbers<[1], [1], [0], [0], [0, 0, 1, 0], [], []>} : vector<8x8xf32>, vector<8x8xf32>, vector<8x8xf32> -> vector<8x8xf32>
    %28 = vector.broadcast %20 : vector<1x8xf32> to vector<8x8xf32>
    %29 = arith.addf %27, %28 : vector<8x8xf32>
    %cst_21 = arith.constant dense<0xFF800000> : vector<8xf32>
    %30 = vector.multi_reduction <maximumf>, %29, %cst_21 [1] : vector<8x8xf32> to vector<8xf32>
    %31 = vector.shape_cast %30 : vector<8xf32> to vector<8x1xf32>
    %32 = vector.broadcast %31 : vector<8x1xf32> to vector<8x8xf32>
    %33 = arith.subf %29, %32 : vector<8x8xf32>
    %34 = math.exp %33 : vector<8x8xf32>
    %cst_22 = arith.constant dense<0.000000e+00> : vector<8xf32>
    %35 = vector.multi_reduction <add>, %34, %cst_22 [1] : vector<8x8xf32> to vector<8xf32>
    %36 = vector.shape_cast %35 : vector<8xf32> to vector<8x1xf32>
    %37 = tpu.reciprocal %36 {approx = true} : vector<8x1xf32> -> vector<8x1xf32>
    %38 = vector.broadcast %37 : vector<8x1xf32> to vector<8x8xf32>
    %39 = arith.mulf %34, %38 : vector<8x8xf32>
    %cst_23 = arith.constant dense<0.000000e+00> : vector<8x8xf32>
    %40 = tpu.matmul %39, %26, %cst_23 {dimension_numbers = #tpu.dot_dimension_numbers<[1], [0], [0], [1], [0, 0, 1, 1], [], []>} : vector<8x8xf32>, vector<8x8xf32>, vector<8x8xf32> -> vector<8x8xf32>
    %41 = vector.extract_strided_slice %23 {offsets = [0, 8], sizes = [8, 8], strides = [1, 1]} : vector<8x32xf32> to vector<8x8xf32>
    %42 = vector.extract_strided_slice %9 {offsets = [0, 40], sizes = [8, 8], strides = [1, 1]} : vector<8x64xf32> to vector<8x8xf32>
    %43 = vector.extract_strided_slice %14 {offsets = [0, 8], sizes = [8, 8], strides = [1, 1]} : vector<8x32xf32> to vector<8x8xf32>
    %cst_24 = arith.constant dense<0.000000e+00> : vector<8x8xf32>
    %44 = tpu.matmul %41, %42, %cst_24 {dimension_numbers = #tpu.dot_dimension_numbers<[1], [1], [0], [0], [0, 0, 1, 0], [], []>} : vector<8x8xf32>, vector<8x8xf32>, vector<8x8xf32> -> vector<8x8xf32>
    %45 = vector.broadcast %20 : vector<1x8xf32> to vector<8x8xf32>
    %46 = arith.addf %44, %45 : vector<8x8xf32>
    %cst_25 = arith.constant dense<0xFF800000> : vector<8xf32>
    %47 = vector.multi_reduction <maximumf>, %46, %cst_25 [1] : vector<8x8xf32> to vector<8xf32>
    %48 = vector.shape_cast %47 : vector<8xf32> to vector<8x1xf32>
    %49 = vector.broadcast %48 : vector<8x1xf32> to vector<8x8xf32>
    %50 = arith.subf %46, %49 : vector<8x8xf32>
    %51 = math.exp %50 : vector<8x8xf32>
    %cst_26 = arith.constant dense<0.000000e+00> : vector<8xf32>
    %52 = vector.multi_reduction <add>, %51, %cst_26 [1] : vector<8x8xf32> to vector<8xf32>
    %53 = vector.shape_cast %52 : vector<8xf32> to vector<8x1xf32>
    %54 = tpu.reciprocal %53 {approx = true} : vector<8x1xf32> -> vector<8x1xf32>
    %55 = vector.broadcast %54 : vector<8x1xf32> to vector<8x8xf32>
    %56 = arith.mulf %51, %55 : vector<8x8xf32>
    %cst_27 = arith.constant dense<0.000000e+00> : vector<8x8xf32>
    %57 = tpu.matmul %56, %43, %cst_27 {dimension_numbers = #tpu.dot_dimension_numbers<[1], [0], [0], [1], [0, 0, 1, 1], [], []>} : vector<8x8xf32>, vector<8x8xf32>, vector<8x8xf32> -> vector<8x8xf32>
    %58 = vector.extract_strided_slice %23 {offsets = [0, 16], sizes = [8, 8], strides = [1, 1]} : vector<8x32xf32> to vector<8x8xf32>
    %59 = vector.extract_strided_slice %9 {offsets = [0, 48], sizes = [8, 8], strides = [1, 1]} : vector<8x64xf32> to vector<8x8xf32>
    %60 = vector.extract_strided_slice %14 {offsets = [0, 16], sizes = [8, 8], strides = [1, 1]} : vector<8x32xf32> to vector<8x8xf32>
    %cst_28 = arith.constant dense<0.000000e+00> : vector<8x8xf32>
    %61 = tpu.matmul %58, %59, %cst_28 {dimension_numbers = #tpu.dot_dimension_numbers<[1], [1], [0], [0], [0, 0, 1, 0], [], []>} : vector<8x8xf32>, vector<8x8xf32>, vector<8x8xf32> -> vector<8x8xf32>
    %62 = vector.broadcast %20 : vector<1x8xf32> to vector<8x8xf32>
    %63 = arith.addf %61, %62 : vector<8x8xf32>
    %cst_29 = arith.constant dense<0xFF800000> : vector<8xf32>
    %64 = vector.multi_reduction <maximumf>, %63, %cst_29 [1] : vector<8x8xf32> to vector<8xf32>
    %65 = vector.shape_cast %64 : vector<8xf32> to vector<8x1xf32>
    %66 = vector.broadcast %65 : vector<8x1xf32> to vector<8x8xf32>
    %67 = arith.subf %63, %66 : vector<8x8xf32>
    %68 = math.exp %67 : vector<8x8xf32>
    %cst_30 = arith.constant dense<0.000000e+00> : vector<8xf32>
    %69 = vector.multi_reduction <add>, %68, %cst_30 [1] : vector<8x8xf32> to vector<8xf32>
    %70 = vector.shape_cast %69 : vector<8xf32> to vector<8x1xf32>
    %71 = tpu.reciprocal %70 {approx = true} : vector<8x1xf32> -> vector<8x1xf32>
    %72 = vector.broadcast %71 : vector<8x1xf32> to vector<8x8xf32>
    %73 = arith.mulf %68, %72 : vector<8x8xf32>
    %cst_31 = arith.constant dense<0.000000e+00> : vector<8x8xf32>
    %74 = tpu.matmul %73, %60, %cst_31 {dimension_numbers = #tpu.dot_dimension_numbers<[1], [0], [0], [1], [0, 0, 1, 1], [], []>} : vector<8x8xf32>, vector<8x8xf32>, vector<8x8xf32> -> vector<8x8xf32>
    %75 = vector.extract_strided_slice %23 {offsets = [0, 24], sizes = [8, 8], strides = [1, 1]} : vector<8x32xf32> to vector<8x8xf32>
    %76 = vector.extract_strided_slice %9 {offsets = [0, 56], sizes = [8, 8], strides = [1, 1]} : vector<8x64xf32> to vector<8x8xf32>
    %77 = vector.extract_strided_slice %14 {offsets = [0, 24], sizes = [8, 8], strides = [1, 1]} : vector<8x32xf32> to vector<8x8xf32>
    %cst_32 = arith.constant dense<0.000000e+00> : vector<8x8xf32>
    %78 = tpu.matmul %75, %76, %cst_32 {dimension_numbers = #tpu.dot_dimension_numbers<[1], [1], [0], [0], [0, 0, 1, 0], [], []>} : vector<8x8xf32>, vector<8x8xf32>, vector<8x8xf32> -> vector<8x8xf32>
    %79 = vector.broadcast %20 : vector<1x8xf32> to vector<8x8xf32>
    %80 = arith.addf %78, %79 : vector<8x8xf32>
    %cst_33 = arith.constant dense<0xFF800000> : vector<8xf32>
    %81 = vector.multi_reduction <maximumf>, %80, %cst_33 [1] : vector<8x8xf32> to vector<8xf32>
    %82 = vector.shape_cast %81 : vector<8xf32> to vector<8x1xf32>
    %83 = vector.broadcast %82 : vector<8x1xf32> to vector<8x8xf32>
    %84 = arith.subf %80, %83 : vector<8x8xf32>
    %85 = math.exp %84 : vector<8x8xf32>
    %cst_34 = arith.constant dense<0.000000e+00> : vector<8xf32>
    %86 = vector.multi_reduction <add>, %85, %cst_34 [1] : vector<8x8xf32> to vector<8xf32>
    %87 = vector.shape_cast %86 : vector<8xf32> to vector<8x1xf32>
    %88 = tpu.reciprocal %87 {approx = true} : vector<8x1xf32> -> vector<8x1xf32>
    %89 = vector.broadcast %88 : vector<8x1xf32> to vector<8x8xf32>
    %90 = arith.mulf %85, %89 : vector<8x8xf32>
    %cst_35 = arith.constant dense<0.000000e+00> : vector<8x8xf32>
    %91 = tpu.matmul %90, %77, %cst_35 {dimension_numbers = #tpu.dot_dimension_numbers<[1], [0], [0], [1], [0, 0, 1, 1], [], []>} : vector<8x8xf32>, vector<8x8xf32>, vector<8x8xf32> -> vector<8x8xf32>
    %92 = tpu.concatenate %40, %57, %74, %91 in 1 : vector<8x8xf32>, vector<8x8xf32>, vector<8x8xf32>, vector<8x8xf32> -> vector<8x32xf32>
    %c0_36 = arith.constant 0 : index
    %c0_37 = arith.constant 0 : index
    %93 = vector.load %arg12[%c0_36, %c0_37] : memref<32x32xf32, #tpu.memory_space<vmem>>, vector<32x32xf32>
    %cst_38 = arith.constant dense<0.000000e+00> : vector<8x32xf32>
    %94 = tpu.matmul %92, %93, %cst_38 {dimension_numbers = #tpu.dot_dimension_numbers<[1], [0], [0], [1], [0, 0, 1, 1], [], []>} : vector<8x32xf32>, vector<32x32xf32>, vector<8x32xf32> -> vector<8x32xf32>
    %c0_39 = arith.constant 0 : index
    %c0_40 = arith.constant 0 : index
    %95 = vector.load %arg13[%c0_39, %c0_40] : memref<1x32xf32, #tpu.memory_space<vmem>>, vector<1x32xf32>
    %96 = vector.broadcast %95 : vector<1x32xf32> to vector<8x32xf32>
    %97 = arith.addf %94, %96 : vector<8x32xf32>
    %98 = arith.addf %1, %97 : vector<8x32xf32>
    %cst_41 = arith.constant dense<0.000000e+00> : vector<8xf32>
    %99 = vector.multi_reduction <add>, %98, %cst_41 [1] : vector<8x32xf32> to vector<8xf32>
    %100 = vector.shape_cast %99 : vector<8xf32> to vector<8x1xf32>
    %cst_42 = arith.constant 3.200000e+01 : f32
    %101 = vector.broadcast %cst_42 : f32 to vector<8x1xf32>
    %102 = arith.divf %100, %101 : vector<8x1xf32>
    %103 = vector.broadcast %102 : vector<8x1xf32> to vector<8x32xf32>
    %104 = arith.subf %98, %103 : vector<8x32xf32>
    %105 = arith.mulf %104, %104 : vector<8x32xf32>
    %cst_43 = arith.constant dense<0.000000e+00> : vector<8xf32>
    %106 = vector.multi_reduction <add>, %105, %cst_43 [1] : vector<8x32xf32> to vector<8xf32>
    %107 = vector.shape_cast %106 : vector<8xf32> to vector<8x1xf32>
    %cst_44 = arith.constant 3.200000e+01 : f32
    %108 = vector.broadcast %cst_44 : f32 to vector<8x1xf32>
    %109 = arith.divf %107, %108 : vector<8x1xf32>
    %110 = vector.broadcast %102 : vector<8x1xf32> to vector<8x32xf32>
    %111 = arith.subf %98, %110 : vector<8x32xf32>
    %cst_45 = arith.constant 9.99999974E-6 : f32
    %112 = vector.broadcast %cst_45 : f32 to vector<8x1xf32>
    %113 = arith.addf %109, %112 : vector<8x1xf32>
    %114 = math.rsqrt %113 : vector<8x1xf32>
    %115 = vector.broadcast %114 : vector<8x1xf32> to vector<8x32xf32>
    %116 = arith.mulf %111, %115 : vector<8x32xf32>
    %c0_46 = arith.constant 0 : index
    %c0_47 = arith.constant 0 : index
    %117 = vector.load %arg14[%c0_46, %c0_47] : memref<1x32xf32, #tpu.memory_space<vmem>>, vector<1x32xf32>
    %118 = vector.broadcast %117 : vector<1x32xf32> to vector<8x32xf32>
    %119 = arith.mulf %116, %118 : vector<8x32xf32>
    %c0_48 = arith.constant 0 : index
    %c0_49 = arith.constant 0 : index
    %120 = vector.load %arg15[%c0_48, %c0_49] : memref<1x32xf32, #tpu.memory_space<vmem>>, vector<1x32xf32>
    %121 = vector.broadcast %120 : vector<1x32xf32> to vector<8x32xf32>
    %122 = arith.addf %119, %121 : vector<8x32xf32>
    %123 = arith.addf %122, %3 : vector<8x32xf32>
    %c0_50 = arith.constant 0 : index
    %c0_51 = arith.constant 0 : index
    %124 = vector.load %arg18[%c0_50, %c0_51] : memref<32x32xf32, #tpu.memory_space<vmem>>, vector<32x32xf32>
    %cst_52 = arith.constant dense<0.000000e+00> : vector<8x32xf32>
    %125 = tpu.matmul %123, %124, %cst_52 {dimension_numbers = #tpu.dot_dimension_numbers<[1], [0], [0], [1], [0, 0, 1, 1], [], []>} : vector<8x32xf32>, vector<32x32xf32>, vector<8x32xf32> -> vector<8x32xf32>
    %c0_53 = arith.constant 0 : index
    %c0_54 = arith.constant 0 : index
    %126 = vector.load %arg19[%c0_53, %c0_54] : memref<1x32xf32, #tpu.memory_space<vmem>>, vector<1x32xf32>
    %127 = vector.broadcast %126 : vector<1x32xf32> to vector<8x32xf32>
    %128 = arith.addf %125, %127 : vector<8x32xf32>
    %129 = vector.extract_strided_slice %128 {offsets = [0, 16], sizes = [8, 4], strides = [1, 1]} : vector<8x32xf32> to vector<8x4xf32>
    %cst_55 = arith.constant dense<0xFF800000> : vector<8xf32>
    %130 = vector.multi_reduction <maximumf>, %129, %cst_55 [1] : vector<8x4xf32> to vector<8xf32>
    %131 = vector.shape_cast %130 : vector<8xf32> to vector<8x1xf32>
    %132 = vector.broadcast %131 : vector<8x1xf32> to vector<8x4xf32>
    %133 = arith.subf %129, %132 : vector<8x4xf32>
    %134 = math.exp %133 : vector<8x4xf32>
    %cst_56 = arith.constant dense<0.000000e+00> : vector<8xf32>
    %135 = vector.multi_reduction <add>, %134, %cst_56 [1] : vector<8x4xf32> to vector<8xf32>
    %136 = vector.shape_cast %135 : vector<8xf32> to vector<8x1xf32>
    %137 = tpu.reciprocal %136 {approx = true} : vector<8x1xf32> -> vector<8x1xf32>
    %138 = vector.broadcast %137 : vector<8x1xf32> to vector<8x4xf32>
    %139 = arith.mulf %134, %138 : vector<8x4xf32>
    %140 = vector.extract_strided_slice %128 {offsets = [0, 20], sizes = [8, 4], strides = [1, 1]} : vector<8x32xf32> to vector<8x4xf32>
    %cst_57 = arith.constant dense<0xFF800000> : vector<8xf32>
    %141 = vector.multi_reduction <maximumf>, %140, %cst_57 [1] : vector<8x4xf32> to vector<8xf32>
    %142 = vector.shape_cast %141 : vector<8xf32> to vector<8x1xf32>
    %143 = vector.broadcast %142 : vector<8x1xf32> to vector<8x4xf32>
    %144 = arith.subf %140, %143 : vector<8x4xf32>
    %145 = math.exp %144 : vector<8x4xf32>
    %cst_58 = arith.constant dense<0.000000e+00> : vector<8xf32>
    %146 = vector.multi_reduction <add>, %145, %cst_58 [1] : vector<8x4xf32> to vector<8xf32>
    %147 = vector.shape_cast %146 : vector<8xf32> to vector<8x1xf32>
    %148 = tpu.reciprocal %147 {approx = true} : vector<8x1xf32> -> vector<8x1xf32>
    %149 = vector.broadcast %148 : vector<8x1xf32> to vector<8x4xf32>
    %150 = arith.mulf %145, %149 : vector<8x4xf32>
    %151 = vector.extract_strided_slice %128 {offsets = [0, 24], sizes = [8, 4], strides = [1, 1]} : vector<8x32xf32> to vector<8x4xf32>
    %cst_59 = arith.constant dense<0xFF800000> : vector<8xf32>
    %152 = vector.multi_reduction <maximumf>, %151, %cst_59 [1] : vector<8x4xf32> to vector<8xf32>
    %153 = vector.shape_cast %152 : vector<8xf32> to vector<8x1xf32>
    %154 = vector.broadcast %153 : vector<8x1xf32> to vector<8x4xf32>
    %155 = arith.subf %151, %154 : vector<8x4xf32>
    %156 = math.exp %155 : vector<8x4xf32>
    %cst_60 = arith.constant dense<0.000000e+00> : vector<8xf32>
    %157 = vector.multi_reduction <add>, %156, %cst_60 [1] : vector<8x4xf32> to vector<8xf32>
    %158 = vector.shape_cast %157 : vector<8xf32> to vector<8x1xf32>
    %159 = tpu.reciprocal %158 {approx = true} : vector<8x1xf32> -> vector<8x1xf32>
    %160 = vector.broadcast %159 : vector<8x1xf32> to vector<8x4xf32>
    %161 = arith.mulf %156, %160 : vector<8x4xf32>
    %162 = vector.extract_strided_slice %128 {offsets = [0, 28], sizes = [8, 4], strides = [1, 1]} : vector<8x32xf32> to vector<8x4xf32>
    %cst_61 = arith.constant dense<0xFF800000> : vector<8xf32>
    %163 = vector.multi_reduction <maximumf>, %162, %cst_61 [1] : vector<8x4xf32> to vector<8xf32>
    %164 = vector.shape_cast %163 : vector<8xf32> to vector<8x1xf32>
    %165 = vector.broadcast %164 : vector<8x1xf32> to vector<8x4xf32>
    %166 = arith.subf %162, %165 : vector<8x4xf32>
    %167 = math.exp %166 : vector<8x4xf32>
    %cst_62 = arith.constant dense<0.000000e+00> : vector<8xf32>
    %168 = vector.multi_reduction <add>, %167, %cst_62 [1] : vector<8x4xf32> to vector<8xf32>
    %169 = vector.shape_cast %168 : vector<8xf32> to vector<8x1xf32>
    %170 = tpu.reciprocal %169 {approx = true} : vector<8x1xf32> -> vector<8x1xf32>
    %171 = vector.broadcast %170 : vector<8x1xf32> to vector<8x4xf32>
    %172 = arith.mulf %167, %171 : vector<8x4xf32>
    %c0_63 = arith.constant 0 : index
    %c0_64 = arith.constant 0 : index
    %c0_65 = arith.constant 0 : index
    %173 = vector.load %arg6[%c0_63, %c0_64, %c0_65] : memref<1x42x32xf32, #tpu.memory_space<vmem>>, vector<1x42x32xf32>
    %174 = vector.shape_cast %173 : vector<1x42x32xf32> to vector<42x32xf32>
    %c0_66 = arith.constant 0 : index
    %c0_67 = arith.constant 0 : index
    %c0_68 = arith.constant 0 : index
    %175 = vector.load %arg7[%c0_66, %c0_67, %c0_68] : memref<1x42x1xf32, #tpu.memory_space<vmem>>, vector<1x42x1xf32>
    %176 = vector.shape_cast %175 : vector<1x42x1xf32> to vector<42x1xf32>
    %c0_69 = arith.constant 0 : index
    %c0_70 = arith.constant 0 : index
    %177 = vector.load %arg16[%c0_69, %c0_70] : memref<32x32xf32, #tpu.memory_space<vmem>>, vector<32x32xf32>
    %cst_71 = arith.constant dense<0.000000e+00> : vector<42x32xf32>
    %178 = tpu.matmul %174, %177, %cst_71 {dimension_numbers = #tpu.dot_dimension_numbers<[1], [0], [0], [1], [0, 0, 1, 1], [], []>} : vector<42x32xf32>, vector<32x32xf32>, vector<42x32xf32> -> vector<42x32xf32>
    %c0_72 = arith.constant 0 : index
    %c0_73 = arith.constant 0 : index
    %179 = vector.load %arg17[%c0_72, %c0_73] : memref<1x32xf32, #tpu.memory_space<vmem>>, vector<1x32xf32>
    %180 = vector.broadcast %179 : vector<1x32xf32> to vector<42x32xf32>
    %181 = arith.addf %178, %180 : vector<42x32xf32>
    %cst_74 = arith.constant 1.000000e+00 : f32
    %182 = vector.broadcast %cst_74 : f32 to vector<42x1xf32>
    %183 = arith.subf %182, %176 : vector<42x1xf32>
    %184 = vector.broadcast %183 : vector<42x1xf32> to vector<42x32xf32>
    %185 = arith.mulf %181, %184 : vector<42x32xf32>
    %186 = vector.extract_strided_slice %185 {offsets = [0, 0], sizes = [24, 32], strides = [1, 1]} : vector<42x32xf32> to vector<24x32xf32>
    %c0_75 = arith.constant 0 : index
    %c0_76 = arith.constant 0 : index
    %c0_77 = arith.constant 0 : index
    %187 = vector.load %arg4[%c0_75, %c0_76, %c0_77] : memref<1x8x2xf32, #tpu.memory_space<vmem>>, vector<1x8x2xf32>
    %188 = vector.shape_cast %187 : vector<1x8x2xf32> to vector<8x2xf32>
    %cst_78 = arith.constant 0.000000e+00 : f32
    %189 = vector.broadcast %cst_78 : f32 to vector<8x8xf32>
    %190 = vector.extract_strided_slice %186 {offsets = [0, 0], sizes = [16, 8], strides = [1, 1]} : vector<24x32xf32> to vector<16x8xf32>
    %191 = vector.extract_strided_slice %188 {offsets = [0, 0], sizes = [8, 1], strides = [1, 1]} : vector<8x2xf32> to vector<8x1xf32>
    %cst_79 = arith.constant 1.600000e+01 : f32
    %192 = vector.broadcast %cst_79 : f32 to vector<8x1xf32>
    %193 = arith.mulf %191, %192 : vector<8x1xf32>
    %cst_80 = arith.constant 5.000000e-01 : f32
    %194 = vector.broadcast %cst_80 : f32 to vector<8x1xf32>
    %195 = arith.subf %193, %194 : vector<8x1xf32>
    %196 = vector.extract_strided_slice %128 {offsets = [0, 0], sizes = [8, 2], strides = [1, 1]} : vector<8x32xf32> to vector<8x2xf32>
    %197 = vector.broadcast %195 : vector<8x1xf32> to vector<8x2xf32>
    %198 = arith.addf %197, %196 : vector<8x2xf32>
    %199 = math.floor %198 : vector<8x2xf32>
    %200 = arith.subf %198, %199 : vector<8x2xf32>
    %201 = vector.shape_cast %200 : vector<8x2xf32> to vector<8x2x1xf32>
    %202 = arith.fptosi %199 : vector<8x2xf32> to vector<8x2xi32>
    %203 = vector.shape_cast %202 : vector<8x2xi32> to vector<8x2x1xi32>
    %204 = vector.extract_strided_slice %139 {offsets = [0, 0], sizes = [8, 2], strides = [1, 1]} : vector<8x4xf32> to vector<8x2xf32>
    %205 = vector.shape_cast %204 : vector<8x2xf32> to vector<8x2x1xf32>
    %206 = tpu.iota {dimensions = array<i32: 2>} : vector<8x2x16xi32>
    %207 = vector.broadcast %203 : vector<8x2x1xi32> to vector<8x2x16xi32>
    %208 = arith.cmpi eq, %206, %207 : vector<8x2x16xi32>
    %209 = arith.extui %208 : vector<8x2x16xi1> to vector<8x2x16xi32>
    %210 = arith.sitofp %209 : vector<8x2x16xi32> to vector<8x2x16xf32>
    %cst_81 = arith.constant 1.000000e+00 : f32
    %211 = vector.broadcast %cst_81 : f32 to vector<8x2x1xf32>
    %212 = arith.subf %211, %201 : vector<8x2x1xf32>
    %213 = vector.broadcast %212 : vector<8x2x1xf32> to vector<8x2x16xf32>
    %214 = arith.mulf %210, %213 : vector<8x2x16xf32>
    %c1_i32 = arith.constant 1 : i32
    %215 = vector.broadcast %c1_i32 : i32 to vector<8x2x1xi32>
    %216 = arith.addi %203, %215 : vector<8x2x1xi32>
    %217 = vector.broadcast %216 : vector<8x2x1xi32> to vector<8x2x16xi32>
    %218 = arith.cmpi eq, %206, %217 : vector<8x2x16xi32>
    %219 = arith.extui %218 : vector<8x2x16xi1> to vector<8x2x16xi32>
    %220 = arith.sitofp %219 : vector<8x2x16xi32> to vector<8x2x16xf32>
    %221 = vector.broadcast %201 : vector<8x2x1xf32> to vector<8x2x16xf32>
    %222 = arith.mulf %220, %221 : vector<8x2x16xf32>
    %223 = arith.addf %214, %222 : vector<8x2x16xf32>
    %224 = vector.broadcast %205 : vector<8x2x1xf32> to vector<8x2x16xf32>
    %225 = arith.mulf %223, %224 : vector<8x2x16xf32>
    %cst_82 = arith.constant dense<0.000000e+00> : vector<8x16xf32>
    %226 = vector.multi_reduction <add>, %225, %cst_82 [1] : vector<8x2x16xf32> to vector<8x16xf32>
    %cst_83 = arith.constant dense<0.000000e+00> : vector<8x8xf32>
    %227 = tpu.matmul %226, %190, %cst_83 {dimension_numbers = #tpu.dot_dimension_numbers<[1], [0], [0], [1], [0, 0, 1, 1], [], []>} : vector<8x16xf32>, vector<16x8xf32>, vector<8x8xf32> -> vector<8x8xf32>
    %228 = arith.addf %189, %227 : vector<8x8xf32>
    %229 = vector.extract_strided_slice %186 {offsets = [16, 0], sizes = [8, 8], strides = [1, 1]} : vector<24x32xf32> to vector<8x8xf32>
    %230 = vector.extract_strided_slice %188 {offsets = [0, 1], sizes = [8, 1], strides = [1, 1]} : vector<8x2xf32> to vector<8x1xf32>
    %cst_84 = arith.constant 8.000000e+00 : f32
    %231 = vector.broadcast %cst_84 : f32 to vector<8x1xf32>
    %232 = arith.mulf %230, %231 : vector<8x1xf32>
    %cst_85 = arith.constant 5.000000e-01 : f32
    %233 = vector.broadcast %cst_85 : f32 to vector<8x1xf32>
    %234 = arith.subf %232, %233 : vector<8x1xf32>
    %235 = vector.extract_strided_slice %128 {offsets = [0, 2], sizes = [8, 2], strides = [1, 1]} : vector<8x32xf32> to vector<8x2xf32>
    %236 = vector.broadcast %234 : vector<8x1xf32> to vector<8x2xf32>
    %237 = arith.addf %236, %235 : vector<8x2xf32>
    %238 = math.floor %237 : vector<8x2xf32>
    %239 = arith.subf %237, %238 : vector<8x2xf32>
    %240 = vector.shape_cast %239 : vector<8x2xf32> to vector<8x2x1xf32>
    %241 = arith.fptosi %238 : vector<8x2xf32> to vector<8x2xi32>
    %242 = vector.shape_cast %241 : vector<8x2xi32> to vector<8x2x1xi32>
    %243 = vector.extract_strided_slice %139 {offsets = [0, 2], sizes = [8, 2], strides = [1, 1]} : vector<8x4xf32> to vector<8x2xf32>
    %244 = vector.shape_cast %243 : vector<8x2xf32> to vector<8x2x1xf32>
    %245 = tpu.iota {dimensions = array<i32: 2>} : vector<8x2x8xi32>
    %246 = vector.broadcast %242 : vector<8x2x1xi32> to vector<8x2x8xi32>
    %247 = arith.cmpi eq, %245, %246 : vector<8x2x8xi32>
    %248 = arith.extui %247 : vector<8x2x8xi1> to vector<8x2x8xi32>
    %249 = arith.sitofp %248 : vector<8x2x8xi32> to vector<8x2x8xf32>
    %cst_86 = arith.constant 1.000000e+00 : f32
    %250 = vector.broadcast %cst_86 : f32 to vector<8x2x1xf32>
    %251 = arith.subf %250, %240 : vector<8x2x1xf32>
    %252 = vector.broadcast %251 : vector<8x2x1xf32> to vector<8x2x8xf32>
    %253 = arith.mulf %249, %252 : vector<8x2x8xf32>
    %c1_i32_87 = arith.constant 1 : i32
    %254 = vector.broadcast %c1_i32_87 : i32 to vector<8x2x1xi32>
    %255 = arith.addi %242, %254 : vector<8x2x1xi32>
    %256 = vector.broadcast %255 : vector<8x2x1xi32> to vector<8x2x8xi32>
    %257 = arith.cmpi eq, %245, %256 : vector<8x2x8xi32>
    %258 = arith.extui %257 : vector<8x2x8xi1> to vector<8x2x8xi32>
    %259 = arith.sitofp %258 : vector<8x2x8xi32> to vector<8x2x8xf32>
    %260 = vector.broadcast %240 : vector<8x2x1xf32> to vector<8x2x8xf32>
    %261 = arith.mulf %259, %260 : vector<8x2x8xf32>
    %262 = arith.addf %253, %261 : vector<8x2x8xf32>
    %263 = vector.broadcast %244 : vector<8x2x1xf32> to vector<8x2x8xf32>
    %264 = arith.mulf %262, %263 : vector<8x2x8xf32>
    %cst_88 = arith.constant dense<0.000000e+00> : vector<8x8xf32>
    %265 = vector.multi_reduction <add>, %264, %cst_88 [1] : vector<8x2x8xf32> to vector<8x8xf32>
    %cst_89 = arith.constant dense<0.000000e+00> : vector<8x8xf32>
    %266 = tpu.matmul %265, %229, %cst_89 {dimension_numbers = #tpu.dot_dimension_numbers<[1], [0], [0], [1], [0, 0, 1, 1], [], []>} : vector<8x8xf32>, vector<8x8xf32>, vector<8x8xf32> -> vector<8x8xf32>
    %267 = arith.addf %228, %266 : vector<8x8xf32>
    %cst_90 = arith.constant 0.000000e+00 : f32
    %268 = vector.broadcast %cst_90 : f32 to vector<8x8xf32>
    %269 = vector.extract_strided_slice %186 {offsets = [0, 8], sizes = [16, 8], strides = [1, 1]} : vector<24x32xf32> to vector<16x8xf32>
    %270 = vector.extract_strided_slice %188 {offsets = [0, 0], sizes = [8, 1], strides = [1, 1]} : vector<8x2xf32> to vector<8x1xf32>
    %cst_91 = arith.constant 1.600000e+01 : f32
    %271 = vector.broadcast %cst_91 : f32 to vector<8x1xf32>
    %272 = arith.mulf %270, %271 : vector<8x1xf32>
    %cst_92 = arith.constant 5.000000e-01 : f32
    %273 = vector.broadcast %cst_92 : f32 to vector<8x1xf32>
    %274 = arith.subf %272, %273 : vector<8x1xf32>
    %275 = vector.extract_strided_slice %128 {offsets = [0, 4], sizes = [8, 2], strides = [1, 1]} : vector<8x32xf32> to vector<8x2xf32>
    %276 = vector.broadcast %274 : vector<8x1xf32> to vector<8x2xf32>
    %277 = arith.addf %276, %275 : vector<8x2xf32>
    %278 = math.floor %277 : vector<8x2xf32>
    %279 = arith.subf %277, %278 : vector<8x2xf32>
    %280 = vector.shape_cast %279 : vector<8x2xf32> to vector<8x2x1xf32>
    %281 = arith.fptosi %278 : vector<8x2xf32> to vector<8x2xi32>
    %282 = vector.shape_cast %281 : vector<8x2xi32> to vector<8x2x1xi32>
    %283 = vector.extract_strided_slice %150 {offsets = [0, 0], sizes = [8, 2], strides = [1, 1]} : vector<8x4xf32> to vector<8x2xf32>
    %284 = vector.shape_cast %283 : vector<8x2xf32> to vector<8x2x1xf32>
    %285 = tpu.iota {dimensions = array<i32: 2>} : vector<8x2x16xi32>
    %286 = vector.broadcast %282 : vector<8x2x1xi32> to vector<8x2x16xi32>
    %287 = arith.cmpi eq, %285, %286 : vector<8x2x16xi32>
    %288 = arith.extui %287 : vector<8x2x16xi1> to vector<8x2x16xi32>
    %289 = arith.sitofp %288 : vector<8x2x16xi32> to vector<8x2x16xf32>
    %cst_93 = arith.constant 1.000000e+00 : f32
    %290 = vector.broadcast %cst_93 : f32 to vector<8x2x1xf32>
    %291 = arith.subf %290, %280 : vector<8x2x1xf32>
    %292 = vector.broadcast %291 : vector<8x2x1xf32> to vector<8x2x16xf32>
    %293 = arith.mulf %289, %292 : vector<8x2x16xf32>
    %c1_i32_94 = arith.constant 1 : i32
    %294 = vector.broadcast %c1_i32_94 : i32 to vector<8x2x1xi32>
    %295 = arith.addi %282, %294 : vector<8x2x1xi32>
    %296 = vector.broadcast %295 : vector<8x2x1xi32> to vector<8x2x16xi32>
    %297 = arith.cmpi eq, %285, %296 : vector<8x2x16xi32>
    %298 = arith.extui %297 : vector<8x2x16xi1> to vector<8x2x16xi32>
    %299 = arith.sitofp %298 : vector<8x2x16xi32> to vector<8x2x16xf32>
    %300 = vector.broadcast %280 : vector<8x2x1xf32> to vector<8x2x16xf32>
    %301 = arith.mulf %299, %300 : vector<8x2x16xf32>
    %302 = arith.addf %293, %301 : vector<8x2x16xf32>
    %303 = vector.broadcast %284 : vector<8x2x1xf32> to vector<8x2x16xf32>
    %304 = arith.mulf %302, %303 : vector<8x2x16xf32>
    %cst_95 = arith.constant dense<0.000000e+00> : vector<8x16xf32>
    %305 = vector.multi_reduction <add>, %304, %cst_95 [1] : vector<8x2x16xf32> to vector<8x16xf32>
    %cst_96 = arith.constant dense<0.000000e+00> : vector<8x8xf32>
    %306 = tpu.matmul %305, %269, %cst_96 {dimension_numbers = #tpu.dot_dimension_numbers<[1], [0], [0], [1], [0, 0, 1, 1], [], []>} : vector<8x16xf32>, vector<16x8xf32>, vector<8x8xf32> -> vector<8x8xf32>
    %307 = arith.addf %268, %306 : vector<8x8xf32>
    %308 = vector.extract_strided_slice %186 {offsets = [16, 8], sizes = [8, 8], strides = [1, 1]} : vector<24x32xf32> to vector<8x8xf32>
    %309 = vector.extract_strided_slice %188 {offsets = [0, 1], sizes = [8, 1], strides = [1, 1]} : vector<8x2xf32> to vector<8x1xf32>
    %cst_97 = arith.constant 8.000000e+00 : f32
    %310 = vector.broadcast %cst_97 : f32 to vector<8x1xf32>
    %311 = arith.mulf %309, %310 : vector<8x1xf32>
    %cst_98 = arith.constant 5.000000e-01 : f32
    %312 = vector.broadcast %cst_98 : f32 to vector<8x1xf32>
    %313 = arith.subf %311, %312 : vector<8x1xf32>
    %314 = vector.extract_strided_slice %128 {offsets = [0, 6], sizes = [8, 2], strides = [1, 1]} : vector<8x32xf32> to vector<8x2xf32>
    %315 = vector.broadcast %313 : vector<8x1xf32> to vector<8x2xf32>
    %316 = arith.addf %315, %314 : vector<8x2xf32>
    %317 = math.floor %316 : vector<8x2xf32>
    %318 = arith.subf %316, %317 : vector<8x2xf32>
    %319 = vector.shape_cast %318 : vector<8x2xf32> to vector<8x2x1xf32>
    %320 = arith.fptosi %317 : vector<8x2xf32> to vector<8x2xi32>
    %321 = vector.shape_cast %320 : vector<8x2xi32> to vector<8x2x1xi32>
    %322 = vector.extract_strided_slice %150 {offsets = [0, 2], sizes = [8, 2], strides = [1, 1]} : vector<8x4xf32> to vector<8x2xf32>
    %323 = vector.shape_cast %322 : vector<8x2xf32> to vector<8x2x1xf32>
    %324 = tpu.iota {dimensions = array<i32: 2>} : vector<8x2x8xi32>
    %325 = vector.broadcast %321 : vector<8x2x1xi32> to vector<8x2x8xi32>
    %326 = arith.cmpi eq, %324, %325 : vector<8x2x8xi32>
    %327 = arith.extui %326 : vector<8x2x8xi1> to vector<8x2x8xi32>
    %328 = arith.sitofp %327 : vector<8x2x8xi32> to vector<8x2x8xf32>
    %cst_99 = arith.constant 1.000000e+00 : f32
    %329 = vector.broadcast %cst_99 : f32 to vector<8x2x1xf32>
    %330 = arith.subf %329, %319 : vector<8x2x1xf32>
    %331 = vector.broadcast %330 : vector<8x2x1xf32> to vector<8x2x8xf32>
    %332 = arith.mulf %328, %331 : vector<8x2x8xf32>
    %c1_i32_100 = arith.constant 1 : i32
    %333 = vector.broadcast %c1_i32_100 : i32 to vector<8x2x1xi32>
    %334 = arith.addi %321, %333 : vector<8x2x1xi32>
    %335 = vector.broadcast %334 : vector<8x2x1xi32> to vector<8x2x8xi32>
    %336 = arith.cmpi eq, %324, %335 : vector<8x2x8xi32>
    %337 = arith.extui %336 : vector<8x2x8xi1> to vector<8x2x8xi32>
    %338 = arith.sitofp %337 : vector<8x2x8xi32> to vector<8x2x8xf32>
    %339 = vector.broadcast %319 : vector<8x2x1xf32> to vector<8x2x8xf32>
    %340 = arith.mulf %338, %339 : vector<8x2x8xf32>
    %341 = arith.addf %332, %340 : vector<8x2x8xf32>
    %342 = vector.broadcast %323 : vector<8x2x1xf32> to vector<8x2x8xf32>
    %343 = arith.mulf %341, %342 : vector<8x2x8xf32>
    %cst_101 = arith.constant dense<0.000000e+00> : vector<8x8xf32>
    %344 = vector.multi_reduction <add>, %343, %cst_101 [1] : vector<8x2x8xf32> to vector<8x8xf32>
    %cst_102 = arith.constant dense<0.000000e+00> : vector<8x8xf32>
    %345 = tpu.matmul %344, %308, %cst_102 {dimension_numbers = #tpu.dot_dimension_numbers<[1], [0], [0], [1], [0, 0, 1, 1], [], []>} : vector<8x8xf32>, vector<8x8xf32>, vector<8x8xf32> -> vector<8x8xf32>
    %346 = arith.addf %307, %345 : vector<8x8xf32>
    %cst_103 = arith.constant 0.000000e+00 : f32
    %347 = vector.broadcast %cst_103 : f32 to vector<8x8xf32>
    %348 = vector.extract_strided_slice %186 {offsets = [0, 16], sizes = [16, 8], strides = [1, 1]} : vector<24x32xf32> to vector<16x8xf32>
    %349 = vector.extract_strided_slice %188 {offsets = [0, 0], sizes = [8, 1], strides = [1, 1]} : vector<8x2xf32> to vector<8x1xf32>
    %cst_104 = arith.constant 1.600000e+01 : f32
    %350 = vector.broadcast %cst_104 : f32 to vector<8x1xf32>
    %351 = arith.mulf %349, %350 : vector<8x1xf32>
    %cst_105 = arith.constant 5.000000e-01 : f32
    %352 = vector.broadcast %cst_105 : f32 to vector<8x1xf32>
    %353 = arith.subf %351, %352 : vector<8x1xf32>
    %354 = vector.extract_strided_slice %128 {offsets = [0, 8], sizes = [8, 2], strides = [1, 1]} : vector<8x32xf32> to vector<8x2xf32>
    %355 = vector.broadcast %353 : vector<8x1xf32> to vector<8x2xf32>
    %356 = arith.addf %355, %354 : vector<8x2xf32>
    %357 = math.floor %356 : vector<8x2xf32>
    %358 = arith.subf %356, %357 : vector<8x2xf32>
    %359 = vector.shape_cast %358 : vector<8x2xf32> to vector<8x2x1xf32>
    %360 = arith.fptosi %357 : vector<8x2xf32> to vector<8x2xi32>
    %361 = vector.shape_cast %360 : vector<8x2xi32> to vector<8x2x1xi32>
    %362 = vector.extract_strided_slice %161 {offsets = [0, 0], sizes = [8, 2], strides = [1, 1]} : vector<8x4xf32> to vector<8x2xf32>
    %363 = vector.shape_cast %362 : vector<8x2xf32> to vector<8x2x1xf32>
    %364 = tpu.iota {dimensions = array<i32: 2>} : vector<8x2x16xi32>
    %365 = vector.broadcast %361 : vector<8x2x1xi32> to vector<8x2x16xi32>
    %366 = arith.cmpi eq, %364, %365 : vector<8x2x16xi32>
    %367 = arith.extui %366 : vector<8x2x16xi1> to vector<8x2x16xi32>
    %368 = arith.sitofp %367 : vector<8x2x16xi32> to vector<8x2x16xf32>
    %cst_106 = arith.constant 1.000000e+00 : f32
    %369 = vector.broadcast %cst_106 : f32 to vector<8x2x1xf32>
    %370 = arith.subf %369, %359 : vector<8x2x1xf32>
    %371 = vector.broadcast %370 : vector<8x2x1xf32> to vector<8x2x16xf32>
    %372 = arith.mulf %368, %371 : vector<8x2x16xf32>
    %c1_i32_107 = arith.constant 1 : i32
    %373 = vector.broadcast %c1_i32_107 : i32 to vector<8x2x1xi32>
    %374 = arith.addi %361, %373 : vector<8x2x1xi32>
    %375 = vector.broadcast %374 : vector<8x2x1xi32> to vector<8x2x16xi32>
    %376 = arith.cmpi eq, %364, %375 : vector<8x2x16xi32>
    %377 = arith.extui %376 : vector<8x2x16xi1> to vector<8x2x16xi32>
    %378 = arith.sitofp %377 : vector<8x2x16xi32> to vector<8x2x16xf32>
    %379 = vector.broadcast %359 : vector<8x2x1xf32> to vector<8x2x16xf32>
    %380 = arith.mulf %378, %379 : vector<8x2x16xf32>
    %381 = arith.addf %372, %380 : vector<8x2x16xf32>
    %382 = vector.broadcast %363 : vector<8x2x1xf32> to vector<8x2x16xf32>
    %383 = arith.mulf %381, %382 : vector<8x2x16xf32>
    %cst_108 = arith.constant dense<0.000000e+00> : vector<8x16xf32>
    %384 = vector.multi_reduction <add>, %383, %cst_108 [1] : vector<8x2x16xf32> to vector<8x16xf32>
    %cst_109 = arith.constant dense<0.000000e+00> : vector<8x8xf32>
    %385 = tpu.matmul %384, %348, %cst_109 {dimension_numbers = #tpu.dot_dimension_numbers<[1], [0], [0], [1], [0, 0, 1, 1], [], []>} : vector<8x16xf32>, vector<16x8xf32>, vector<8x8xf32> -> vector<8x8xf32>
    %386 = arith.addf %347, %385 : vector<8x8xf32>
    %387 = vector.extract_strided_slice %186 {offsets = [16, 16], sizes = [8, 8], strides = [1, 1]} : vector<24x32xf32> to vector<8x8xf32>
    %388 = vector.extract_strided_slice %188 {offsets = [0, 1], sizes = [8, 1], strides = [1, 1]} : vector<8x2xf32> to vector<8x1xf32>
    %cst_110 = arith.constant 8.000000e+00 : f32
    %389 = vector.broadcast %cst_110 : f32 to vector<8x1xf32>
    %390 = arith.mulf %388, %389 : vector<8x1xf32>
    %cst_111 = arith.constant 5.000000e-01 : f32
    %391 = vector.broadcast %cst_111 : f32 to vector<8x1xf32>
    %392 = arith.subf %390, %391 : vector<8x1xf32>
    %393 = vector.extract_strided_slice %128 {offsets = [0, 10], sizes = [8, 2], strides = [1, 1]} : vector<8x32xf32> to vector<8x2xf32>
    %394 = vector.broadcast %392 : vector<8x1xf32> to vector<8x2xf32>
    %395 = arith.addf %394, %393 : vector<8x2xf32>
    %396 = math.floor %395 : vector<8x2xf32>
    %397 = arith.subf %395, %396 : vector<8x2xf32>
    %398 = vector.shape_cast %397 : vector<8x2xf32> to vector<8x2x1xf32>
    %399 = arith.fptosi %396 : vector<8x2xf32> to vector<8x2xi32>
    %400 = vector.shape_cast %399 : vector<8x2xi32> to vector<8x2x1xi32>
    %401 = vector.extract_strided_slice %161 {offsets = [0, 2], sizes = [8, 2], strides = [1, 1]} : vector<8x4xf32> to vector<8x2xf32>
    %402 = vector.shape_cast %401 : vector<8x2xf32> to vector<8x2x1xf32>
    %403 = tpu.iota {dimensions = array<i32: 2>} : vector<8x2x8xi32>
    %404 = vector.broadcast %400 : vector<8x2x1xi32> to vector<8x2x8xi32>
    %405 = arith.cmpi eq, %403, %404 : vector<8x2x8xi32>
    %406 = arith.extui %405 : vector<8x2x8xi1> to vector<8x2x8xi32>
    %407 = arith.sitofp %406 : vector<8x2x8xi32> to vector<8x2x8xf32>
    %cst_112 = arith.constant 1.000000e+00 : f32
    %408 = vector.broadcast %cst_112 : f32 to vector<8x2x1xf32>
    %409 = arith.subf %408, %398 : vector<8x2x1xf32>
    %410 = vector.broadcast %409 : vector<8x2x1xf32> to vector<8x2x8xf32>
    %411 = arith.mulf %407, %410 : vector<8x2x8xf32>
    %c1_i32_113 = arith.constant 1 : i32
    %412 = vector.broadcast %c1_i32_113 : i32 to vector<8x2x1xi32>
    %413 = arith.addi %400, %412 : vector<8x2x1xi32>
    %414 = vector.broadcast %413 : vector<8x2x1xi32> to vector<8x2x8xi32>
    %415 = arith.cmpi eq, %403, %414 : vector<8x2x8xi32>
    %416 = arith.extui %415 : vector<8x2x8xi1> to vector<8x2x8xi32>
    %417 = arith.sitofp %416 : vector<8x2x8xi32> to vector<8x2x8xf32>
    %418 = vector.broadcast %398 : vector<8x2x1xf32> to vector<8x2x8xf32>
    %419 = arith.mulf %417, %418 : vector<8x2x8xf32>
    %420 = arith.addf %411, %419 : vector<8x2x8xf32>
    %421 = vector.broadcast %402 : vector<8x2x1xf32> to vector<8x2x8xf32>
    %422 = arith.mulf %420, %421 : vector<8x2x8xf32>
    %cst_114 = arith.constant dense<0.000000e+00> : vector<8x8xf32>
    %423 = vector.multi_reduction <add>, %422, %cst_114 [1] : vector<8x2x8xf32> to vector<8x8xf32>
    %cst_115 = arith.constant dense<0.000000e+00> : vector<8x8xf32>
    %424 = tpu.matmul %423, %387, %cst_115 {dimension_numbers = #tpu.dot_dimension_numbers<[1], [0], [0], [1], [0, 0, 1, 1], [], []>} : vector<8x8xf32>, vector<8x8xf32>, vector<8x8xf32> -> vector<8x8xf32>
    %425 = arith.addf %386, %424 : vector<8x8xf32>
    %cst_116 = arith.constant 0.000000e+00 : f32
    %426 = vector.broadcast %cst_116 : f32 to vector<8x8xf32>
    %427 = vector.extract_strided_slice %186 {offsets = [0, 24], sizes = [16, 8], strides = [1, 1]} : vector<24x32xf32> to vector<16x8xf32>
    %428 = vector.extract_strided_slice %188 {offsets = [0, 0], sizes = [8, 1], strides = [1, 1]} : vector<8x2xf32> to vector<8x1xf32>
    %cst_117 = arith.constant 1.600000e+01 : f32
    %429 = vector.broadcast %cst_117 : f32 to vector<8x1xf32>
    %430 = arith.mulf %428, %429 : vector<8x1xf32>
    %cst_118 = arith.constant 5.000000e-01 : f32
    %431 = vector.broadcast %cst_118 : f32 to vector<8x1xf32>
    %432 = arith.subf %430, %431 : vector<8x1xf32>
    %433 = vector.extract_strided_slice %128 {offsets = [0, 12], sizes = [8, 2], strides = [1, 1]} : vector<8x32xf32> to vector<8x2xf32>
    %434 = vector.broadcast %432 : vector<8x1xf32> to vector<8x2xf32>
    %435 = arith.addf %434, %433 : vector<8x2xf32>
    %436 = math.floor %435 : vector<8x2xf32>
    %437 = arith.subf %435, %436 : vector<8x2xf32>
    %438 = vector.shape_cast %437 : vector<8x2xf32> to vector<8x2x1xf32>
    %439 = arith.fptosi %436 : vector<8x2xf32> to vector<8x2xi32>
    %440 = vector.shape_cast %439 : vector<8x2xi32> to vector<8x2x1xi32>
    %441 = vector.extract_strided_slice %172 {offsets = [0, 0], sizes = [8, 2], strides = [1, 1]} : vector<8x4xf32> to vector<8x2xf32>
    %442 = vector.shape_cast %441 : vector<8x2xf32> to vector<8x2x1xf32>
    %443 = tpu.iota {dimensions = array<i32: 2>} : vector<8x2x16xi32>
    %444 = vector.broadcast %440 : vector<8x2x1xi32> to vector<8x2x16xi32>
    %445 = arith.cmpi eq, %443, %444 : vector<8x2x16xi32>
    %446 = arith.extui %445 : vector<8x2x16xi1> to vector<8x2x16xi32>
    %447 = arith.sitofp %446 : vector<8x2x16xi32> to vector<8x2x16xf32>
    %cst_119 = arith.constant 1.000000e+00 : f32
    %448 = vector.broadcast %cst_119 : f32 to vector<8x2x1xf32>
    %449 = arith.subf %448, %438 : vector<8x2x1xf32>
    %450 = vector.broadcast %449 : vector<8x2x1xf32> to vector<8x2x16xf32>
    %451 = arith.mulf %447, %450 : vector<8x2x16xf32>
    %c1_i32_120 = arith.constant 1 : i32
    %452 = vector.broadcast %c1_i32_120 : i32 to vector<8x2x1xi32>
    %453 = arith.addi %440, %452 : vector<8x2x1xi32>
    %454 = vector.broadcast %453 : vector<8x2x1xi32> to vector<8x2x16xi32>
    %455 = arith.cmpi eq, %443, %454 : vector<8x2x16xi32>
    %456 = arith.extui %455 : vector<8x2x16xi1> to vector<8x2x16xi32>
    %457 = arith.sitofp %456 : vector<8x2x16xi32> to vector<8x2x16xf32>
    %458 = vector.broadcast %438 : vector<8x2x1xf32> to vector<8x2x16xf32>
    %459 = arith.mulf %457, %458 : vector<8x2x16xf32>
    %460 = arith.addf %451, %459 : vector<8x2x16xf32>
    %461 = vector.broadcast %442 : vector<8x2x1xf32> to vector<8x2x16xf32>
    %462 = arith.mulf %460, %461 : vector<8x2x16xf32>
    %cst_121 = arith.constant dense<0.000000e+00> : vector<8x16xf32>
    %463 = vector.multi_reduction <add>, %462, %cst_121 [1] : vector<8x2x16xf32> to vector<8x16xf32>
    %cst_122 = arith.constant dense<0.000000e+00> : vector<8x8xf32>
    %464 = tpu.matmul %463, %427, %cst_122 {dimension_numbers = #tpu.dot_dimension_numbers<[1], [0], [0], [1], [0, 0, 1, 1], [], []>} : vector<8x16xf32>, vector<16x8xf32>, vector<8x8xf32> -> vector<8x8xf32>
    %465 = arith.addf %426, %464 : vector<8x8xf32>
    %466 = vector.extract_strided_slice %186 {offsets = [16, 24], sizes = [8, 8], strides = [1, 1]} : vector<24x32xf32> to vector<8x8xf32>
    %467 = vector.extract_strided_slice %188 {offsets = [0, 1], sizes = [8, 1], strides = [1, 1]} : vector<8x2xf32> to vector<8x1xf32>
    %cst_123 = arith.constant 8.000000e+00 : f32
    %468 = vector.broadcast %cst_123 : f32 to vector<8x1xf32>
    %469 = arith.mulf %467, %468 : vector<8x1xf32>
    %cst_124 = arith.constant 5.000000e-01 : f32
    %470 = vector.broadcast %cst_124 : f32 to vector<8x1xf32>
    %471 = arith.subf %469, %470 : vector<8x1xf32>
    %472 = vector.extract_strided_slice %128 {offsets = [0, 14], sizes = [8, 2], strides = [1, 1]} : vector<8x32xf32> to vector<8x2xf32>
    %473 = vector.broadcast %471 : vector<8x1xf32> to vector<8x2xf32>
    %474 = arith.addf %473, %472 : vector<8x2xf32>
    %475 = math.floor %474 : vector<8x2xf32>
    %476 = arith.subf %474, %475 : vector<8x2xf32>
    %477 = vector.shape_cast %476 : vector<8x2xf32> to vector<8x2x1xf32>
    %478 = arith.fptosi %475 : vector<8x2xf32> to vector<8x2xi32>
    %479 = vector.shape_cast %478 : vector<8x2xi32> to vector<8x2x1xi32>
    %480 = vector.extract_strided_slice %172 {offsets = [0, 2], sizes = [8, 2], strides = [1, 1]} : vector<8x4xf32> to vector<8x2xf32>
    %481 = vector.shape_cast %480 : vector<8x2xf32> to vector<8x2x1xf32>
    %482 = tpu.iota {dimensions = array<i32: 2>} : vector<8x2x8xi32>
    %483 = vector.broadcast %479 : vector<8x2x1xi32> to vector<8x2x8xi32>
    %484 = arith.cmpi eq, %482, %483 : vector<8x2x8xi32>
    %485 = arith.extui %484 : vector<8x2x8xi1> to vector<8x2x8xi32>
    %486 = arith.sitofp %485 : vector<8x2x8xi32> to vector<8x2x8xf32>
    %cst_125 = arith.constant 1.000000e+00 : f32
    %487 = vector.broadcast %cst_125 : f32 to vector<8x2x1xf32>
    %488 = arith.subf %487, %477 : vector<8x2x1xf32>
    %489 = vector.broadcast %488 : vector<8x2x1xf32> to vector<8x2x8xf32>
    %490 = arith.mulf %486, %489 : vector<8x2x8xf32>
    %c1_i32_126 = arith.constant 1 : i32
    %491 = vector.broadcast %c1_i32_126 : i32 to vector<8x2x1xi32>
    %492 = arith.addi %479, %491 : vector<8x2x1xi32>
    %493 = vector.broadcast %492 : vector<8x2x1xi32> to vector<8x2x8xi32>
    %494 = arith.cmpi eq, %482, %493 : vector<8x2x8xi32>
    %495 = arith.extui %494 : vector<8x2x8xi1> to vector<8x2x8xi32>
    %496 = arith.sitofp %495 : vector<8x2x8xi32> to vector<8x2x8xf32>
    %497 = vector.broadcast %477 : vector<8x2x1xf32> to vector<8x2x8xf32>
    %498 = arith.mulf %496, %497 : vector<8x2x8xf32>
    %499 = arith.addf %490, %498 : vector<8x2x8xf32>
    %500 = vector.broadcast %481 : vector<8x2x1xf32> to vector<8x2x8xf32>
    %501 = arith.mulf %499, %500 : vector<8x2x8xf32>
    %cst_127 = arith.constant dense<0.000000e+00> : vector<8x8xf32>
    %502 = vector.multi_reduction <add>, %501, %cst_127 [1] : vector<8x2x8xf32> to vector<8x8xf32>
    %cst_128 = arith.constant dense<0.000000e+00> : vector<8x8xf32>
    %503 = tpu.matmul %502, %466, %cst_128 {dimension_numbers = #tpu.dot_dimension_numbers<[1], [0], [0], [1], [0, 0, 1, 1], [], []>} : vector<8x8xf32>, vector<8x8xf32>, vector<8x8xf32> -> vector<8x8xf32>
    %504 = arith.addf %465, %503 : vector<8x8xf32>
    %505 = tpu.concatenate %267, %346, %425, %504 in 1 : vector<8x8xf32>, vector<8x8xf32>, vector<8x8xf32>, vector<8x8xf32> -> vector<8x32xf32>
    %c0_129 = arith.constant 0 : index
    %c0_130 = arith.constant 0 : index
    %506 = vector.load %arg20[%c0_129, %c0_130] : memref<32x32xf32, #tpu.memory_space<vmem>>, vector<32x32xf32>
    %cst_131 = arith.constant dense<0.000000e+00> : vector<8x32xf32>
    %507 = tpu.matmul %505, %506, %cst_131 {dimension_numbers = #tpu.dot_dimension_numbers<[1], [0], [0], [1], [0, 0, 1, 1], [], []>} : vector<8x32xf32>, vector<32x32xf32>, vector<8x32xf32> -> vector<8x32xf32>
    %c0_132 = arith.constant 0 : index
    %c0_133 = arith.constant 0 : index
    %508 = vector.load %arg21[%c0_132, %c0_133] : memref<1x32xf32, #tpu.memory_space<vmem>>, vector<1x32xf32>
    %509 = vector.broadcast %508 : vector<1x32xf32> to vector<8x32xf32>
    %510 = arith.addf %507, %509 : vector<8x32xf32>
    %511 = arith.addf %122, %510 : vector<8x32xf32>
    %cst_134 = arith.constant dense<0.000000e+00> : vector<8xf32>
    %512 = vector.multi_reduction <add>, %511, %cst_134 [1] : vector<8x32xf32> to vector<8xf32>
    %513 = vector.shape_cast %512 : vector<8xf32> to vector<8x1xf32>
    %cst_135 = arith.constant 3.200000e+01 : f32
    %514 = vector.broadcast %cst_135 : f32 to vector<8x1xf32>
    %515 = arith.divf %513, %514 : vector<8x1xf32>
    %516 = vector.broadcast %515 : vector<8x1xf32> to vector<8x32xf32>
    %517 = arith.subf %511, %516 : vector<8x32xf32>
    %518 = arith.mulf %517, %517 : vector<8x32xf32>
    %cst_136 = arith.constant dense<0.000000e+00> : vector<8xf32>
    %519 = vector.multi_reduction <add>, %518, %cst_136 [1] : vector<8x32xf32> to vector<8xf32>
    %520 = vector.shape_cast %519 : vector<8xf32> to vector<8x1xf32>
    %cst_137 = arith.constant 3.200000e+01 : f32
    %521 = vector.broadcast %cst_137 : f32 to vector<8x1xf32>
    %522 = arith.divf %520, %521 : vector<8x1xf32>
    %523 = vector.broadcast %515 : vector<8x1xf32> to vector<8x32xf32>
    %524 = arith.subf %511, %523 : vector<8x32xf32>
    %cst_138 = arith.constant 9.99999974E-6 : f32
    %525 = vector.broadcast %cst_138 : f32 to vector<8x1xf32>
    %526 = arith.addf %522, %525 : vector<8x1xf32>
    %527 = math.rsqrt %526 : vector<8x1xf32>
    %528 = vector.broadcast %527 : vector<8x1xf32> to vector<8x32xf32>
    %529 = arith.mulf %524, %528 : vector<8x32xf32>
    %c0_139 = arith.constant 0 : index
    %c0_140 = arith.constant 0 : index
    %530 = vector.load %arg22[%c0_139, %c0_140] : memref<1x32xf32, #tpu.memory_space<vmem>>, vector<1x32xf32>
    %531 = vector.broadcast %530 : vector<1x32xf32> to vector<8x32xf32>
    %532 = arith.mulf %529, %531 : vector<8x32xf32>
    %c0_141 = arith.constant 0 : index
    %c0_142 = arith.constant 0 : index
    %533 = vector.load %arg23[%c0_141, %c0_142] : memref<1x32xf32, #tpu.memory_space<vmem>>, vector<1x32xf32>
    %534 = vector.broadcast %533 : vector<1x32xf32> to vector<8x32xf32>
    %535 = arith.addf %532, %534 : vector<8x32xf32>
    %536 = vector.extract_strided_slice %185 {offsets = [24, 0], sizes = [18, 32], strides = [1, 1]} : vector<42x32xf32> to vector<18x32xf32>
    %c0_143 = arith.constant 0 : index
    %c0_144 = arith.constant 0 : index
    %c0_145 = arith.constant 0 : index
    %537 = vector.load %arg5[%c0_143, %c0_144, %c0_145] : memref<1x8x2xf32, #tpu.memory_space<vmem>>, vector<1x8x2xf32>
    %538 = vector.shape_cast %537 : vector<1x8x2xf32> to vector<8x2xf32>
    %cst_146 = arith.constant 0.000000e+00 : f32
    %539 = vector.broadcast %cst_146 : f32 to vector<8x8xf32>
    %540 = vector.extract_strided_slice %536 {offsets = [0, 0], sizes = [12, 8], strides = [1, 1]} : vector<18x32xf32> to vector<12x8xf32>
    %541 = vector.extract_strided_slice %538 {offsets = [0, 0], sizes = [8, 1], strides = [1, 1]} : vector<8x2xf32> to vector<8x1xf32>
    %cst_147 = arith.constant 1.200000e+01 : f32
    %542 = vector.broadcast %cst_147 : f32 to vector<8x1xf32>
    %543 = arith.mulf %541, %542 : vector<8x1xf32>
    %cst_148 = arith.constant 5.000000e-01 : f32
    %544 = vector.broadcast %cst_148 : f32 to vector<8x1xf32>
    %545 = arith.subf %543, %544 : vector<8x1xf32>
    %546 = vector.extract_strided_slice %128 {offsets = [0, 0], sizes = [8, 2], strides = [1, 1]} : vector<8x32xf32> to vector<8x2xf32>
    %547 = vector.broadcast %545 : vector<8x1xf32> to vector<8x2xf32>
    %548 = arith.addf %547, %546 : vector<8x2xf32>
    %549 = math.floor %548 : vector<8x2xf32>
    %550 = arith.subf %548, %549 : vector<8x2xf32>
    %551 = vector.shape_cast %550 : vector<8x2xf32> to vector<8x2x1xf32>
    %552 = arith.fptosi %549 : vector<8x2xf32> to vector<8x2xi32>
    %553 = vector.shape_cast %552 : vector<8x2xi32> to vector<8x2x1xi32>
    %554 = vector.extract_strided_slice %139 {offsets = [0, 0], sizes = [8, 2], strides = [1, 1]} : vector<8x4xf32> to vector<8x2xf32>
    %555 = vector.shape_cast %554 : vector<8x2xf32> to vector<8x2x1xf32>
    %556 = tpu.iota {dimensions = array<i32: 2>} : vector<8x2x12xi32>
    %557 = vector.broadcast %553 : vector<8x2x1xi32> to vector<8x2x12xi32>
    %558 = arith.cmpi eq, %556, %557 : vector<8x2x12xi32>
    %559 = arith.extui %558 : vector<8x2x12xi1> to vector<8x2x12xi32>
    %560 = arith.sitofp %559 : vector<8x2x12xi32> to vector<8x2x12xf32>
    %cst_149 = arith.constant 1.000000e+00 : f32
    %561 = vector.broadcast %cst_149 : f32 to vector<8x2x1xf32>
    %562 = arith.subf %561, %551 : vector<8x2x1xf32>
    %563 = vector.broadcast %562 : vector<8x2x1xf32> to vector<8x2x12xf32>
    %564 = arith.mulf %560, %563 : vector<8x2x12xf32>
    %c1_i32_150 = arith.constant 1 : i32
    %565 = vector.broadcast %c1_i32_150 : i32 to vector<8x2x1xi32>
    %566 = arith.addi %553, %565 : vector<8x2x1xi32>
    %567 = vector.broadcast %566 : vector<8x2x1xi32> to vector<8x2x12xi32>
    %568 = arith.cmpi eq, %556, %567 : vector<8x2x12xi32>
    %569 = arith.extui %568 : vector<8x2x12xi1> to vector<8x2x12xi32>
    %570 = arith.sitofp %569 : vector<8x2x12xi32> to vector<8x2x12xf32>
    %571 = vector.broadcast %551 : vector<8x2x1xf32> to vector<8x2x12xf32>
    %572 = arith.mulf %570, %571 : vector<8x2x12xf32>
    %573 = arith.addf %564, %572 : vector<8x2x12xf32>
    %574 = vector.broadcast %555 : vector<8x2x1xf32> to vector<8x2x12xf32>
    %575 = arith.mulf %573, %574 : vector<8x2x12xf32>
    %cst_151 = arith.constant dense<0.000000e+00> : vector<8x12xf32>
    %576 = vector.multi_reduction <add>, %575, %cst_151 [1] : vector<8x2x12xf32> to vector<8x12xf32>
    %cst_152 = arith.constant dense<0.000000e+00> : vector<8x8xf32>
    %577 = tpu.matmul %576, %540, %cst_152 {dimension_numbers = #tpu.dot_dimension_numbers<[1], [0], [0], [1], [0, 0, 1, 1], [], []>} : vector<8x12xf32>, vector<12x8xf32>, vector<8x8xf32> -> vector<8x8xf32>
    %578 = arith.addf %539, %577 : vector<8x8xf32>
    %579 = vector.extract_strided_slice %536 {offsets = [12, 0], sizes = [6, 8], strides = [1, 1]} : vector<18x32xf32> to vector<6x8xf32>
    %580 = vector.extract_strided_slice %538 {offsets = [0, 1], sizes = [8, 1], strides = [1, 1]} : vector<8x2xf32> to vector<8x1xf32>
    %cst_153 = arith.constant 6.000000e+00 : f32
    %581 = vector.broadcast %cst_153 : f32 to vector<8x1xf32>
    %582 = arith.mulf %580, %581 : vector<8x1xf32>
    %cst_154 = arith.constant 5.000000e-01 : f32
    %583 = vector.broadcast %cst_154 : f32 to vector<8x1xf32>
    %584 = arith.subf %582, %583 : vector<8x1xf32>
    %585 = vector.extract_strided_slice %128 {offsets = [0, 2], sizes = [8, 2], strides = [1, 1]} : vector<8x32xf32> to vector<8x2xf32>
    %586 = vector.broadcast %584 : vector<8x1xf32> to vector<8x2xf32>
    %587 = arith.addf %586, %585 : vector<8x2xf32>
    %588 = math.floor %587 : vector<8x2xf32>
    %589 = arith.subf %587, %588 : vector<8x2xf32>
    %590 = vector.shape_cast %589 : vector<8x2xf32> to vector<8x2x1xf32>
    %591 = arith.fptosi %588 : vector<8x2xf32> to vector<8x2xi32>
    %592 = vector.shape_cast %591 : vector<8x2xi32> to vector<8x2x1xi32>
    %593 = vector.extract_strided_slice %139 {offsets = [0, 2], sizes = [8, 2], strides = [1, 1]} : vector<8x4xf32> to vector<8x2xf32>
    %594 = vector.shape_cast %593 : vector<8x2xf32> to vector<8x2x1xf32>
    %595 = tpu.iota {dimensions = array<i32: 2>} : vector<8x2x6xi32>
    %596 = vector.broadcast %592 : vector<8x2x1xi32> to vector<8x2x6xi32>
    %597 = arith.cmpi eq, %595, %596 : vector<8x2x6xi32>
    %598 = arith.extui %597 : vector<8x2x6xi1> to vector<8x2x6xi32>
    %599 = arith.sitofp %598 : vector<8x2x6xi32> to vector<8x2x6xf32>
    %cst_155 = arith.constant 1.000000e+00 : f32
    %600 = vector.broadcast %cst_155 : f32 to vector<8x2x1xf32>
    %601 = arith.subf %600, %590 : vector<8x2x1xf32>
    %602 = vector.broadcast %601 : vector<8x2x1xf32> to vector<8x2x6xf32>
    %603 = arith.mulf %599, %602 : vector<8x2x6xf32>
    %c1_i32_156 = arith.constant 1 : i32
    %604 = vector.broadcast %c1_i32_156 : i32 to vector<8x2x1xi32>
    %605 = arith.addi %592, %604 : vector<8x2x1xi32>
    %606 = vector.broadcast %605 : vector<8x2x1xi32> to vector<8x2x6xi32>
    %607 = arith.cmpi eq, %595, %606 : vector<8x2x6xi32>
    %608 = arith.extui %607 : vector<8x2x6xi1> to vector<8x2x6xi32>
    %609 = arith.sitofp %608 : vector<8x2x6xi32> to vector<8x2x6xf32>
    %610 = vector.broadcast %590 : vector<8x2x1xf32> to vector<8x2x6xf32>
    %611 = arith.mulf %609, %610 : vector<8x2x6xf32>
    %612 = arith.addf %603, %611 : vector<8x2x6xf32>
    %613 = vector.broadcast %594 : vector<8x2x1xf32> to vector<8x2x6xf32>
    %614 = arith.mulf %612, %613 : vector<8x2x6xf32>
    %cst_157 = arith.constant dense<0.000000e+00> : vector<8x6xf32>
    %615 = vector.multi_reduction <add>, %614, %cst_157 [1] : vector<8x2x6xf32> to vector<8x6xf32>
    %cst_158 = arith.constant dense<0.000000e+00> : vector<8x8xf32>
    %616 = tpu.matmul %615, %579, %cst_158 {dimension_numbers = #tpu.dot_dimension_numbers<[1], [0], [0], [1], [0, 0, 1, 1], [], []>} : vector<8x6xf32>, vector<6x8xf32>, vector<8x8xf32> -> vector<8x8xf32>
    %617 = arith.addf %578, %616 : vector<8x8xf32>
    %cst_159 = arith.constant 0.000000e+00 : f32
    %618 = vector.broadcast %cst_159 : f32 to vector<8x8xf32>
    %619 = vector.extract_strided_slice %536 {offsets = [0, 8], sizes = [12, 8], strides = [1, 1]} : vector<18x32xf32> to vector<12x8xf32>
    %620 = vector.extract_strided_slice %538 {offsets = [0, 0], sizes = [8, 1], strides = [1, 1]} : vector<8x2xf32> to vector<8x1xf32>
    %cst_160 = arith.constant 1.200000e+01 : f32
    %621 = vector.broadcast %cst_160 : f32 to vector<8x1xf32>
    %622 = arith.mulf %620, %621 : vector<8x1xf32>
    %cst_161 = arith.constant 5.000000e-01 : f32
    %623 = vector.broadcast %cst_161 : f32 to vector<8x1xf32>
    %624 = arith.subf %622, %623 : vector<8x1xf32>
    %625 = vector.extract_strided_slice %128 {offsets = [0, 4], sizes = [8, 2], strides = [1, 1]} : vector<8x32xf32> to vector<8x2xf32>
    %626 = vector.broadcast %624 : vector<8x1xf32> to vector<8x2xf32>
    %627 = arith.addf %626, %625 : vector<8x2xf32>
    %628 = math.floor %627 : vector<8x2xf32>
    %629 = arith.subf %627, %628 : vector<8x2xf32>
    %630 = vector.shape_cast %629 : vector<8x2xf32> to vector<8x2x1xf32>
    %631 = arith.fptosi %628 : vector<8x2xf32> to vector<8x2xi32>
    %632 = vector.shape_cast %631 : vector<8x2xi32> to vector<8x2x1xi32>
    %633 = vector.extract_strided_slice %150 {offsets = [0, 0], sizes = [8, 2], strides = [1, 1]} : vector<8x4xf32> to vector<8x2xf32>
    %634 = vector.shape_cast %633 : vector<8x2xf32> to vector<8x2x1xf32>
    %635 = tpu.iota {dimensions = array<i32: 2>} : vector<8x2x12xi32>
    %636 = vector.broadcast %632 : vector<8x2x1xi32> to vector<8x2x12xi32>
    %637 = arith.cmpi eq, %635, %636 : vector<8x2x12xi32>
    %638 = arith.extui %637 : vector<8x2x12xi1> to vector<8x2x12xi32>
    %639 = arith.sitofp %638 : vector<8x2x12xi32> to vector<8x2x12xf32>
    %cst_162 = arith.constant 1.000000e+00 : f32
    %640 = vector.broadcast %cst_162 : f32 to vector<8x2x1xf32>
    %641 = arith.subf %640, %630 : vector<8x2x1xf32>
    %642 = vector.broadcast %641 : vector<8x2x1xf32> to vector<8x2x12xf32>
    %643 = arith.mulf %639, %642 : vector<8x2x12xf32>
    %c1_i32_163 = arith.constant 1 : i32
    %644 = vector.broadcast %c1_i32_163 : i32 to vector<8x2x1xi32>
    %645 = arith.addi %632, %644 : vector<8x2x1xi32>
    %646 = vector.broadcast %645 : vector<8x2x1xi32> to vector<8x2x12xi32>
    %647 = arith.cmpi eq, %635, %646 : vector<8x2x12xi32>
    %648 = arith.extui %647 : vector<8x2x12xi1> to vector<8x2x12xi32>
    %649 = arith.sitofp %648 : vector<8x2x12xi32> to vector<8x2x12xf32>
    %650 = vector.broadcast %630 : vector<8x2x1xf32> to vector<8x2x12xf32>
    %651 = arith.mulf %649, %650 : vector<8x2x12xf32>
    %652 = arith.addf %643, %651 : vector<8x2x12xf32>
    %653 = vector.broadcast %634 : vector<8x2x1xf32> to vector<8x2x12xf32>
    %654 = arith.mulf %652, %653 : vector<8x2x12xf32>
    %cst_164 = arith.constant dense<0.000000e+00> : vector<8x12xf32>
    %655 = vector.multi_reduction <add>, %654, %cst_164 [1] : vector<8x2x12xf32> to vector<8x12xf32>
    %cst_165 = arith.constant dense<0.000000e+00> : vector<8x8xf32>
    %656 = tpu.matmul %655, %619, %cst_165 {dimension_numbers = #tpu.dot_dimension_numbers<[1], [0], [0], [1], [0, 0, 1, 1], [], []>} : vector<8x12xf32>, vector<12x8xf32>, vector<8x8xf32> -> vector<8x8xf32>
    %657 = arith.addf %618, %656 : vector<8x8xf32>
    %658 = vector.extract_strided_slice %536 {offsets = [12, 8], sizes = [6, 8], strides = [1, 1]} : vector<18x32xf32> to vector<6x8xf32>
    %659 = vector.extract_strided_slice %538 {offsets = [0, 1], sizes = [8, 1], strides = [1, 1]} : vector<8x2xf32> to vector<8x1xf32>
    %cst_166 = arith.constant 6.000000e+00 : f32
    %660 = vector.broadcast %cst_166 : f32 to vector<8x1xf32>
    %661 = arith.mulf %659, %660 : vector<8x1xf32>
    %cst_167 = arith.constant 5.000000e-01 : f32
    %662 = vector.broadcast %cst_167 : f32 to vector<8x1xf32>
    %663 = arith.subf %661, %662 : vector<8x1xf32>
    %664 = vector.extract_strided_slice %128 {offsets = [0, 6], sizes = [8, 2], strides = [1, 1]} : vector<8x32xf32> to vector<8x2xf32>
    %665 = vector.broadcast %663 : vector<8x1xf32> to vector<8x2xf32>
    %666 = arith.addf %665, %664 : vector<8x2xf32>
    %667 = math.floor %666 : vector<8x2xf32>
    %668 = arith.subf %666, %667 : vector<8x2xf32>
    %669 = vector.shape_cast %668 : vector<8x2xf32> to vector<8x2x1xf32>
    %670 = arith.fptosi %667 : vector<8x2xf32> to vector<8x2xi32>
    %671 = vector.shape_cast %670 : vector<8x2xi32> to vector<8x2x1xi32>
    %672 = vector.extract_strided_slice %150 {offsets = [0, 2], sizes = [8, 2], strides = [1, 1]} : vector<8x4xf32> to vector<8x2xf32>
    %673 = vector.shape_cast %672 : vector<8x2xf32> to vector<8x2x1xf32>
    %674 = tpu.iota {dimensions = array<i32: 2>} : vector<8x2x6xi32>
    %675 = vector.broadcast %671 : vector<8x2x1xi32> to vector<8x2x6xi32>
    %676 = arith.cmpi eq, %674, %675 : vector<8x2x6xi32>
    %677 = arith.extui %676 : vector<8x2x6xi1> to vector<8x2x6xi32>
    %678 = arith.sitofp %677 : vector<8x2x6xi32> to vector<8x2x6xf32>
    %cst_168 = arith.constant 1.000000e+00 : f32
    %679 = vector.broadcast %cst_168 : f32 to vector<8x2x1xf32>
    %680 = arith.subf %679, %669 : vector<8x2x1xf32>
    %681 = vector.broadcast %680 : vector<8x2x1xf32> to vector<8x2x6xf32>
    %682 = arith.mulf %678, %681 : vector<8x2x6xf32>
    %c1_i32_169 = arith.constant 1 : i32
    %683 = vector.broadcast %c1_i32_169 : i32 to vector<8x2x1xi32>
    %684 = arith.addi %671, %683 : vector<8x2x1xi32>
    %685 = vector.broadcast %684 : vector<8x2x1xi32> to vector<8x2x6xi32>
    %686 = arith.cmpi eq, %674, %685 : vector<8x2x6xi32>
    %687 = arith.extui %686 : vector<8x2x6xi1> to vector<8x2x6xi32>
    %688 = arith.sitofp %687 : vector<8x2x6xi32> to vector<8x2x6xf32>
    %689 = vector.broadcast %669 : vector<8x2x1xf32> to vector<8x2x6xf32>
    %690 = arith.mulf %688, %689 : vector<8x2x6xf32>
    %691 = arith.addf %682, %690 : vector<8x2x6xf32>
    %692 = vector.broadcast %673 : vector<8x2x1xf32> to vector<8x2x6xf32>
    %693 = arith.mulf %691, %692 : vector<8x2x6xf32>
    %cst_170 = arith.constant dense<0.000000e+00> : vector<8x6xf32>
    %694 = vector.multi_reduction <add>, %693, %cst_170 [1] : vector<8x2x6xf32> to vector<8x6xf32>
    %cst_171 = arith.constant dense<0.000000e+00> : vector<8x8xf32>
    %695 = tpu.matmul %694, %658, %cst_171 {dimension_numbers = #tpu.dot_dimension_numbers<[1], [0], [0], [1], [0, 0, 1, 1], [], []>} : vector<8x6xf32>, vector<6x8xf32>, vector<8x8xf32> -> vector<8x8xf32>
    %696 = arith.addf %657, %695 : vector<8x8xf32>
    %cst_172 = arith.constant 0.000000e+00 : f32
    %697 = vector.broadcast %cst_172 : f32 to vector<8x8xf32>
    %698 = vector.extract_strided_slice %536 {offsets = [0, 16], sizes = [12, 8], strides = [1, 1]} : vector<18x32xf32> to vector<12x8xf32>
    %699 = vector.extract_strided_slice %538 {offsets = [0, 0], sizes = [8, 1], strides = [1, 1]} : vector<8x2xf32> to vector<8x1xf32>
    %cst_173 = arith.constant 1.200000e+01 : f32
    %700 = vector.broadcast %cst_173 : f32 to vector<8x1xf32>
    %701 = arith.mulf %699, %700 : vector<8x1xf32>
    %cst_174 = arith.constant 5.000000e-01 : f32
    %702 = vector.broadcast %cst_174 : f32 to vector<8x1xf32>
    %703 = arith.subf %701, %702 : vector<8x1xf32>
    %704 = vector.extract_strided_slice %128 {offsets = [0, 8], sizes = [8, 2], strides = [1, 1]} : vector<8x32xf32> to vector<8x2xf32>
    %705 = vector.broadcast %703 : vector<8x1xf32> to vector<8x2xf32>
    %706 = arith.addf %705, %704 : vector<8x2xf32>
    %707 = math.floor %706 : vector<8x2xf32>
    %708 = arith.subf %706, %707 : vector<8x2xf32>
    %709 = vector.shape_cast %708 : vector<8x2xf32> to vector<8x2x1xf32>
    %710 = arith.fptosi %707 : vector<8x2xf32> to vector<8x2xi32>
    %711 = vector.shape_cast %710 : vector<8x2xi32> to vector<8x2x1xi32>
    %712 = vector.extract_strided_slice %161 {offsets = [0, 0], sizes = [8, 2], strides = [1, 1]} : vector<8x4xf32> to vector<8x2xf32>
    %713 = vector.shape_cast %712 : vector<8x2xf32> to vector<8x2x1xf32>
    %714 = tpu.iota {dimensions = array<i32: 2>} : vector<8x2x12xi32>
    %715 = vector.broadcast %711 : vector<8x2x1xi32> to vector<8x2x12xi32>
    %716 = arith.cmpi eq, %714, %715 : vector<8x2x12xi32>
    %717 = arith.extui %716 : vector<8x2x12xi1> to vector<8x2x12xi32>
    %718 = arith.sitofp %717 : vector<8x2x12xi32> to vector<8x2x12xf32>
    %cst_175 = arith.constant 1.000000e+00 : f32
    %719 = vector.broadcast %cst_175 : f32 to vector<8x2x1xf32>
    %720 = arith.subf %719, %709 : vector<8x2x1xf32>
    %721 = vector.broadcast %720 : vector<8x2x1xf32> to vector<8x2x12xf32>
    %722 = arith.mulf %718, %721 : vector<8x2x12xf32>
    %c1_i32_176 = arith.constant 1 : i32
    %723 = vector.broadcast %c1_i32_176 : i32 to vector<8x2x1xi32>
    %724 = arith.addi %711, %723 : vector<8x2x1xi32>
    %725 = vector.broadcast %724 : vector<8x2x1xi32> to vector<8x2x12xi32>
    %726 = arith.cmpi eq, %714, %725 : vector<8x2x12xi32>
    %727 = arith.extui %726 : vector<8x2x12xi1> to vector<8x2x12xi32>
    %728 = arith.sitofp %727 : vector<8x2x12xi32> to vector<8x2x12xf32>
    %729 = vector.broadcast %709 : vector<8x2x1xf32> to vector<8x2x12xf32>
    %730 = arith.mulf %728, %729 : vector<8x2x12xf32>
    %731 = arith.addf %722, %730 : vector<8x2x12xf32>
    %732 = vector.broadcast %713 : vector<8x2x1xf32> to vector<8x2x12xf32>
    %733 = arith.mulf %731, %732 : vector<8x2x12xf32>
    %cst_177 = arith.constant dense<0.000000e+00> : vector<8x12xf32>
    %734 = vector.multi_reduction <add>, %733, %cst_177 [1] : vector<8x2x12xf32> to vector<8x12xf32>
    %cst_178 = arith.constant dense<0.000000e+00> : vector<8x8xf32>
    %735 = tpu.matmul %734, %698, %cst_178 {dimension_numbers = #tpu.dot_dimension_numbers<[1], [0], [0], [1], [0, 0, 1, 1], [], []>} : vector<8x12xf32>, vector<12x8xf32>, vector<8x8xf32> -> vector<8x8xf32>
    %736 = arith.addf %697, %735 : vector<8x8xf32>
    %737 = vector.extract_strided_slice %536 {offsets = [12, 16], sizes = [6, 8], strides = [1, 1]} : vector<18x32xf32> to vector<6x8xf32>
    %738 = vector.extract_strided_slice %538 {offsets = [0, 1], sizes = [8, 1], strides = [1, 1]} : vector<8x2xf32> to vector<8x1xf32>
    %cst_179 = arith.constant 6.000000e+00 : f32
    %739 = vector.broadcast %cst_179 : f32 to vector<8x1xf32>
    %740 = arith.mulf %738, %739 : vector<8x1xf32>
    %cst_180 = arith.constant 5.000000e-01 : f32
    %741 = vector.broadcast %cst_180 : f32 to vector<8x1xf32>
    %742 = arith.subf %740, %741 : vector<8x1xf32>
    %743 = vector.extract_strided_slice %128 {offsets = [0, 10], sizes = [8, 2], strides = [1, 1]} : vector<8x32xf32> to vector<8x2xf32>
    %744 = vector.broadcast %742 : vector<8x1xf32> to vector<8x2xf32>
    %745 = arith.addf %744, %743 : vector<8x2xf32>
    %746 = math.floor %745 : vector<8x2xf32>
    %747 = arith.subf %745, %746 : vector<8x2xf32>
    %748 = vector.shape_cast %747 : vector<8x2xf32> to vector<8x2x1xf32>
    %749 = arith.fptosi %746 : vector<8x2xf32> to vector<8x2xi32>
    %750 = vector.shape_cast %749 : vector<8x2xi32> to vector<8x2x1xi32>
    %751 = vector.extract_strided_slice %161 {offsets = [0, 2], sizes = [8, 2], strides = [1, 1]} : vector<8x4xf32> to vector<8x2xf32>
    %752 = vector.shape_cast %751 : vector<8x2xf32> to vector<8x2x1xf32>
    %753 = tpu.iota {dimensions = array<i32: 2>} : vector<8x2x6xi32>
    %754 = vector.broadcast %750 : vector<8x2x1xi32> to vector<8x2x6xi32>
    %755 = arith.cmpi eq, %753, %754 : vector<8x2x6xi32>
    %756 = arith.extui %755 : vector<8x2x6xi1> to vector<8x2x6xi32>
    %757 = arith.sitofp %756 : vector<8x2x6xi32> to vector<8x2x6xf32>
    %cst_181 = arith.constant 1.000000e+00 : f32
    %758 = vector.broadcast %cst_181 : f32 to vector<8x2x1xf32>
    %759 = arith.subf %758, %748 : vector<8x2x1xf32>
    %760 = vector.broadcast %759 : vector<8x2x1xf32> to vector<8x2x6xf32>
    %761 = arith.mulf %757, %760 : vector<8x2x6xf32>
    %c1_i32_182 = arith.constant 1 : i32
    %762 = vector.broadcast %c1_i32_182 : i32 to vector<8x2x1xi32>
    %763 = arith.addi %750, %762 : vector<8x2x1xi32>
    %764 = vector.broadcast %763 : vector<8x2x1xi32> to vector<8x2x6xi32>
    %765 = arith.cmpi eq, %753, %764 : vector<8x2x6xi32>
    %766 = arith.extui %765 : vector<8x2x6xi1> to vector<8x2x6xi32>
    %767 = arith.sitofp %766 : vector<8x2x6xi32> to vector<8x2x6xf32>
    %768 = vector.broadcast %748 : vector<8x2x1xf32> to vector<8x2x6xf32>
    %769 = arith.mulf %767, %768 : vector<8x2x6xf32>
    %770 = arith.addf %761, %769 : vector<8x2x6xf32>
    %771 = vector.broadcast %752 : vector<8x2x1xf32> to vector<8x2x6xf32>
    %772 = arith.mulf %770, %771 : vector<8x2x6xf32>
    %cst_183 = arith.constant dense<0.000000e+00> : vector<8x6xf32>
    %773 = vector.multi_reduction <add>, %772, %cst_183 [1] : vector<8x2x6xf32> to vector<8x6xf32>
    %cst_184 = arith.constant dense<0.000000e+00> : vector<8x8xf32>
    %774 = tpu.matmul %773, %737, %cst_184 {dimension_numbers = #tpu.dot_dimension_numbers<[1], [0], [0], [1], [0, 0, 1, 1], [], []>} : vector<8x6xf32>, vector<6x8xf32>, vector<8x8xf32> -> vector<8x8xf32>
    %775 = arith.addf %736, %774 : vector<8x8xf32>
    %cst_185 = arith.constant 0.000000e+00 : f32
    %776 = vector.broadcast %cst_185 : f32 to vector<8x8xf32>
    %777 = vector.extract_strided_slice %536 {offsets = [0, 24], sizes = [12, 8], strides = [1, 1]} : vector<18x32xf32> to vector<12x8xf32>
    %778 = vector.extract_strided_slice %538 {offsets = [0, 0], sizes = [8, 1], strides = [1, 1]} : vector<8x2xf32> to vector<8x1xf32>
    %cst_186 = arith.constant 1.200000e+01 : f32
    %779 = vector.broadcast %cst_186 : f32 to vector<8x1xf32>
    %780 = arith.mulf %778, %779 : vector<8x1xf32>
    %cst_187 = arith.constant 5.000000e-01 : f32
    %781 = vector.broadcast %cst_187 : f32 to vector<8x1xf32>
    %782 = arith.subf %780, %781 : vector<8x1xf32>
    %783 = vector.extract_strided_slice %128 {offsets = [0, 12], sizes = [8, 2], strides = [1, 1]} : vector<8x32xf32> to vector<8x2xf32>
    %784 = vector.broadcast %782 : vector<8x1xf32> to vector<8x2xf32>
    %785 = arith.addf %784, %783 : vector<8x2xf32>
    %786 = math.floor %785 : vector<8x2xf32>
    %787 = arith.subf %785, %786 : vector<8x2xf32>
    %788 = vector.shape_cast %787 : vector<8x2xf32> to vector<8x2x1xf32>
    %789 = arith.fptosi %786 : vector<8x2xf32> to vector<8x2xi32>
    %790 = vector.shape_cast %789 : vector<8x2xi32> to vector<8x2x1xi32>
    %791 = vector.extract_strided_slice %172 {offsets = [0, 0], sizes = [8, 2], strides = [1, 1]} : vector<8x4xf32> to vector<8x2xf32>
    %792 = vector.shape_cast %791 : vector<8x2xf32> to vector<8x2x1xf32>
    %793 = tpu.iota {dimensions = array<i32: 2>} : vector<8x2x12xi32>
    %794 = vector.broadcast %790 : vector<8x2x1xi32> to vector<8x2x12xi32>
    %795 = arith.cmpi eq, %793, %794 : vector<8x2x12xi32>
    %796 = arith.extui %795 : vector<8x2x12xi1> to vector<8x2x12xi32>
    %797 = arith.sitofp %796 : vector<8x2x12xi32> to vector<8x2x12xf32>
    %cst_188 = arith.constant 1.000000e+00 : f32
    %798 = vector.broadcast %cst_188 : f32 to vector<8x2x1xf32>
    %799 = arith.subf %798, %788 : vector<8x2x1xf32>
    %800 = vector.broadcast %799 : vector<8x2x1xf32> to vector<8x2x12xf32>
    %801 = arith.mulf %797, %800 : vector<8x2x12xf32>
    %c1_i32_189 = arith.constant 1 : i32
    %802 = vector.broadcast %c1_i32_189 : i32 to vector<8x2x1xi32>
    %803 = arith.addi %790, %802 : vector<8x2x1xi32>
    %804 = vector.broadcast %803 : vector<8x2x1xi32> to vector<8x2x12xi32>
    %805 = arith.cmpi eq, %793, %804 : vector<8x2x12xi32>
    %806 = arith.extui %805 : vector<8x2x12xi1> to vector<8x2x12xi32>
    %807 = arith.sitofp %806 : vector<8x2x12xi32> to vector<8x2x12xf32>
    %808 = vector.broadcast %788 : vector<8x2x1xf32> to vector<8x2x12xf32>
    %809 = arith.mulf %807, %808 : vector<8x2x12xf32>
    %810 = arith.addf %801, %809 : vector<8x2x12xf32>
    %811 = vector.broadcast %792 : vector<8x2x1xf32> to vector<8x2x12xf32>
    %812 = arith.mulf %810, %811 : vector<8x2x12xf32>
    %cst_190 = arith.constant dense<0.000000e+00> : vector<8x12xf32>
    %813 = vector.multi_reduction <add>, %812, %cst_190 [1] : vector<8x2x12xf32> to vector<8x12xf32>
    %cst_191 = arith.constant dense<0.000000e+00> : vector<8x8xf32>
    %814 = tpu.matmul %813, %777, %cst_191 {dimension_numbers = #tpu.dot_dimension_numbers<[1], [0], [0], [1], [0, 0, 1, 1], [], []>} : vector<8x12xf32>, vector<12x8xf32>, vector<8x8xf32> -> vector<8x8xf32>
    %815 = arith.addf %776, %814 : vector<8x8xf32>
    %816 = vector.extract_strided_slice %536 {offsets = [12, 24], sizes = [6, 8], strides = [1, 1]} : vector<18x32xf32> to vector<6x8xf32>
    %817 = vector.extract_strided_slice %538 {offsets = [0, 1], sizes = [8, 1], strides = [1, 1]} : vector<8x2xf32> to vector<8x1xf32>
    %cst_192 = arith.constant 6.000000e+00 : f32
    %818 = vector.broadcast %cst_192 : f32 to vector<8x1xf32>
    %819 = arith.mulf %817, %818 : vector<8x1xf32>
    %cst_193 = arith.constant 5.000000e-01 : f32
    %820 = vector.broadcast %cst_193 : f32 to vector<8x1xf32>
    %821 = arith.subf %819, %820 : vector<8x1xf32>
    %822 = vector.extract_strided_slice %128 {offsets = [0, 14], sizes = [8, 2], strides = [1, 1]} : vector<8x32xf32> to vector<8x2xf32>
    %823 = vector.broadcast %821 : vector<8x1xf32> to vector<8x2xf32>
    %824 = arith.addf %823, %822 : vector<8x2xf32>
    %825 = math.floor %824 : vector<8x2xf32>
    %826 = arith.subf %824, %825 : vector<8x2xf32>
    %827 = vector.shape_cast %826 : vector<8x2xf32> to vector<8x2x1xf32>
    %828 = arith.fptosi %825 : vector<8x2xf32> to vector<8x2xi32>
    %829 = vector.shape_cast %828 : vector<8x2xi32> to vector<8x2x1xi32>
    %830 = vector.extract_strided_slice %172 {offsets = [0, 2], sizes = [8, 2], strides = [1, 1]} : vector<8x4xf32> to vector<8x2xf32>
    %831 = vector.shape_cast %830 : vector<8x2xf32> to vector<8x2x1xf32>
    %832 = tpu.iota {dimensions = array<i32: 2>} : vector<8x2x6xi32>
    %833 = vector.broadcast %829 : vector<8x2x1xi32> to vector<8x2x6xi32>
    %834 = arith.cmpi eq, %832, %833 : vector<8x2x6xi32>
    %835 = arith.extui %834 : vector<8x2x6xi1> to vector<8x2x6xi32>
    %836 = arith.sitofp %835 : vector<8x2x6xi32> to vector<8x2x6xf32>
    %cst_194 = arith.constant 1.000000e+00 : f32
    %837 = vector.broadcast %cst_194 : f32 to vector<8x2x1xf32>
    %838 = arith.subf %837, %827 : vector<8x2x1xf32>
    %839 = vector.broadcast %838 : vector<8x2x1xf32> to vector<8x2x6xf32>
    %840 = arith.mulf %836, %839 : vector<8x2x6xf32>
    %c1_i32_195 = arith.constant 1 : i32
    %841 = vector.broadcast %c1_i32_195 : i32 to vector<8x2x1xi32>
    %842 = arith.addi %829, %841 : vector<8x2x1xi32>
    %843 = vector.broadcast %842 : vector<8x2x1xi32> to vector<8x2x6xi32>
    %844 = arith.cmpi eq, %832, %843 : vector<8x2x6xi32>
    %845 = arith.extui %844 : vector<8x2x6xi1> to vector<8x2x6xi32>
    %846 = arith.sitofp %845 : vector<8x2x6xi32> to vector<8x2x6xf32>
    %847 = vector.broadcast %827 : vector<8x2x1xf32> to vector<8x2x6xf32>
    %848 = arith.mulf %846, %847 : vector<8x2x6xf32>
    %849 = arith.addf %840, %848 : vector<8x2x6xf32>
    %850 = vector.broadcast %831 : vector<8x2x1xf32> to vector<8x2x6xf32>
    %851 = arith.mulf %849, %850 : vector<8x2x6xf32>
    %cst_196 = arith.constant dense<0.000000e+00> : vector<8x6xf32>
    %852 = vector.multi_reduction <add>, %851, %cst_196 [1] : vector<8x2x6xf32> to vector<8x6xf32>
    %cst_197 = arith.constant dense<0.000000e+00> : vector<8x8xf32>
    %853 = tpu.matmul %852, %816, %cst_197 {dimension_numbers = #tpu.dot_dimension_numbers<[1], [0], [0], [1], [0, 0, 1, 1], [], []>} : vector<8x6xf32>, vector<6x8xf32>, vector<8x8xf32> -> vector<8x8xf32>
    %854 = arith.addf %815, %853 : vector<8x8xf32>
    %855 = tpu.concatenate %617, %696, %775, %854 in 1 : vector<8x8xf32>, vector<8x8xf32>, vector<8x8xf32>, vector<8x8xf32> -> vector<8x32xf32>
    %c0_198 = arith.constant 0 : index
    %c0_199 = arith.constant 0 : index
    %856 = vector.load %arg20[%c0_198, %c0_199] : memref<32x32xf32, #tpu.memory_space<vmem>>, vector<32x32xf32>
    %cst_200 = arith.constant dense<0.000000e+00> : vector<8x32xf32>
    %857 = tpu.matmul %855, %856, %cst_200 {dimension_numbers = #tpu.dot_dimension_numbers<[1], [0], [0], [1], [0, 0, 1, 1], [], []>} : vector<8x32xf32>, vector<32x32xf32>, vector<8x32xf32> -> vector<8x32xf32>
    %c0_201 = arith.constant 0 : index
    %c0_202 = arith.constant 0 : index
    %858 = vector.load %arg21[%c0_201, %c0_202] : memref<1x32xf32, #tpu.memory_space<vmem>>, vector<1x32xf32>
    %859 = vector.broadcast %858 : vector<1x32xf32> to vector<8x32xf32>
    %860 = arith.addf %857, %859 : vector<8x32xf32>
    %861 = arith.addf %122, %860 : vector<8x32xf32>
    %cst_203 = arith.constant dense<0.000000e+00> : vector<8xf32>
    %862 = vector.multi_reduction <add>, %861, %cst_203 [1] : vector<8x32xf32> to vector<8xf32>
    %863 = vector.shape_cast %862 : vector<8xf32> to vector<8x1xf32>
    %cst_204 = arith.constant 3.200000e+01 : f32
    %864 = vector.broadcast %cst_204 : f32 to vector<8x1xf32>
    %865 = arith.divf %863, %864 : vector<8x1xf32>
    %866 = vector.broadcast %865 : vector<8x1xf32> to vector<8x32xf32>
    %867 = arith.subf %861, %866 : vector<8x32xf32>
    %868 = arith.mulf %867, %867 : vector<8x32xf32>
    %cst_205 = arith.constant dense<0.000000e+00> : vector<8xf32>
    %869 = vector.multi_reduction <add>, %868, %cst_205 [1] : vector<8x32xf32> to vector<8xf32>
    %870 = vector.shape_cast %869 : vector<8xf32> to vector<8x1xf32>
    %cst_206 = arith.constant 3.200000e+01 : f32
    %871 = vector.broadcast %cst_206 : f32 to vector<8x1xf32>
    %872 = arith.divf %870, %871 : vector<8x1xf32>
    %873 = vector.broadcast %865 : vector<8x1xf32> to vector<8x32xf32>
    %874 = arith.subf %861, %873 : vector<8x32xf32>
    %cst_207 = arith.constant 9.99999974E-6 : f32
    %875 = vector.broadcast %cst_207 : f32 to vector<8x1xf32>
    %876 = arith.addf %872, %875 : vector<8x1xf32>
    %877 = math.rsqrt %876 : vector<8x1xf32>
    %878 = vector.broadcast %877 : vector<8x1xf32> to vector<8x32xf32>
    %879 = arith.mulf %874, %878 : vector<8x32xf32>
    %c0_208 = arith.constant 0 : index
    %c0_209 = arith.constant 0 : index
    %880 = vector.load %arg22[%c0_208, %c0_209] : memref<1x32xf32, #tpu.memory_space<vmem>>, vector<1x32xf32>
    %881 = vector.broadcast %880 : vector<1x32xf32> to vector<8x32xf32>
    %882 = arith.mulf %879, %881 : vector<8x32xf32>
    %c0_210 = arith.constant 0 : index
    %c0_211 = arith.constant 0 : index
    %883 = vector.load %arg23[%c0_210, %c0_211] : memref<1x32xf32, #tpu.memory_space<vmem>>, vector<1x32xf32>
    %884 = vector.broadcast %883 : vector<1x32xf32> to vector<8x32xf32>
    %885 = arith.addf %882, %884 : vector<8x32xf32>
    %886 = tpu.concatenate %535, %885 in 1 : vector<8x32xf32>, vector<8x32xf32> -> vector<8x64xf32>
    %cst_212 = arith.constant dense<0.000000e+00> : vector<8xf32>
    %887 = vector.multi_reduction <add>, %886, %cst_212 [1] : vector<8x64xf32> to vector<8xf32>
    %888 = vector.shape_cast %887 : vector<8xf32> to vector<8x1xf32>
    %cst_213 = arith.constant 6.400000e+01 : f32
    %889 = vector.broadcast %cst_213 : f32 to vector<8x1xf32>
    %890 = arith.divf %888, %889 : vector<8x1xf32>
    %891 = vector.broadcast %890 : vector<8x1xf32> to vector<8x64xf32>
    %892 = arith.subf %886, %891 : vector<8x64xf32>
    %893 = arith.mulf %892, %892 : vector<8x64xf32>
    %cst_214 = arith.constant dense<0.000000e+00> : vector<8xf32>
    %894 = vector.multi_reduction <add>, %893, %cst_214 [1] : vector<8x64xf32> to vector<8xf32>
    %895 = vector.shape_cast %894 : vector<8xf32> to vector<8x1xf32>
    %cst_215 = arith.constant 6.400000e+01 : f32
    %896 = vector.broadcast %cst_215 : f32 to vector<8x1xf32>
    %897 = arith.divf %895, %896 : vector<8x1xf32>
    %898 = vector.broadcast %890 : vector<8x1xf32> to vector<8x64xf32>
    %899 = arith.subf %886, %898 : vector<8x64xf32>
    %cst_216 = arith.constant 9.99999974E-6 : f32
    %900 = vector.broadcast %cst_216 : f32 to vector<8x1xf32>
    %901 = arith.addf %897, %900 : vector<8x1xf32>
    %902 = math.rsqrt %901 : vector<8x1xf32>
    %903 = vector.broadcast %902 : vector<8x1xf32> to vector<8x64xf32>
    %904 = arith.mulf %899, %903 : vector<8x64xf32>
    %c0_217 = arith.constant 0 : index
    %c0_218 = arith.constant 0 : index
    %905 = vector.load %arg24[%c0_217, %c0_218] : memref<1x64xf32, #tpu.memory_space<vmem>>, vector<1x64xf32>
    %906 = vector.broadcast %905 : vector<1x64xf32> to vector<8x64xf32>
    %907 = arith.mulf %904, %906 : vector<8x64xf32>
    %c0_219 = arith.constant 0 : index
    %c0_220 = arith.constant 0 : index
    %908 = vector.load %arg25[%c0_219, %c0_220] : memref<1x64xf32, #tpu.memory_space<vmem>>, vector<1x64xf32>
    %909 = vector.broadcast %908 : vector<1x64xf32> to vector<8x64xf32>
    %910 = arith.addf %907, %909 : vector<8x64xf32>
    %c0_221 = arith.constant 0 : index
    %c0_222 = arith.constant 0 : index
    %911 = vector.load %arg26[%c0_221, %c0_222] : memref<64x32xf32, #tpu.memory_space<vmem>>, vector<64x32xf32>
    %cst_223 = arith.constant dense<0.000000e+00> : vector<8x32xf32>
    %912 = tpu.matmul %910, %911, %cst_223 {dimension_numbers = #tpu.dot_dimension_numbers<[1], [0], [0], [1], [0, 0, 1, 1], [], []>} : vector<8x64xf32>, vector<64x32xf32>, vector<8x32xf32> -> vector<8x32xf32>
    %c0_224 = arith.constant 0 : index
    %c0_225 = arith.constant 0 : index
    %913 = vector.load %arg27[%c0_224, %c0_225] : memref<1x32xf32, #tpu.memory_space<vmem>>, vector<1x32xf32>
    %914 = vector.broadcast %913 : vector<1x32xf32> to vector<8x32xf32>
    %915 = arith.addf %912, %914 : vector<8x32xf32>
    %cst_226 = arith.constant 0.000000e+00 : f32
    %916 = vector.broadcast %cst_226 : f32 to vector<8x32xf32>
    %917 = arith.maximumf %915, %916 : vector<8x32xf32>
    %c0_227 = arith.constant 0 : index
    %c0_228 = arith.constant 0 : index
    %918 = vector.load %arg28[%c0_227, %c0_228] : memref<32x64xf32, #tpu.memory_space<vmem>>, vector<32x64xf32>
    %cst_229 = arith.constant dense<0.000000e+00> : vector<8x64xf32>
    %919 = tpu.matmul %917, %918, %cst_229 {dimension_numbers = #tpu.dot_dimension_numbers<[1], [0], [0], [1], [0, 0, 1, 1], [], []>} : vector<8x32xf32>, vector<32x64xf32>, vector<8x64xf32> -> vector<8x64xf32>
    %c0_230 = arith.constant 0 : index
    %c0_231 = arith.constant 0 : index
    %920 = vector.load %arg29[%c0_230, %c0_231] : memref<1x64xf32, #tpu.memory_space<vmem>>, vector<1x64xf32>
    %921 = vector.broadcast %920 : vector<1x64xf32> to vector<8x64xf32>
    %922 = arith.addf %919, %921 : vector<8x64xf32>
    %cst_232 = arith.constant 0.000000e+00 : f32
    %923 = vector.broadcast %cst_232 : f32 to vector<8x64xf32>
    %924 = arith.maximumf %922, %923 : vector<8x64xf32>
    %c0_233 = arith.constant 0 : index
    %c0_234 = arith.constant 0 : index
    %925 = vector.load %arg30[%c0_233, %c0_234] : memref<64x32xf32, #tpu.memory_space<vmem>>, vector<64x32xf32>
    %cst_235 = arith.constant dense<0.000000e+00> : vector<8x32xf32>
    %926 = tpu.matmul %924, %925, %cst_235 {dimension_numbers = #tpu.dot_dimension_numbers<[1], [0], [0], [1], [0, 0, 1, 1], [], []>} : vector<8x64xf32>, vector<64x32xf32>, vector<8x32xf32> -> vector<8x32xf32>
    %c0_236 = arith.constant 0 : index
    %c0_237 = arith.constant 0 : index
    %927 = vector.load %arg31[%c0_236, %c0_237] : memref<1x32xf32, #tpu.memory_space<vmem>>, vector<1x32xf32>
    %928 = vector.broadcast %927 : vector<1x32xf32> to vector<8x32xf32>
    %929 = arith.addf %926, %928 : vector<8x32xf32>
    %930 = arith.addf %917, %929 : vector<8x32xf32>
    %cst_238 = arith.constant dense<0.000000e+00> : vector<8xf32>
    %931 = vector.multi_reduction <add>, %930, %cst_238 [1] : vector<8x32xf32> to vector<8xf32>
    %932 = vector.shape_cast %931 : vector<8xf32> to vector<8x1xf32>
    %cst_239 = arith.constant 3.200000e+01 : f32
    %933 = vector.broadcast %cst_239 : f32 to vector<8x1xf32>
    %934 = arith.divf %932, %933 : vector<8x1xf32>
    %935 = vector.broadcast %934 : vector<8x1xf32> to vector<8x32xf32>
    %936 = arith.subf %930, %935 : vector<8x32xf32>
    %937 = arith.mulf %936, %936 : vector<8x32xf32>
    %cst_240 = arith.constant dense<0.000000e+00> : vector<8xf32>
    %938 = vector.multi_reduction <add>, %937, %cst_240 [1] : vector<8x32xf32> to vector<8xf32>
    %939 = vector.shape_cast %938 : vector<8xf32> to vector<8x1xf32>
    %cst_241 = arith.constant 3.200000e+01 : f32
    %940 = vector.broadcast %cst_241 : f32 to vector<8x1xf32>
    %941 = arith.divf %939, %940 : vector<8x1xf32>
    %942 = vector.broadcast %934 : vector<8x1xf32> to vector<8x32xf32>
    %943 = arith.subf %930, %942 : vector<8x32xf32>
    %cst_242 = arith.constant 9.99999974E-6 : f32
    %944 = vector.broadcast %cst_242 : f32 to vector<8x1xf32>
    %945 = arith.addf %941, %944 : vector<8x1xf32>
    %946 = math.rsqrt %945 : vector<8x1xf32>
    %947 = vector.broadcast %946 : vector<8x1xf32> to vector<8x32xf32>
    %948 = arith.mulf %943, %947 : vector<8x32xf32>
    %c0_243 = arith.constant 0 : index
    %c0_244 = arith.constant 0 : index
    %949 = vector.load %arg32[%c0_243, %c0_244] : memref<1x32xf32, #tpu.memory_space<vmem>>, vector<1x32xf32>
    %950 = vector.broadcast %949 : vector<1x32xf32> to vector<8x32xf32>
    %951 = arith.mulf %948, %950 : vector<8x32xf32>
    %c0_245 = arith.constant 0 : index
    %c0_246 = arith.constant 0 : index
    %952 = vector.load %arg33[%c0_245, %c0_246] : memref<1x32xf32, #tpu.memory_space<vmem>>, vector<1x32xf32>
    %953 = vector.broadcast %952 : vector<1x32xf32> to vector<8x32xf32>
    %954 = arith.addf %951, %953 : vector<8x32xf32>
    %c0_247 = arith.constant 0 : index
    %c0_248 = arith.constant 0 : index
    %c0_249 = arith.constant 0 : index
    %955 = vector.load %arg34[%c0_247, %c0_248, %c0_249] : memref<1x8x32xf32, #tpu.memory_space<vmem>>, vector<1x8x32xf32>
    %956 = vector.shape_cast %955 : vector<1x8x32xf32> to vector<8x32xf32>
    %957 = vector.shape_cast %954 : vector<8x32xf32> to vector<1x8x32xf32>
    tpu.vector_store %arg34[%c0_247, %c0_248, %c0_249], %957 {strides = array<i32>} : memref<1x8x32xf32, #tpu.memory_space<vmem>>, vector<1x8x32xf32>,
    return
  }
  func.func @transform_0(%arg0: i32) -> (i32, i32, i32) {
    %c0_i32 = arith.constant 0 : i32
    %c0_i32_0 = arith.constant 0 : i32
    %c0_i32_1 = arith.constant 0 : i32
    return %arg0, %c0_i32, %c0_i32_0 : i32, i32, i32
  }
  func.func @transform_1(%arg0: i32) -> (i32, i32, i32) {
    %c0_i32 = arith.constant 0 : i32
    %c0_i32_0 = arith.constant 0 : i32
    %c0_i32_1 = arith.constant 0 : i32
    return %arg0, %c0_i32, %c0_i32_0 : i32, i32, i32
  }
  func.func @transform_2(%arg0: i32) -> (i32, i32, i32) {
    %c0_i32 = arith.constant 0 : i32
    %c0_i32_0 = arith.constant 0 : i32
    %c0_i32_1 = arith.constant 0 : i32
    return %arg0, %c0_i32, %c0_i32_0 : i32, i32, i32
  }
  func.func @transform_3(%arg0: i32) -> (i32, i32, i32) {
    %c0_i32 = arith.constant 0 : i32
    %c0_i32_0 = arith.constant 0 : i32
    %c0_i32_1 = arith.constant 0 : i32
    return %arg0, %c0_i32, %c0_i32_0 : i32, i32, i32
  }
  func.func @transform_4(%arg0: i32) -> (i32, i32, i32) {
    %c0_i32 = arith.constant 0 : i32
    %c0_i32_0 = arith.constant 0 : i32
    %c0_i32_1 = arith.constant 0 : i32
    return %arg0, %c0_i32, %c0_i32_0 : i32, i32, i32
  }
  func.func @transform_5(%arg0: i32) -> (i32, i32, i32) {
    %c0_i32 = arith.constant 0 : i32
    %c0_i32_0 = arith.constant 0 : i32
    %c0_i32_1 = arith.constant 0 : i32
    return %arg0, %c0_i32, %c0_i32_0 : i32, i32, i32
  }
  func.func @transform_6(%arg0: i32) -> (i32, i32, i32) {
    %c0_i32 = arith.constant 0 : i32
    %c0_i32_0 = arith.constant 0 : i32
    %c0_i32_1 = arith.constant 0 : i32
    return %arg0, %c0_i32, %c0_i32_0 : i32, i32, i32
  }
  func.func @transform_7(%arg0: i32) -> (i32, i32) {
    %c0_i32 = arith.constant 0 : i32
    %c0_i32_0 = arith.constant 0 : i32
    %c0_i32_1 = arith.constant 0 : i32
    return %c0_i32, %c0_i32_0 : i32, i32
  }
  func.func @transform_8(%arg0: i32) -> (i32, i32) {
    %c0_i32 = arith.constant 0 : i32
    %c0_i32_0 = arith.constant 0 : i32
    %c0_i32_1 = arith.constant 0 : i32
    return %c0_i32, %c0_i32_0 : i32, i32
  }
  func.func @transform_9(%arg0: i32) -> (i32, i32) {
    %c0_i32 = arith.constant 0 : i32
    %c0_i32_0 = arith.constant 0 : i32
    %c0_i32_1 = arith.constant 0 : i32
    return %c0_i32, %c0_i32_0 : i32, i32
  }
  func.func @transform_10(%arg0: i32) -> (i32, i32) {
    %c0_i32 = arith.constant 0 : i32
    %c0_i32_0 = arith.constant 0 : i32
    %c0_i32_1 = arith.constant 0 : i32
    return %c0_i32, %c0_i32_0 : i32, i32
  }
  func.func @transform_11(%arg0: i32) -> (i32, i32) {
    %c0_i32 = arith.constant 0 : i32
    %c0_i32_0 = arith.constant 0 : i32
    %c0_i32_1 = arith.constant 0 : i32
    return %c0_i32, %c0_i32_0 : i32, i32
  }
  func.func @transform_12(%arg0: i32) -> (i32, i32) {
    %c0_i32 = arith.constant 0 : i32
    %c0_i32_0 = arith.constant 0 : i32
    %c0_i32_1 = arith.constant 0 : i32
    return %c0_i32, %c0_i32_0 : i32, i32
  }
  func.func @transform_13(%arg0: i32) -> (i32, i32) {
    %c0_i32 = arith.constant 0 : i32
    %c0_i32_0 = arith.constant 0 : i32
    %c0_i32_1 = arith.constant 0 : i32
    return %c0_i32, %c0_i32_0 : i32, i32
  }
  func.func @transform_14(%arg0: i32) -> (i32, i32) {
    %c0_i32 = arith.constant 0 : i32
    %c0_i32_0 = arith.constant 0 : i32
    %c0_i32_1 = arith.constant 0 : i32
    return %c0_i32, %c0_i32_0 : i32, i32
  }
  func.func @transform_15(%arg0: i32) -> (i32, i32) {
    %c0_i32 = arith.constant 0 : i32
    %c0_i32_0 = arith.constant 0 : i32
    %c0_i32_1 = arith.constant 0 : i32
    return %c0_i32, %c0_i32_0 : i32, i32
  }
  func.func @transform_16(%arg0: i32) -> (i32, i32) {
    %c0_i32 = arith.constant 0 : i32
    %c0_i32_0 = arith.constant 0 : i32
    %c0_i32_1 = arith.constant 0 : i32
    return %c0_i32, %c0_i32_0 : i32, i32
  }
  func.func @transform_17(%arg0: i32) -> (i32, i32) {
    %c0_i32 = arith.constant 0 : i32
    %c0_i32_0 = arith.constant 0 : i32
    %c0_i32_1 = arith.constant 0 : i32
    return %c0_i32, %c0_i32_0 : i32, i32
  }
  func.func @transform_18(%arg0: i32) -> (i32, i32) {
    %c0_i32 = arith.constant 0 : i32
    %c0_i32_0 = arith.constant 0 : i32
    %c0_i32_1 = arith.constant 0 : i32
    return %c0_i32, %c0_i32_0 : i32, i32
  }
  func.func @transform_19(%arg0: i32) -> (i32, i32) {
    %c0_i32 = arith.constant 0 : i32
    %c0_i32_0 = arith.constant 0 : i32
    %c0_i32_1 = arith.constant 0 : i32
    return %c0_i32, %c0_i32_0 : i32, i32
  }
  func.func @transform_20(%arg0: i32) -> (i32, i32) {
    %c0_i32 = arith.constant 0 : i32
    %c0_i32_0 = arith.constant 0 : i32
    %c0_i32_1 = arith.constant 0 : i32
    return %c0_i32, %c0_i32_0 : i32, i32
  }
  func.func @transform_21(%arg0: i32) -> (i32, i32) {
    %c0_i32 = arith.constant 0 : i32
    %c0_i32_0 = arith.constant 0 : i32
    %c0_i32_1 = arith.constant 0 : i32
    return %c0_i32, %c0_i32_0 : i32, i32
  }
  func.func @transform_22(%arg0: i32) -> (i32, i32) {
    %c0_i32 = arith.constant 0 : i32
    %c0_i32_0 = arith.constant 0 : i32
    %c0_i32_1 = arith.constant 0 : i32
    return %c0_i32, %c0_i32_0 : i32, i32
  }
  func.func @transform_23(%arg0: i32) -> (i32, i32) {
    %c0_i32 = arith.constant 0 : i32
    %c0_i32_0 = arith.constant 0 : i32
    %c0_i32_1 = arith.constant 0 : i32
    return %c0_i32, %c0_i32_0 : i32, i32
  }
  func.func @transform_24(%arg0: i32) -> (i32, i32) {
    %c0_i32 = arith.constant 0 : i32
    %c0_i32_0 = arith.constant 0 : i32
    %c0_i32_1 = arith.constant 0 : i32
    return %c0_i32, %c0_i32_0 : i32, i32
  }
  func.func @transform_25(%arg0: i32) -> (i32, i32) {
    %c0_i32 = arith.constant 0 : i32
    %c0_i32_0 = arith.constant 0 : i32
    %c0_i32_1 = arith.constant 0 : i32
    return %c0_i32, %c0_i32_0 : i32, i32
  }
  func.func @transform_26(%arg0: i32) -> (i32, i32) {
    %c0_i32 = arith.constant 0 : i32
    %c0_i32_0 = arith.constant 0 : i32
    %c0_i32_1 = arith.constant 0 : i32
    return %c0_i32, %c0_i32_0 : i32, i32
  }
  func.func @transform_27(%arg0: i32) -> (i32, i32) {
    %c0_i32 = arith.constant 0 : i32
    %c0_i32_0 = arith.constant 0 : i32
    %c0_i32_1 = arith.constant 0 : i32
    return %c0_i32, %c0_i32_0 : i32, i32
  }
  func.func @transform_28(%arg0: i32) -> (i32, i32) {
    %c0_i32 = arith.constant 0 : i32
    %c0_i32_0 = arith.constant 0 : i32
    %c0_i32_1 = arith.constant 0 : i32
    return %c0_i32, %c0_i32_0 : i32, i32
  }
  func.func @transform_29(%arg0: i32) -> (i32, i32) {
    %c0_i32 = arith.constant 0 : i32
    %c0_i32_0 = arith.constant 0 : i32
    %c0_i32_1 = arith.constant 0 : i32
    return %c0_i32, %c0_i32_0 : i32, i32
  }
  func.func @transform_30(%arg0: i32) -> (i32, i32) {
    %c0_i32 = arith.constant 0 : i32
    %c0_i32_0 = arith.constant 0 : i32
    %c0_i32_1 = arith.constant 0 : i32
    return %c0_i32, %c0_i32_0 : i32, i32
  }
  func.func @transform_31(%arg0: i32) -> (i32, i32) {
    %c0_i32 = arith.constant 0 : i32
    %c0_i32_0 = arith.constant 0 : i32
    %c0_i32_1 = arith.constant 0 : i32
    return %c0_i32, %c0_i32_0 : i32, i32
  }
  func.func @transform_32(%arg0: i32) -> (i32, i32) {
    %c0_i32 = arith.constant 0 : i32
    %c0_i32_0 = arith.constant 0 : i32
    %c0_i32_1 = arith.constant 0 : i32
    return %c0_i32, %c0_i32_0 : i32, i32
  }
  func.func @transform_33(%arg0: i32) -> (i32, i32, i32) {
    %c0_i32 = arith.constant 0 : i32
    %c0_i32_0 = arith.constant 0 : i32
    %c0_i32_1 = arith.constant 0 : i32
    return %arg0, %c0_i32, %c0_i32_0 : i32, i32, i32
  }
}

</mosaic_0001>

<bundles_post_ra>
// kernel: decoder_layer_forward.1
= control target key start
LH: loop header
LB: loop body
LE: loop exit
PB: predicated region body
PF: predicated region fallthrough
CT: control target
= control target key end

     0   :  { %s8159_s6 = smov 1   ;;  %s8160_s10 = smov 2   ;;  %s12182_s0 = inlined_call_operand.smem [shape: u32[34], index: -1, kind: input, shape index: {}] }
   0x1   :  { %s8218_s5 = sld [smem:[%s12182_s0]]   ;;  %s8161_s14 = smov 3  }
   0x2   :  { %s8223_s9 = sld [smem:[%s12182_s0 + %s8159_s6]]   ;;  %s8162_s18 = smov 4  }
   0x3   :  { %s8228_s13 = sld [smem:[%s12182_s0 + %s8160_s10]]   ;;  %s8163_s22 = smov 5  }
   0x4   :  { %s8233_s17 = sld [smem:[%s12182_s0 + %s8161_s14]]   ;;  %s8164_s26 = smov 6  }
   0x5   :  { %s8238_s21 = sld [smem:[%s12182_s0 + %s8162_s18]]   ;;  %s8165_s30 = smov 7  }
   0x6   :  { %s8243_s25 = sld [smem:[%s12182_s0 + %s8163_s22]]   ;;  %s8166_s4 = smov 8  }
   0x7   :  { %12489 = sst [smem:[#allocation5_spill]] %s8218_s5  ;;  %s8167_s10 = smov 9  }
   0x8   :  { %12490 = sst [smem:[#allocation6_spill]] %s8223_s9  ;;  %s8168_s15 = smov 10  }
   0x9   :  { %s8248_s29 = sld [smem:[%s12182_s0 + %s8164_s26]]   ;;  %s8169_s20 = smov 11  }
   0xa   :  { %s8253_s3 = sld [smem:[%s12182_s0 + %s8165_s30]]   ;;  %s8170_s26 = smov 12  }
   0xb   :  { %s8258_s8 = sld [smem:[%s12182_s0 + %s8166_s4]]   ;;  %s8171_s1 = smov 13  }
   0xc   :  { %s8263_s14 = sld [smem:[%s12182_s0 + %s8167_s10]]   ;;  %s8172_s7 = smov 14  }
   0xd   :  { %s8268_s19 = sld [smem:[%s12182_s0 + %s8168_s15]]   ;;  %s8173_s15 = smov 15  }
   0xe   :  { %s8273_s24 = sld [smem:[%s12182_s0 + %s8169_s20]]   ;;  %s8174_s22 = smov 16  }
   0xf   :  { %s8278_s30 = sld [smem:[%s12182_s0 + %s8170_s26]]   ;;  %s8175_s28 = smov 17  }
  0x10   :  { %12491 = sst [smem:[#allocation7_spill]] %s8253_s3 }
  0x11   :  { %12492 = sst [smem:[#allocation8_spill]] %s8258_s8 }
  0x12   :  { %12493 = sst [smem:[#allocation9_spill]] %s8263_s14 }
  0x13   :  { %s8283_s6 = sld [smem:[%s12182_s0 + %s8171_s1]]  }
  0x14   :  { %s8288_s12 = sld [smem:[%s12182_s0 + %s8172_s7]]   ;;  %s8176_s7 = smov 18  }
  0x15   :  { %12494 = sst [smem:[#allocation10_spill]] %s8278_s30 }
  0x16   :  { %s8293_s20 = sld [smem:[%s12182_s0 + %s8173_s15]]   ;;  %s8177_s15 = smov 19  }
  0x17   :  { %s8298_s27 = sld [smem:[%s12182_s0 + %s8174_s22]]   ;;  %s8178_s22 = smov 20  }
  0x18   :  { %s8303_s4 = sld [smem:[%s12182_s0 + %s8175_s28]]   ;;  %s8179_s28 = smov 21  }
  0x19   :  { %12495 = sst [smem:[#allocation11_spill]] %s8283_s6 }
  0x1a   :  { %12496 = sst [smem:[#allocation12_spill]] %s8288_s12 }
  0x1b   :  { %s8308_s12 = sld [smem:[%s12182_s0 + %s8176_s7]]   ;;  %s8180_s7 = smov 22  }
  0x1c   :  { %s8313_s6 = sld [smem:[%s12182_s0 + %s8177_s15]]   ;;  %s8181_s15 = smov 23  }
  0x1d   :  { %s8318_s30 = sld [smem:[%s12182_s0 + %s8178_s22]]   ;;  %s8182_s22 = smov 24  }
  0x1e   :  { %12497 = sst [smem:[#allocation13_spill]] %s8303_s4 }
  0x1f   :  { %s8323_s4 = sld [smem:[%s12182_s0 + %s8179_s28]]   ;;  %s8183_s28 = smov 25  }
  0x21   :  { %12498 = sst [smem:[#allocation14_spill]] %s8308_s12 }
  0x22   :  { %12499 = sst [smem:[#allocation15_spill]] %s8313_s6 }
  0x23   :  { %12500 = sst [smem:[#allocation16_spill]] %s8318_s30 }
  0x24   :  { %s8328_s12 = sld [smem:[%s12182_s0 + %s8180_s7]]   ;;  %s8184_s7 = smov 26  }
  0x25   :  { %12501 = sst [smem:[#allocation17_spill]] %s8323_s4 }
  0x26   :  { %s8333_s6 = sld [smem:[%s12182_s0 + %s8181_s15]]   ;;  %s8185_s15 = smov 27  }
  0x27   :  { %s8338_s30 = sld [smem:[%s12182_s0 + %s8182_s22]]   ;;  %s8186_s22 = smov 28  }
  0x28   :  { %s8343_s4 = sld [smem:[%s12182_s0 + %s8183_s28]]   ;;  %s8187_s28 = smov 29  }
  0x2a   :  { %12502 = sst [smem:[#allocation18_spill]] %s8328_s12 }
  0x2b   :  { %s8348_s12 = sld [smem:[%s12182_s0 + %s8184_s7]]   ;;  %s8188_s7 = smov 30  }
  0x2c   :  { %12503 = sst [smem:[#allocation19_spill]] %s8333_s6 }
  0x2d   :  { %12504 = sst [smem:[#allocation20_spill]] %s8338_s30 }
  0x2e   :  { %12505 = sst [smem:[#allocation21_spill]] %s8343_s4 }
  0x2f   :  { %s8353_s6 = sld [smem:[%s12182_s0 + %s8185_s15]]   ;;  %s8189_s15 = smov 31  }
  0x30   :  { %s8358_s30 = sld [smem:[%s12182_s0 + %s8186_s22]]   ;;  %s8190_s22 = smov 32  }
  0x31   :  { %12506 = sst [smem:[#allocation22_spill]] %s8348_s12 }
  0x32   :  { %s8363_s4 = sld [smem:[%s12182_s0 + %s8187_s28]]   ;;  %s8191_s28 = smov 33  }
  0x33   :  { %s8368_s12 = sld [smem:[%s12182_s0 + %s8188_s7]]  }
  0x35   :  { %12507 = sst [smem:[#allocation23_spill]] %s8353_s6 }
  0x36   :  { %12508 = sst [smem:[#allocation24_spill]] %s8358_s30 }
  0x37   :  { %s8373_s6 = sld [smem:[%s12182_s0 + %s8189_s15]]  }
  0x38   :  { %12509 = sst [smem:[#allocation25_spill]] %s8363_s4 }
  0x39   :  { %12510 = sst [smem:[#allocation26_spill]] %s8368_s12 }
  0x3a   :  { %s8378_s30 = sld [smem:[%s12182_s0 + %s8190_s22]]  }
  0x3b   :  { %s8383_s4 = sld [smem:[%s12182_s0 + %s8191_s28]]  }
  0x3d   :  { %12511 = sst [smem:[#allocation27_spill]] %s8373_s6 }
  0x3e   :  { %72 = vsyncpa [#allocation3], 0 }
  0x3f   :  { %74 = vsyncpa [#allocation3 + $0x1], 0  ;;  %s8385_s7 = smov 0   ;;  %s8387_s10 = smov 0  }
  0x40   :  { %s8389_s11 = smov 0   ;;  %s8391_s15 = smov 0  }
  0x41 LB: > { %s12512_s14 = sld [smem:[#allocation9_spill]]  ;;  %s8406_s0 = sadd.s32 4294967295, %s8157_s15   ;;  %s8149_s10 = sphi %s8387_s10, %s13216_s10   ;;  %s8145_s7 = sphi %s8385_s7, %s13215_s7   ;;  %s8157_s15 = sphi %s8391_s15, %s13218_s15   ;;  %s8153_s11 = sphi %s8389_s11, %s13217_s11  }
  0x42   : > { %s12513_s3 = sld [smem:[#allocation7_spill]]  ;;  %s7424_s16 = sadd.s32 4294967294, %s8157_s15  }
  0x43   : > { %s8410_s18 = sadd.s32 1, %s8157_s15   ;;  %s815_s22 = sadd.s32 1, %s8153_s11 }
  0x44   : > { %s812_s23 = ssub.s32 %s8157_s15, %s8410_s18  ;;  %p825_p0 = scmp.ne.s32.totalorder %s8153_s11, %s8149_s10 }
  0x45   : > { %p813_p1 = scmp.eq.s32.totalorder %s812_s23, 0  ;;  %p826_p2 = scmp.eq.s32.totalorder %s8406_s0, 1 }
  0x46   : > { %p831_p3 = scmp.ne.s32.totalorder %s8149_s10, %s8145_s7  ;;  %p832_p4 = scmp.eq.s32.totalorder %s7424_s16, 1 }
  0x47   : > { %s8421_s26 = scalar_select %p813_p1, %s8153_s11, %s815_s22  }
  0x48   : > { %p8423_p5 = por %p826_p2, %p825_p0  ;;  %p8427_p6 = por %p832_p4, %p831_p3 }
  0x49   : > { %p7427_p7 = scmp.ge.s32.totalorder %s8157_s15, 1  ;;  %p978_p8 = scmp.lt.s32.totalorder %s8157_s15, 3 }
  0x4b   : > { %p979_p9 = pnand %p7427_p7, %p978_p8 }
  0x4d   : > { %982 = sbr.rel (%p979_p9) target bundleno = 5447 (0x1547), region = 152 }
  0x52   : > { %s12516_s5 = sld [smem:[#allocation5_spill]]  ;;  %v1121_v0 = vld [vmem:[%s12513_s3 + $0x18] sm:$0xff]  ;;  %v1120_v1 = vld [vmem:[%s12513_s3 + $0x10] sm:$0xff]  ;;  %p1086_p10 = scmp.lt.s32.totalorder %s8406_s0, 1  ;;  %v1119_v2 = vld [vmem:[%s12513_s3 + $0x8] sm:$0xff]  ;;  %vm12458_vm0 = vcmask 261120  }
  0x53   : > { %s12517_s9 = sld [smem:[#allocation6_spill]]  ;;  %1142 = vmatpush.msra.mxu1 %v1121_v0  ;;  %v1118_v3 = vld [vmem:[%s12513_s3] sm:$0xff]  ;;  %v1153_v4 = vld [vmem:[%s12512_s14 + $0x18] sm:$0xff]  ;;  %v1152_v8 = vld [vmem:[%s12512_s14 + $0x10] sm:$0xff]  ;;  %s8194_s3 = smov 120   ;;  %vm12464_vm1 = vcmask 64512  }
  0x54   : > { %s8438_s2 = scalar_select %p1086_p10, %s8406_s0, 1  ;;  %v1151_v9 = vld [vmem:[%s12512_s14 + $0x8] sm:$0xff]  ;;  %v1150_v10 = vld [vmem:[%s12512_s14] sm:$0xff]  ;;  %v1647_v54 = vld [vmem:[%s8293_s20 + $0x18] sm:$0xff]  ;;  %v8199_v60 = vmov 0   ;;  %vm12461_vm2 = vcmask 130048  }
  0x55   : > { %1143 = vmatpush.msra.mxu1 %v1120_v1  ;;  %s12518_s8 = sld [smem:[#allocation8_spill]]  ;;  %v8032_v15 = vld [vmem:[%s8268_s19] ss:$0 sm:$0xff]  ;;  %s8198_s14 = smov 80   ;;  %v1646_v55 = vld [vmem:[%s8293_s20 + $0x10] sm:$0xff]  ;;  %v1645_v56 = vld [vmem:[%s8293_s20 + $0x8] sm:$0xff]  ;;  %7849 = vset.pattern.permute.xlu1 %v8199_v60 }
  0x56   : > { %s8442_s16 = sshll.u32 %s8438_s2, 3  ;;  %v1644_v57 = vld [vmem:[%s8293_s20] sm:$0xff]  ;;  %7851 = vset.pattern.permute.xlu2 %v8199_v60  ;;  %7850 = vset.pattern.permute.xlu0 %v8199_v60  ;;  %vm12459_vm3 = vcmask 195584   ;;  %vm1600_vm8 = vcmask 228544   ;;  %vm1567_vm9 = vcmask 162944   ;;  %vm1584_vm10 = vcmask 195744  }
  0x57   : > { %1144 = vmatpush.msra.mxu1 %v1119_v2  ;;  %vm1616_vm11 = vcmask 261344   ;;  %vm1578_vm12 = vcmask 31744   ;;  %vm12463_vm14 = vcmask 1043456   ;;  %s13210_s12 = sld [smem:[#allocation26_spill]] }
  0x58   : > { %s1089_s22 = scalar_lea.vmem %s12516_s5, %s8442_s16  ;;  %s8195_s5 = smov 112  }
  0x59   : > { %s1093_s23 = scalar_lea.vmem %s12517_s9, %s8442_s16  ;;  %v8449_v5 = vld [vmem:[%s1089_s22] sm:$0xff]  ;;  %1145 = vmatpush.msra.mxu1 %v1118_v3  ;;  %s8192_s22 = smov 88  }
  0x5a   : > { %v8451_v6 = vld [vmem:[%s1093_s23] sm:$0xff]  ;;  %s8193_s23 = smov 96   ;;  %s8196_s9 = smov 72  }
  0x5b   : > { %v1117_v7 = vadd.f32 %v8451_v6, %v8449_v5  ;;  %1173 = vmatpush.msrb.mxu1 %v1153_v4  ;;  %v8031_v11 = vld [vmem:[%s12518_s8] ss:$0 sm:$0xff]  ;;  %s8197_s8 = smov 104   ;;  %s13213_s6 = sld [smem:[#allocation27_spill]] }
  0x5d   : > { %7435 = vmatmul.msk.f32.vlgmr.msra.gmra.mxu1 %vm12458_vm0, %v1117_v7 }
  0x5e   : > { %1174 = vmatpush.msrb.mxu1 %v1152_v8 }
  0x60   : > { %1175 = vmatpush.msrb.mxu1 %v1151_v9 }
  0x62   : > { %1176 = vmatpush.msrb.mxu1 %v1150_v10 }
  0x65   : > { %7436 = vmatmul.msk.f32.vlgmr.msrb.gmra.mxu1 %vm12458_vm0, %v8449_v5 }
  0xda   : > { %v1147_v12 = vpop.f32.mrf.mxu1 }
  0xdb   : > { %v1148_v13 = vadd.f32 %v8031_v11, %v1147_v12 }
  0xdd   : > { %1253 = vrot.lane.b32.xlu2 %v1148_v13, %s8192_s22  ;;  %1189 = vrot.lane.b32.xlu0 %v1148_v13, %s8193_s23  ;;  %v1184_v14 = vmul.f32 0.35355338, %v1148_v13 }
  0xdf   : > { %1251 = vrot.lane.b32.xlu1 %v1184_v14, %s8194_s3 }
  0xe2   : > { %v1178_v16 = vpop.f32.mrf.mxu1 }
  0xe3   : > { %v1179_v17 = vadd.f32 %v8032_v15, %v1178_v16 }
  0xe5   : > { %1317 = vrot.lane.b32.xlu2 %v1184_v14, %s8195_s5  ;;  %1246 = vmatpush.msra.mxu3 %v1179_v17 }
  0xe7   : > { %1384 = vrot.lane.b32.xlu1 %v1148_v13, %s8196_s9  ;;  %s1096_s9 = scalar_lea.vmem %s8228_s13, %s8438_s2 }
  0xe8   : > { %v1181_v25 = vld [vmem:[%s1096_s9] sm:$0x1]  ;;  %s1104_s9 = scalar_lea.vmem %s8238_s21, %s8442_s16 }
  0xe9   : > { %v1182_v26 = vsub.f32 1.0, %v1181_v25  ;;  %v4618_v12 = vld [vmem:[%s1104_s9] sm:$0xff]  ;;  %s12523_s9 = sld [smem:[#allocation11_spill]] }
  0xeb   : > { %v1183_v27 = vmul.f32 -1e+30, %v1182_v26  ;;  %v4895_v26 = vmul.f32 6.0, %v4618_v12 }
  0xed   : > { %v8475_v28 = vperm.slane %v1183_v27, 0  ;;  %v7613_v27 = vadd.f32 -0.5, %v4895_v26 }
  0xef   : > { %1382 = vrot.lane.b32.xlu1 %v1184_v14, %s8197_s8 }
  0xf7   : > { %1319 = vrot.lane.b32.xlu1 %v1148_v13, %s8198_s14  ;;  %s7750_s14 = smul.u32 48, %s8438_s2  ;;  %s1100_s2 = scalar_lea.vmem %s8233_s17, %s8442_s16  ;;  %v4619_v13 = vmul.f32 12.0, %v4618_v12 }
  0xf8   : > { %v1747_v8 = vld [vmem:[%s1100_s2] sm:$0xff]  ;;  %s8200_s16 = smov 16   ;;  %s12521_s2 = sld [smem:[#allocation10_spill]] }
  0xf9   : > { %s1114_s22 = scalar_lea.vmem %s8248_s29, %s7750_s14  ;;  %s8496_s23 = scalar_lea.vmem %s8243_s25, %s7750_s14  ;;  %v7596_v15 = vadd.f32 -0.5, %v4619_v13 }
  0xfa   : > { %v1638_v58 = vld [vmem:[%s1114_s22] sm:$0xff]  ;;  %v1640_v59 = vld [vmem:[%s1114_s22 + $0x10] sm:$0xff]  ;;  %v1639_v0 = vld [vmem:[%s1114_s22 + $0x8] sm:$0xff]  ;;  %s12519_s14 = sld [smem:[#allocation13_spill]] }
  0xfb   : > { %v1705_v61 = vsub.f32 1.0, %v1638_v58  ;;  %v1707_v62 = vsub.f32 1.0, %v1640_v59  ;;  %v1632_v63 = vld [vmem:[%s8496_s23] sm:$0xff]  ;;  %v1641_v1 = vld [vmem:[%s1114_s22 + $0x18] sm:$0xff]  ;;  %v1706_v2 = vsub.f32 1.0, %v1639_v0  ;;  %v1633_v4 = vld [vmem:[%s8496_s23 + $0x8] sm:$0xff] }
  0xfc   : > { %v1708_v3 = vsub.f32 1.0, %v1641_v1  ;;  %v1642_v7 = vld [vmem:[%s1114_s22 + $0x20] sm:$0xff]  ;;  %v1643_v9 = vld [vmem:[%s1114_s22 + $0x28] sm:$0x3]  ;;  %v1634_v16 = vld [vmem:[%s8496_s23 + $0x10] sm:$0xff]  ;;  %s8202_s22 = smov 8  }
  0xfd   : > { %1723 = vperm.xlu2 %7851, %v1707_v62   ;;  %v1709_v10 = vsub.f32 1.0, %v1642_v7  ;;  %v1710_v11 = vsub.f32 1.0, %v1643_v9 }
  0xff   : > { %1291 = vrot.lane.b32.xlu1 %v1179_v17, %s8194_s3 }
 0x100   : > { %v1539_v58 = vld [vmem:[%s12519_s14 + $0x18] sm:$0xff]  ;;  %v1538_v59 = vld [vmem:[%s12519_s14 + $0x10] sm:$0xff]  ;;  %v1537_v62 = vld [vmem:[%s12519_s14 + $0x8] sm:$0xff] }
 0x101   : > { %v1536_v0 = vld [vmem:[%s12519_s14] sm:$0xff] }
 0x105   : > { %1728 = vperm.xlu2 %7851, %v1708_v3  }
 0x107   : > { %1421 = vrot.lane.b32.xlu1 %v1179_v17, %s8197_s8 }
 0x10d   : > { %1733 = vperm.xlu2 %7851, %v1709_v10  }
 0x137   : > { %v1254_v18 = vpop.permute.xlu2 %1253 }
 0x138   : > { %7440 = vmatpush.xpose.msk.msrb.mxu3 %vm12464_vm1, %v1254_v18  ;;  %v1635_v18 = vld [vmem:[%s8496_s23 + $0x18] sm:$0xff] }
 0x13f   : > { %v1318_v24 = vpop.permute.xlu2 %1317 }
 0x14f   : > { %v1190_v19 = vpop.permute.xlu0 %1189 }
 0x150   : > { %7437 = vmatpush.xpose.msk.msra.mxu2 %vm12464_vm1, %v1190_v19  ;;  %v1636_v19 = vld [vmem:[%s8496_s23 + $0x20] sm:$0xff] }
 0x151   : > { %v1252_v20 = vpop.permute.xlu1 %1251 }
 0x153   : > { %7438 = vmatmul.msk.f32.vlgmr.msra.gmra.mxu2 %vm12464_vm1, %v1184_v14  ;;  %v1748_v14 = vmul.f32 16.0, %v1747_v8 }
 0x159   : > { %v1385_v21 = vpop.permute.xlu1 %1384 }
 0x161   : > { %v1383_v22 = vpop.permute.xlu1 %1382 }
 0x169   : > { %v1320_v23 = vpop.permute.xlu1 %1319 }
 0x16a   : > { %7443 = vmatpush.xpose.msk.msra.mxu0 %vm12464_vm1, %v1320_v23  ;;  %v8201_v23 = vmov 1  }
 0x16d   : > { %7444 = vmatmul.msk.f32.vlgmr.msra.gmra.mxu0 %vm12464_vm1, %v1318_v24 }
 0x171   : > { %v1292_v35 = vpop.permute.xlu1 %1291 }
 0x172   : > { %1312 = vmatpush.msrb.mxu2 %v1292_v35  ;;  %v8033_v35 = vld [vmem:[%s8298_s27] ss:$0 sm:$0xff] }
 0x179   : > { %v1422_v37 = vpop.permute.xlu1 %1421 }
 0x17a   : > { %1442 = vmatpush.msra.mxu2 %v1422_v37 }
 0x1d6   : > { %v1214_v29 = vpop.f32.mrf.mxu2 }
 0x1d7   : > { %v1215_v30 = vadd.f32 %v1214_v29, %v8475_v28 }
 0x1d9   : > { %v1217_v31 = vsel %vm12464_vm1, %v1215_v30, -inf }
 0x1da   : > { %1218 = vmax.xlane.f32.xlu0 %v1217_v31 }
 0x1ea   : > { %v1342_v32 = vpop.f32.mrf.mxu0 }
 0x1eb   : > { %v1343_v33 = vadd.f32 %v1342_v32, %v8475_v28 }
 0x1ed   : > { %v1345_v34 = vsel %vm12464_vm1, %v1343_v33, -inf }
 0x1ee   : > { %1346 = vmax.xlane.f32.xlu0 %v1345_v34 }
 0x202   : > { %1356 = vrot.lane.b32.xlu0 %v1179_v17, %s8195_s5  ;;  %v7457_v17 = vadd.f32 -0.5, %v1748_v14 }
 0x204   : > { %1752 = vperm.xlu2 %7851, %v7457_v17  }
 0x20a   : > { %1718 = vperm.xlu0 %7850, %v1706_v2  }
 0x212   : > { %4623 = vperm.xlu0 %7850, %v7596_v15  }
 0x24d   : > { %v1219_v36 = vpop.xlane.xlu0 %1218 }
 0x24e   : > { %v1220_v40 = vsub.f32 %v1215_v30, %v1219_v36 }
 0x250   : > { %v1221_v42 = vmul.f32 1.442695, %v1220_v40 }
 0x261   : > { %v1347_v38 = vpop.xlane.xlu0 %1346 }
 0x262   : > { %v1348_v39 = vsub.f32 %v1343_v33, %v1347_v38 }
 0x264   : > { %v1349_v41 = vmul.f32 1.442695, %v1348_v39 }
 0x266   : > { %8048 = vpow2.f32 %v1349_v41 }
 0x267   : > { %8050 = vpow2.f32 %v1221_v42  ;;  %v1467_v42 = vld [vmem:[%s8273_s24 + $0x18] sm:$0xff] }
 0x268   : > { %1487 = vmatpush.msrb.mxu0 %v1467_v42 }
 0x26c   : > { %v8049_v43 = vpop.eup %8048 }
 0x26d   : > { %v1351_v44 = vsel %vm12464_vm1, %v8049_v43, 0.0  ;;  %v8051_v45 = vpop.eup %8050 }
 0x26e   : > { %1352 = vadd.xlane.f32.xlu1 %v1351_v44  ;;  %v1223_v47 = vsel %vm12464_vm1, %v8051_v45, 0.0 }
 0x274   : > { %v1357_v46 = vpop.permute.xlu0 %1356 }
 0x275   : > { %1377 = vmatpush.msra.mxu1 %v1357_v46 }
 0x276   : > { %1224 = vadd.xlane.f32.xlu1 %v1223_v47 }
 0x277   : > { %1559 = vmatpush.msrb.mxu1 %v1539_v58 }
 0x279   : > { %1560 = vmatpush.msrb.mxu1 %v1538_v59 }
 0x27b   : > { %1561 = vmatpush.msrb.mxu1 %v1537_v62 }
 0x27c   : > { %v1719_v44 = vpop.permute.xlu0 %1718 }
 0x27d   : > { %1562 = vmatpush.msrb.mxu1 %v1536_v0 }
 0x284   : > { %v8544_v1 = vpop.permute.xlu0 %4623 }
 0x28f   : > { %1713 = vperm.xlu1 %7849, %v1705_v61  }
 0x297   : > { %1738 = vperm.xlu1 %7849, %v1710_v11  }
 0x29f   : > { %7852 = vset.pattern.permute.xlu1 %v8201_v23 }
 0x2e1   : > { %v1353_v48 = vpop.xlane.xlu1 %1352 }
 0x2e2   : > { %8052 = vrcp.f32 %v1353_v48  ;;  %v1464_v48 = vld [vmem:[%s8273_s24] sm:$0xff] }
 0x2e8   : > { %v8053_v49 = vpop.eup %8052 }
 0x2e9   : > { %v1355_v50 = vmul.f32 %v8053_v49, %v8049_v43  ;;  %v1225_v51 = vpop.xlane.xlu1 %1224  ;;  %v1466_v43 = vld [vmem:[%s8273_s24 + $0x10] sm:$0xff]  ;;  %v1724_v49 = vpop.permute.xlu2 %1723 }
 0x2ea   : > { %8054 = vrcp.f32 %v1225_v51  ;;  %1488 = vmatpush.msrb.mxu0 %v1466_v43 }
 0x2eb   : > { %7445 = vmatmul.msk.f32.vlgmr.msra.gmra.mxu1 %vm12464_vm1, %v1355_v50 }
 0x2f0   : > { %v8055_v52 = vpop.eup %8054 }
 0x2f1   : > { %v1227_v53 = vmul.f32 %v8055_v52, %v8051_v45  ;;  %v1465_v45 = vld [vmem:[%s8273_s24 + $0x8] sm:$0xff] }
 0x2f2   : > { %1489 = vmatpush.msrb.mxu0 %v1465_v45 }
 0x2f3   : > { %7439 = vmatmul.msk.f32.vlgmr.msra.gmra.mxu3 %vm12464_vm1, %v1227_v53 }
 0x2f4   : > { %7446 = vmatpush.xpose.msk.msra.mxu3 %vm12464_vm1, %v1385_v21  ;;  %1490 = vmatpush.msrb.mxu0 %v1464_v48 }
 0x2fb   : > { %7441 = vmatmul.msk.f32.vlgmr.msrb.gmra.mxu3 %vm12464_vm1, %v1252_v20  ;;  %v1637_v20 = vld [vmem:[%s8496_s23 + $0x28] sm:$0x3]  ;;  %s12190_s23 = smov 24  }
 0x2fc   : > { %1682 = vmatpush.msrb.mxu3 %v1647_v54 }
 0x2fe   : > { %1683 = vmatpush.msrb.mxu3 %v1646_v55  ;;  %v8534_v55 = vpop.permute.xlu2 %1728 }
 0x300   : > { %1684 = vmatpush.msrb.mxu3 %v1645_v56 }
 0x301   : > { %v1714_v37 = vpop.permute.xlu1 %1713 }
 0x302   : > { %1685 = vmatpush.msrb.mxu3 %v1644_v57 }
 0x303   : > { %7447 = vmatmul.msk.f32.vlgmr.msra.gmra.mxu3 %vm12464_vm1, %v1383_v22  ;;  %v2082_v22 = vmul.f32 8.0, %v1747_v8 }
 0x305   : > { %v7474_v24 = vadd.f32 -0.5, %v2082_v22 }
 0x306   : > { %v8536_v56 = vpop.permute.xlu2 %1733 }
 0x307   : > { %2086 = vperm.xlu1 %7852, %v7474_v24  }
 0x30b   : > { %7451 = vmatmul.msk.f32.vlgmr.msrb.gmra.mxu3 %vm12458_vm0, %v1632_v63 }
 0x30e   : > { %v8538_v57 = vpop.permute.xlu2 %1752 }
 0x30f   : > { %4899 = vperm.xlu1 %7852, %v7613_v27   ;;  %v8556_v27 = vpop.permute.xlu1 %1738 }
 0x313   : > { %7452 = vmatmul.msk.f32.gmra.mxu3 %vm12458_vm0, %v1633_v4 }
 0x31b   : > { %7453 = vmatmul.msk.f32.gmra.mxu3 %vm12458_vm0, %v1634_v16 }
 0x323   : > { %7454 = vmatmul.msk.f32.gmra.mxu3 %vm12458_vm0, %v1635_v18 }
 0x32b   : > { %7455 = vmatmul.msk.f32.gmra.mxu3 %vm12458_vm0, %v1636_v19 }
 0x333   : > { %7456 = vmatmul.msk.f32.gmra.mxu3 %vm12458_vm0, %v1637_v20 }
 0x368   : > { %v1379_v21 = vpop.f32.mrf.mxu1 }
 0x369   : > { %1452 = vrot.lane.b32.xlu0 %v1379_v21, %s8200_s16 }
 0x376   : > { %v8515_v25 = vpop.f32.mrf.mxu3 }
 0x37e   : > { %v1276_v29 = vpop.f32.mrf.mxu3 }
 0x37f   : > { %v1277_v30 = vadd.f32 %v1276_v29, %v8475_v28  ;;  %v8558_v29 = vpop.permute.xlu1 %2086 }
 0x381   : > { %v1279_v31 = vsel %vm12464_vm1, %v1277_v30, -inf }
 0x382   : > { %1280 = vmax.xlane.f32.xlu2 %v1279_v31 }
 0x386   : > { %v1407_v32 = vpop.f32.mrf.mxu3 }
 0x387   : > { %v1408_v33 = vadd.f32 %v1407_v32, %v8475_v28 }
 0x389   : > { %v1410_v34 = vsel %vm12464_vm1, %v1408_v33, -inf }
 0x38a   : > { %1411 = vmax.xlane.f32.xlu2 %v1410_v34 }
 0x38e   : > { %v1687_v36 = vpop.f32.mrf.mxu3 }
 0x38f   : > { %v1688_v38 = vadd.f32 %v8033_v35, %v1687_v36 }
 0x391   : > { %v1741_v39 = vmul.f32 %v1714_v37, %v1688_v38 }
 0x393   : > { %3828 = vrot.lane.b32.xlu0 %v1741_v39, %s8195_s5 }
 0x396   : > { %v1690_v40 = vpop.f32.mrf.mxu3 }
 0x397   : > { %v1691_v41 = vadd.f32 %v8033_v35, %v1690_v40 }
 0x399   : > { %v1742_v47 = vmul.f32 %v1719_v44, %v1691_v41 }
 0x39b   : > { %2481 = vmatpush.msra.mxu0 %v1742_v47 }
 0x39d   : > { %2482 = vmatpush.msra.mxu0 %v1741_v39 }
 0x39e   : > { %v1693_v46 = vpop.f32.mrf.mxu3 }
 0x39f   : > { %v1694_v28 = vadd.f32 %v8033_v35, %v1693_v46 }
 0x3a1   : > { %v1743_v50 = vmul.f32 %v1724_v49, %v1694_v28 }
 0x3a2   : > { %4511 = vrot.lane.b32.xlu2 %v1741_v39, %s8197_s8 }
 0x3a3   : > { %v7853_v51 = vpack.i.bf16 %v1741_v39, %v1743_v50  ;;  %v7863_v52 = vpack.i.bf16 %v1742_v47, %v1743_v50  ;;  %v8034_v39 = vld [vmem:[%s12521_s2] ss:$0 sm:$0xff]  ;;  %s12524_s2 = sld [smem:[#allocation12_spill]] }
 0x3a5   : > { %7854 = vrot.lane.b32.xlu0 %v7853_v51, %s8194_s3  ;;  %7864 = vrot.lane.b32.xlu1 %v7863_v52, %s8197_s8 }
 0x3a6   : > { %v1696_v53 = vpop.f32.mrf.mxu3 }
 0x3a7   : > { %v8530_v54 = vadd.f32 %v8033_v35, %v1696_v53 }
 0x3aa   : > { %3147 = vrot.lane.b32.xlu2 %v1742_v47, %s8194_s3 }
 0x3b2   : > { %7859 = vrot.lane.b32.xlu2 %v7863_v52, %s8195_s5 }
 0x3db   : > { %v1453_v9 = vpop.permute.xlu0 %1452 }
 0x3f5   : > { %v1281_v60 = vpop.xlane.xlu2 %1280 }
 0x3f6   : > { %v1282_v61 = vsub.f32 %v1277_v30, %v1281_v60  ;;  %v8560_v30 = vpop.permute.xlu1 %4899 }
 0x3f8   : > { %v1283_v63 = vmul.f32 1.442695, %v1282_v61 }
 0x3fa   : > { %8056 = vpow2.f32 %v1283_v63 }
 0x3fd   : > { %v1412_v2 = vpop.xlane.xlu2 %1411 }
 0x3fe   : > { %v1413_v3 = vsub.f32 %v1408_v33, %v1412_v2 }
 0x400   : > { %v8057_v4 = vpop.eup %8056  ;;  %v1414_v7 = vmul.f32 1.442695, %v1413_v3  ;;  %v8035_v3 = vld [vmem:[%s12523_s9] ss:$0 sm:$0xff]  ;;  %s8206_s9 = smov 100  }
 0x401   : > { %v1285_v8 = vsel %vm12464_vm1, %v8057_v4, 0.0 }
 0x402   : > { %8058 = vpow2.f32 %v1414_v7  ;;  %1286 = vadd.xlane.f32.xlu0 %v1285_v8  ;;  %v8036_v7 = vld [vmem:[%s12524_s2] ss:$0 sm:$0xff]  ;;  %s13170_s2 = smov 24  }
 0x405   : > { %v8548_v12 = vpop.permute.xlu0 %3828  ;;  %v8550_v17 = vpop.permute.xlu2 %4511 }
 0x406   : > { %12520 = vst [vmem:[#allocation28_spill] sm:$0xff] %v8550_v17 }
 0x408   : > { %v8059_v10 = vpop.eup %8058 }
 0x409   : > { %v1416_v11 = vsel %vm12464_vm1, %v8059_v10, 0.0 }
 0x40a   : > { %1417 = vadd.xlane.f32.xlu0 %v1416_v11 }
 0x40d   : > { %v3148_v22 = vpop.permute.xlu2 %3147 }
 0x415   : > { %v7860_v31 = vpop.permute.xlu2 %7859 }
 0x416   : > { %v7861_v37 = vunpack.i.l.bf16 %v7860_v31 }
 0x417   : > { %v7855_v13 = vpop.permute.xlu0 %7854  ;;  %v8562_v32 = vpop.permute.xlu1 %7864 }
 0x418   : > { %v7856_v14 = vunpack.i.l.bf16 %v7855_v13  ;;  %v7857_v23 = vunpack.i.h.bf16 %v7855_v13  ;;  %v7862_v13 = vunpack.i.h.bf16 %v7860_v31 }
 0x41a   : > { %3123 = vmatpush.msra.mxu1 %v7856_v14  ;;  %v12192_v14 = vlaneseq }
 0x475   : > { %v1287_v15 = vpop.xlane.xlu0 %1286 }
 0x476   : > { %8060 = vrcp.f32 %v1287_v15  ;;  %v8586_v15 = vshrl.u32 %v12192_v14, 7 }
 0x478   : > { %12527 = vst [vmem:[#allocation31_spill] sm:$0xff] %v8586_v15  ;;  %7868 = vset.pattern.permute.xlu1 %v8586_v15  ;;  %7869 = vset.pattern.permute.xlu2 %v8586_v15 }
 0x479   : > { %7870 = vset.pattern.permute.xlu0 %v8586_v15 }
 0x47c   : > { %v8061_v16 = vpop.eup %8060 }
 0x47d   : > { %v1418_v18 = vpop.xlane.xlu0 %1417  ;;  %v1289_v19 = vmul.f32 %v8061_v16, %v8057_v4 }
 0x47e   : > { %8062 = vrcp.f32 %v1418_v18 }
 0x47f   : > { %7442 = vmatmul.msk.f32.vlgmr.msrb.gmra.mxu2 %vm12464_vm1, %v1289_v19 }
 0x480   : > { %2445 = vmatpush.msrb.mxu2 %v1743_v50 }
 0x484   : > { %v8063_v20 = vpop.eup %8062 }
 0x485   : > { %v1420_v21 = vmul.f32 %v8063_v20, %v8059_v10 }
 0x487   : > { %7448 = vmatmul.msk.f32.vlgmr.msra.gmra.mxu2 %vm12464_vm1, %v1420_v21 }
 0x488   : > { %3167 = vmatpush.msra.mxu2 %v3148_v22 }
 0x48a   : > { %3168 = vmatpush.msra.mxu2 %v7857_v23 }
 0x502   : > { %v1314_v24 = vpop.f32.mrf.mxu2 }
 0x503   : > { %1448 = vrot.lane.b32.xlu2 %v1314_v24, %s8202_s22 }
 0x50a   : > { %v1444_v26 = vpop.f32.mrf.mxu2 }
 0x50b   : > { %1456 = vrot.lane.b32.xlu1 %v1444_v26, %s12190_s23  ;;  %s12525_s23 = sld [smem:[#allocation14_spill]] }
 0x511   : > { %v8037_v16 = vld [vmem:[%s12525_s23] ss:$0 sm:$0xff]  ;;  %s8205_s23 = smov 108  }
 0x55d   : > { %v1449_v33 = vpop.permute.xlu2 %1448 }
 0x55e   : > { %v1459_v34 = vsel %vm12464_vm1, %v8515_v25, %v1449_v33  ;;  %v8204_v25 = vmov 32.0  }
 0x55f   : > { %v1461_v35 = vsel %vm12461_vm2, %v1459_v34, %v1453_v9  ;;  %8064 = vrcp.f32 %v8204_v25 }
 0x565   : > { %v8065_v44 = vpop.eup %8064 }
 0x566   : > { %v1500_v45 = vmul.f32 32.0, %v8065_v44  ;;  %vm1504_vm4 = vweird.f32 %v8065_v44 }
 0x568   : > { %v1501_v46 = vsub.f32 1.0, %v1500_v45 }
 0x56a   : > { %v1502_v28 = vmul.f32 %v8065_v44, %v1501_v46 }
 0x56c   : > { %v1503_v47 = vadd.f32 %v8065_v44, %v1502_v28 }
 0x56e   : > { %v8572_v48 = vsel %vm1504_vm4, %v8065_v44, %v1503_v47  ;;  %v8641_v44 = vadd.s32 2, %v8586_v15 }
 0x56f   : > { %12522 = vst [vmem:[#allocation29_spill] sm:$0xff] %v8572_v48 }
 0x57d   : > { %v1457_v36 = vpop.permute.xlu1 %1456 }
 0x57e   : > { %v1463_v38 = vsel %vm12459_vm3, %v1461_v35, %v1457_v36 }
 0x57f   : > { %7449 = vmatmul.msk.f32.vlgmr.msrb.gmra.mxu0 %vm12458_vm0, %v1463_v38 }
 0x580   : > { %3808 = vmatpush.msrb.mxu0 %v7861_v37 }
 0x5fc   : > { %v1492_v40 = vpop.f32.mrf.mxu0 }
 0x5fd   : > { %v1493_v41 = vadd.f32 %v8034_v39, %v1492_v40 }
 0x5ff   : > { %v1495_v42 = vadd.f32 %v1493_v41, %v8449_v5 }
 0x601   : > { %v1496_v43 = vsel %vm12458_vm0, %v1495_v42, 0.0 }
 0x602   : > { %1497 = vadd.xlane.f32.xlu2 %v1496_v43 }
 0x675   : > { %v1498_v49 = vpop.xlane.xlu2 %1497 }
 0x676   : > { %v1506_v50 = vmul.f32 %v8572_v48, %v1498_v49 }
 0x678   : > { %v1507_v51 = vsub.f32 %v1495_v42, %v1506_v50 }
 0x67a   : > { %v1508_v52 = vmul.f32 %v1507_v51, %v1507_v51 }
 0x67c   : > { %v1509_v5 = vsel %vm12458_vm0, %v1508_v52, 0.0 }
 0x67d   : > { %1510 = vadd.xlane.f32.xlu1 %v1509_v5 }
 0x6f0   : > { %v1511_v53 = vpop.xlane.xlu1 %1510 }
 0x6f1   : > { %v1512_v58 = vmul.f32 %v1511_v53, %v8572_v48 }
 0x6f3   : > { %v1513_v59 = vadd.f32 1e-05, %v1512_v58 }
 0x6f5   : > { %8066 = vrsqrt.f32 %v1513_v59  ;;  %vm1520_vm6 = vweird.f32 %v1513_v59 }
 0x6fb   : > { %v8067_v60 = vpop.eup %8066 }
 0x6fc   : > { %v1515_v61 = vmul.f32 %v8067_v60, %v1513_v59  ;;  %vm1521_vm5 = vweird.f32 %v8067_v60 }
 0x6fd   : > { %vm1522_vm7 = vmor %vm1520_vm6, %vm1521_vm5 }
 0x6fe   : > { %v1516_v62 = vmul.f32 %v8067_v60, %v1515_v61 }
 0x700   : > { %v1517_v63 = vmul.f32 0.5, %v1516_v62 }
 0x702   : > { %v1518_v0 = vsub.f32 1.5, %v1517_v63 }
 0x704   : > { %v1519_v2 = vmul.f32 %v8067_v60, %v1518_v0 }
 0x706   : > { %v1523_v4 = vsel %vm1522_vm7, %v8067_v60, %v1519_v2  ;;  %v8692_v2 = vadd.s32 4, %v8586_v15 }
 0x707   : > { %v1524_v8 = vmul.f32 %v1523_v4, %v1507_v51 }
 0x709   : > { %v1529_v9 = vmul.f32 %v8035_v3, %v1524_v8 }
 0x70b   : > { %v8579_v10 = vadd.f32 %v8036_v7, %v1529_v9  ;;  %v8724_v9 = vadd.s32 6, %v8586_v15 }
 0x70d   : > { %12526 = vst [vmem:[#allocation30_spill] sm:$0xff] %v8579_v10  ;;  %v1535_v11 = vadd.f32 %v8579_v10, %v8451_v6 }
 0x70e   : > { %12528 = vst [vmem:[#allocation32_spill] sm:$0xff] %v8724_v9 }
 0x70f   : > { %7450 = vmatmul.msk.f32.vlgmr.msrb.gmra.mxu1 %vm12458_vm0, %v1535_v11  ;;  %v8745_v11 = vadd.s32 8, %v8586_v15  ;;  %vm12460_vm0 = vcmask 1045504  }
 0x710   : > { %3850 = vmatpush.msrb.mxu1 %v7862_v13  ;;  %v8766_v13 = vadd.s32 10, %v8586_v15 }
 0x711   : > { %12529 = vst [vmem:[#allocation33_spill] sm:$0xff] %v8745_v11 }
 0x712   : > { %3851 = vmatpush.msrb.mxu1 %v8548_v12  ;;  %12530 = vst [vmem:[#allocation34_spill] sm:$0xff] %v8766_v13 }
 0x78c   : > { %v1564_v18 = vpop.f32.mrf.mxu1 }
 0x78d   : > { %v8592_v6 = vadd.f32 %v8037_v16, %v1564_v18  ;;  %v8775_v16 = vadd.s32 14, %v8586_v15 }
 0x78f   : > { %v1601_v19 = vsel %vm1600_vm8, %v8592_v6, -inf  ;;  %v1568_v12 = vsel %vm1567_vm9, %v8592_v6, -inf  ;;  %v1755_v20 = vadd.f32 %v8538_v57, %v8592_v6  ;;  %v1585_v24 = vsel %vm1584_vm10, %v8592_v6, -inf  ;;  %12531 = vst [vmem:[#allocation35_spill] sm:$0xff] %v8775_v16 }
 0x790   : > { %1602 = vmax.xlane.f32.xlu2 %v1601_v19  ;;  %1569 = vmax.xlane.f32.xlu0 %v1568_v12  ;;  %v1617_v31 = vsel %vm1616_vm11, %v8592_v6, -inf  ;;  %v2089_v43 = vadd.f32 %v8558_v29, %v8592_v6  ;;  %v4626_v10 = vadd.f32 %v8544_v1, %v8592_v6 }
 0x791   : > { %v1756_v21 = vfloor.f32 %v1755_v20 }
 0x792   : > { %v2090_v45 = vfloor.f32 %v2089_v43 }
 0x793   : > { %v1757_v22 = vsub.f32 %v1755_v20, %v1756_v21  ;;  %v7752_v36 = vcvt.f32.s32 %v1756_v21 }
 0x794   : > { %v2091_v28 = vsub.f32 %v2089_v43, %v2090_v45  ;;  %v7754_v53 = vcvt.f32.s32 %v2090_v45 }
 0x795   : > { %v8598_v23 = vperm.slane %v1757_v22, 0  ;;  %v8602_v26 = vperm.slane %v1757_v22, 2  ;;  %v8606_v57 = vperm.slane %v1757_v22, 5  ;;  %v8608_v33 = vperm.slane %v1757_v22, 1 }
 0x796   : > { %v8612_v34 = vperm.slane %v1757_v22, 7  ;;  %v8614_v35 = vperm.slane %v1757_v22, 4  ;;  %v8618_v37 = vperm.slane %v1757_v22, 3  ;;  %v8621_v38 = vperm.slane %v7752_v36, 2 }
 0x797   : > { %1763 = vperm.xlu1 %7868, %v8598_v23   ;;  %v8623_v39 = vperm.slane %v1757_v22, 6  ;;  %v8627_v40 = vperm.slane %v7752_v36, 0  ;;  %v8630_v41 = vperm.slane %v7752_v36, 5  ;;  %v8632_v42 = vperm.slane %v7752_v36, 1 }
 0x798   : > { %1586 = vmax.xlane.f32.xlu0 %v1585_v24  ;;  %v8638_v25 = vperm.slane %v7752_v36, 3  ;;  %v8644_v46 = vperm.slane %v7752_v36, 4  ;;  %v8648_v47 = vperm.slane %v7752_v36, 6  ;;  %v8651_v29 = vperm.slane %v2091_v28, 2 }
 0x799   : > { %v8653_v49 = vperm.slane %v7752_v36, 7  ;;  %v8658_v50 = vperm.slane %v2091_v28, 4  ;;  %v8662_v51 = vperm.slane %v2091_v28, 0  ;;  %v8665_v52 = vperm.slane %v2091_v28, 7 }
 0x79a   : > { %v8667_v5 = vperm.slane %v2091_v28, 1  ;;  %v8671_v58 = vperm.slane %v2091_v28, 5  ;;  %v8674_v59 = vperm.slane %v7754_v53, 2  ;;  %v8676_v60 = vperm.slane %v2091_v28, 3 }
 0x79b   : > { %v8680_v61 = vperm.slane %v7754_v53, 0  ;;  %v8683_v62 = vperm.slane %v7754_v53, 5  ;;  %v8685_v63 = vperm.slane %v2091_v28, 6  ;;  %v8689_v0 = vperm.slane %v7754_v53, 3 }
 0x79c   : > { %v8695_v3 = vperm.slane %v7754_v53, 1  ;;  %v8699_v4 = vperm.slane %v7754_v53, 6  ;;  %v8702_v7 = vperm.slane %v7754_v53, 4  ;;  %v8707_v8 = vperm.slane %v7754_v53, 7 }
 0x79d   : > { %v8829_v53 = vadd.s32 12, %v8586_v15 }
 0x79f   : > { %1777 = vperm.xlu1 %7868, %v8602_v26   ;;  %12532 = vst [vmem:[#allocation36_spill] sm:$0xff] %v8829_v53 }
 0x7a0   : > { %1618 = vmax.xlane.f32.xlu0 %v1617_v31 }
 0x7a7   : > { %1798 = vperm.xlu1 %7868, %v8606_v57  }
 0x7a8   : > { %1770 = vperm.xlu2 %7869, %v8608_v33  }
 0x7af   : > { %1812 = vperm.xlu1 %7868, %v8612_v34  }
 0x7b0   : > { %1791 = vperm.xlu2 %7869, %v8614_v35  }
 0x7b4   : > { %1784 = vperm.xlu0 %7870, %v8618_v37  }
 0x7b7   : > { %1834 = vperm.xlu1 %7868, %v8621_v38  }
 0x7b8   : > { %1805 = vperm.xlu2 %7869, %v8623_v39  }
 0x7bc   : > { %1820 = vperm.xlu0 %7870, %v8627_v40  }
 0x7bf   : > { %1855 = vperm.xlu1 %7868, %v8630_v41  }
 0x7c0   : > { %1827 = vperm.xlu2 %7869, %v8632_v42  }
 0x7c4   : > { %1841 = vperm.xlu0 %7870, %v8638_v25  }
 0x7c7   : > { %7873 = vset.pattern.permute.xlu1 %v8641_v44 }
 0x7c8   : > { %1848 = vperm.xlu2 %7869, %v8644_v46  }
 0x7cc   : > { %1862 = vperm.xlu0 %7870, %v8648_v47  }
 0x7cf   : > { %2111 = vperm.xlu1 %7873, %v8651_v29  }
 0x7d0   : > { %1869 = vperm.xlu2 %7869, %v8653_v49  }
 0x7d4   : > { %7871 = vset.pattern.permute.xlu0 %v8641_v44 }
 0x7d7   : > { %2125 = vperm.xlu1 %7873, %v8658_v50  }
 0x7d8   : > { %7872 = vset.pattern.permute.xlu2 %v8641_v44 }
 0x7dc   : > { %2097 = vperm.xlu0 %7871, %v8662_v51  }
 0x7df   : > { %2146 = vperm.xlu1 %7873, %v8665_v52  }
 0x7e0   : > { %2104 = vperm.xlu2 %7872, %v8667_v5  }
 0x7e4   : > { %2132 = vperm.xlu0 %7871, %v8671_v58  }
 0x7e7   : > { %2168 = vperm.xlu1 %7873, %v8674_v59  }
 0x7e8   : > { %2118 = vperm.xlu2 %7872, %v8676_v60  }
 0x7ec   : > { %2154 = vperm.xlu0 %7871, %v8680_v61  }
 0x7ef   : > { %2189 = vperm.xlu1 %7873, %v8683_v62  }
 0x7f0   : > { %2139 = vperm.xlu2 %7872, %v8685_v63  }
 0x7f4   : > { %2175 = vperm.xlu0 %7871, %v8689_v0  }
 0x7f7   : > { %7874 = vset.pattern.permute.xlu1 %v8692_v2 }
 0x7f8   : > { %2161 = vperm.xlu2 %7872, %v8695_v3  }
 0x7fc   : > { %2196 = vperm.xlu0 %7871, %v8699_v4  }
 0x7ff   : > { %2491 = vperm.xlu1 %7874, %v8598_v23  }
 0x800   : > { %2182 = vperm.xlu2 %7872, %v8702_v7  }
 0x803   : > { %v8780_v18 = vpop.xlane.xlu2 %1602 }
 0x804   : > { %7875 = vset.pattern.permute.xlu0 %v8692_v2 }
 0x807   : > { %2509 = vperm.xlu1 %7874, %v8618_v37  }
 0x808   : > { %2203 = vperm.xlu2 %7872, %v8707_v8  }
 0x809   : > { %v8790_v12 = vpop.permute.xlu1 %1763 }
 0x80b   : > { %v8785_v19 = vpop.permute.xlu2 %1770 }
 0x80c   : > { %2497 = vperm.xlu0 %7875, %v8608_v33  }
 0x80f   : > { %2521 = vperm.xlu1 %7874, %v8606_v57  }
 0x810   : > { %7876 = vset.pattern.permute.xlu2 %v8692_v2 }
 0x811   : > { %v8798_v21 = vpop.permute.xlu1 %1777 }
 0x813   : > { %v8793_v20 = vpop.permute.xlu2 %1791 }
 0x814   : > { %2527 = vperm.xlu0 %7875, %v8623_v39  }
 0x817   : > { %2539 = vperm.xlu1 %7874, %v8627_v40  }
 0x818   : > { %2503 = vperm.xlu2 %7876, %v8602_v26  }
 0x819   : > { %v8805_v24 = vpop.permute.xlu1 %1798 }
 0x81b   : > { %v8801_v22 = vpop.permute.xlu2 %1805 }
 0x81c   : > { %2545 = vperm.xlu0 %7875, %v8632_v42  }
 0x81f   : > { %2557 = vperm.xlu1 %7874, %v8638_v25  }
 0x820   : > { %2515 = vperm.xlu2 %7876, %v8614_v35  }
 0x821   : > { %v8814_v36 = vpop.permute.xlu1 %1812 }
 0x823   : > { %v8809_v31 = vpop.permute.xlu2 %1827 }
 0x824   : > { %2563 = vperm.xlu0 %7875, %v8644_v46  }
 0x827   : > { %2575 = vperm.xlu1 %7874, %v8648_v47  }
 0x828   : > { %2533 = vperm.xlu2 %7876, %v8612_v34  }
 0x829   : > { %v8821_v45 = vpop.permute.xlu1 %1834 }
 0x82b   : > { %v8816_v43 = vpop.permute.xlu2 %1848 }
 0x82c   : > { %2581 = vperm.xlu0 %7875, %v8653_v49  }
 0x82f   : > { %7878 = vset.pattern.permute.xlu1 %v8724_v9 }
 0x830   : > { %2551 = vperm.xlu2 %7876, %v8621_v38  }
 0x833   : > { %v8824_v28 = vpop.permute.xlu2 %1869 }
 0x834   : > { %7879 = vset.pattern.permute.xlu0 %v8724_v9 }
 0x837   : > { %2801 = vperm.xlu1 %7878, %v8667_v5  }
 0x838   : > { %2569 = vperm.xlu2 %7876, %v8630_v41  }
 0x83c   : > { %2807 = vperm.xlu0 %7879, %v8651_v29  }
 0x83f   : > { %2819 = vperm.xlu1 %7878, %v8658_v50  }
 0x840   : > { %7877 = vset.pattern.permute.xlu2 %v8724_v9 }
 0x844   : > { %2837 = vperm.xlu0 %7879, %v8665_v52  }
 0x847   : > { %2831 = vperm.xlu1 %7878, %v8685_v63  }
 0x848   : > { %2795 = vperm.xlu2 %7877, %v8662_v51  }
 0x84c   : > { %2855 = vperm.xlu0 %7879, %v8674_v59  }
 0x84f   : > { %2849 = vperm.xlu1 %7878, %v8695_v3  }
 0x850   : > { %2813 = vperm.xlu2 %7877, %v8676_v60  }
 0x854   : > { %2873 = vperm.xlu0 %7879, %v8683_v62  }
 0x857   : > { %2867 = vperm.xlu1 %7878, %v8702_v7  }
 0x858   : > { %2825 = vperm.xlu2 %7877, %v8671_v58  }
 0x85c   : > { %7881 = vset.pattern.permute.xlu0 %v8745_v11 }
 0x85f   : > { %2885 = vperm.xlu1 %7878, %v8707_v8  }
 0x860   : > { %2843 = vperm.xlu2 %7877, %v8680_v61  }
 0x864   : > { %3183 = vperm.xlu0 %7881, %v8608_v33  }
 0x867   : > { %7880 = vset.pattern.permute.xlu1 %v8745_v11 }
 0x868   : > { %2861 = vperm.xlu2 %7877, %v8689_v0  }
 0x86c   : > { %3213 = vperm.xlu0 %7881, %v8623_v39  }
 0x86f   : > { %3177 = vperm.xlu1 %7880, %v8598_v23  }
 0x870   : > { %2879 = vperm.xlu2 %7877, %v8699_v4  }
 0x874   : > { %3231 = vperm.xlu0 %7881, %v8632_v42  }
 0x877   : > { %3195 = vperm.xlu1 %7880, %v8618_v37  }
 0x878   : > { %7882 = vset.pattern.permute.xlu2 %v8745_v11 }
 0x87c   : > { %3249 = vperm.xlu0 %7881, %v8644_v46  }
 0x87f   : > { %3207 = vperm.xlu1 %7880, %v8606_v57  }
 0x880   : > { %3189 = vperm.xlu2 %7882, %v8602_v26  }
 0x884   : > { %3267 = vperm.xlu0 %7881, %v8653_v49  }
 0x887   : > { %3225 = vperm.xlu1 %7880, %v8627_v40  }
 0x888   : > { %3201 = vperm.xlu2 %7882, %v8614_v35  }
 0x88c   : > { %7885 = vset.pattern.permute.xlu0 %v8766_v13 }
 0x88f   : > { %3243 = vperm.xlu1 %7880, %v8638_v25  }
 0x890   : > { %3219 = vperm.xlu2 %7882, %v8612_v34  }
 0x894   : > { %3541 = vperm.xlu0 %7885, %v8674_v59  }
 0x897   : > { %3261 = vperm.xlu1 %7880, %v8648_v47  }
 0x898   : > { %3237 = vperm.xlu2 %7882, %v8621_v38  }
 0x89c   : > { %7887 = vset.pattern.permute.xlu0 %v8775_v16 }
 0x89f   : > { %7884 = vset.pattern.permute.xlu1 %v8766_v13 }
 0x8a0   : > { %3255 = vperm.xlu2 %7882, %v8630_v41  }
 0x8a4   : > { %4218 = vperm.xlu0 %7887, %v8695_v3  }
 0x8a7   : > { %3535 = vperm.xlu1 %7884, %v8695_v3  }
 0x8a8   : > { %7883 = vset.pattern.permute.xlu2 %v8766_v13 }
 0x8ac   : > { %7890 = vset.pattern.permute.xlu0 %v8766_v13 }
 0x8af   : > { %3487 = vperm.xlu1 %7884, %v8667_v5  }
 0x8b0   : > { %3529 = vperm.xlu2 %7883, %v8680_v61  }
 0x8b4   : > { %3559 = vperm.xlu0 %7890, %v8683_v62  }
 0x8b7   : > { %7886 = vset.pattern.permute.xlu1 %v8775_v16 }
 0x8b8   : > { %3481 = vperm.xlu2 %7883, %v8662_v51  }
 0x8bc   : > { %3565 = vperm.xlu0 %7890, %v8699_v4  }
 0x8bf   : > { %4212 = vperm.xlu1 %7886, %v8680_v61   ;;  %v8832_v61 = vpop.permute.xlu1 %1855 }
 0x8c0   : > { %3547 = vperm.xlu2 %7883, %v8689_v0  }
 0x8c4   : > { %3511 = vperm.xlu0 %7890, %v8671_v58  }
 0x8c7   : > { %7888 = vset.pattern.permute.xlu1 %v8766_v13 }
 0x8c8   : > { %3493 = vperm.xlu2 %7883, %v8651_v29  }
 0x8cc   : > { %7895 = vset.pattern.permute.xlu0 %v8775_v16 }
 0x8cf   : > { %3553 = vperm.xlu1 %7888, %v8702_v7  }
 0x8d0   : > { %7889 = vset.pattern.permute.xlu2 %v8775_v16 }
 0x8d4   : > { %4242 = vperm.xlu0 %7895, %v8683_v62   ;;  %v8839_v62 = vpop.permute.xlu1 %2111 }
 0x8d7   : > { %3499 = vperm.xlu1 %7888, %v8676_v60  }
 0x8d8   : > { %4224 = vperm.xlu2 %7889, %v8674_v59   ;;  %v8835_v59 = vpop.permute.xlu2 %2104 }
 0x8dc   : > { %4254 = vperm.xlu0 %7895, %v8707_v8   ;;  %v8846_v3 = vpop.permute.xlu1 %2125 }
 0x8dd   : > { %12534 = vst [vmem:[#allocation38_spill] sm:$0xff] %v8846_v3 }
 0x8df   : > { %7891 = vset.pattern.permute.xlu1 %v8775_v16 }
 0x8e0   : > { %4164 = vperm.xlu2 %7889, %v8662_v51   ;;  %v8843_v51 = vpop.permute.xlu2 %2118 }
 0x8e1   : > { %12533 = vst [vmem:[#allocation37_spill] sm:$0xff] %v8843_v51 }
 0x8e4   : > { %7903 = vset.pattern.permute.xlu0 %v8829_v53 }
 0x8e7   : > { %4170 = vperm.xlu1 %7891, %v8667_v5  }
 0x8e8   : > { %4230 = vperm.xlu2 %7889, %v8689_v0   ;;  %v8850_v5 = vpop.permute.xlu2 %2139 }
 0x8e9   : > { %12535 = vst [vmem:[#allocation39_spill] sm:$0xff] %v8850_v5 }
 0x8ec   : > { %3860 = vperm.xlu0 %7903, %v8598_v23   ;;  %v4902_v23 = vadd.f32 %v8560_v30, %v8592_v6 }
 0x8ef   : > { %7892 = vset.pattern.permute.xlu1 %v8766_v13 }
 0x8f0   : > { %4176 = vperm.xlu2 %7889, %v8651_v29   ;;  %v8857_v29 = vpop.permute.xlu1 %2146  ;;  %v8860_v0 = vpop.permute.xlu2 %2161 }
 0x8f1   : > { %12536 = vst [vmem:[#allocation40_spill] sm:$0xff] %v8857_v29 }
 0x8f4   : > { %3884 = vperm.xlu0 %7903, %v8614_v35   ;;  %v4903_v35 = vfloor.f32 %v4902_v23 }
 0x8f6   : > { %v8862_v14 = vsub.f32 %v4902_v23, %v4903_v35 }
 0x8f7   : > { %3505 = vperm.xlu1 %7892, %v8658_v50  }
 0x8f8   : > { %7894 = vset.pattern.permute.xlu2 %v8766_v13  ;;  %v8869_v30 = vpop.permute.xlu1 %2168  ;;  %v8875_v48 = vpop.permute.xlu2 %2182 }
 0x8f9   : > { %12538 = vst [vmem:[#allocation42_spill] sm:$0xff] %v8875_v48 }
 0x8fc   : > { %3950 = vperm.xlu0 %7903, %v8653_v49   ;;  %v8867_v49 = vperm.slane %v8862_v14, 1 }
 0x8fe   : > { %12537 = vst [vmem:[#allocation41_spill] sm:$0xff] %v8867_v49 }
 0x8ff   : > { %7893 = vset.pattern.permute.xlu1 %v8775_v16 }
 0x900   : > { %3571 = vperm.xlu2 %7894, %v8707_v8   ;;  %v8872_v8 = vcvt.f32.s32 %v4903_v35  ;;  %v8888_v35 = vpop.permute.xlu2 %2203 }
 0x901   : > { %12541 = vst [vmem:[#allocation45_spill] sm:$0xff] %v8888_v35 }
 0x902   : > { %v8879_v23 = vperm.slane %v8872_v8, 5 }
 0x904   : > { %7909 = vset.pattern.permute.xlu0 %v8641_v44  ;;  %12539 = vst [vmem:[#allocation43_spill] sm:$0xff] %v8879_v23 }
 0x907   : > { %4236 = vperm.xlu1 %7893, %v8702_v7   ;;  %v8882_v7 = vpop.permute.xlu1 %2189 }
 0x908   : > { %3517 = vperm.xlu2 %7894, %v8685_v63   ;;  %12540 = vst [vmem:[#allocation44_spill] sm:$0xff] %v8882_v7  ;;  %v8897_v5 = vpop.permute.xlu2 %2503  ;;  %v9113_v7 = vperm.slane %v8872_v8, 7 }
 0x909   : > { %12543 = vst [vmem:[#allocation47_spill] sm:$0xff] %v8897_v5 }
 0x90a   : > { %12599 = vst [vmem:[#allocation103_spill] sm:$0xff] %v9113_v7 }
 0x90c   : > { %4917 = vperm.xlu0 %7909, %v8867_v49  }
 0x90f   : > { %4182 = vperm.xlu1 %7893, %v8676_v60   ;;  %v4627_v60 = vfloor.f32 %v4626_v10  ;;  %v8891_v11 = vpop.permute.xlu1 %2491 }
 0x910   : > { %7896 = vset.pattern.permute.xlu2 %v8775_v16  ;;  %12542 = vst [vmem:[#allocation46_spill] sm:$0xff] %v8891_v11  ;;  %v8915_v11 = vperm.slane %v8862_v14, 6 }
 0x911   : > { %v8893_v17 = vcvt.f32.s32 %v4627_v60 }
 0x912   : > { %12548 = vst [vmem:[#allocation52_spill] sm:$0xff] %v8915_v11 }
 0x913   : > { %v8900_v1 = vperm.slane %v8893_v17, 0 }
 0x914   : > { %5002 = vperm.xlu0 %7909, %v8879_v23  }
 0x915   : > { %12544 = vst [vmem:[#allocation48_spill] sm:$0xff] %v8900_v1 }
 0x917   : > { %4188 = vperm.xlu1 %7893, %v8658_v50   ;;  %v8903_v50 = vpop.permute.xlu1 %2509 }
 0x918   : > { %4248 = vperm.xlu2 %7896, %v8699_v4   ;;  %12545 = vst [vmem:[#allocation49_spill] sm:$0xff] %v8903_v50  ;;  %v8907_v4 = vpop.permute.xlu2 %2515 }
 0x919   : > { %12546 = vst [vmem:[#allocation50_spill] sm:$0xff] %v8907_v4 }
 0x91c   : > { %7910 = vset.pattern.permute.xlu0 %v8586_v15 }
 0x91f   : > { %7897 = vset.pattern.permute.xlu1 %v8766_v13  ;;  %v8912_v5 = vpop.permute.xlu1 %2521 }
 0x920   : > { %7899 = vset.pattern.permute.xlu2 %v8829_v53  ;;  %12547 = vst [vmem:[#allocation51_spill] sm:$0xff] %v8912_v5  ;;  %v8918_v50 = vpop.permute.xlu2 %2533 }
 0x921   : > { %12549 = vst [vmem:[#allocation53_spill] sm:$0xff] %v8918_v50 }
 0x924   : > { %4691 = vperm.xlu0 %7910, %v8900_v1  }
 0x927   : > { %3523 = vperm.xlu1 %7897, %v8665_v52  }
 0x928   : > { %3914 = vperm.xlu2 %7899, %v8632_v42   ;;  %v8922_v42 = vpop.permute.xlu1 %2539  ;;  %v8926_v4 = vpop.permute.xlu2 %2551 }
 0x929   : > { %12550 = vst [vmem:[#allocation54_spill] sm:$0xff] %v8922_v42 }
 0x92a   : > { %12551 = vst [vmem:[#allocation55_spill] sm:$0xff] %v8926_v4 }
 0x92c   : > { %7914 = vset.pattern.permute.xlu0 %v8641_v44 }
 0x92f   : > { %7898 = vset.pattern.permute.xlu1 %v8829_v53 }
 0x930   : > { %7902 = vset.pattern.permute.xlu2 %v8775_v16  ;;  %v8930_v5 = vpop.permute.xlu1 %2557 }
 0x931   : > { %12552 = vst [vmem:[#allocation56_spill] sm:$0xff] %v8930_v5 }
 0x934   : > { %4952 = vperm.xlu0 %7914, %v8915_v11  }
 0x937   : > { %3908 = vperm.xlu1 %7898, %v8627_v40   ;;  %v8934_v40 = vpop.permute.xlu2 %2569 }
 0x938   : > { %4200 = vperm.xlu2 %7902, %v8685_v63   ;;  %12553 = vst [vmem:[#allocation57_spill] sm:$0xff] %v8934_v40  ;;  %v8937_v63 = vsub.f32 %v4626_v10, %v4627_v60  ;;  %v8939_v11 = vpop.permute.xlu1 %2575 }
 0x939   : > { %12554 = vst [vmem:[#allocation58_spill] sm:$0xff] %v8939_v11 }
 0x93a   : > { %v8954_v10 = vperm.slane %v8937_v63, 4  ;;  %v9110_v35 = vperm.slane %v8937_v63, 1 }
 0x93c   : > { %7917 = vset.pattern.permute.xlu0 %v8692_v2  ;;  %12558 = vst [vmem:[#allocation62_spill] sm:$0xff] %v8954_v10 }
 0x93d   : > { %12598 = vst [vmem:[#allocation102_spill] sm:$0xff] %v9110_v35 }
 0x93f   : > { %7900 = vset.pattern.permute.xlu1 %v8775_v16  ;;  %v8943_v50 = vpop.permute.xlu2 %2795 }
 0x940   : > { %7904 = vset.pattern.permute.xlu2 %v8829_v53  ;;  %12555 = vst [vmem:[#allocation59_spill] sm:$0xff] %v8943_v50  ;;  %v9053_v50 = vperm.slane %v8872_v8, 4 }
 0x942   : > { %12583 = vst [vmem:[#allocation87_spill] sm:$0xff] %v9053_v50 }
 0x944   : > { %5310 = vperm.xlu0 %7917, %v8900_v1   ;;  %v8946_v1 = vperm.slane %v8937_v63, 3 }
 0x946   : > { %12556 = vst [vmem:[#allocation60_spill] sm:$0xff] %v8946_v1 }
 0x947   : > { %4194 = vperm.xlu1 %7900, %v8671_v58   ;;  %v8956_v58 = vpop.permute.xlu2 %2813 }
 0x948   : > { %3866 = vperm.xlu2 %7904, %v8608_v33   ;;  %v8949_v33 = vpop.permute.xlu1 %2801  ;;  %12559 = vst [vmem:[#allocation63_spill] sm:$0xff] %v8956_v58 }
 0x949   : > { %12557 = vst [vmem:[#allocation61_spill] sm:$0xff] %v8949_v33 }
 0x94c   : > { %7922 = vset.pattern.permute.xlu0 %v8586_v15 }
 0x94f   : > { %7901 = vset.pattern.permute.xlu1 %v8829_v53  ;;  %v8964_v33 = vpop.permute.xlu2 %2825 }
 0x950   : > { %7905 = vset.pattern.permute.xlu2 %v8775_v16  ;;  %v8961_v60 = vpop.permute.xlu1 %2819  ;;  %12561 = vst [vmem:[#allocation65_spill] sm:$0xff] %v8964_v33  ;;  %v9029_v33 = vpop.xlane.xlu0 %1569 }
 0x951   : > { %12560 = vst [vmem:[#allocation64_spill] sm:$0xff] %v8961_v60  ;;  %v9048_v60 = vperm.slane %v8862_v14, 3 }
 0x953   : > { %12582 = vst [vmem:[#allocation86_spill] sm:$0xff] %v9048_v60 }
 0x954   : > { %4655 = vperm.xlu0 %7922, %v8946_v1  }
 0x957   : > { %3920 = vperm.xlu1 %7901, %v8621_v38   ;;  %v8969_v38 = vperm.slane %v8893_v17, 4 }
 0x958   : > { %4206 = vperm.xlu2 %7905, %v8665_v52   ;;  %v8971_v52 = vpop.permute.xlu1 %2831  ;;  %v9050_v58 = vpop.xlane.xlu0 %1586 }
 0x959   : > { %12562 = vst [vmem:[#allocation66_spill] sm:$0xff] %v8969_v38 }
 0x95a   : > { %12563 = vst [vmem:[#allocation67_spill] sm:$0xff] %v8971_v52 }
 0x95c   : > { %4662 = vperm.xlu0 %7922, %v8954_v10  }
 0x95f   : > { %3926 = vperm.xlu1 %7901, %v8638_v25   ;;  %v8975_v25 = vpop.permute.xlu2 %2843 }
 0x960   : > { %7906 = vset.pattern.permute.xlu2 %v8829_v53  ;;  %12564 = vst [vmem:[#allocation68_spill] sm:$0xff] %v8975_v25  ;;  %v8979_v53 = vpop.permute.xlu1 %2849  ;;  %v9069_v40 = vpop.xlane.xlu0 %1618 }
 0x961   : > { %12565 = vst [vmem:[#allocation69_spill] sm:$0xff] %v8979_v53 }
 0x964   : > { %7925 = vset.pattern.permute.xlu0 %v8692_v2 }
 0x967   : > { %3872 = vperm.xlu1 %7901, %v8602_v26   ;;  %v8983_v26 = vpop.permute.xlu2 %2861 }
 0x968   : > { %3932 = vperm.xlu2 %7906, %v8644_v46   ;;  %12566 = vst [vmem:[#allocation70_spill] sm:$0xff] %v8983_v26  ;;  %v8986_v46 = vperm.slane %v8937_v63, 6  ;;  %v9082_v5 = vpop.permute.xlu0 %1784 }
 0x96a   : > { %12567 = vst [vmem:[#allocation71_spill] sm:$0xff] %v8986_v46 }
 0x96c   : > { %5334 = vperm.xlu0 %7925, %v8969_v38  }
 0x96f   : > { %3938 = vperm.xlu1 %7901, %v8630_v41   ;;  %v8989_v41 = vpop.permute.xlu1 %2867  ;;  %v8996_v52 = vpop.permute.xlu2 %2879 }
 0x970   : > { %3878 = vperm.xlu2 %7906, %v8618_v37   ;;  %12568 = vst [vmem:[#allocation72_spill] sm:$0xff] %v8989_v41  ;;  %v8994_v37 = vperm.slane %v8937_v63, 7  ;;  %v9023_v41 = vperm.slane %v8872_v8, 2 }
 0x971   : > { %12570 = vst [vmem:[#allocation74_spill] sm:$0xff] %v8996_v52 }
 0x972   : > { %12569 = vst [vmem:[#allocation73_spill] sm:$0xff] %v8994_v37 }
 0x973   : > { %12576 = vst [vmem:[#allocation80_spill] sm:$0xff] %v9023_v41 }
 0x974   : > { %7929 = vset.pattern.permute.xlu0 %v8586_v15 }
 0x977   : > { %3890 = vperm.xlu1 %7901, %v8606_v57   ;;  %v9001_v57 = vpop.permute.xlu1 %2885 }
 0x978   : > { %3944 = vperm.xlu2 %7906, %v8648_v47   ;;  %12571 = vst [vmem:[#allocation75_spill] sm:$0xff] %v9001_v57  ;;  %v9003_v47 = vpop.permute.xlu2 %3189  ;;  %v9018_v57 = vperm.slane %v8862_v14, 0 }
 0x979   : > { %12572 = vst [vmem:[#allocation76_spill] sm:$0xff] %v9003_v47 }
 0x97a   : > { %12574 = vst [vmem:[#allocation78_spill] sm:$0xff] %v9018_v57 }
 0x97c   : > { %4676 = vperm.xlu0 %7929, %v8986_v46  }
 0x97f   : > { %3896 = vperm.xlu1 %7901, %v8623_v39   ;;  %v9007_v39 = vperm.slane %v8872_v8, 1  ;;  %v9014_v52 = vpop.permute.xlu1 %3177 }
 0x980   : > { %3902 = vperm.xlu2 %7906, %v8612_v34   ;;  %v9010_v34 = vperm.slane %v8872_v8, 0  ;;  %12573 = vst [vmem:[#allocation77_spill] sm:$0xff] %v9014_v52  ;;  %v9020_v47 = vpop.permute.xlu2 %3201  ;;  %v9036_v52 = vperm.slane %v8872_v8, 3 }
 0x981   : > { %12575 = vst [vmem:[#allocation79_spill] sm:$0xff] %v9020_v47 }
 0x982   : > { %12579 = vst [vmem:[#allocation83_spill] sm:$0xff] %v9036_v52 }
 0x984   : > { %4683 = vperm.xlu0 %7929, %v8994_v37  }
 0x987   : > { %7908 = vset.pattern.permute.xlu1 %v8641_v44  ;;  %v9027_v26 = vpop.permute.xlu1 %3195 }
 0x988   : > { %7907 = vset.pattern.permute.xlu2 %v8641_v44  ;;  %12577 = vst [vmem:[#allocation81_spill] sm:$0xff] %v9027_v26  ;;  %v9039_v47 = vpop.permute.xlu2 %3219  ;;  %v1604_v26 = vsub.f32 %v8592_v6, %v8780_v18  ;;  %v9061_v18 = vperm.slane %v8872_v8, 6  ;;  %v9130_v8 = vperm.slane %v8862_v14, 7 }
 0x989   : > { %12580 = vst [vmem:[#allocation84_spill] sm:$0xff] %v9039_v47 }
 0x98a   : > { %v1605_v47 = vmul.f32 1.442695, %v1604_v26  ;;  %12585 = vst [vmem:[#allocation89_spill] sm:$0xff] %v9061_v18 }
 0x98b   : > { %12604 = vst [vmem:[#allocation108_spill] sm:$0xff] %v9130_v8 }
 0x98c   : > { %7940 = vset.pattern.permute.xlu0 %v8692_v2  ;;  %8068 = vpow2.f32 %v1605_v47  ;;  %v9079_v47 = vperm.slane %v8862_v14, 5 }
 0x98e   : > { %12590 = vst [vmem:[#allocation94_spill] sm:$0xff] %v9079_v47 }
 0x98f   : > { %4974 = vperm.xlu1 %7908, %v9007_v39   ;;  %v9045_v53 = vpop.permute.xlu1 %3207 }
 0x990   : > { %4967 = vperm.xlu2 %7907, %v9010_v34   ;;  %12581 = vst [vmem:[#allocation85_spill] sm:$0xff] %v9045_v53  ;;  %v9057_v25 = vpop.permute.xlu2 %3237  ;;  %v9064_v53 = vperm.slane %v8862_v14, 4 }
 0x991   : > { %12584 = vst [vmem:[#allocation88_spill] sm:$0xff] %v9057_v25 }
 0x992   : > { %12586 = vst [vmem:[#allocation90_spill] sm:$0xff] %v9064_v53  ;;  %v9072_v26 = vpop.eup %8068 }
 0x993   : > { %12588 = vst [vmem:[#allocation92_spill] sm:$0xff] %v9072_v26 }
 0x994   : > { %5304 = vperm.xlu0 %7940, %v8994_v37   ;;  %v9033_v37 = vperm.slane %v8862_v14, 2 }
 0x996   : > { %12578 = vst [vmem:[#allocation82_spill] sm:$0xff] %v9033_v37 }
 0x997   : > { %4910 = vperm.xlu1 %7908, %v9018_v57   ;;  %v9066_v11 = vpop.permute.xlu1 %3225 }
 0x998   : > { %4981 = vperm.xlu2 %7907, %v9023_v41   ;;  %12587 = vst [vmem:[#allocation91_spill] sm:$0xff] %v9066_v11  ;;  %v9074_v25 = vpop.permute.xlu2 %3255 }
 0x999   : > { %12589 = vst [vmem:[#allocation93_spill] sm:$0xff] %v9074_v25 }
 0x99c   : > { %7944 = vset.pattern.permute.xlu0 %v8766_v13 }
 0x99f   : > { %4924 = vperm.xlu1 %7908, %v9033_v37   ;;  %v9085_v11 = vpop.permute.xlu1 %3243 }
 0x9a0   : > { %4988 = vperm.xlu2 %7907, %v9036_v52   ;;  %12591 = vst [vmem:[#allocation95_spill] sm:$0xff] %v9085_v11  ;;  %v9087_v4 = vpop.permute.xlu2 %3529 }
 0x9a1   : > { %12592 = vst [vmem:[#allocation96_spill] sm:$0xff] %v9087_v4 }
 0x9a4   : > { %6158 = vperm.xlu0 %7944, %v9036_v52  }
 0x9a7   : > { %4931 = vperm.xlu1 %7908, %v9048_v60   ;;  %v9096_v25 = vpop.permute.xlu1 %3261 }
 0x9a8   : > { %4995 = vperm.xlu2 %7907, %v9053_v50   ;;  %12594 = vst [vmem:[#allocation98_spill] sm:$0xff] %v9096_v25  ;;  %v9101_v42 = vpop.permute.xlu2 %3481 }
 0x9a9   : > { %12596 = vst [vmem:[#allocation100_spill] sm:$0xff] %v9101_v42 }
 0x9ac   : > { %6104 = vperm.xlu0 %7944, %v9033_v37  }
 0x9af   : > { %5009 = vperm.xlu1 %7908, %v9061_v18   ;;  %v9105_v4 = vpop.permute.xlu1 %3535 }
 0x9b0   : > { %4938 = vperm.xlu2 %7907, %v9064_v53   ;;  %v9090_v53 = vperm.slane %v8893_v17, 1  ;;  %12597 = vst [vmem:[#allocation101_spill] sm:$0xff] %v9105_v4  ;;  %v9116_v25 = vpop.permute.xlu2 %3547 }
 0x9b1   : > { %12600 = vst [vmem:[#allocation104_spill] sm:$0xff] %v9116_v25  ;;  %v9135_v25 = vperm.slane %v8937_v63, 0 }
 0x9b2   : > { %12593 = vst [vmem:[#allocation97_spill] sm:$0xff] %v9090_v53 }
 0x9b3   : > { %12606 = vst [vmem:[#allocation110_spill] sm:$0xff] %v9135_v25 }
 0x9b4   : > { %1608 = vrot.lane.b32.xlu0 %v9072_v26, %s8197_s8  ;;  %v9094_v26 = vpop.permute.xlu0 %1820 }
 0x9b7   : > { %4945 = vperm.xlu1 %7908, %v9079_v47   ;;  %v9099_v47 = vperm.slane %v8893_v17, 2  ;;  %v9119_v42 = vpop.permute.xlu1 %3487 }
 0x9b8   : > { %7911 = vset.pattern.permute.xlu2 %v8586_v15  ;;  %12601 = vst [vmem:[#allocation105_spill] sm:$0xff] %v9119_v42  ;;  %v9125_v4 = vpop.permute.xlu2 %3493 }
 0x9b9   : > { %12595 = vst [vmem:[#allocation99_spill] sm:$0xff] %v9099_v47 }
 0x9ba   : > { %12602 = vst [vmem:[#allocation106_spill] sm:$0xff] %v9125_v4  ;;  %v9144_v4 = vperm.slane %v8893_v17, 3 }
 0x9bc   : > { %v9107_v11 = vpop.permute.xlu0 %1841  ;;  %12609 = vst [vmem:[#allocation113_spill] sm:$0xff] %v9144_v4 }
 0x9bf   : > { %7913 = vset.pattern.permute.xlu1 %v8586_v15  ;;  %v9127_v3 = vpop.permute.xlu1 %4212 }
 0x9c0   : > { %4698 = vperm.xlu2 %7911, %v9090_v53   ;;  %12603 = vst [vmem:[#allocation107_spill] sm:$0xff] %v9127_v3  ;;  %v9139_v42 = vpop.permute.xlu2 %4224 }
 0x9c1   : > { %12607 = vst [vmem:[#allocation111_spill] sm:$0xff] %v9139_v42 }
 0x9c4   : > { %v9121_v29 = vpop.permute.xlu0 %1862 }
 0x9c7   : > { %4705 = vperm.xlu1 %7913, %v9099_v47  }
 0x9c8   : > { %7912 = vset.pattern.permute.xlu2 %v8641_v44  ;;  %v9150_v3 = vpop.permute.xlu2 %4164 }
 0x9c9   : > { %12611 = vst [vmem:[#allocation115_spill] sm:$0xff] %v9150_v3 }
 0x9cc   : > { %v9132_v48 = vpop.permute.xlu0 %2097 }
 0x9cd   : > { %12605 = vst [vmem:[#allocation109_spill] sm:$0xff] %v9132_v48 }
 0x9cf   : > { %4641 = vperm.xlu1 %7913, %v9110_v35  }
 0x9d0   : > { %5016 = vperm.xlu2 %7912, %v9113_v7   ;;  %v9153_v7 = vperm.slane %v8937_v63, 2  ;;  %v9161_v42 = vpop.permute.xlu2 %4230 }
 0x9d1   : > { %12615 = vst [vmem:[#allocation119_spill] sm:$0xff] %v9161_v42  ;;  %v9186_v42 = vperm.slane %v8893_v17, 5 }
 0x9d2   : > { %12612 = vst [vmem:[#allocation116_spill] sm:$0xff] %v9153_v7 }
 0x9d3   : > { %12621 = vst [vmem:[#allocation125_spill] sm:$0xff] %v9186_v42 }
 0x9d4   : > { %v9147_v14 = vpop.permute.xlu0 %2132 }
 0x9d5   : > { %12610 = vst [vmem:[#allocation114_spill] sm:$0xff] %v9147_v14 }
 0x9d7   : > { %7916 = vset.pattern.permute.xlu1 %v8641_v44  ;;  %v9141_v44 = vpop.permute.xlu1 %3553 }
 0x9d8   : > { %7915 = vset.pattern.permute.xlu2 %v8586_v15  ;;  %12608 = vst [vmem:[#allocation112_spill] sm:$0xff] %v9141_v44 }
 0x9dc   : > { %v9159_v44 = vpop.permute.xlu0 %2154 }
 0x9dd   : > { %12614 = vst [vmem:[#allocation118_spill] sm:$0xff] %v9159_v44 }
 0x9df   : > { %4959 = vperm.xlu1 %7916, %v9130_v8   ;;  %v9155_v8 = vpop.permute.xlu1 %3499 }
 0x9e0   : > { %4634 = vperm.xlu2 %7915, %v9135_v25   ;;  %12613 = vst [vmem:[#allocation117_spill] sm:$0xff] %v9155_v8  ;;  %v9172_v8 = vpop.permute.xlu2 %4176 }
 0x9e1   : > { %12618 = vst [vmem:[#allocation122_spill] sm:$0xff] %v9172_v8 }
 0x9e4   : > { %v9167_v3 = vpop.permute.xlu0 %2175 }
 0x9e7   : > { %7919 = vset.pattern.permute.xlu1 %v8586_v15  ;;  %v9163_v48 = vpop.permute.xlu1 %4170 }
 0x9e8   : > { %4712 = vperm.xlu2 %7915, %v9144_v4   ;;  %12616 = vst [vmem:[#allocation120_spill] sm:$0xff] %v9163_v48  ;;  %v9180_v48 = vpop.permute.xlu2 %3571 }
 0x9e9   : > { %12620 = vst [vmem:[#allocation124_spill] sm:$0xff] %v9180_v48 }
 0x9ec   : > { %v9175_v51 = vpop.permute.xlu0 %2196 }
 0x9ef   : > { %4648 = vperm.xlu1 %7919, %v9153_v7   ;;  %v9169_v14 = vpop.permute.xlu1 %3505 }
 0x9f0   : > { %7918 = vset.pattern.permute.xlu2 %v8692_v2  ;;  %12617 = vst [vmem:[#allocation121_spill] sm:$0xff] %v9169_v14  ;;  %v9192_v8 = vpop.permute.xlu2 %3517 }
 0x9f1   : > { %12623 = vst [vmem:[#allocation127_spill] sm:$0xff] %v9192_v8 }
 0x9f7   : > { %7921 = vset.pattern.permute.xlu1 %v8692_v2  ;;  %v9177_v44 = vpop.permute.xlu1 %4236 }
 0x9f8   : > { %5316 = vperm.xlu2 %7918, %v9090_v53   ;;  %12619 = vst [vmem:[#allocation123_spill] sm:$0xff] %v9177_v44  ;;  %v9183_v53 = vpop.permute.xlu0 %2497 }
 0x9ff   : > { %5322 = vperm.xlu1 %7921, %v9099_v47   ;;  %v9190_v47 = vpop.permute.xlu1 %4182 }
 0xa00   : > { %7920 = vset.pattern.permute.xlu2 %v8586_v15  ;;  %12622 = vst [vmem:[#allocation126_spill] sm:$0xff] %v9190_v47 }
 0xa07   : > { %5262 = vperm.xlu1 %7921, %v9135_v25   ;;  %v9195_v25 = vpop.permute.xlu0 %2527  ;;  %v9200_v44 = vpop.permute.xlu1 %4188 }
 0xa08   : > { %4719 = vperm.xlu2 %7920, %v8969_v38   ;;  %12624 = vst [vmem:[#allocation128_spill] sm:$0xff] %v9195_v25  ;;  %v9198_v38 = vpop.permute.xlu2 %4248  ;;  %v9233_v25 = vperm.slane %v8937_v63, 5 }
 0xa09   : > { %12625 = vst [vmem:[#allocation129_spill] sm:$0xff] %v9198_v38 }
 0xa0a   : > { %12626 = vst [vmem:[#allocation130_spill] sm:$0xff] %v9200_v44 }
 0xa0b   : > { %12635 = vst [vmem:[#allocation139_spill] sm:$0xff] %v9233_v25 }
 0xa0f   : > { %5328 = vperm.xlu1 %7921, %v9144_v4   ;;  %v9204_v4 = vpop.permute.xlu0 %2545  ;;  %v9208_v47 = vpop.permute.xlu1 %3523 }
 0xa10   : > { %4726 = vperm.xlu2 %7920, %v9186_v42   ;;  %v9206_v48 = vpop.permute.xlu2 %3914  ;;  %12628 = vst [vmem:[#allocation132_spill] sm:$0xff] %v9208_v47 }
 0xa11   : > { %12627 = vst [vmem:[#allocation131_spill] sm:$0xff] %v9206_v48 }
 0xa17   : > { %5274 = vperm.xlu1 %7921, %v9153_v7   ;;  %v9211_v7 = vperm.slane %v8893_v17, 7  ;;  %v9217_v44 = vpop.permute.xlu1 %3908  ;;  %v9219_v8 = vpop.permute.xlu0 %2563 }
 0xa18   : > { %7923 = vset.pattern.permute.xlu2 %v8692_v2  ;;  %v9215_v38 = vpop.permute.xlu2 %4200  ;;  %12631 = vst [vmem:[#allocation135_spill] sm:$0xff] %v9217_v44 }
 0xa19   : > { %12629 = vst [vmem:[#allocation133_spill] sm:$0xff] %v9211_v7 }
 0xa1a   : > { %12630 = vst [vmem:[#allocation134_spill] sm:$0xff] %v9215_v38 }
 0xa1f   : > { %7926 = vset.pattern.permute.xlu1 %v8586_v15  ;;  %v9228_v47 = vpop.permute.xlu1 %4194  ;;  %v9230_v14 = vpop.permute.xlu0 %2581 }
 0xa20   : > { %5268 = vperm.xlu2 %7923, %v9110_v35   ;;  %v9222_v35 = vperm.slane %v8893_v17, 6  ;;  %v9226_v48 = vpop.permute.xlu2 %3866  ;;  %12634 = vst [vmem:[#allocation138_spill] sm:$0xff] %v9228_v47 }
 0xa21   : > { %12633 = vst [vmem:[#allocation137_spill] sm:$0xff] %v9226_v48 }
 0xa22   : > { %12632 = vst [vmem:[#allocation136_spill] sm:$0xff] %v9222_v35 }
 0xa27   : > { %4740 = vperm.xlu1 %7926, %v9211_v7   ;;  %v9239_v17 = vpop.permute.xlu1 %3920  ;;  %v9241_v44 = vpop.permute.xlu0 %2807 }
 0xa28   : > { %7924 = vset.pattern.permute.xlu2 %v8586_v15  ;;  %v9237_v38 = vpop.permute.xlu2 %4206  ;;  %12637 = vst [vmem:[#allocation141_spill] sm:$0xff] %v9239_v17 }
 0xa29   : > { %12636 = vst [vmem:[#allocation140_spill] sm:$0xff] %v9237_v38 }
 0xa2f   : > { %7928 = vset.pattern.permute.xlu1 %v8692_v2  ;;  %v9247_v48 = vpop.permute.xlu1 %3926  ;;  %v9250_v63 = vpop.permute.xlu0 %2837 }
 0xa30   : > { %4733 = vperm.xlu2 %7924, %v9222_v35   ;;  %v9245_v47 = vpop.permute.xlu2 %3932  ;;  %12639 = vst [vmem:[#allocation143_spill] sm:$0xff] %v9247_v48 }
 0xa31   : > { %12638 = vst [vmem:[#allocation142_spill] sm:$0xff] %v9245_v47 }
 0xa37   : > { %5340 = vperm.xlu1 %7928, %v9186_v42   ;;  %v9255_v38 = vpop.permute.xlu1 %3872 }
 0xa38   : > { %4669 = vperm.xlu2 %7924, %v9233_v25   ;;  %v9253_v42 = vpop.permute.xlu2 %3878  ;;  %12641 = vst [vmem:[#allocation145_spill] sm:$0xff] %v9255_v38 }
 0xa39   : > { %12640 = vst [vmem:[#allocation144_spill] sm:$0xff] %v9253_v42 }
 0xa3f   : > { %5346 = vperm.xlu1 %7928, %v9222_v35   ;;  %v9259_v35 = vpop.permute.xlu0 %2855  ;;  %v9265_v48 = vpop.permute.xlu1 %3938 }
 0xa40   : > { %7927 = vset.pattern.permute.xlu2 %v8692_v2  ;;  %v9261_v17 = vpop.permute.xlu2 %3944  ;;  %12643 = vst [vmem:[#allocation147_spill] sm:$0xff] %v9265_v48 }
 0xa41   : > { %12642 = vst [vmem:[#allocation146_spill] sm:$0xff] %v9261_v17 }
 0xa47   : > { %7931 = vset.pattern.permute.xlu1 %v8724_v9  ;;  %v9267_v47 = vpop.permute.xlu0 %2873  ;;  %v9273_v38 = vpop.permute.xlu1 %3890 }
 0xa48   : > { %5280 = vperm.xlu2 %7927, %v8946_v1   ;;  %v9270_v1 = vpop.permute.xlu2 %3902  ;;  %12645 = vst [vmem:[#allocation149_spill] sm:$0xff] %v9273_v38 }
 0xa49   : > { %12644 = vst [vmem:[#allocation148_spill] sm:$0xff] %v9270_v1 }
 0xa4f   : > { %5564 = vperm.xlu1 %7931, %v9007_v39   ;;  %v9281_v17 = vpop.permute.xlu1 %3896 }
 0xa50   : > { %5286 = vperm.xlu2 %7927, %v8954_v10   ;;  %v9275_v10 = vpop.permute.xlu0 %3183  ;;  %v9278_v42 = vpop.permute.xlu2 %4967  ;;  %12648 = vst [vmem:[#allocation152_spill] sm:$0xff] %v9281_v17 }
 0xa51   : > { %12646 = vst [vmem:[#allocation150_spill] sm:$0xff] %v9275_v10 }
 0xa52   : > { %12647 = vst [vmem:[#allocation151_spill] sm:$0xff] %v9278_v42 }
 0xa57   : > { %7933 = vset.pattern.permute.xlu1 %v8692_v2  ;;  %v9289_v1 = vpop.permute.xlu1 %4974 }
 0xa58   : > { %7930 = vset.pattern.permute.xlu2 %v8724_v9  ;;  %v9283_v48 = vpop.permute.xlu0 %3213  ;;  %12651 = vst [vmem:[#allocation155_spill] sm:$0xff] %v9289_v1 }
 0xa59   : > { %12649 = vst [vmem:[#allocation153_spill] sm:$0xff] %v9283_v48 }
 0xa5f   : > { %5352 = vperm.xlu1 %7933, %v9211_v7   ;;  %v9287_v7 = vpop.permute.xlu2 %4981  ;;  %v9297_v10 = vpop.permute.xlu1 %4910 }
 0xa60   : > { %5558 = vperm.xlu2 %7930, %v9010_v34   ;;  %12650 = vst [vmem:[#allocation154_spill] sm:$0xff] %v9287_v7  ;;  %v9292_v38 = vpop.permute.xlu0 %3231 }
 0xa61   : > { %12653 = vst [vmem:[#allocation157_spill] sm:$0xff] %v9297_v10 }
 0xa67   : > { %7935 = vset.pattern.permute.xlu1 %v8766_v13  ;;  %v9295_v42 = vpop.permute.xlu2 %4988  ;;  %v9307_v7 = vpop.permute.xlu1 %4924 }
 0xa68   : > { %7932 = vset.pattern.permute.xlu2 %v8692_v2  ;;  %12652 = vst [vmem:[#allocation156_spill] sm:$0xff] %v9295_v42  ;;  %v9301_v17 = vpop.permute.xlu0 %3249 }
 0xa69   : > { %12655 = vst [vmem:[#allocation159_spill] sm:$0xff] %v9307_v7 }
 0xa6f   : > { %6146 = vperm.xlu1 %7935, %v9007_v39   ;;  %v9315_v10 = vpop.permute.xlu1 %4931 }
 0xa70   : > { %5292 = vperm.xlu2 %7932, %v9233_v25   ;;  %v9303_v25 = vpop.permute.xlu2 %4995  ;;  %v9309_v1 = vpop.permute.xlu0 %3267  ;;  %12658 = vst [vmem:[#allocation162_spill] sm:$0xff] %v9315_v10 }
 0xa71   : > { %12654 = vst [vmem:[#allocation158_spill] sm:$0xff] %v9303_v25 }
 0xa72   : > { %12656 = vst [vmem:[#allocation160_spill] sm:$0xff] %v9309_v1 }
 0xa77   : > { %7937 = vset.pattern.permute.xlu1 %v8724_v9  ;;  %v9325_v7 = vpop.permute.xlu1 %5009 }
 0xa78   : > { %7934 = vset.pattern.permute.xlu2 %v8766_v13  ;;  %v9312_v42 = vpop.permute.xlu2 %4938  ;;  %v9317_v48 = vpop.permute.xlu0 %3541  ;;  %12661 = vst [vmem:[#allocation165_spill] sm:$0xff] %v9325_v7  ;;  %v1874_v7 = vadd.s32 16, %v8586_v15 }
 0xa79   : > { %12657 = vst [vmem:[#allocation161_spill] sm:$0xff] %v9312_v42 }
 0xa7a   : > { %7954 = vset.pattern.permute.xlu0 %v1874_v7 }
 0xa7f   : > { %5510 = vperm.xlu1 %7937, %v9018_v57   ;;  %v9333_v10 = vpop.permute.xlu1 %4945 }
 0xa80   : > { %6140 = vperm.xlu2 %7934, %v9010_v34   ;;  %v9320_v25 = vpop.permute.xlu2 %4698  ;;  %12664 = vst [vmem:[#allocation168_spill] sm:$0xff] %v9333_v10 }
 0xa81   : > { %12659 = vst [vmem:[#allocation163_spill] sm:$0xff] %v9320_v25 }
 0xa87   : > { %7939 = vset.pattern.permute.xlu1 %v8766_v13 }
 0xa88   : > { %7936 = vset.pattern.permute.xlu2 %v8692_v2  ;;  %v9323_v2 = vpop.permute.xlu0 %4218  ;;  %v9328_v1 = vpop.permute.xlu2 %5016 }
 0xa89   : > { %12660 = vst [vmem:[#allocation164_spill] sm:$0xff] %v9323_v2  ;;  %v9341_v2 = vpop.permute.xlu1 %4705 }
 0xa8a   : > { %12662 = vst [vmem:[#allocation166_spill] sm:$0xff] %v9328_v1 }
 0xa8b   : > { %12667 = vst [vmem:[#allocation171_spill] sm:$0xff] %v9341_v2 }
 0xa8f   : > { %6152 = vperm.xlu1 %7939, %v9023_v41  }
 0xa90   : > { %5298 = vperm.xlu2 %7936, %v8986_v46   ;;  %v9331_v46 = vpop.permute.xlu0 %3559  ;;  %v9336_v42 = vpop.permute.xlu2 %4634 }
 0xa91   : > { %12663 = vst [vmem:[#allocation167_spill] sm:$0xff] %v9331_v46  ;;  %v9351_v46 = vpop.permute.xlu1 %4641 }
 0xa92   : > { %12665 = vst [vmem:[#allocation169_spill] sm:$0xff] %v9336_v42 }
 0xa93   : > { %12670 = vst [vmem:[#allocation174_spill] sm:$0xff] %v9351_v46 }
 0xa97   : > { %7941 = vset.pattern.permute.xlu1 %v8724_v9 }
 0xa98   : > { %7938 = vset.pattern.permute.xlu2 %v8724_v9  ;;  %v9339_v25 = vpop.permute.xlu0 %3565  ;;  %v9345_v1 = vpop.permute.xlu2 %4712 }
 0xa99   : > { %12666 = vst [vmem:[#allocation170_spill] sm:$0xff] %v9339_v25  ;;  %v9359_v25 = vpop.permute.xlu1 %4959 }
 0xa9a   : > { %12668 = vst [vmem:[#allocation172_spill] sm:$0xff] %v9345_v1  ;;  %v8094_v1 = vld [vmem:[%s8298_s27] ss:$0 sm:$0xff] }
 0xa9b   : > { %12673 = vst [vmem:[#allocation177_spill] sm:$0xff] %v9359_v25 }
 0xa9f   : > { %5582 = vperm.xlu1 %7941, %v9053_v50  }
 0xaa0   : > { %5576 = vperm.xlu2 %7938, %v9036_v52   ;;  %v9348_v52 = vpop.permute.xlu0 %3511  ;;  %v9353_v42 = vpop.permute.xlu2 %5316 }
 0xaa1   : > { %12669 = vst [vmem:[#allocation173_spill] sm:$0xff] %v9348_v52  ;;  %v9365_v52 = vpop.permute.xlu1 %4648 }
 0xaa2   : > { %12671 = vst [vmem:[#allocation175_spill] sm:$0xff] %v9353_v42 }
 0xaa3   : > { %12675 = vst [vmem:[#allocation179_spill] sm:$0xff] %v9365_v52 }
 0xaa7   : > { %7943 = vset.pattern.permute.xlu1 %v8766_v13 }
 0xaa8   : > { %5522 = vperm.xlu2 %7938, %v9033_v37   ;;  %v9356_v37 = vpop.permute.xlu0 %4242 }
 0xaa9   : > { %12672 = vst [vmem:[#allocation176_spill] sm:$0xff] %v9356_v37 }
 0xaaf   : > { %6098 = vperm.xlu1 %7943, %v8867_v49   ;;  %v9361_v49 = vpop.permute.xlu2 %4719 }
 0xab0   : > { %7942 = vset.pattern.permute.xlu2 %v8766_v13  ;;  %12674 = vst [vmem:[#allocation178_spill] sm:$0xff] %v9361_v49 }
 0xab7   : > { %7946 = vset.pattern.permute.xlu1 %v8775_v16  ;;  %v9369_v46 = vpop.permute.xlu2 %4726 }
 0xab8   : > { %6092 = vperm.xlu2 %7942, %v9018_v57   ;;  %v9367_v57 = vpop.permute.xlu0 %4254  ;;  %12677 = vst [vmem:[#allocation181_spill] sm:$0xff] %v9369_v46 }
 0xab9   : > { %12676 = vst [vmem:[#allocation180_spill] sm:$0xff] %v9367_v57 }
 0xabf   : > { %6727 = vperm.xlu1 %7946, %v9007_v39   ;;  %v9373_v39 = vpop.permute.xlu1 %5322  ;;  %v9377_v42 = vpop.permute.xlu2 %5268 }
 0xac0   : > { %7945 = vset.pattern.permute.xlu2 %v8775_v16  ;;  %12678 = vst [vmem:[#allocation182_spill] sm:$0xff] %v9373_v39  ;;  %v9375_v37 = vpop.permute.xlu0 %3860 }
 0xac1   : > { %12679 = vst [vmem:[#allocation183_spill] sm:$0xff] %v9375_v37 }
 0xac2   : > { %12680 = vst [vmem:[#allocation184_spill] sm:$0xff] %v9377_v42 }
 0xac7   : > { %7948 = vset.pattern.permute.xlu1 %v8724_v9  ;;  %v9385_v57 = vpop.permute.xlu2 %4733 }
 0xac8   : > { %6721 = vperm.xlu2 %7945, %v9010_v34   ;;  %v9381_v34 = vpop.permute.xlu1 %5262  ;;  %v9383_v52 = vpop.permute.xlu0 %3884  ;;  %12683 = vst [vmem:[#allocation187_spill] sm:$0xff] %v9385_v57 }
 0xac9   : > { %12681 = vst [vmem:[#allocation185_spill] sm:$0xff] %v9381_v34 }
 0xaca   : > { %12682 = vst [vmem:[#allocation186_spill] sm:$0xff] %v9383_v52 }
 0xacf   : > { %5588 = vperm.xlu1 %7948, %v8879_v23   ;;  %v9393_v37 = vpop.permute.xlu2 %4669 }
 0xad0   : > { %7947 = vset.pattern.permute.xlu2 %v8724_v9  ;;  %v9389_v23 = vpop.permute.xlu1 %5328  ;;  %v9391_v39 = vpop.permute.xlu0 %3950  ;;  %12686 = vst [vmem:[#allocation190_spill] sm:$0xff] %v9393_v37 }
 0xad1   : > { %12684 = vst [vmem:[#allocation188_spill] sm:$0xff] %v9389_v23 }
 0xad2   : > { %12685 = vst [vmem:[#allocation189_spill] sm:$0xff] %v9391_v39  ;;  %v1571_v39 = vsub.f32 %v8592_v6, %v9029_v33 }
 0xad7   : > { %7950 = vset.pattern.permute.xlu1 %v8775_v16  ;;  %v1588_v16 = vsub.f32 %v8592_v6, %v9050_v58  ;;  %v9401_v34 = vpop.permute.xlu2 %5280 }
 0xad8   : > { %5528 = vperm.xlu2 %7947, %v9048_v60   ;;  %v9399_v42 = vpop.permute.xlu0 %4917  ;;  %12688 = vst [vmem:[#allocation192_spill] sm:$0xff] %v9401_v34 }
 0xad9   : > { %v1589_v52 = vmul.f32 1.442695, %v1588_v16  ;;  %12687 = vst [vmem:[#allocation191_spill] sm:$0xff] %v9399_v42 }
 0xadb   : > { %8070 = vpow2.f32 %v1589_v52  ;;  %v1620_v52 = vsub.f32 %v8592_v6, %v9069_v40 }
 0xadf   : > { %6733 = vperm.xlu1 %7950, %v9023_v41   ;;  %v9403_v41 = vpop.permute.xlu1 %5274 }
 0xae0   : > { %7949 = vset.pattern.permute.xlu2 %v8766_v13  ;;  %12689 = vst [vmem:[#allocation193_spill] sm:$0xff] %v9403_v41  ;;  %v9414_v16 = vpop.permute.xlu0 %5002 }
 0xae1   : > { %v9409_v23 = vpop.eup %8070 }
 0xae7   : > { %7952 = vset.pattern.permute.xlu1 %v8766_v13  ;;  %v1572_v13 = vmul.f32 1.442695, %v1571_v39  ;;  %v9411_v58 = vpop.permute.xlu1 %4740 }
 0xae8   : > { %6164 = vperm.xlu2 %7949, %v9053_v50   ;;  %12690 = vst [vmem:[#allocation194_spill] sm:$0xff] %v9411_v58  ;;  %v9416_v50 = vpop.permute.xlu2 %5286 }
 0xae9   : > { %12691 = vst [vmem:[#allocation195_spill] sm:$0xff] %v9416_v50  ;;  %8072 = vpow2.f32 %v1572_v13 }
 0xaef   : > { %6110 = vperm.xlu1 %7952, %v9048_v60   ;;  %v1621_v60 = vmul.f32 1.442695, %v1620_v52  ;;  %v9421_v33 = vpop.eup %8072  ;;  %v9423_v39 = vpop.permute.xlu1 %5340 }
 0xaf0   : > { %7951 = vset.pattern.permute.xlu2 %v8724_v9  ;;  %12692 = vst [vmem:[#allocation196_spill] sm:$0xff] %v9423_v39  ;;  %v9425_v9 = vpop.permute.xlu0 %4691  ;;  %v9427_v58 = vpop.permute.xlu2 %5558 }
 0xaf1   : > { %12693 = vst [vmem:[#allocation197_spill] sm:$0xff] %v9427_v58  ;;  %8074 = vpow2.f32 %v1621_v60 }
 0xaf7   : > { %1592 = vrot.lane.b32.xlu1 %v9409_v23, %s8205_s23  ;;  %v9431_v34 = vpop.eup %8074  ;;  %v9438_v6 = vpop.permute.xlu1 %5346  ;;  %s8208_s23 = smov 32  }
 0xaf8   : > { %5594 = vperm.xlu2 %7951, %v9061_v18   ;;  %12694 = vst [vmem:[#allocation198_spill] sm:$0xff] %v9431_v34  ;;  %v9433_v18 = vpop.permute.xlu0 %4952  ;;  %v9435_v13 = vpop.permute.xlu2 %5292  ;;  %7953 = vset.pattern.permute.xlu1 %v1874_v7 }
 0xaf9   : > { %12695 = vst [vmem:[#allocation199_spill] sm:$0xff] %v9433_v18 }
 0xafa   : > { %12696 = vst [vmem:[#allocation200_spill] sm:$0xff] %v9435_v13 }
 0xafb   : > { %12697 = vst [vmem:[#allocation201_spill] sm:$0xff] %v9438_v6 }
 0xaff   : > { %v9444_v58 = vpop.permute.xlu1 %5564 }
 0xb00   : > { %1575 = vrot.lane.b32.xlu2 %v9421_v33, %s8195_s5  ;;  %v9440_v40 = vpop.permute.xlu0 %5310  ;;  %v9442_v52 = vpop.permute.xlu2 %6140  ;;  %12699 = vst [vmem:[#allocation203_spill] sm:$0xff] %v9444_v58 }
 0xb01   : > { %12698 = vst [vmem:[#allocation202_spill] sm:$0xff] %v9442_v52  ;;  %7955 = vset.pattern.permute.xlu2 %v1874_v7 }
 0xb07   : > { %v9450_v50 = vpop.permute.xlu1 %5352 }
 0xb08   : > { %1624 = vrot.lane.b32.xlu2 %v9431_v34, %s8206_s9  ;;  %v9446_v39 = vpop.permute.xlu0 %4655  ;;  %v9448_v60 = vpop.permute.xlu2 %5298  ;;  %12702 = vst [vmem:[#allocation206_spill] sm:$0xff] %v9450_v50  ;;  %s13204_s9 = sld [smem:[#allocation23_spill]] }
 0xb09   : > { %12700 = vst [vmem:[#allocation204_spill] sm:$0xff] %v9446_v39 }
 0xb0a   : > { %12701 = vst [vmem:[#allocation205_spill] sm:$0xff] %v9448_v60 }
 0xb0f   : > { %v9454_v13 = vpop.permute.xlu1 %6146 }
 0xb10   : > { %v9452_v37 = vpop.permute.xlu2 %5576  ;;  %12704 = vst [vmem:[#allocation208_spill] sm:$0xff] %v9454_v13  ;;  %v9456_v41 = vpop.permute.xlu0 %4662 }
 0xb11   : > { %12703 = vst [vmem:[#allocation207_spill] sm:$0xff] %v9452_v37 }
 0xb12   : > { %12705 = vst [vmem:[#allocation209_spill] sm:$0xff] %v9456_v41 }
 0xb17   : > { %v9458_v34 = vpop.permute.xlu1 %5510 }
 0xb18   : > { %12706 = vst [vmem:[#allocation210_spill] sm:$0xff] %v9458_v34  ;;  %v9460_v6 = vpop.permute.xlu0 %5334  ;;  %v9462_v46 = vpop.permute.xlu2 %5522 }
 0xb19   : > { %12707 = vst [vmem:[#allocation211_spill] sm:$0xff] %v9462_v46 }
 0xb1f   : > { %v9464_v52 = vpop.permute.xlu1 %6152 }
 0xb20   : > { %12708 = vst [vmem:[#allocation212_spill] sm:$0xff] %v9464_v52  ;;  %v9466_v58 = vpop.permute.xlu0 %4676  ;;  %v9468_v57 = vpop.permute.xlu2 %6092 }
 0xb21   : > { %12709 = vst [vmem:[#allocation213_spill] sm:$0xff] %v9466_v58 }
 0xb22   : > { %12710 = vst [vmem:[#allocation214_spill] sm:$0xff] %v9468_v57 }
 0xb27   : > { %v9470_v60 = vpop.permute.xlu1 %5582 }
 0xb28   : > { %12711 = vst [vmem:[#allocation215_spill] sm:$0xff] %v9470_v60  ;;  %v9472_v50 = vpop.permute.xlu2 %6721  ;;  %v9474_v37 = vpop.permute.xlu0 %4683 }
 0xb29   : > { %12712 = vst [vmem:[#allocation216_spill] sm:$0xff] %v9472_v50 }
 0xb2a   : > { %12713 = vst [vmem:[#allocation217_spill] sm:$0xff] %v9474_v37 }
 0xb2f   : > { %v9476_v13 = vpop.permute.xlu1 %6098 }
 0xb30   : > { %12714 = vst [vmem:[#allocation218_spill] sm:$0xff] %v9476_v13  ;;  %v9480_v34 = vpop.permute.xlu0 %5304 }
 0xb31   : > { %12716 = vst [vmem:[#allocation220_spill] sm:$0xff] %v9480_v34 }
 0xb32   : > { %v9478_v25 = vpop.permute.xlu2 %5528 }
 0xb33   : > { %12715 = vst [vmem:[#allocation219_spill] sm:$0xff] %v9478_v25 }
 0xb37   : > { %v9482_v49 = vpop.permute.xlu1 %6727 }
 0xb38   : > { %12717 = vst [vmem:[#allocation221_spill] sm:$0xff] %v9482_v49  ;;  %v9486_v52 = vpop.permute.xlu0 %6158 }
 0xb39   : > { %12719 = vst [vmem:[#allocation223_spill] sm:$0xff] %v9486_v52 }
 0xb40   : > { %v9492_v60 = vpop.permute.xlu0 %6104 }
 0xb41   : > { %v9488_v2 = vpop.permute.xlu1 %5588  ;;  %12722 = vst [vmem:[#allocation226_spill] sm:$0xff] %v9492_v60 }
 0xb42   : > { %v9484_v46 = vpop.permute.xlu2 %6164  ;;  %12720 = vst [vmem:[#allocation224_spill] sm:$0xff] %v9488_v2 }
 0xb43   : > { %12718 = vst [vmem:[#allocation222_spill] sm:$0xff] %v9484_v46 }
 0xb48   : > { %v1609_v34 = vpop.permute.xlu0 %1608 }
 0xb49   : > { %v1611_v49 = vsel %vm1578_vm12, %v1609_v34, 0.0  ;;  %v12726_v34 = vlaneseq }
 0xb51   : > { %v9494_v50 = vpop.permute.xlu1 %6733 }
 0xb52   : > { %v9490_v57 = vpop.permute.xlu2 %5594  ;;  %12723 = vst [vmem:[#allocation227_spill] sm:$0xff] %v9494_v50 }
 0xb53   : > { %12721 = vst [vmem:[#allocation225_spill] sm:$0xff] %v9490_v57  ;;  %v1699_v57 = vpop.f32.mrf.mxu3 }
 0xb54   : > { %v1700_v58 = vadd.f32 %v8094_v1, %v1699_v57  ;;  %v1971_v57 = vadd.s32 1, %v8821_v45 }
 0xb5a   : > { %v1576_v37 = vpop.permute.xlu2 %1575 }
 0xb5b   : > { %v1579_v25 = vsel %vm1578_vm12, %v1576_v37, 0.0  ;;  %v1702_v60 = vpop.f32.mrf.mxu3  ;;  %v1970_v37 = vadd.s32 1, %v8809_v31 }
 0xb5c   : > { %1580 = vadd.xlane.f32.xlu1 %v1579_v25  ;;  %v1703_v50 = vadd.f32 %v8094_v1, %v1702_v60  ;;  %v12433_v1 = vmov 0.0   ;;  %v1954_v60 = vsub.f32 1.0, %v8785_v19 }
 0xb5e   : > { %v1746_v25 = vmul.f32 %v8556_v27, %v1703_v50 }
 0xb61   : > { %v9496_v13 = vpop.permute.xlu1 %6110 }
 0xb62   : > { %12724 = vst [vmem:[#allocation228_spill] sm:$0xff] %v9496_v13  ;;  %v1625_v46 = vpop.permute.xlu2 %1624  ;;  %v1960_v13 = vsub.f32 1.0, %v8814_v36 }
 0xb63   : > { %v1627_v2 = vsel %vm1578_vm12, %v1625_v46, 0.0  ;;  %v5190_v46 = vrot.slane %v1746_v25, 4  ;;  %v1955_v25 = vsub.f32 1.0, %v8798_v21 }
 0xb64   : > { %1612 = vadd.xlane.f32.xlu1 %v1611_v49  ;;  %v9503_v49 = vmul.f32 %v8536_v56, %v1700_v58  ;;  %v9516_v56 = vmul.f32 %v8534_v55, %v8530_v54  ;;  %v1953_v58 = vsub.f32 1.0, %v8790_v12  ;;  %v1957_v54 = vsub.f32 1.0, %v8793_v20 }
 0xb66   : > { %12725 = vst [vmem:[#allocation229_spill] sm:$0xff] %v9503_v49  ;;  %v5189_v27 = vrot.slane %v9503_v49, 4  ;;  %v1959_v49 = vsub.f32 1.0, %v8801_v22 }
 0xb67   : > { %12728 = vst [vmem:[#allocation231_spill] sm:$0xff] %v9516_v56  ;;  %v1972_v56 = vadd.s32 1, %v9107_v11 }
 0xb69   : > { %v1593_v52 = vpop.permute.xlu1 %1592 }
 0xb6a   : > { %v1595_v10 = vsel %vm1578_vm12, %v1593_v52, 0.0  ;;  %v1973_v52 = vadd.s32 1, %v8816_v43 }
 0xb6b   : > { %1596 = vadd.xlane.f32.xlu0 %v1595_v10  ;;  %v9506_v10 = vand.u32 127, %v12726_v34  ;;  %v1974_v34 = vadd.s32 1, %v8832_v61 }
 0xb6c   : > { %1628 = vadd.xlane.f32.xlu1 %v1627_v2  ;;  %v9520_v2 = vsel %vm12463_vm14, %v5189_v27, %v5190_v46  ;;  %v1976_v46 = vadd.s32 1, %v8824_v28 }
 0xb6d   : > { %12727 = vst [vmem:[#allocation230_spill] sm:$0xff] %v9506_v10  ;;  %vm1978_vm13 = vcmp.eq.s32.totalorder %v9506_v10, %v1970_v37  ;;  %vm1930_vm15 = vcmp.eq.s32.totalorder %v9506_v10, %v8809_v31  ;;  %vm1931_vm4 = vcmp.eq.s32.totalorder %v9506_v10, %v8821_v45  ;;  %vm1979_vm5 = vcmp.eq.s32.totalorder %v9506_v10, %v1971_v57 }
 0xb6e   : > { %v7467_v50 = vsel %vm1978_vm13, 1.0, %v12433_v1  ;;  %12729 = vst [vmem:[#allocation232_spill] sm:$0xff] %v9520_v2  ;;  %v7459_v31 = vsel %vm1930_vm15, 1.0, %v12433_v1  ;;  %v1969_v37 = vadd.s32 1, %v9094_v26  ;;  %v1958_v45 = vsub.f32 1.0, %v8805_v24 }
 0xb6f   : > { %v2002_v55 = vmul.f32 %v7467_v50, %v8785_v19  ;;  %v1962_v27 = vmul.f32 %v7459_v31, %v1954_v60  ;;  %v7460_v7 = vsel %vm1931_vm4, 1.0, %v12433_v1  ;;  %v1956_v19 = vsub.f32 1.0, %v9082_v5 }
 0xb70   : > { %vm1981_vm6 = vcmp.eq.s32.totalorder %v9506_v10, %v1973_v52  ;;  %v7468_v50 = vsel %vm1979_vm5, 1.0, %v12433_v1  ;;  %vm1933_vm7 = vcmp.eq.s32.totalorder %v9506_v10, %v8816_v43  ;;  %v1975_v57 = vadd.s32 1, %v9121_v29 }
 0xb71   : > { %v9546_v31 = vadd.f32 %v2002_v55, %v1962_v27  ;;  %v1963_v60 = vmul.f32 %v7460_v7, %v1955_v25  ;;  %vm1977_vm8 = vcmp.eq.s32.totalorder %v9506_v10, %v1969_v37  ;;  %vm1982_vm9 = vcmp.eq.s32.totalorder %v9506_v10, %v1974_v34 }
 0xb72   : > { %vm1984_vm10 = vcmp.eq.s32.totalorder %v9506_v10, %v1976_v46  ;;  %v7470_v2 = vsel %vm1981_vm6, 1.0, %v12433_v1  ;;  %vm1929_vm11 = vcmp.eq.s32.totalorder %v9506_v10, %v9094_v26  ;;  %vm1934_vm12 = vcmp.eq.s32.totalorder %v9506_v10, %v8832_v61 }
 0xb73   : > { %12730 = vst [vmem:[#allocation233_spill] sm:$0xff] %v9546_v31  ;;  %vm1980_vm13 = vcmp.eq.s32.totalorder %v9506_v10, %v1972_v56  ;;  %v7462_v43 = vsel %vm1933_vm7, 1.0, %v12433_v1  ;;  %vm1936_vm15 = vcmp.eq.s32.totalorder %v9506_v10, %v8824_v28  ;;  %vm1932_vm4 = vcmp.eq.s32.totalorder %v9506_v10, %v9107_v11 }
 0xb74   : > { %v2003_v7 = vmul.f32 %v7468_v50, %v8798_v21  ;;  %v7466_v52 = vsel %vm1977_vm8, 1.0, %v12433_v1  ;;  %v7471_v25 = vsel %vm1982_vm9, 1.0, %v12433_v1  ;;  %v7473_v26 = vsel %vm1984_vm10, 1.0, %v12433_v1 }
 0xb75   : > { %vm1983_vm5 = vcmp.eq.s32.totalorder %v9506_v10, %v1975_v57  ;;  %v7458_v61 = vsel %vm1929_vm11, 1.0, %v12433_v1  ;;  %v7463_v56 = vsel %vm1934_vm12, 1.0, %v12433_v1  ;;  %v7469_v55 = vsel %vm1980_vm13, 1.0, %v12433_v1 }
 0xb76   : > { %v2005_v28 = vmul.f32 %v7470_v2, %v8793_v20  ;;  %v7465_v11 = vsel %vm1936_vm15, 1.0, %v12433_v1  ;;  %v7461_v21 = vsel %vm1932_vm4, 1.0, %v12433_v1  ;;  %vm1935_vm6 = vcmp.eq.s32.totalorder %v9506_v10, %v9121_v29 }
 0xb77   : > { %v2294_v37 = vadd.s32 1, %v8860_v0  ;;  %v7472_v34 = vsel %vm1983_vm5, 1.0, %v12433_v1  ;;  %v2008_v46 = vmul.f32 %v7473_v26, %v8814_v36  ;;  %v2001_v27 = vmul.f32 %v7466_v52, %v8790_v12  ;;  %v12735_v52 = vld [vmem:[#allocation109_spill] sm:$0xff] }
 0xb78   : > { %v2006_v50 = vmul.f32 %v7471_v25, %v8805_v24  ;;  %v1965_v57 = vmul.f32 %v7462_v43, %v1957_v54  ;;  %v1961_v31 = vmul.f32 %v7458_v61, %v1953_v58  ;;  %v9580_v20 = vadd.f32 %v2003_v7, %v1963_v60  ;;  %v12731_v60 = vld [vmem:[#allocation37_spill] sm:$0xff] }
 0xb79   : > { %v2004_v2 = vmul.f32 %v7469_v55, %v9082_v5  ;;  %v1966_v41 = vmul.f32 %v7463_v56, %v1958_v45  ;;  %v1968_v39 = vmul.f32 %v7465_v11, %v1960_v13  ;;  %v1964_v18 = vmul.f32 %v7461_v21, %v1956_v19  ;;  %v12736_v56 = vld [vmem:[#allocation40_spill] sm:$0xff] }
 0xb7a   : > { %v7464_v29 = vsel %vm1935_vm6, 1.0, %v12433_v1  ;;  %vm2302_vm7 = vcmp.eq.s32.totalorder %v9506_v10, %v2294_v37  ;;  %v2295_v36 = vadd.s32 1, %v8869_v30  ;;  %v2007_v12 = vmul.f32 %v7472_v34, %v8801_v22  ;;  %v12738_v34 = vld [vmem:[#allocation45_spill] sm:$0xff] }
 0xb7b   : > { %v9587_v24 = vadd.f32 %v2005_v28, %v1965_v57  ;;  %v9589_v58 = vadd.f32 %v2008_v46, %v1968_v39  ;;  %v9591_v54 = vadd.f32 %v2001_v27, %v1961_v31  ;;  %v9593_v5 = vadd.f32 %v2006_v50, %v1966_v41  ;;  %v12732_v41 = vld [vmem:[#allocation42_spill] sm:$0xff]  ;;  %v12737_v28 = vld [vmem:[#allocation44_spill] sm:$0xff] }
 0xb7c   : > { %v2278_v13 = vsub.f32 1.0, %v8835_v59  ;;  %v1967_v45 = vmul.f32 %v7464_v29, %v1959_v49  ;;  %vm2254_vm8 = vcmp.eq.s32.totalorder %v9506_v10, %v8860_v0  ;;  %v9598_v19 = vadd.f32 %v2004_v2, %v1964_v18  ;;  %v12733_v31 = vld [vmem:[#allocation118_spill] sm:$0xff] }
 0xb7d   : > { %v2280_v22 = vsub.f32 1.0, %v12731_v60  ;;  %v7484_v43 = vsel %vm2302_vm7, 1.0, %v12433_v1  ;;  %vm2255_vm9 = vcmp.eq.s32.totalorder %v9506_v10, %v8869_v30  ;;  %vm2303_vm10 = vcmp.eq.s32.totalorder %v9506_v10, %v2295_v36  ;;  %v12734_v0 = vld [vmem:[#allocation38_spill] sm:$0xff] }
 0xb7e   : > { %v2297_v39 = vadd.s32 1, %v12732_v41  ;;  %v2293_v49 = vadd.s32 1, %v12733_v31  ;;  %v9608_v7 = vadd.f32 %v2007_v12, %v1967_v45  ;;  %v2281_v18 = vsub.f32 1.0, %v12734_v0 }
 0xb7f   : > { %v2277_v25 = vsub.f32 1.0, %v12735_v52  ;;  %v7476_v26 = vsel %vm2254_vm8, 1.0, %v12433_v1  ;;  %vm2257_vm11 = vcmp.eq.s32.totalorder %v9506_v10, %v12732_v41  ;;  %v2284_v30 = vsub.f32 1.0, %v12736_v56 }
 0xb80   : > { %v7477_v55 = vsel %vm2255_vm9, 1.0, %v12433_v1  ;;  %v2298_v11 = vadd.s32 1, %v12737_v28  ;;  %v2326_v21 = vmul.f32 %v7484_v43, %v8835_v59  ;;  %v7485_v37 = vsel %vm2303_vm10, 1.0, %v12433_v1  ;;  %v12740_v43 = vld [vmem:[#allocation114_spill] sm:$0xff] }
 0xb81   : > { %v2300_v46 = vadd.s32 1, %v12738_v34  ;;  %v2296_v27 = vadd.s32 1, %v9167_v3  ;;  %v2286_v57 = vmul.f32 %v7476_v26, %v2278_v13  ;;  %v7479_v2 = vsel %vm2257_vm11, 1.0, %v12433_v1 }
 0xb82   : > { %vm2305_vm12 = vcmp.eq.s32.totalorder %v9506_v10, %v2297_v39  ;;  %vm2301_vm13 = vcmp.eq.s32.totalorder %v9506_v10, %v2293_v49  ;;  %v2299_v29 = vadd.s32 1, %v9175_v51  ;;  %vm2306_vm15 = vcmp.eq.s32.totalorder %v9506_v10, %v2298_v11 }
 0xb83   : > { %v9634_v13 = vadd.f32 %v2326_v21, %v2286_v57  ;;  %v2282_v41 = vsub.f32 1.0, %v12740_v43  ;;  %vm2253_vm4 = vcmp.eq.s32.totalorder %v9506_v10, %v12733_v31  ;;  %vm2308_vm5 = vcmp.eq.s32.totalorder %v9506_v10, %v2300_v46 }
 0xb84   : > { %vm2304_vm6 = vcmp.eq.s32.totalorder %v9506_v10, %v2296_v27  ;;  %v7483_v26 = vsel %vm2301_vm13, 1.0, %v12433_v1  ;;  %vm2258_vm7 = vcmp.eq.s32.totalorder %v9506_v10, %v12737_v28  ;;  %v7488_v31 = vsel %vm2306_vm15, 1.0, %v12433_v1 }
 0xb85   : > { %12739 = vst [vmem:[#allocation37_spill] sm:$0xff] %v9634_v13  ;;  %vm2260_vm8 = vcmp.eq.s32.totalorder %v9506_v10, %v12738_v34  ;;  %vm2256_vm9 = vcmp.eq.s32.totalorder %v9506_v10, %v9167_v3  ;;  %vm2307_vm10 = vcmp.eq.s32.totalorder %v9506_v10, %v2299_v29  ;;  %v7475_v39 = vsel %vm2253_vm4, 1.0, %v12433_v1 }
 0xb86   : > { %v7490_v49 = vsel %vm2308_vm5, 1.0, %v12433_v1  ;;  %vm2259_vm11 = vcmp.eq.s32.totalorder %v9506_v10, %v9175_v51  ;;  %v2325_v11 = vmul.f32 %v7483_v26, %v12735_v52  ;;  %v7482_v3 = vsel %vm2260_vm8, 1.0, %v12433_v1  ;;  %v12743_v26 = vld [vmem:[#allocation55_spill] sm:$0xff] }
 0xb87   : > { %v7478_v21 = vsel %vm2256_vm9, 1.0, %v12433_v1  ;;  %v2330_v34 = vmul.f32 %v7488_v31, %v12740_v43  ;;  %v2332_v57 = vmul.f32 %v7490_v49, %v12736_v56  ;;  %v7481_v52 = vsel %vm2259_vm11, 1.0, %v12433_v1 }
 0xb88   : > { %v2288_v43 = vmul.f32 %v7478_v21, %v2280_v22  ;;  %v2681_v31 = vadd.s32 1, %v12743_v26  ;;  %v12749_v21 = vld [vmem:[#allocation47_spill] sm:$0xff]  ;;  %vm2641_vm13 = vcmp.eq.s32.totalorder %v9506_v10, %v12743_v26  ;;  %vm2640_vm5 = vcmp.eq.s32.totalorder %v9506_v10, %v9204_v4 }
 0xb89   : > { %v2683_v26 = vadd.s32 1, %v9219_v8 }
 0xb8a   : > { %vm2689_vm4 = vcmp.eq.s32.totalorder %v9506_v10, %v2681_v31 }
 0xb8b   : > { %vm2691_vm9 = vcmp.eq.s32.totalorder %v9506_v10, %v2683_v26 }
 0xbcf   : > { %v1581_v42 = vpop.xlane.xlu1 %1580 }
 0xbd0   : > { %8076 = vrcp.f32 %v1581_v42  ;;  %v2279_v42 = vsub.f32 1.0, %v8839_v62 }
 0xbd2   : > { %v2287_v45 = vmul.f32 %v7477_v55, %v2279_v42  ;;  %v2289_v42 = vmul.f32 %v7479_v2, %v2281_v18  ;;  %v7486_v18 = vsel %vm2304_vm6, 1.0, %v12433_v1  ;;  %v7480_v55 = vsel %vm2258_vm7, 1.0, %v12433_v1 }
 0xbd3   : > { %v2328_v51 = vmul.f32 %v7486_v18, %v12731_v60  ;;  %v2285_v2 = vmul.f32 %v7475_v39, %v2277_v25  ;;  %v12742_v25 = vld [vmem:[#allocation54_spill] sm:$0xff] }
 0xbd5   : > { %v9699_v49 = vadd.f32 %v2328_v51, %v2288_v43 }
 0xbd6   : > { %v8077_v61 = vpop.eup %8076 }
 0xbd7   : > { %v9623_v50 = vmul.f32 %v8077_v61, %v9421_v33  ;;  %v2327_v33 = vmul.f32 %v7485_v37, %v8839_v62  ;;  %v7487_v62 = vsel %vm2305_vm12, 1.0, %v12433_v1  ;;  %v7489_v37 = vsel %vm2307_vm10, 1.0, %v12433_v1  ;;  %12746 = vst [vmem:[#allocation38_spill] sm:$0xff] %v9699_v49 }
 0xbd8   : > { %v2329_v28 = vmul.f32 %v7487_v62, %v12734_v0  ;;  %v2290_v0 = vmul.f32 %v7480_v55, %v2282_v41  ;;  %v2292_v62 = vmul.f32 %v7482_v3, %v2284_v30  ;;  %v2679_v41 = vadd.s32 1, %v12742_v25  ;;  %v12748_v55 = vld [vmem:[#allocation46_spill] sm:$0xff] }
 0xbd9   : > { %v12431_v59 = vperm.slane %v9623_v50, 2  ;;  %v12432_v36 = vperm.slane %v9623_v50, 1  ;;  %v12429_v12 = vperm.slane %v9623_v50, 0  ;;  %v9664_v61 = vadd.f32 %v2327_v33, %v2287_v45  ;;  %v12741_v45 = vld [vmem:[#allocation39_spill] sm:$0xff] }
 0xbda   : > { %v12428_v46 = vperm.slane %v9623_v50, 4  ;;  %v12430_v27 = vperm.slane %v9623_v50, 6  ;;  %v12427_v29 = vperm.slane %v9623_v50, 3  ;;  %v2283_v33 = vsub.f32 1.0, %v12741_v45 }
 0xbdb   : > { %1890 = vperm.xlu2 %7955, %v12431_v59   ;;  %1883 = vperm.xlu0 %7954, %v12432_v36   ;;  %v2331_v56 = vmul.f32 %v7489_v37, %v12741_v45  ;;  %v9693_v39 = vadd.f32 %v2329_v28, %v2289_v42  ;;  %v9695_v30 = vadd.f32 %v2325_v11, %v2285_v2  ;;  %v2663_v3 = vsub.f32 1.0, %v12748_v55  ;;  %v12750_v42 = vld [vmem:[#allocation49_spill] sm:$0xff]  ;;  %v12751_v11 = vld [vmem:[#allocation50_spill] sm:$0xff]  ;;  %v12758_v36 = vld [vmem:[#allocation128_spill] sm:$0xff] }
 0xbdc   : > { %1876 = vperm.xlu1 %7953, %v12429_v12   ;;  %v2291_v60 = vmul.f32 %v7481_v52, %v2283_v33  ;;  %v9697_v22 = vadd.f32 %v2332_v57, %v2292_v62  ;;  %v9701_v18 = vadd.f32 %v2330_v34, %v2290_v0  ;;  %v2665_v37 = vsub.f32 1.0, %v12749_v21  ;;  %v12753_v33 = vld [vmem:[#allocation56_spill] sm:$0xff]  ;;  %v12757_v2 = vld [vmem:[#allocation53_spill] sm:$0xff] }
 0xbdd   : > { %12744 = vst [vmem:[#allocation42_spill] sm:$0xff] %v9695_v30  ;;  %vm2639_vm12 = vcmp.eq.s32.totalorder %v9506_v10, %v12742_v25  ;;  %v2207_v57 = vadd.s32 18, %v8586_v15  ;;  %v2664_v34 = vsub.f32 1.0, %v9183_v53  ;;  %vm2687_vm15 = vcmp.eq.s32.totalorder %v9506_v10, %v2679_v41 }
 0xbde   : > { %12745 = vst [vmem:[#allocation118_spill] sm:$0xff] %v9697_v22  ;;  %v9712_v51 = vadd.f32 %v2331_v56, %v2291_v60  ;;  %v2680_v0 = vadd.s32 1, %v9204_v4  ;;  %v7493_v52 = vsel %vm2639_vm12, 1.0, %v12433_v1  ;;  %v7495_v45 = vsel %vm2641_vm13, 1.0, %v12433_v1  ;;  %v12754_v56 = vld [vmem:[#allocation57_spill] sm:$0xff] }
 0xbdf   : > { %12747 = vst [vmem:[#allocation109_spill] sm:$0xff] %v9701_v18  ;;  %v2682_v62 = vadd.s32 1, %v12753_v33  ;;  %v12435_v43 = vperm.slane %v9623_v50, 7  ;;  %v2684_v25 = vadd.s32 1, %v12754_v56  ;;  %v12436_v41 = vperm.slane %v9623_v50, 5 }
 0xbe0   : > { %12752 = vst [vmem:[#allocation40_spill] sm:$0xff] %v9712_v51  ;;  %v7501_v31 = vsel %vm2687_vm15, 1.0, %v12433_v1  ;;  %v7503_v60 = vsel %vm2689_vm4, 1.0, %v12433_v1  ;;  %v2686_v12 = vadd.s32 1, %v9230_v14  ;;  %v2670_v28 = vsub.f32 1.0, %v12757_v2 }
 0xbe1   : > { %v2669_v18 = vsub.f32 1.0, %v12758_v36  ;;  %vm2688_vm6 = vcmp.eq.s32.totalorder %v9506_v10, %v2680_v0  ;;  %v2671_v1 = vmul.f32 %v7493_v52, %v2663_v3  ;;  %v2673_v51 = vmul.f32 %v7495_v45, %v2665_v37  ;;  %v12760_v52 = vld [vmem:[#allocation68_spill] sm:$0xff] }
 0xbe2   : > { %v12759_v49 = vmov 0.0   ;;  %vm2690_vm7 = vcmp.eq.s32.totalorder %v9506_v10, %v2682_v62  ;;  %vm2692_vm8 = vcmp.eq.s32.totalorder %v9506_v10, %v2684_v25  ;;  %v2713_v0 = vmul.f32 %v7503_v60, %v12749_v21 }
 0xbe3   : > { %1904 = vperm.xlu2 %7955, %v12428_v46   ;;  %1918 = vperm.xlu0 %7954, %v12430_v27   ;;  %v12756_v27 = vld [vmem:[#allocation51_spill] sm:$0xff]  ;;  %v7494_v22 = vsel %vm2640_vm5, 1.0, %v12759_v49  ;;  %v7502_v13 = vsel %vm2688_vm6, 1.0, %v12759_v49  ;;  %vm2642_vm10 = vcmp.eq.s32.totalorder %v9506_v10, %v12753_v33  ;;  %vm2694_vm12 = vcmp.eq.s32.totalorder %v9506_v10, %v2686_v12 }
 0xbe4   : > { %1897 = vperm.xlu1 %7953, %v12427_v29   ;;  %v12755_v29 = vld [vmem:[#allocation58_spill] sm:$0xff]  ;;  %v2668_v59 = vsub.f32 1.0, %v12756_v27  ;;  %v2672_v4 = vmul.f32 %v7494_v22, %v2664_v34  ;;  %v7504_v3 = vsel %vm2690_vm7, 1.0, %v12759_v49  ;;  %vm2644_vm13 = vcmp.eq.s32.totalorder %v9506_v10, %v12754_v56 }
 0xbe5   : > { %v2685_v46 = vadd.s32 1, %v12755_v29  ;;  %vm2643_vm15 = vcmp.eq.s32.totalorder %v9506_v10, %v9219_v8  ;;  %v7505_v21 = vsel %vm2691_vm9, 1.0, %v12759_v49  ;;  %vm2645_vm4 = vcmp.eq.s32.totalorder %v9506_v10, %v12755_v29 }
 0xbe6   : > { %vm2646_vm5 = vcmp.eq.s32.totalorder %v9506_v10, %v9230_v14  ;;  %v7496_v12 = vsel %vm2642_vm10, 1.0, %v12759_v49  ;;  %v7508_v22 = vsel %vm2694_vm12, 1.0, %v12759_v49  ;;  %v2712_v37 = vmul.f32 %v7502_v13, %v9183_v53 }
 0xbe7   : > { %vm2693_vm11 = vcmp.eq.s32.totalorder %v9506_v10, %v2685_v46  ;;  %v7498_v8 = vsel %vm2644_vm13, 1.0, %v12759_v49  ;;  %v7497_v34 = vsel %vm2643_vm15, 1.0, %v12759_v49  ;;  %v2975_v45 = vadd.s32 1, %v12760_v52 }
 0xbe8   : > { %v7507_v46 = vsel %vm2693_vm11, 1.0, %v12759_v49  ;;  %v12761_v29 = vperm.slane %v9623_v50, 1  ;;  %v2714_v14 = vmul.f32 %v7504_v3, %v12750_v42  ;;  %v7499_v33 = vsel %vm2645_vm4, 1.0, %v12759_v49 }
 0xbe9   : > { %v7500_v62 = vsel %vm2646_vm5, 1.0, %v12759_v49  ;;  %v2715_v53 = vmul.f32 %v7505_v21, %v12751_v11  ;;  %v9780_v25 = vadd.f32 %v2713_v0, %v2673_v51  ;;  %v2718_v26 = vmul.f32 %v7508_v22, %v12757_v2  ;;  %v12768_v51 = vld [vmem:[#allocation61_spill] sm:$0xff]  ;;  %v12771_v0 = vld [vmem:[#allocation63_spill] sm:$0xff] }
 0xbea   : > { %v12762_v60 = vsub.f32 1.0, %v12750_v42  ;;  %vm2983_vm6 = vcmp.eq.s32.totalorder %v9506_v10, %v2975_v45  ;;  %vm2935_vm7 = vcmp.eq.s32.totalorder %v9506_v10, %v12760_v52  ;;  %v2961_v21 = vsub.f32 1.0, %v9241_v44  ;;  %v12776_v45 = vld [vmem:[#allocation65_spill] sm:$0xff] }
 0xbeb   : > { %1925 = vperm.xlu2 %7955, %v12435_v43   ;;  %7957 = vset.pattern.permute.xlu0 %v2207_v57  ;;  %v2711_v43 = vmul.f32 %v7501_v31, %v12748_v55  ;;  %v7506_v55 = vsel %vm2692_vm8, 1.0, %v12759_v49  ;;  %v2717_v31 = vmul.f32 %v7507_v46, %v12758_v36  ;;  %v7517_v22 = vsel %vm2983_vm6, 1.0, %v12759_v49 }
 0xbec   : > { %1911 = vperm.xlu1 %7953, %v12436_v41   ;;  %v2716_v56 = vmul.f32 %v7506_v55, %v12756_v27  ;;  %v2674_v3 = vmul.f32 %v7496_v12, %v12762_v60  ;;  %v12763_v41 = vsub.f32 1.0, %v12751_v11  ;;  %v2677_v27 = vmul.f32 %v7499_v33, %v2669_v18  ;;  %v12772_v12 = vld [vmem:[#allocation64_spill] sm:$0xff]  ;;  %v12777_v33 = vld [vmem:[#allocation70_spill] sm:$0xff] }
 0xbed   : > { %v9778_v13 = vadd.f32 %v2711_v43, %v2671_v1  ;;  %v2678_v55 = vmul.f32 %v7500_v62, %v2670_v28  ;;  %v2977_v1 = vadd.s32 1, %v9259_v35  ;;  %v2960_v43 = vsub.f32 1.0, %v12768_v51 }
 0xbee   : > { %v2675_v30 = vmul.f32 %v7497_v34, %v12763_v41  ;;  %v9794_v2 = vadd.f32 %v2714_v14, %v2674_v3  ;;  %v1597_v41 = vpop.xlane.xlu0 %1596  ;;  %v9804_v28 = vadd.f32 %v2717_v31, %v2677_v27  ;;  %vm2937_vm8 = vcmp.eq.s32.totalorder %v9506_v10, %v9259_v35  ;;  %v12780_v27 = vld [vmem:[#allocation74_spill] sm:$0xff] }
 0xbef   : > { %v9802_v18 = vadd.f32 %v2718_v26, %v2678_v55  ;;  %vm2985_vm9 = vcmp.eq.s32.totalorder %v9506_v10, %v2977_v1  ;;  %v12774_v34 = vperm.slane %v9623_v50, 2  ;;  %v12775_v52 = vperm.slane %v9623_v50, 6 }
 0xbf0   : > { %12764 = vst [vmem:[#allocation44_spill] sm:$0xff] %v9794_v2  ;;  %v9798_v42 = vadd.f32 %v2715_v53, %v2675_v30  ;;  %v7509_v30 = vsel %vm2935_vm7, 1.0, %v12759_v49  ;;  %v2964_v14 = vsub.f32 1.0, %v12776_v45  ;;  %v2978_v62 = vadd.s32 1, %v12777_v33  ;;  %v12779_v53 = vld [vmem:[#allocation72_spill] sm:$0xff] }
 0xbf1   : > { %12769 = vst [vmem:[#allocation39_spill] sm:$0xff] %v9802_v18  ;;  %8078 = vrcp.f32 %v1597_v41  ;;  %v12778_v35 = vperm.slane %v9623_v50, 0  ;;  %vm2938_vm11 = vcmp.eq.s32.totalorder %v9506_v10, %v12777_v33  ;;  %v2979_v26 = vadd.s32 1, %v12779_v53  ;;  %v12781_v41 = vld [vmem:[#allocation75_spill] sm:$0xff] }
 0xbf2   : > { %12766 = vst [vmem:[#allocation114_spill] sm:$0xff] %v9798_v42  ;;  %v7511_v3 = vsel %vm2937_vm8, 1.0, %v12759_v49  ;;  %v2981_v55 = vadd.s32 1, %v12780_v27  ;;  %v12782_v33 = vld [vmem:[#allocation67_spill] sm:$0xff]  ;;  %vm2986_vm13 = vcmp.eq.s32.totalorder %v9506_v10, %v2978_v62  ;;  %vm2940_vm6 = vcmp.eq.s32.totalorder %v9506_v10, %v9267_v47 }
 0xbf3   : > { %7958 = vset.pattern.permute.xlu2 %v2207_v57  ;;  %2215 = vperm.xlu0 %7957, %v12761_v29   ;;  %v2676_v29 = vmul.f32 %v7498_v8, %v2668_v59  ;;  %v12767_v59 = vld [vmem:[#allocation59_spill] sm:$0xff]  ;;  %12770 = vst [vmem:[#allocation54_spill] sm:$0xff] %v9804_v28  ;;  %vm2987_vm4 = vcmp.eq.s32.totalorder %v9506_v10, %v2979_v26  ;;  %v7520_v18 = vsel %vm2986_vm13, 1.0, %v12759_v49  ;;  %v3366_v62 = vadd.s32 1, %v9292_v38 }
 0xbf4   : > { %7956 = vset.pattern.permute.xlu1 %v2207_v57  ;;  %v9788_v57 = vadd.f32 %v2712_v37, %v2672_v4  ;;  %v2959_v11 = vsub.f32 1.0, %v12767_v59  ;;  %v2962_v4 = vsub.f32 1.0, %v12771_v0  ;;  %v12773_v37 = vld [vmem:[#allocation69_spill] sm:$0xff]  ;;  %v3007_v31 = vmul.f32 %v7517_v22, %v12767_v59 }
 0xbf5   : > { %v9796_v36 = vadd.f32 %v2716_v56, %v2676_v29  ;;  %v2976_v8 = vadd.s32 1, %v12773_v37  ;;  %vm2936_vm10 = vcmp.eq.s32.totalorder %v9506_v10, %v12773_v37  ;;  %v2980_v56 = vadd.s32 1, %v9267_v47 }
 0xbf6   : > { %v2967_v60 = vmul.f32 %v7509_v30, %v2959_v11  ;;  %v7519_v29 = vsel %vm2985_vm9, 1.0, %v12759_v49  ;;  %v7510_v1 = vsel %vm2936_vm10, 1.0, %v12759_v49  ;;  %v2982_v37 = vadd.s32 1, %v12781_v41 }
 0xbf7   : > { %12765 = vst [vmem:[#allocation45_spill] sm:$0xff] %v9796_v36  ;;  %vm2984_vm12 = vcmp.eq.s32.totalorder %v9506_v10, %v2976_v8  ;;  %v2965_v59 = vsub.f32 1.0, %v12782_v33  ;;  %v7512_v11 = vsel %vm2938_vm11, 1.0, %v12759_v49  ;;  %v2969_v22 = vmul.f32 %v7511_v3, %v2961_v21  ;;  %v8079_v8 = vpop.eup %8078 }
 0xbf8   : > { %vm2988_vm15 = vcmp.eq.s32.totalorder %v9506_v10, %v2980_v56  ;;  %v9845_v30 = vadd.f32 %v3007_v31, %v2967_v60  ;;  %v7518_v46 = vsel %vm2984_vm12, 1.0, %v12759_v49  ;;  %vm2989_vm5 = vcmp.eq.s32.totalorder %v9506_v10, %v2981_v55 }
 0xbf9   : > { %v3009_v28 = vmul.f32 %v7519_v29, %v9241_v44  ;;  %v2970_v42 = vmul.f32 %v7512_v11, %v2962_v4  ;;  %vm2990_vm7 = vcmp.eq.s32.totalorder %v9506_v10, %v2982_v37  ;;  %v12784_v21 = vperm.slane %v9623_v50, 4 }
 0xbfa   : > { %12783 = vst [vmem:[#allocation55_spill] sm:$0xff] %v9845_v30  ;;  %vm2939_vm8 = vcmp.eq.s32.totalorder %v9506_v10, %v12779_v53  ;;  %v7521_v44 = vsel %vm2987_vm4, 1.0, %v12759_v49  ;;  %vm2941_vm9 = vcmp.eq.s32.totalorder %v9506_v10, %v12780_v27  ;;  %v12785_v4 = vperm.slane %v9623_v50, 3 }
 0xbfb   : > { %2221 = vperm.xlu2 %7958, %v12774_v34   ;;  %2245 = vperm.xlu0 %7957, %v12775_v52   ;;  %v9837_v34 = vadd.s32 20, %v8586_v15  ;;  %v2966_v52 = vsub.f32 1.0, %v9250_v63  ;;  %v7523_v47 = vsel %vm2989_vm5, 1.0, %v12759_v49  ;;  %vm2942_vm10 = vcmp.eq.s32.totalorder %v9506_v10, %v12781_v41 }
 0xbfc   : > { %2209 = vperm.xlu1 %7956, %v12778_v35   ;;  %v2968_v35 = vmul.f32 %v7510_v1, %v2960_v43  ;;  %v7522_v43 = vsel %vm2988_vm15, 1.0, %v12759_v49  ;;  %v9870_v56 = vmul.f32 %v8079_v8, %v9409_v23  ;;  %v7514_v53 = vsel %vm2940_vm6, 1.0, %v12759_v49 }
 0xbfd   : > { %v7524_v26 = vsel %vm2990_vm7, 1.0, %v12759_v49  ;;  %v3008_v31 = vmul.f32 %v7518_v46, %v12768_v51  ;;  %v3010_v60 = vmul.f32 %v7520_v18, %v12771_v0  ;;  %v7513_v3 = vsel %vm2939_vm8, 1.0, %v12759_v49 }
 0xbfe   : > { %v7515_v29 = vsel %vm2941_vm9, 1.0, %v12759_v49  ;;  %v3012_v27 = vmul.f32 %v7522_v43, %v12776_v45  ;;  %v9879_v55 = vadd.f32 %v3009_v28, %v2969_v22  ;;  %v7516_v1 = vsel %vm2942_vm10, 1.0, %v12759_v49 }
 0xbff   : > { %v3369_v23 = vadd.s32 1, %v9301_v17  ;;  %v3013_v41 = vmul.f32 %v7523_v47, %v12782_v33  ;;  %v3011_v37 = vmul.f32 %v7521_v44, %v12772_v12  ;;  %v2972_v11 = vmul.f32 %v7514_v53, %v2964_v14 }
 0xc00   : > { %12786 = vst [vmem:[#allocation46_spill] sm:$0xff] %v9879_v55  ;;  %vm3374_vm11 = vcmp.eq.s32.totalorder %v9506_v10, %v3366_v62  ;;  %v12437_v51 = vperm.slane %v9870_v56, 2  ;;  %v3014_v18 = vmul.f32 %v7524_v26, %v9250_v63  ;;  %v12787_v0 = vsub.f32 1.0, %v12772_v12  ;;  %v12799_v62 = vld [vmem:[#allocation77_spill] sm:$0xff]  ;;  %v12800_v26 = vld [vmem:[#allocation88_spill] sm:$0xff] }
 0xc01   : > { %v2973_v28 = vmul.f32 %v7515_v29, %v2965_v59  ;;  %v9890_v45 = vadd.f32 %v3008_v31, %v2968_v35  ;;  %v9892_v22 = vadd.f32 %v3010_v60, %v2970_v42  ;;  %v2974_v33 = vmul.f32 %v7516_v1, %v2966_v52  ;;  %v12801_v60 = vld [vmem:[#allocation79_spill] sm:$0xff] }
 0xc02   : > { %v2971_v46 = vmul.f32 %v7513_v3, %v12787_v0  ;;  %vm3326_vm12 = vcmp.eq.s32.totalorder %v9506_v10, %v9292_v38  ;;  %v12790_v14 = vperm.slane %v9623_v50, 7  ;;  %v9901_v63 = vadd.f32 %v3012_v27, %v2972_v11  ;;  %v12795_v38 = vld [vmem:[#allocation150_spill] sm:$0xff]  ;;  %v12802_v27 = vld [vmem:[#allocation160_spill] sm:$0xff]  ;;  %v12804_v11 = vld [vmem:[#allocation93_spill] sm:$0xff] }
 0xc03   : > { %2233 = vperm.xlu2 %7958, %v12784_v21   ;;  %7961 = vset.pattern.permute.xlu0 %v9837_v34  ;;  %12788 = vst [vmem:[#allocation47_spill] sm:$0xff] %v9890_v45  ;;  %v7536_v12 = vsel %vm3374_vm11, 1.0, %v12759_v49  ;;  %vm3377_vm13 = vcmp.eq.s32.totalorder %v9506_v10, %v3369_v23  ;;  %v12792_v42 = vperm.slane %v9623_v50, 5  ;;  %v9907_v59 = vadd.f32 %v3013_v41, %v2973_v28  ;;  %v12796_v21 = vld [vmem:[#allocation76_spill] sm:$0xff]  ;;  %v12803_v41 = vld [vmem:[#allocation91_spill] sm:$0xff] }
 0xc04   : > { %2227 = vperm.xlu1 %7956, %v12785_v4   ;;  %12789 = vst [vmem:[#allocation49_spill] sm:$0xff] %v9892_v22  ;;  %v9909_v52 = vadd.f32 %v3011_v37, %v2971_v46  ;;  %v3350_v35 = vsub.f32 1.0, %v12795_v38  ;;  %v3351_v43 = vsub.f32 1.0, %v12796_v21  ;;  %vm3329_vm15 = vcmp.eq.s32.totalorder %v9506_v10, %v9301_v17  ;;  %v12798_v4 = vld [vmem:[#allocation153_spill] sm:$0xff]  ;;  %v12850_v22 = vld [vmem:[#allocation162_spill] sm:$0xff] }
 0xc05   : > { %12791 = vst [vmem:[#allocation50_spill] sm:$0xff] %v9901_v63  ;;  %v9915_v44 = vadd.f32 %v3014_v18, %v2974_v33  ;;  %v3349_v53 = vsub.f32 1.0, %v12799_v62  ;;  %v7528_v50 = vsel %vm3326_vm12, 1.0, %v12759_v49  ;;  %v3367_v31 = vadd.s32 1, %v12800_v26  ;;  %v12805_v46 = vld [vmem:[#allocation81_spill] sm:$0xff]  ;;  %v12806_v33 = vld [vmem:[#allocation84_spill] sm:$0xff] }
 0xc06   : > { %12793 = vst [vmem:[#allocation56_spill] sm:$0xff] %v9907_v59  ;;  %v3353_v3 = vsub.f32 1.0, %v12801_v60  ;;  %v7539_v29 = vsel %vm3377_vm13, 1.0, %v12759_v49  ;;  %v3372_v1 = vadd.s32 1, %v12802_v27  ;;  %v3398_v23 = vmul.f32 %v7536_v12, %v12795_v38  ;;  %v12807_v12 = vld [vmem:[#allocation95_spill] sm:$0xff] }
 0xc07   : > { %12794 = vst [vmem:[#allocation57_spill] sm:$0xff] %v9909_v52  ;;  %v7531_v17 = vsel %vm3329_vm15, 1.0, %v12759_v49  ;;  %vm3327_vm4 = vcmp.eq.s32.totalorder %v9506_v10, %v12800_v26  ;;  %v3365_v37 = vadd.s32 1, %v12803_v41  ;;  %v3370_v18 = vadd.s32 1, %v12804_v11  ;;  %v12849_v52 = vld [vmem:[#allocation92_spill] sm:$0xff] }
 0xc08   : > { %12797 = vst [vmem:[#allocation58_spill] sm:$0xff] %v9915_v44  ;;  %v3358_v0 = vmul.f32 %v7528_v50, %v3350_v35  ;;  %v3352_v28 = vsub.f32 1.0, %v12805_v46  ;;  %vm3375_vm5 = vcmp.eq.s32.totalorder %v9506_v10, %v3367_v31  ;;  %vm3332_vm6 = vcmp.eq.s32.totalorder %v9506_v10, %v12802_v27  ;;  %v12809_v50 = vld [vmem:[#allocation85_spill] sm:$0xff] }
 0xc09   : > { %v3368_v38 = vadd.s32 1, %v12807_v12  ;;  %v3401_v26 = vmul.f32 %v7539_v29, %v12801_v60  ;;  %v3361_v8 = vmul.f32 %v7531_v17, %v3353_v3  ;;  %vm3380_vm7 = vcmp.eq.s32.totalorder %v9506_v10, %v3372_v1  ;;  %v12810_v29 = vld [vmem:[#allocation98_spill] sm:$0xff] }
 0xc0a   : > { %v9943_v35 = vadd.f32 %v3398_v23, %v3358_v0  ;;  %v3354_v31 = vsub.f32 1.0, %v12809_v50  ;;  %vm3325_vm8 = vcmp.eq.s32.totalorder %v9506_v10, %v12803_v41  ;;  %vm3373_vm9 = vcmp.eq.s32.totalorder %v9506_v10, %v3365_v37 }
 0xc0b   : > { %2251 = vperm.xlu2 %7958, %v12790_v14   ;;  %2602 = vperm.xlu0 %7961, %v12437_v51   ;;  %v3356_v14 = vsub.f32 1.0, %v12806_v33  ;;  %v7529_v51 = vsel %vm3327_vm4, 1.0, %v12759_v49  ;;  %vm3378_vm10 = vcmp.eq.s32.totalorder %v9506_v10, %v3370_v18  ;;  %v7537_v60 = vsel %vm3375_vm5, 1.0, %v12759_v49 }
 0xc0c   : > { %2239 = vperm.xlu1 %7956, %v12792_v42   ;;  %v12438_v42 = vperm.slane %v9870_v56, 7  ;;  %12808 = vst [vmem:[#allocation51_spill] sm:$0xff] %v9943_v35  ;;  %v7534_v3 = vsel %vm3332_vm6, 1.0, %v12759_v49  ;;  %vm3330_vm11 = vcmp.eq.s32.totalorder %v9506_v10, %v12804_v11  ;;  %v3371_v27 = vadd.s32 1, %v12810_v29 }
 0xc0d   : > { %v3359_v1 = vmul.f32 %v7529_v51, %v3351_v43  ;;  %v7542_v23 = vsel %vm3380_vm7, 1.0, %v12759_v49  ;;  %vm3376_vm12 = vcmp.eq.s32.totalorder %v9506_v10, %v3368_v38  ;;  %v9958_v17 = vadd.f32 %v3401_v26, %v3361_v8 }
 0xc0e   : > { %v7527_v41 = vsel %vm3325_vm8, 1.0, %v12759_v49  ;;  %v7540_v37 = vsel %vm3378_vm10, 1.0, %v12759_v49  ;;  %v9964_v18 = vadd.s32 22, %v8586_v15  ;;  %v3364_v0 = vmul.f32 %v7534_v3, %v3356_v14 }
 0xc0f   : > { %12811 = vst [vmem:[#allocation53_spill] sm:$0xff] %v9958_v17  ;;  %v7532_v11 = vsel %vm3330_vm11, 1.0, %v12759_v49  ;;  %vm3328_vm13 = vcmp.eq.s32.totalorder %v9506_v10, %v12807_v12  ;;  %v3399_v51 = vmul.f32 %v7537_v60, %v12796_v21  ;;  %v7538_v8 = vsel %vm3376_vm12, 1.0, %v12759_v49  ;;  %v12812_v21 = vld [vmem:[#allocation96_spill] sm:$0xff] }
 0xc10   : > { %vm3379_vm15 = vcmp.eq.s32.totalorder %v9506_v10, %v3371_v27  ;;  %v2583_v43 = vperm.slane %v9870_v56, 0  ;;  %v3404_v38 = vmul.f32 %v7542_v23, %v12806_v33  ;;  %v3357_v26 = vmul.f32 %v7527_v41, %v3349_v53 }
 0xc11   : > { %v3402_v3 = vmul.f32 %v7540_v37, %v12809_v50  ;;  %v3362_v47 = vmul.f32 %v7532_v11, %v3354_v31  ;;  %v7530_v12 = vsel %vm3328_vm13, 1.0, %v12759_v49  ;;  %vm3331_vm4 = vcmp.eq.s32.totalorder %v9506_v10, %v12810_v29  ;;  %v12813_v50 = vld [vmem:[#allocation100_spill] sm:$0xff] }
 0xc12   : > { %v3661_v60 = vadd.s32 1, %v12812_v21  ;;  %vm3623_vm5 = vcmp.eq.s32.totalorder %v9506_v10, %v9317_v48  ;;  %v3663_v53 = vadd.s32 1, %v9317_v48  ;;  %v3400_v33 = vmul.f32 %v7538_v8, %v12805_v46  ;;  %v12819_v46 = vld [vmem:[#allocation164_spill] sm:$0xff] }
 0xc13   : > { %7959 = vset.pattern.permute.xlu2 %v9837_v34  ;;  %2637 = vperm.xlu0 %7961, %v12438_v42   ;;  %v12441_v42 = vperm.slane %v9870_v56, 1  ;;  %vm3621_vm6 = vcmp.eq.s32.totalorder %v9506_v10, %v12812_v21  ;;  %v3645_v31 = vsub.f32 1.0, %v12813_v50  ;;  %v9992_v29 = vadd.f32 %v3399_v51, %v3359_v1 }
 0xc14   : > { %7960 = vset.pattern.permute.xlu1 %v9837_v34  ;;  %v7535_v34 = vsel %vm3373_vm9, 1.0, %v12759_v49  ;;  %v9994_v27 = vadd.f32 %v3404_v38, %v3364_v0  ;;  %v3360_v23 = vmul.f32 %v7530_v12, %v3352_v28  ;;  %v7533_v41 = vsel %vm3331_vm4, 1.0, %v12759_v49  ;;  %v12820_v0 = vld [vmem:[#allocation101_spill] sm:$0xff] }
 0xc15   : > { %v3397_v14 = vmul.f32 %v7535_v34, %v12799_v62  ;;  %v7541_v62 = vsel %vm3379_vm15, 1.0, %v12759_v49  ;;  %12814 = vst [vmem:[#allocation128_spill] sm:$0xff] %v9992_v29  ;;  %v9999_v34 = vadd.f32 %v3402_v3, %v3362_v47  ;;  %v10002_v37 = vsel %vm3623_vm5, 1.0, %v12759_v49 }
 0xc16   : > { %12815 = vst [vmem:[#allocation68_spill] sm:$0xff] %v9994_v27  ;;  %vm3669_vm7 = vcmp.eq.s32.totalorder %v9506_v10, %v3661_v60  ;;  %v4345_v11 = vadd.s32 1, %v12819_v46  ;;  %v3403_v8 = vmul.f32 %v7541_v62, %v12798_v4  ;;  %v7543_v1 = vsel %vm3621_vm6, 1.0, %v12759_v49  ;;  %v12840_v27 = vld [vmem:[#allocation209_spill] sm:$0xff] }
 0xc17   : > { %v9997_v48 = vadd.f32 %v3397_v14, %v3357_v26  ;;  %12817 = vst [vmem:[#allocation61_spill] sm:$0xff] %v9999_v34  ;;  %v3662_v51 = vadd.s32 1, %v12820_v0  ;;  %vm3671_vm8 = vcmp.eq.s32.totalorder %v9506_v10, %v3663_v53  ;;  %v10010_v28 = vadd.f32 %v3400_v33, %v3360_v23  ;;  %v12823_v14 = vld [vmem:[#allocation104_spill] sm:$0xff]  ;;  %v12845_v34 = vld [vmem:[#allocation157_spill] sm:$0xff] }
 0xc18   : > { %12818 = vst [vmem:[#allocation63_spill] sm:$0xff] %v10002_v37  ;;  %v12822_v47 = vsub.f32 1.0, %v12798_v4  ;;  %v3653_v26 = vmul.f32 %v7543_v1, %v3645_v31  ;;  %v3664_v3 = vadd.s32 1, %v12823_v14  ;;  %v12439_v12 = vperm.slane %v9870_v56, 3 }
 0xc19   : > { %12816 = vst [vmem:[#allocation59_spill] sm:$0xff] %v9997_v48  ;;  %v7551_v21 = vsel %vm3669_vm7, 1.0, %v12759_v49  ;;  %vm4305_vm9 = vcmp.eq.s32.totalorder %v9506_v10, %v12819_v46  ;;  %v5063_v60 = vadd.s32 1, %v9414_v16  ;;  %v12440_v62 = vperm.slane %v9870_v56, 4 }
 0xc1a   : > { %12821 = vst [vmem:[#allocation64_spill] sm:$0xff] %v10010_v28  ;;  %v3363_v38 = vmul.f32 %v7533_v41, %v12822_v47  ;;  %v3693_v53 = vmul.f32 %v7551_v21, %v12813_v50  ;;  %v10023_v33 = vsel %vm3671_vm8, 1.0, %v12759_v49  ;;  %vm4353_vm10 = vcmp.eq.s32.totalorder %v9506_v10, %v4345_v11  ;;  %v12841_v28 = vld [vmem:[#allocation156_spill] sm:$0xff] }
 0xc1b   : > { %7962 = vset.pattern.permute.xlu0 %v9964_v18  ;;  %2588 = vperm.xlu2 %7959, %v2583_v43   ;;  %12824 = vst [vmem:[#allocation69_spill] sm:$0xff] %v10023_v33  ;;  %vm3622_vm11 = vcmp.eq.s32.totalorder %v9506_v10, %v12820_v0  ;;  %vm3624_vm12 = vcmp.eq.s32.totalorder %v9506_v10, %v12823_v14  ;;  %v4782_v50 = vadd.s32 1, %v9425_v9  ;;  %v10047_v23 = vsel %vm4353_vm10, 1.0, %v12759_v49  ;;  %v12833_v0 = vld [vmem:[#allocation191_spill] sm:$0xff] }
 0xc1c   : > { %2595 = vperm.xlu1 %7960, %v12441_v42   ;;  %v10028_v4 = vadd.f32 %v3403_v8, %v3363_v38  ;;  %vm3670_vm13 = vcmp.eq.s32.totalorder %v9506_v10, %v3662_v51  ;;  %vm3672_vm15 = vcmp.eq.s32.totalorder %v9506_v10, %v3664_v3  ;;  %vm5023_vm4 = vcmp.eq.s32.totalorder %v9506_v10, %v9414_v16  ;;  %v12834_v3 = vld [vmem:[#allocation151_spill] sm:$0xff] }
 0xc1d   : > { %v10044_v31 = vadd.f32 %v3693_v53, %v3653_v26  ;;  %12828 = vst [vmem:[#allocation74_spill] sm:$0xff] %v10047_v23  ;;  %vm4742_vm5 = vcmp.eq.s32.totalorder %v9506_v10, %v9425_v9  ;;  %v5394_v41 = vadd.s32 1, %v9440_v40  ;;  %vm5071_vm6 = vcmp.eq.s32.totalorder %v9506_v10, %v5063_v60  ;;  %v1613_v26 = vpop.xlane.xlu1 %1612  ;;  %v12835_v60 = vld [vmem:[#allocation155_spill] sm:$0xff] }
 0xc1e   : > { %12825 = vst [vmem:[#allocation65_spill] sm:$0xff] %v10028_v4  ;;  %v10054_v46 = vsel %vm3622_vm11, 1.0, %v12759_v49  ;;  %v10057_v11 = vsel %vm3624_vm12, 1.0, %v12759_v49  ;;  %v10060_v16 = vsel %vm3670_vm13, 1.0, %v12759_v49  ;;  %v5398_v8 = vadd.s32 1, %v9460_v6  ;;  %v12837_v4 = vld [vmem:[#allocation154_spill] sm:$0xff] }
 0xc1f   : > { %12827 = vst [vmem:[#allocation72_spill] sm:$0xff] %v10044_v31  ;;  %v10064_v1 = vsel %vm3672_vm15, 1.0, %v12759_v49  ;;  %v5043_v9 = vsub.f32 1.0, %v12833_v0  ;;  %v10068_v51 = vsel %vm5023_vm4, 1.0, %v12759_v49  ;;  %vm4790_vm7 = vcmp.eq.s32.totalorder %v9506_v10, %v4782_v50 }
 0xc20   : > { %12829 = vst [vmem:[#allocation75_spill] sm:$0xff] %v10054_v46  ;;  %v10072_v47 = vsel %vm4742_vm5, 1.0, %v12759_v49  ;;  %vm5354_vm8 = vcmp.eq.s32.totalorder %v9506_v10, %v9440_v40  ;;  %v10077_v38 = vsel %vm5071_vm6, 1.0, %v12759_v49  ;;  %v2618_v14 = vperm.slane %v9870_v56, 5 }
 0xc21   : > { %12830 = vst [vmem:[#allocation67_spill] sm:$0xff] %v10057_v11  ;;  %v5058_v21 = vadd.s32 1, %v12834_v3  ;;  %v5059_v53 = vadd.s32 1, %v12835_v60  ;;  %vm5358_vm10 = vcmp.eq.s32.totalorder %v9506_v10, %v9460_v6  ;;  %vm5406_vm11 = vcmp.eq.s32.totalorder %v9506_v10, %v5398_v8  ;;  %v12839_v6 = vld [vmem:[#allocation204_spill] sm:$0xff]  ;;  %v12844_v8 = vld [vmem:[#allocation165_spill] sm:$0xff] }
 0xc22   : > { %12831 = vst [vmem:[#allocation150_spill] sm:$0xff] %v10060_v16  ;;  %v10089_v40 = vsel %vm4790_vm7, 1.0, %v12759_v49  ;;  %v10092_v42 = vsel %vm5354_vm8, 1.0, %v12759_v49  ;;  %vm5018_vm12 = vcmp.eq.s32.totalorder %v9506_v10, %v12834_v3  ;;  %v5060_v50 = vadd.s32 1, %v12837_v4  ;;  %v12843_v3 = vld [vmem:[#allocation158_spill] sm:$0xff]  ;;  %v12848_v11 = vld [vmem:[#allocation213_spill] sm:$0xff] }
 0xc23   : > { %2891 = vperm.xlu0 %7962, %v2583_v43   ;;  %2609 = vperm.xlu2 %7959, %v12439_v12   ;;  %v10039_v43 = vsel %vm4305_vm9, 1.0, %v12759_v49  ;;  %12832 = vst [vmem:[#allocation76_spill] sm:$0xff] %v10064_v1  ;;  %vm5402_vm9 = vcmp.eq.s32.totalorder %v9506_v10, %v5394_v41  ;;  %v12836_v12 = vld [vmem:[#allocation199_spill] sm:$0xff]  ;;  %8080 = vrcp.f32 %v1613_v26  ;;  %v5061_v35 = vadd.s32 1, %v12841_v28 }
 0xc24   : > { %2616 = vperm.xlu1 %7960, %v12440_v62   ;;  %12826 = vst [vmem:[#allocation70_spill] sm:$0xff] %v10039_v43  ;;  %v12838_v62 = vperm.slane %v9870_v56, 6  ;;  %v10108_v48 = vsel %vm5358_vm10, 1.0, %v12759_v49  ;;  %vm5067_vm13 = vcmp.eq.s32.totalorder %v9506_v10, %v5059_v53  ;;  %vm5066_vm15 = vcmp.eq.s32.totalorder %v9506_v10, %v5058_v21  ;;  %v12847_v1 = vld [vmem:[#allocation159_spill] sm:$0xff] }
 0xc25   : > { %v7614_v26 = vsel %vm5018_vm12, 1.0, %v12759_v49  ;;  %vm5020_vm4 = vcmp.eq.s32.totalorder %v9506_v10, %v12837_v4  ;;  %vm5019_vm5 = vcmp.eq.s32.totalorder %v9506_v10, %v12835_v60  ;;  %v10123_v41 = vadd.s32 24, %v8586_v15 }
 0xc26   : > { %vm5021_vm6 = vcmp.eq.s32.totalorder %v9506_v10, %v12841_v28  ;;  %v5062_v21 = vadd.s32 1, %v12843_v3  ;;  %vm5068_vm7 = vcmp.eq.s32.totalorder %v9506_v10, %v5060_v50  ;;  %v5064_v53 = vadd.s32 1, %v12844_v8  ;;  %v12846_v28 = vld [vmem:[#allocation161_spill] sm:$0xff] }
 0xc27   : > { %12842 = vst [vmem:[#allocation153_spill] sm:$0xff] %v10123_v41  ;;  %v7623_v17 = vsel %vm5067_vm13, 1.0, %v12759_v49  ;;  %v5042_v29 = vsub.f32 1.0, %v12845_v34  ;;  %v7622_v23 = vsel %vm5066_vm15, 1.0, %v12759_v49  ;;  %vm5069_vm8 = vcmp.eq.s32.totalorder %v9506_v10, %v5061_v35 }
 0xc28   : > { %v7615_v43 = vsel %vm5019_vm5, 1.0, %v12759_v49  ;;  %v5046_v31 = vsub.f32 1.0, %v12846_v28  ;;  %v5044_v50 = vsub.f32 1.0, %v12847_v1  ;;  %v7616_v33 = vsel %vm5020_vm4, 1.0, %v12759_v49 }
 0xc29   : > { %v8081_v60 = vpop.eup %8080  ;;  %v7617_v46 = vsel %vm5021_vm6, 1.0, %v12759_v49  ;;  %v7624_v35 = vsel %vm5068_vm7, 1.0, %v12759_v49  ;;  %vm5070_vm10 = vcmp.eq.s32.totalorder %v9506_v10, %v5062_v21  ;;  %v5091_v37 = vmul.f32 %v7623_v17, %v12833_v0  ;;  %v12852_v0 = vld [vmem:[#allocation166_spill] sm:$0xff] }
 0xc2a   : > { %v5051_v4 = vmul.f32 %v7615_v43, %v5043_v9  ;;  %v5050_v44 = vmul.f32 %v7614_v26, %v5042_v29  ;;  %v10155_v55 = vmul.f32 %v8081_v60, %v12849_v52  ;;  %v5052_v63 = vmul.f32 %v7616_v33, %v5044_v50  ;;  %v12853_v9 = vld [vmem:[#allocation172_spill] sm:$0xff] }
 0xc2b   : > { %2921 = vperm.xlu0 %7962, %v2618_v14   ;;  %2623 = vperm.xlu2 %7959, %v2618_v14   ;;  %v10105_v14 = vsel %vm5402_vm9, 1.0, %v12759_v49  ;;  %vm5022_vm9 = vcmp.eq.s32.totalorder %v9506_v10, %v12843_v3  ;;  %v7625_v3 = vsel %vm5069_vm8, 1.0, %v12759_v49  ;;  %v5045_v30 = vsub.f32 1.0, %v12850_v22 }
 0xc2c   : > { %2630 = vperm.xlu1 %7960, %v12838_v62   ;;  %v10115_v62 = vsel %vm5406_vm11, 1.0, %v12759_v49  ;;  %vm5072_vm11 = vcmp.eq.s32.totalorder %v9506_v10, %v5064_v53  ;;  %v7618_v16 = vsel %vm5022_vm9, 1.0, %v12759_v49  ;;  %vm5024_vm12 = vcmp.eq.s32.totalorder %v9506_v10, %v12844_v8  ;;  %v12851_v53 = vld [vmem:[#allocation163_spill] sm:$0xff] }
 0xc2d   : > { %v5054_v59 = vmul.f32 %v7618_v16, %v5046_v31  ;;  %v5090_v21 = vmul.f32 %v7622_v23, %v12845_v34  ;;  %v4783_v17 = vadd.s32 1, %v12851_v53  ;;  %v7628_v43 = vsel %vm5072_vm11, 1.0, %v12759_v49 }
 0xc2e   : > { %v5092_v52 = vmul.f32 %v7624_v35, %v12847_v1  ;;  %v5065_v31 = vadd.s32 1, %v12852_v0  ;;  %v10167_v33 = vadd.f32 %v5091_v37, %v5051_v4  ;;  %v7620_v16 = vsel %vm5024_vm12, 1.0, %v12759_v49  ;;  %v12854_v37 = vld [vmem:[#allocation168_spill] sm:$0xff] }
 0xc2f   : > { %v4785_v26 = vadd.s32 1, %v12853_v9  ;;  %v12442_v34 = vperm.slane %v10155_v55, 2  ;;  %v10172_v23 = vadd.f32 %v5090_v21, %v5050_v44  ;;  %v5053_v8 = vmul.f32 %v7617_v46, %v5045_v30  ;;  %v12860_v21 = vld [vmem:[#allocation174_spill] sm:$0xff] }
 0xc30   : > { %v10174_v60 = vadd.f32 %v5092_v52, %v5052_v63  ;;  %v5093_v1 = vmul.f32 %v7625_v3, %v12850_v22  ;;  %vm4743_vm13 = vcmp.eq.s32.totalorder %v9506_v10, %v12851_v53  ;;  %v5047_v35 = vsub.f32 1.0, %v12854_v37  ;;  %v12857_v22 = vld [vmem:[#allocation171_spill] sm:$0xff]  ;;  %v12859_v3 = vld [vmem:[#allocation169_spill] sm:$0xff]  ;;  %v12861_v53 = vld [vmem:[#allocation178_spill] sm:$0xff] }
 0xc31   : > { %vm4791_vm15 = vcmp.eq.s32.totalorder %v9506_v10, %v4783_v17  ;;  %v12855_v30 = vperm.slane %v9870_v56, 1  ;;  %v12856_v63 = vsub.f32 1.0, %v12836_v12  ;;  %vm5025_vm4 = vcmp.eq.s32.totalorder %v9506_v10, %v12852_v0 }
 0xc32   : > { %v4784_v44 = vadd.s32 1, %v12857_v22  ;;  %vm5073_vm5 = vcmp.eq.s32.totalorder %v9506_v10, %v5065_v31  ;;  %v12858_v46 = vperm.slane %v9870_v56, 2  ;;  %v4766_v4 = vsub.f32 1.0, %v12859_v3  ;;  %v12866_v31 = vld [vmem:[#allocation175_spill] sm:$0xff] }
 0xc33   : > { %7967 = vset.pattern.permute.xlu0 %v10123_v41  ;;  %7963 = vset.pattern.permute.xlu2 %v9964_v18  ;;  %vm4793_vm6 = vcmp.eq.s32.totalorder %v9506_v10, %v4785_v26  ;;  %v4786_v17 = vadd.s32 1, %v12861_v53  ;;  %v10204_v52 = vadd.f32 %v5093_v1, %v5053_v8  ;;  %vm4745_vm7 = vcmp.eq.s32.totalorder %v9506_v10, %v12853_v9  ;;  %v12864_v1 = vld [vmem:[#allocation177_spill] sm:$0xff] }
 0xc34   : > { %7964 = vset.pattern.permute.xlu1 %v9964_v18  ;;  %v7626_v18 = vsel %vm5070_vm10, 1.0, %v12759_v49  ;;  %v10212_v26 = vadd.s32 26, %v8586_v15  ;;  %vm4744_vm8 = vcmp.eq.s32.totalorder %v9506_v10, %v12857_v22  ;;  %v7608_v8 = vsel %vm4793_vm6, 1.0, %v12759_v49 }
 0xc35   : > { %v5094_v29 = vmul.f32 %v7626_v18, %v12846_v28  ;;  %v5096_v28 = vmul.f32 %v7628_v43, %v12836_v12  ;;  %v4767_v18 = vsub.f32 1.0, %v12860_v21  ;;  %v7598_v12 = vsel %vm4743_vm13, 1.0, %v12759_v49  ;;  %12863 = vst [vmem:[#allocation88_spill] sm:$0xff] %v10204_v52 }
 0xc36   : > { %v7606_v43 = vsel %vm4791_vm15, 1.0, %v12759_v49  ;;  %vm4792_vm9 = vcmp.eq.s32.totalorder %v9506_v10, %v4784_v44  ;;  %vm4794_vm10 = vcmp.eq.s32.totalorder %v9506_v10, %v4786_v17  ;;  %v4814_v0 = vmul.f32 %v10089_v40, %v12859_v3 }
 0xc37   : > { %v10176_v50 = vadd.f32 %v5094_v29, %v5054_v59  ;;  %v5056_v59 = vmul.f32 %v7620_v16, %v12856_v63  ;;  %v5055_v16 = vmul.f32 %v10068_v51, %v5047_v35  ;;  %v7621_v63 = vsel %vm5025_vm4, 1.0, %v12759_v49  ;;  %v12865_v35 = vld [vmem:[#allocation179_spill] sm:$0xff] }
 0xc38   : > { %v7629_v51 = vsel %vm5073_vm5, 1.0, %v12759_v49  ;;  %v4775_v9 = vmul.f32 %v7598_v12, %v4767_v18  ;;  %vm4746_vm11 = vcmp.eq.s32.totalorder %v9506_v10, %v12861_v53  ;;  %v7599_v40 = vsel %vm4744_vm8, 1.0, %v12759_v49  ;;  %v1629_v53 = vpop.xlane.xlu1 %1628 }
 0xc39   : > { %v10202_v29 = vadd.f32 %v5096_v28, %v5056_v59  ;;  %v7600_v28 = vsel %vm4745_vm7, 1.0, %v12759_v49  ;;  %v4768_v59 = vsub.f32 1.0, %v12865_v35  ;;  %v7607_v44 = vsel %vm4792_vm9, 1.0, %v12759_v49 }
 0xc3a   : > { %v7609_v3 = vsel %vm4794_vm10, 1.0, %v12759_v49  ;;  %v12868_v18 = vperm.slane %v9870_v56, 3  ;;  %v12870_v12 = vsub.f32 1.0, %v12839_v6  ;;  %vm5355_vm12 = vcmp.eq.s32.totalorder %v9506_v10, %v12866_v31 }
 0xc3b   : > { %3288 = vperm.xlu0 %7967, %v12442_v34   ;;  %2897 = vperm.xlu2 %7963, %v12855_v30   ;;  %12862 = vst [vmem:[#allocation77_spill] sm:$0xff] %v10202_v29  ;;  %v5095_v30 = vmul.f32 %v10077_v38, %v12854_v37  ;;  %v4774_v38 = vmul.f32 %v10072_v47, %v4766_v4  ;;  %v5049_v37 = vsub.f32 1.0, %v12864_v1  ;;  %v5395_v34 = vadd.s32 1, %v12866_v31  ;;  %v10244_v4 = vpop.permute.xlu2 %1890  ;;  %v12875_v31 = vld [vmem:[#allocation185_spill] sm:$0xff] }
 0xc3c   : > { %2903 = vperm.xlu1 %7964, %v12858_v46   ;;  %v4815_v46 = vmul.f32 %v7606_v43, %v12860_v21  ;;  %v4817_v47 = vmul.f32 %v7608_v8, %v12839_v6  ;;  %v12867_v21 = vperm.slane %v9870_v56, 4  ;;  %v4777_v43 = vmul.f32 %v7600_v28, %v12870_v12  ;;  %v12876_v12 = vld [vmem:[#allocation184_spill] sm:$0xff] }
 0xc3d   : > { %v10250_v17 = vadd.f32 %v5095_v30, %v5055_v16  ;;  %v10256_v22 = vadd.f32 %v4814_v0, %v4774_v38  ;;  %v5057_v52 = vmul.f32 %v7621_v63, %v5049_v37  ;;  %v4776_v45 = vmul.f32 %v7599_v40, %v4768_v59  ;;  %v12872_v30 = vld [vmem:[#allocation181_spill] sm:$0xff]  ;;  %v12873_v0 = vld [vmem:[#allocation182_spill] sm:$0xff] }
 0xc3e   : > { %v10258_v8 = vadd.f32 %v4815_v46, %v4775_v9  ;;  %vm5403_vm13 = vcmp.eq.s32.totalorder %v9506_v10, %v5395_v34  ;;  %v4818_v6 = vmul.f32 %v7609_v3, %v12840_v27  ;;  %v10268_v28 = vadd.f32 %v4817_v47, %v4777_v43 }
 0xc3f   : > { %12869 = vst [vmem:[#allocation79_spill] sm:$0xff] %v10250_v17  ;;  %v4787_v17 = vadd.s32 1, %v12872_v30  ;;  %v5097_v38 = vmul.f32 %v7629_v51, %v12864_v1  ;;  %v7635_v63 = vsel %vm5355_vm12, 1.0, %v12759_v49  ;;  %v4816_v9 = vmul.f32 %v7607_v44, %v12865_v35  ;;  %v12877_v35 = vld [vmem:[#allocation193_spill] sm:$0xff] }
 0xc40   : > { %v5396_v37 = vadd.s32 1, %v12873_v0  ;;  %v12874_v59 = vsub.f32 1.0, %v12840_v27  ;;  %v5378_v40 = vsub.f32 1.0, %v12875_v31  ;;  %v5379_v34 = vsub.f32 1.0, %v12876_v12 }
 0xc41   : > { %v12443_v3 = vperm.slane %v10155_v55, 0  ;;  %v7643_v47 = vsel %vm5403_vm13, 1.0, %v12759_v49  ;;  %v4824_v51 = vadd.f32 %v4816_v9, %v4776_v45  ;;  %v10281_v1 = vadd.f32 %v5097_v38, %v5057_v52 }
 0xc42   : > { %vm4747_vm4 = vcmp.eq.s32.totalorder %v9506_v10, %v12872_v30  ;;  %vm5356_vm5 = vcmp.eq.s32.totalorder %v9506_v10, %v12873_v0  ;;  %vm4795_vm6 = vcmp.eq.s32.totalorder %v9506_v10, %v4787_v17  ;;  %vm5404_vm7 = vcmp.eq.s32.totalorder %v9506_v10, %v5396_v37  ;;  %v12885_v37 = vld [vmem:[#allocation192_spill] sm:$0xff] }
 0xc43   : > { %7968 = vset.pattern.permute.xlu0 %v10212_v26  ;;  %2909 = vperm.xlu2 %7963, %v12868_v18   ;;  %v12871_v18 = vld [vmem:[#allocation187_spill] sm:$0xff]  ;;  %v5380_v44 = vsub.f32 1.0, %v12877_v35  ;;  %8082 = vrcp.f32 %v1629_v53  ;;  %v12878_v45 = vperm.slane %v9870_v56, 7  ;;  %v12879_v52 = vperm.slane %v9870_v56, 6  ;;  %v10312_v53 = vpop.permute.xlu2 %1904 }
 0xc44   : > { %2915 = vperm.xlu1 %7964, %v12867_v21   ;;  %v7601_v21 = vsel %vm4746_vm11, 1.0, %v12759_v49  ;;  %v4788_v16 = vadd.s32 1, %v12871_v18  ;;  %vm4748_vm8 = vcmp.eq.s32.totalorder %v9506_v10, %v12871_v18  ;;  %v5386_v43 = vmul.f32 %v10092_v42, %v5378_v40  ;;  %v12882_v40 = vld [vmem:[#allocation188_spill] sm:$0xff] }
 0xc45   : > { %v4778_v46 = vmul.f32 %v7601_v21, %v12874_v59  ;;  %v5387_v21 = vmul.f32 %v7635_v63, %v5379_v34  ;;  %v7602_v9 = vsel %vm4747_vm4, 1.0, %v12759_v49  ;;  %v7636_v18 = vsel %vm5356_vm5, 1.0, %v12759_v49  ;;  %v12881_v63 = vld [vmem:[#allocation195_spill] sm:$0xff] }
 0xc46   : > { %vm4796_vm15 = vcmp.eq.s32.totalorder %v9506_v10, %v4788_v16  ;;  %v5426_v0 = vmul.f32 %v10105_v14, %v12875_v31  ;;  %v7610_v56 = vsel %vm4795_vm6, 1.0, %v12759_v49  ;;  %v5427_v42 = vmul.f32 %v7643_v47, %v12876_v12 }
 0xc47   : > { %v10288_v27 = vadd.f32 %v4818_v6, %v4778_v46  ;;  %v7611_v30 = vsel %vm4796_vm15, 1.0, %v12759_v49  ;;  %v12880_v6 = vld [vmem:[#allocation190_spill] sm:$0xff]  ;;  %v7603_v16 = vsel %vm4748_vm8, 1.0, %v12759_v49  ;;  %v5382_v59 = vsub.f32 1.0, %v12881_v63 }
 0xc48   : > { %v4771_v38 = vsub.f32 1.0, %v12880_v6  ;;  %v10318_v46 = vadd.s32 30, %v8586_v15  ;;  %vm5357_vm9 = vcmp.eq.s32.totalorder %v9506_v10, %v12882_v40  ;;  %v7644_v14 = vsel %vm5404_vm7, 1.0, %v12759_v49 }
 0xc49   : > { %v5388_v17 = vmul.f32 %v7636_v18, %v5380_v44  ;;  %v4820_v34 = vmul.f32 %v7611_v30, %v12848_v11  ;;  %v10327_v12 = vadd.s32 1, %v12882_v40  ;;  %v5428_v15 = vmul.f32 %v7644_v14, %v12877_v35  ;;  %v12886_v44 = vld [vmem:[#allocation202_spill] sm:$0xff] }
 0xc4a   : > { %v4779_v47 = vmul.f32 %v7602_v9, %v4771_v38  ;;  %v12884_v36 = vsub.f32 1.0, %v12848_v11  ;;  %v5381_v2 = vsub.f32 1.0, %v12885_v37  ;;  %v6224_v18 = vadd.s32 1, %v12886_v44  ;;  %v12888_v35 = vld [vmem:[#allocation214_spill] sm:$0xff] }
 0xc4b   : > { %3577 = vperm.xlu0 %7968, %v12443_v3   ;;  %2927 = vperm.xlu2 %7963, %v12879_v52   ;;  %12883 = vst [vmem:[#allocation160_spill] sm:$0xff] %v10327_v12  ;;  %v10331_v52 = vadd.f32 %v5427_v42, %v5387_v21  ;;  %v8083_v3 = vpop.eup %8082  ;;  %v7637_v30 = vsel %vm5357_vm9, 1.0, %v12759_v49  ;;  %v4819_v40 = vmul.f32 %v7610_v56, %v12880_v6  ;;  %v6208_v11 = vsub.f32 1.0, %v12888_v35 }
 0xc4c   : > { %2933 = vperm.xlu1 %7964, %v12878_v45   ;;  %v10329_v45 = vadd.f32 %v5426_v0, %v5386_v43  ;;  %v4780_v29 = vmul.f32 %v7603_v16, %v12884_v36  ;;  %v5390_v38 = vmul.f32 %v10108_v48, %v5382_v59  ;;  %v12887_v43 = vld [vmem:[#allocation208_spill] sm:$0xff]  ;;  %vm6184_vm10 = vcmp.eq.s32.totalorder %v9506_v10, %v12886_v44  ;;  %v12889_v0 = vld [vmem:[#allocation198_spill] sm:$0xff] }
 0xc4d   : > { %v6225_v9 = vadd.s32 1, %v12887_v43  ;;  %v10349_v21 = vadd.f32 %v5428_v15, %v5388_v17  ;;  %v5430_v6 = vmul.f32 %v10115_v62, %v12881_v63  ;;  %v10354_v48 = vmul.f32 %v8083_v3, %v12889_v0  ;;  %v1884_v42 = vpop.permute.xlu0 %1883  ;;  %v10371_v3 = vpop.permute.xlu2 %1925  ;;  %v12892_v63 = vld [vmem:[#allocation233_spill] sm:$0xff] }
 0xc4e   : > { %v1877_v31 = vpop.permute.xlu1 %1876  ;;  %v10347_v36 = vadd.f32 %v4820_v34, %v4780_v29  ;;  %v2019_v56 = vmul.f32 %v9580_v20, %v10244_v4  ;;  %v10359_v16 = vadd.f32 %v4819_v40, %v4779_v47  ;;  %v10361_v59 = vmul.f32 %v7637_v30, %v5381_v2  ;;  %12891 = vst [vmem:[#allocation93_spill] sm:$0xff] %v10371_v3 }
 0xc4f   : > { %vm6185_vm11 = vcmp.eq.s32.totalorder %v9506_v10, %v12887_v43  ;;  %vm6232_vm12 = vcmp.eq.s32.totalorder %v9506_v10, %v6224_v18  ;;  %vm12462_vm13 = vcmask 123904   ;;  %v7686_v15 = vsel %vm6184_vm10, 1.0, %v12759_v49  ;;  %v12893_v18 = vld [vmem:[#allocation218_spill] sm:$0xff] }
 0xc50   : > { %12890 = vst [vmem:[#allocation91_spill] sm:$0xff] %v10361_v59  ;;  %vm6233_vm15 = vcmp.eq.s32.totalorder %v9506_v10, %v6225_v9  ;;  %v4832_v62 = vmul.f32 %v4824_v51, %v10244_v4  ;;  %v10369_v20 = vadd.f32 %v5430_v6, %v5390_v38  ;;  %v6216_v29 = vmul.f32 %v7686_v15, %v6208_v11  ;;  %v12894_v38 = vld [vmem:[#allocation212_spill] sm:$0xff] }
 0xc51   : > { %vm4838_vm4 = vcmask 91136   ;;  %v2017_v2 = vmul.f32 %v9591_v54, %v1877_v31  ;;  %v2018_v14 = vmul.f32 %v12892_v63, %v1884_v42  ;;  %v7687_v17 = vsel %vm6185_vm11, 1.0, %v12759_v49 }
 0xc52   : > { %v7694_v34 = vsel %vm6232_vm12, 1.0, %v12759_v49  ;;  %v2040_v47 = vsel %vm12462_vm13, %v2019_v56, 0.0  ;;  %v12445_v44 = vperm.slane %v10354_v48, 1  ;;  %v7695_v51 = vsel %vm6233_vm15, 1.0, %v12759_v49 }
 0xc53   : > { %7972 = vset.pattern.permute.xlu0 %v10318_v46  ;;  %7965 = vset.pattern.permute.xlu2 %v10123_v41  ;;  %v6256_v4 = vmul.f32 %v7694_v34, %v12888_v35  ;;  %v6209_v30 = vsub.f32 1.0, %v12893_v18  ;;  %v12446_v54 = vperm.slane %v10155_v55, 1  ;;  %v10386_v43 = vadd.s32 1, %v12894_v38 }
 0xc54   : > { %7966 = vset.pattern.permute.xlu1 %v10123_v41  ;;  %v4853_v9 = vsel %vm4838_vm4, %v4832_v62, 0.0  ;;  %v2021_v11 = vmul.f32 %v9587_v24, %v10312_v53  ;;  %v2024_v6 = vmul.f32 %v9589_v58, %v10371_v3  ;;  %v2041_v35 = vrot.slane %v2040_v47, 4 }
 0xc55   : > { %v2026_v0 = vsel %vm12462_vm13, %v2017_v2, 0.0  ;;  %v2033_v56 = vsel %vm12462_vm13, %v2018_v14, 0.0  ;;  %v10399_v15 = vadd.f32 %v6256_v4, %v6216_v29  ;;  %v10402_v62 = vmul.f32 %v7695_v51, %v12893_v18 }
 0xc56   : > { %v10382_v40 = vpop.permute.xlu1 %1897  ;;  %v4834_v24 = vmul.f32 %v10288_v27, %v10312_v53  ;;  %v4830_v58 = vmul.f32 %v10256_v22, %v1877_v31  ;;  %v12897_v2 = vperm.slane %v10155_v55, 0  ;;  %v10411_v14 = vmul.f32 %v7687_v17, %v6209_v30  ;;  %v10417_v22 = vpop.permute.xlu0 %1918 }
 0xc57   : > { %12895 = vst [vmem:[#allocation81_spill] sm:$0xff] %v10399_v15  ;;  %v2020_v63 = vmul.f32 %v9598_v19, %v10382_v40  ;;  %v4854_v34 = vrot.slane %v4853_v9, 4  ;;  %v4831_v29 = vmul.f32 %v10258_v8, %v1884_v42  ;;  %v2054_v51 = vsel %vm12462_vm13, %v2021_v11, 0.0 }
 0xc58   : > { %12896 = vst [vmem:[#allocation84_spill] sm:$0xff] %v10402_v62  ;;  %v2075_v18 = vsel %vm12462_vm13, %v2024_v6, 0.0  ;;  %v2027_v27 = vrot.slane %v2026_v0, 4  ;;  %v2034_v53 = vrot.slane %v2033_v56, 4  ;;  %v2042_v31 = vadd.f32 %v2041_v35, %v2040_v47 }
 0xc59   : > { %12898 = vst [vmem:[#allocation95_spill] sm:$0xff] %v10411_v14  ;;  %v4867_v30 = vsel %vm4838_vm4, %v4834_v24, 0.0  ;;  %v4839_v8 = vsel %vm4838_vm4, %v4830_v58, 0.0  ;;  %v2047_v42 = vsel %vm12462_vm13, %v2020_v63, 0.0  ;;  %v2055_v6 = vrot.slane %v2054_v51, 4 }
 0xc5a   : > { %v2023_v47 = vmul.f32 %v9608_v7, %v10417_v22  ;;  %v4855_v35 = vadd.f32 %v4854_v34, %v4853_v9  ;;  %v2028_v19 = vadd.f32 %v2027_v27, %v2026_v0  ;;  %v2043_v17 = vrot.slane %v2042_v31, 2  ;;  %v2222_v7 = vpop.permute.xlu2 %2221 }
 0xc5b   : > { %4266 = vperm.xlu0 %7972, %v12445_v44   ;;  %3274 = vperm.xlu2 %7965, %v12897_v2   ;;  %v2076_v44 = vrot.slane %v2075_v18, 4  ;;  %v2035_v2 = vadd.f32 %v2034_v53, %v2033_v56  ;;  %v4840_v58 = vrot.slane %v4839_v8, 4  ;;  %v2048_v4 = vrot.slane %v2047_v42, 4 }
 0xc5c   : > { %3281 = vperm.xlu1 %7966, %v12446_v54   ;;  %v4846_v54 = vsel %vm4838_vm4, %v4831_v29, 0.0  ;;  %v12899_v11 = vperm.slane %v10155_v55, 4  ;;  %v4868_v3 = vrot.slane %v4867_v30, 4  ;;  %v12900_v9 = vperm.slane %v10155_v55, 3 }
 0xc5d   : > { %v4847_v41 = vrot.slane %v4846_v54, 4  ;;  %v2056_v34 = vadd.f32 %v2055_v6, %v2054_v51  ;;  %v2077_v27 = vadd.f32 %v2076_v44, %v2075_v18  ;;  %v2068_v53 = vsel %vm12462_vm13, %v2023_v47, 0.0 }
 0xc5e   : > { %v10431_v63 = vpop.permute.xlu1 %1911  ;;  %v4856_v59 = vrot.slane %v4855_v35, 2  ;;  %v2036_v37 = vrot.slane %v2035_v2, 2  ;;  %v2044_v49 = vadd.f32 %v2043_v17, %v2042_v31  ;;  %v4841_v62 = vadd.f32 %v4840_v58, %v4839_v8 }
 0xc5f   : > { %v2022_v29 = vmul.f32 %v9593_v5, %v10431_v63  ;;  %v2049_v14 = vadd.f32 %v2048_v4, %v2047_v42  ;;  %v4869_v0 = vadd.f32 %v4868_v3, %v4867_v30  ;;  %v4848_v38 = vadd.f32 %v4847_v41, %v4846_v54 }
 0xc60   : > { %v2069_v56 = vrot.slane %v2068_v53, 4  ;;  %v2057_v51 = vrot.slane %v2056_v34, 2  ;;  %v2078_v18 = vrot.slane %v2077_v27, 2  ;;  %v4857_v24 = vadd.f32 %v4856_v59, %v4855_v35 }
 0xc61   : > { %v2061_v44 = vsel %vm12462_vm13, %v2022_v29, 0.0  ;;  %v2037_v15 = vadd.f32 %v2036_v37, %v2035_v2  ;;  %vm2349_vm5 = vcmask 58368   ;;  %v12901_v5 = vperm.slane %v10155_v55, 5 }
 0xc62   : > { %v2062_v6 = vrot.slane %v2061_v44, 4  ;;  %v4842_v4 = vrot.slane %v4841_v62, 2  ;;  %vm2414_vm6 = vcmask 1041409   ;;  %v2343_v3 = vmul.f32 %v9664_v61, %v2222_v7  ;;  %v2234_v29 = vpop.permute.xlu2 %2233 }
 0xc63   : > { %7973 = vset.pattern.permute.xlu0 %v10212_v26  ;;  %3295 = vperm.xlu2 %7965, %v12900_v9   ;;  %v2050_v41 = vrot.slane %v2049_v14, 2  ;;  %v2045_v31 = vrot.slane %v2044_v49, 1  ;;  %v4870_v17 = vrot.slane %v4869_v0, 2  ;;  %v4849_v30 = vrot.slane %v4848_v38, 2 }
 0xc64   : > { %3302 = vperm.xlu1 %7966, %v12899_v11   ;;  %v2029_v11 = vrot.slane %v2028_v19, 2  ;;  %v2063_v54 = vadd.f32 %v2062_v6, %v2061_v44  ;;  %v2070_v8 = vadd.f32 %v2069_v56, %v2068_v53  ;;  %v2058_v59 = vadd.f32 %v2057_v51, %v2056_v34 }
 0xc65   : > { %v2079_v37 = vadd.f32 %v2078_v18, %v2077_v27  ;;  %vm2416_vm7 = vcmask 1042434   ;;  %v2038_v61 = vrot.slane %v2037_v15, 1  ;;  %vm5114_vm8 = vcmask 41984  }
 0xc66   : > { %v2030_v12 = vadd.f32 %v2029_v11, %v2028_v19  ;;  %v5108_v19 = vmul.f32 %v10174_v60, %v2222_v7  ;;  %v2064_v2 = vrot.slane %v2063_v54, 2  ;;  %v4833_v58 = vmul.f32 %v10268_v28, %v10382_v40 }
 0xc67   : > { %v4858_v11 = vrot.slane %v4857_v24, 1  ;;  %v4843_v44 = vadd.f32 %v4842_v4, %v4841_v62  ;;  %v2364_v56 = vsel %vm2349_vm5, %v2343_v3, 0.0  ;;  %v2051_v53 = vadd.f32 %v2050_v41, %v2049_v14 }
 0xc68   : > { %v2031_v35 = vrot.slane %v2030_v12, 1  ;;  %v2046_v34 = vadd.f32 %v2045_v31, %v2044_v49  ;;  %v10458_v27 = vadd.f32 %v4870_v17, %v4869_v0  ;;  %v4850_v60 = vadd.f32 %v4849_v30, %v4848_v38  ;;  %v10466_v38 = vpop.permute.xlu0 %2215 }
 0xc69   : > { %v2071_v7 = vrot.slane %v2070_v8, 2  ;;  %v2059_v51 = vrot.slane %v2058_v59, 1  ;;  %v2080_v18 = vrot.slane %v2079_v37, 1  ;;  %v5129_v6 = vsel %vm5114_vm8, %v5108_v19, 0.0 }
 0xc6a   : > { %v2032_v47 = vadd.f32 %v2031_v35, %v2030_v12  ;;  %v2039_v9 = vadd.f32 %v2038_v61, %v2037_v15  ;;  %v2365_v10 = vrot.slane %v2364_v56, 4  ;;  %v4860_v28 = vsel %vm4838_vm4, %v4833_v58, 0.0 }
 0xc6b   : > { %3607 = vperm.xlu0 %7973, %v12901_v5   ;;  %7969 = vset.pattern.permute.xlu2 %v10212_v26  ;;  %v2065_v5 = vadd.f32 %v2064_v2, %v2063_v54  ;;  %v10463_v40 = vadd.f32 %v4858_v11, %v4857_v24  ;;  %v4844_v62 = vrot.slane %v4843_v44, 1  ;;  %v2052_v49 = vrot.slane %v2051_v53, 1  ;;  %v2252_v11 = vpop.permute.xlu2 %2251 }
 0xc6c   : > { %7970 = vset.pattern.permute.xlu1 %v10212_v26  ;;  %v2345_v14 = vmul.f32 %v9693_v39, %v2234_v29  ;;  %v12902_v0 = vperm.slane %v10155_v55, 3  ;;  %v4851_v4 = vrot.slane %v4850_v60, 1  ;;  %v5130_v3 = vrot.slane %v5129_v6, 4 }
 0xc6d   : > { %v2072_v12 = vadd.f32 %v2071_v7, %v2070_v8  ;;  %v5110_v15 = vmul.f32 %v10176_v50, %v2234_v29  ;;  %v12903_v41 = vperm.slane %v10155_v55, 1  ;;  %v2060_v54 = vadd.f32 %v2059_v51, %v2058_v59 }
 0xc6e   : > { %v10453_v42 = vpop.permute.xlu1 %2209  ;;  %v4861_v31 = vrot.slane %v4860_v28, 4  ;;  %v2066_v17 = vrot.slane %v2065_v5, 1  ;;  %v2458_v39 = vsel %vm2414_vm6, %v2039_v9, %v2032_v47  ;;  %v2366_v30 = vadd.f32 %v2365_v10, %v2364_v56 }
 0xc6f   : > { %v2081_v19 = vadd.f32 %v2080_v18, %v2079_v37  ;;  %vm2418_vm9 = vcmask 1043459   ;;  %v4845_v35 = vadd.f32 %v4844_v62, %v4843_v44  ;;  %v2053_v61 = vadd.f32 %v2052_v49, %v2051_v53  ;;  %v12904_v44 = vld [vmem:[#allocation42_spill] sm:$0xff] }
 0xc70   : > { %v2378_v8 = vsel %vm2349_vm5, %v2345_v14, 0.0  ;;  %vm2420_vm10 = vcmask 1044484   ;;  %v4852_v50 = vadd.f32 %v4851_v4, %v4850_v60  ;;  %v5131_v58 = vadd.f32 %v5130_v3, %v5129_v6  ;;  %v12908_v14 = vld [vmem:[#allocation118_spill] sm:$0xff] }
 0xc71   : > { %v2073_v29 = vrot.slane %v2072_v12, 1  ;;  %v5143_v59 = vsel %vm5114_vm8, %v5110_v15, 0.0  ;;  %v2459_v7 = vsel %vm2416_vm7, %v2046_v34, %v2458_v39  ;;  %v4862_v51 = vadd.f32 %v4861_v31, %v4860_v28  ;;  %v12909_v15 = vld [vmem:[#allocation38_spill] sm:$0xff] }
 0xc72   : > { %v4836_v10 = vmul.f32 %v10347_v36, %v10417_v22  ;;  %v2067_v9 = vadd.f32 %v2066_v17, %v2065_v5  ;;  %v2367_v47 = vrot.slane %v2366_v30, 2  ;;  %v2379_v37 = vrot.slane %v2378_v8, 4  ;;  %v12906_v22 = vld [vmem:[#allocation37_spill] sm:$0xff] }
 0xc73   : > { %7979 = vset.pattern.permute.xlu0 %v10318_v46  ;;  %3583 = vperm.xlu2 %7969, %v12903_v41   ;;  %v2341_v56 = vmul.f32 %v12904_v44, %v10453_v42  ;;  %vm2422_vm11 = vcmask 1045509   ;;  %v12905_v53 = vperm.slane %v10354_v48, 6  ;;  %v5144_v60 = vrot.slane %v5143_v59, 4 }
 0xc74   : > { %3595 = vperm.xlu1 %7970, %v12902_v0   ;;  %v4835_v18 = vmul.f32 %v10359_v16, %v10431_v63  ;;  %vm2424_vm12 = vcmask 1046534   ;;  %v2460_v34 = vsel %vm2418_vm9, %v2053_v61, %v2459_v7  ;;  %v2074_v36 = vadd.f32 %v2073_v29, %v2072_v12  ;;  %v10496_v16 = vpop.permute.xlu0 %2245 }
 0xc75   : > { %v2342_v6 = vmul.f32 %v12906_v22, %v10466_v38  ;;  %vm2426_vm15 = vcmask 1047559   ;;  %v2461_v5 = vsel %vm2420_vm10, %v2060_v54, %v2460_v34  ;;  %v12907_v28 = vperm.slane %v10155_v55, 2  ;;  %v10511_v44 = vpop.permute.xlu2 %2588  ;;  %v12914_v22 = vld [vmem:[#allocation109_spill] sm:$0xff] }
 0xc76   : > { %v10475_v2 = vpop.permute.xlu1 %2227  ;;  %v5132_v62 = vrot.slane %v5131_v58, 2  ;;  %v4863_v49 = vrot.slane %v4862_v51, 2  ;;  %v2348_v0 = vmul.f32 %v12908_v14, %v2252_v11  ;;  %v2462_v63 = vsel %vm2422_vm11, %v2067_v9, %v2461_v5 }
 0xc77   : > { %v4881_v4 = vsel %vm4838_vm4, %v4836_v10, 0.0  ;;  %v2350_v3 = vsel %vm2349_vm5, %v2341_v56, 0.0  ;;  %v2463_v12 = vsel %vm2424_vm12, %v2074_v36, %v2462_v63  ;;  %v2344_v41 = vmul.f32 %v12909_v15, %v10475_v2  ;;  %v12910_v10 = vld [vmem:[#allocation40_spill] sm:$0xff] }
 0xc78   : > { %v5226_v54 = vsel %vm2414_vm6, %v4852_v50, %v4845_v35  ;;  %v2368_v31 = vadd.f32 %v2367_v47, %v2366_v30  ;;  %v4874_v17 = vsel %vm4838_vm4, %v4835_v18, 0.0  ;;  %v2464_v39 = vsel %vm2426_vm15, %v2081_v19, %v2463_v12  ;;  %v12913_v36 = vld [vmem:[#allocation28_spill] sm:$0xff] }
 0xc79   : > { %v2380_v61 = vadd.f32 %v2379_v37, %v2378_v8  ;;  %v5145_v29 = vadd.f32 %v5144_v60, %v5143_v59  ;;  %v2357_v7 = vsel %vm2349_vm5, %v2342_v6, 0.0  ;;  %v2347_v9 = vmul.f32 %v12910_v10, %v10496_v16  ;;  %7492 = vmatmul.msk.f32.vlgmr.msra.gmra.mxu0 %vm12461_vm2, %v2464_v39  ;;  %v12912_v60 = vld [vmem:[#allocation34_spill] sm:$0xff] }
 0xc7a   : > { %v4882_v35 = vrot.slane %v4881_v4, 4  ;;  %v2399_v30 = vsel %vm2349_vm5, %v2348_v0, 0.0  ;;  %v2351_v50 = vrot.slane %v2350_v3, 4  ;;  %v12911_v19 = vunpack.i.h.bf16 %v8562_v32 }
 0xc7b   : > { %4296 = vperm.xlu0 %7979, %v12905_v53   ;;  %3589 = vperm.xlu2 %7969, %v12907_v28   ;;  %v5133_v53 = vadd.f32 %v5132_v62, %v5131_v58  ;;  %v4864_v8 = vadd.f32 %v4863_v49, %v4862_v51  ;;  %v4875_v59 = vrot.slane %v4874_v17, 4  ;;  %v5113_v47 = vmul.f32 %v10281_v1, %v2252_v11 }
 0xc7c   : > { %7971 = vset.pattern.permute.xlu1 %v10318_v46  ;;  %4533 = vmatpush.msra.mxu0 %v12911_v19  ;;  %v2371_v37 = vsel %vm2349_vm5, %v2344_v41, 0.0  ;;  %v10523_v18 = vsel %vm2416_vm7, %v10463_v40, %v5226_v54  ;;  %v2369_v58 = vrot.slane %v2368_v31, 1  ;;  %v2358_v34 = vrot.slane %v2357_v7, 4 }
 0xc7d   : > { %v12915_v51 = vperm.slane %v10354_v48, 0  ;;  %v2381_v5 = vrot.slane %v2380_v61, 2  ;;  %v5146_v1 = vrot.slane %v5145_v29, 2  ;;  %v2400_v11 = vrot.slane %v2399_v30, 4 }
 0xc7e   : > { %v10513_v56 = vpop.permute.xlu1 %2239  ;;  %4534 = vmatpush.msra.mxu0 %v12913_v36  ;;  %v2392_v28 = vsel %vm2349_vm5, %v2347_v9, 0.0  ;;  %v12916_v62 = vperm.slane %v10155_v55, 4  ;;  %v5134_v40 = vrot.slane %v5133_v53, 1  ;;  %v4883_v49 = vadd.f32 %v4882_v35, %v4881_v4 }
 0xc7f   : > { %v2346_v6 = vmul.f32 %v12914_v22, %v10513_v56  ;;  %v2352_v14 = vadd.f32 %v2351_v50, %v2350_v3  ;;  %v2372_v0 = vrot.slane %v2371_v37, 4  ;;  %v4865_v63 = vrot.slane %v4864_v8, 1 }
 0xc80   : > { %v4876_v12 = vadd.f32 %v4875_v59, %v4874_v17  ;;  %v5164_v15 = vsel %vm5114_vm8, %v5113_v47, 0.0  ;;  %v2359_v54 = vadd.f32 %v2358_v34, %v2357_v7  ;;  %v5107_v39 = vmul.f32 %v10167_v33, %v10466_v38  ;;  %v10545_v33 = vpop.permute.xlu2 %2609  ;;  %v2603_v38 = vpop.permute.xlu0 %2602 }
 0xc81   : > { %v2385_v41 = vsel %vm2349_vm5, %v2346_v6, 0.0  ;;  %v2393_v10 = vrot.slane %v2392_v28, 4  ;;  %v5442_v9 = vmul.f32 %v10329_v45, %v10511_v44  ;;  %v2382_v19 = vadd.f32 %v2381_v5, %v2380_v61  ;;  %v12917_v6 = vld [vmem:[#allocation89_spill] sm:$0xff] }
 0xc82   : > { %v5147_v36 = vadd.f32 %v5146_v1, %v5145_v29  ;;  %v2401_v22 = vadd.f32 %v2400_v11, %v2399_v30  ;;  %v2386_v4 = vrot.slane %v2385_v41, 4  ;;  %v10539_v3 = vadd.f32 %v2369_v58, %v2368_v31 }
 0xc83   : > { %7992 = vset.pattern.permute.xlu0 %v12912_v60  ;;  %3601 = vperm.xlu2 %7969, %v12916_v62   ;;  %v5165_v35 = vrot.slane %v5164_v15, 4  ;;  %v2353_v17 = vrot.slane %v2352_v14, 2  ;;  %v2373_v50 = vadd.f32 %v2372_v0, %v2371_v37  ;;  %v10541_v59 = vadd.f32 %v5134_v40, %v5133_v53 }
 0xc84   : > { %4260 = vperm.xlu1 %7971, %v12915_v51   ;;  %v10543_v47 = vadd.f32 %v4865_v63, %v4864_v8  ;;  %v4884_v7 = vrot.slane %v4883_v49, 2  ;;  %v4877_v34 = vrot.slane %v4876_v12, 2  ;;  %v2360_v45 = vrot.slane %v2359_v54, 2 }
 0xc85   : > { %v5122_v61 = vsel %vm5114_vm8, %v5107_v39, 0.0  ;;  %v2394_v29 = vadd.f32 %v2393_v10, %v2392_v28  ;;  %v5450_v31 = vsel %vm4838_vm4, %v5442_v9, 0.0  ;;  %v12918_v30 = vperm.slane %v10354_v48, 2 }
 0xc86   : > { %v2383_v53 = vrot.slane %v2382_v19, 1  ;;  %v5148_v37 = vrot.slane %v5147_v36, 1  ;;  %v2402_v8 = vrot.slane %v2401_v22, 2  ;;  %v2387_v58 = vadd.f32 %v2386_v4, %v2385_v41 }
 0xc87   : > { %v10553_v51 = vadd.f32 %v5165_v35, %v5164_v15  ;;  %v2354_v5 = vadd.f32 %v2353_v17, %v2352_v14  ;;  %v2374_v1 = vrot.slane %v2373_v50, 2  ;;  %v5444_v11 = vmul.f32 %v10349_v21, %v2603_v38 }
 0xc88   : > { %v10556_v40 = vadd.f32 %v4877_v34, %v4876_v12  ;;  %v5123_v28 = vrot.slane %v5122_v61, 4  ;;  %v5106_v0 = vmul.f32 %v10172_v23, %v10453_v42  ;;  %v5451_v63 = vrot.slane %v5450_v31, 4  ;;  %v12922_v42 = vld [vmem:[#allocation45_spill] sm:$0xff] }
 0xc89   : > { %v2361_v39 = vadd.f32 %v2360_v45, %v2359_v54  ;;  %v2395_v10 = vrot.slane %v2394_v29, 2  ;;  %v2727_v41 = vmul.f32 %v9778_v13, %v10511_v44  ;;  %v5464_v15 = vsel %vm4838_vm4, %v5444_v11, 0.0  ;;  %v10579_v45 = vpop.permute.xlu2 %2623 }
 0xc8a   : > { %v10563_v9 = vadd.f32 %v4884_v7, %v4883_v49  ;;  %v10565_v14 = vadd.f32 %v2383_v53, %v2382_v19  ;;  %v2403_v21 = vadd.f32 %v2402_v8, %v2401_v22  ;;  %v2388_v4 = vrot.slane %v2387_v58, 2 }
 0xc8b   : > { %6176 = vperm.xlu0 %7992, %v12917_v6   ;;  %7974 = vset.pattern.permute.xlu2 %v10318_v46  ;;  %v10567_v12 = vadd.f32 %v5148_v37, %v5147_v36  ;;  %v2355_v35 = vrot.slane %v2354_v5, 1  ;;  %v2375_v17 = vadd.f32 %v2374_v1, %v2373_v50  ;;  %v5465_v34 = vrot.slane %v5464_v15, 4 }
 0xc8c   : > { %4272 = vperm.xlu1 %7971, %v12918_v30   ;;  %v10571_v54 = vadd.f32 %v5123_v28, %v5122_v61  ;;  %v5452_v13 = vadd.f32 %v5451_v63, %v5450_v31  ;;  %v2362_v44 = vrot.slane %v2361_v39, 1  ;;  %v10574_v49 = vsel %vm5114_vm8, %v5106_v0, 0.0 }
 0xc8d   : > { %v2396_v19 = vadd.f32 %v2395_v10, %v2394_v29  ;;  %v2735_v22 = vsel %vm12462_vm13, %v2727_v41, 0.0  ;;  %v2404_v36 = vrot.slane %v2403_v21, 1  ;;  %v2389_v7 = vadd.f32 %v2388_v4, %v2387_v58 }
 0xc8e   : > { %v2596_v62 = vpop.permute.xlu1 %2595  ;;  %v2729_v50 = vmul.f32 %v9780_v25, %v2603_v38  ;;  %v12919_v61 = vperm.slane %v10354_v48, 3  ;;  %v2356_v31 = vadd.f32 %v2355_v35, %v2354_v5  ;;  %v2376_v53 = vrot.slane %v2375_v17, 1 }
 0xc8f   : > { %v2728_v30 = vmul.f32 %v9788_v57, %v2596_v62  ;;  %v5466_v37 = vadd.f32 %v5465_v34, %v5464_v15  ;;  %v5443_v29 = vmul.f32 %v10331_v52, %v2596_v62  ;;  %v5125_v8 = vrot.slane %v10571_v54, 2  ;;  %v12920_v57 = vld [vmem:[#allocation44_spill] sm:$0xff]  ;;  %v12921_v15 = vld [vmem:[#allocation77_spill] sm:$0xff] }
 0xc90   : > { %v2736_v1 = vrot.slane %v2735_v22, 4  ;;  %v5453_v11 = vrot.slane %v5452_v13, 2  ;;  %v2363_v28 = vadd.f32 %v2362_v44, %v2361_v39  ;;  %v5116_v25 = vrot.slane %v10574_v49, 4 }
 0xc91   : > { %v2742_v58 = vsel %vm12462_vm13, %v2728_v30, 0.0  ;;  %v2397_v38 = vrot.slane %v2396_v19, 1  ;;  %v2730_v0 = vmul.f32 %v12920_v57, %v10545_v33  ;;  %v2390_v10 = vrot.slane %v2389_v7, 1 }
 0xc92   : > { %v2749_v5 = vsel %vm12462_vm13, %v2729_v50, 0.0  ;;  %v2743_v41 = vrot.slane %v2742_v58, 4  ;;  %v5457_v52 = vsel %vm4838_vm4, %v5443_v29, 0.0  ;;  %v2415_v62 = vsel %vm2414_vm6, %v2363_v28, %v2356_v31 }
 0xc93   : > { %4278 = vperm.xlu2 %7974, %v12919_v61   ;;  %v5112_v4 = vmul.f32 %v12921_v15, %v10496_v16  ;;  %v2377_v35 = vadd.f32 %v2376_v53, %v2375_v17  ;;  %v5467_v39 = vrot.slane %v5466_v37, 2  ;;  %v2405_v34 = vadd.f32 %v2404_v36, %v2403_v21  ;;  %v10595_v61 = vpop.permute.xlu0 %2637 }
 0xc94   : > { %7975 = vset.pattern.permute.xlu1 %v10212_v26  ;;  %v2737_v44 = vadd.f32 %v2736_v1, %v2735_v22  ;;  %v5454_v30 = vadd.f32 %v5453_v11, %v5452_v13  ;;  %v5458_v57 = vrot.slane %v5457_v52, 4  ;;  %v2398_v24 = vadd.f32 %v2397_v38, %v2396_v19  ;;  %v12925_v22 = vld [vmem:[#allocation39_spill] sm:$0xff] }
 0xc95   : > { %v2756_v23 = vsel %vm12462_vm13, %v2730_v0, 0.0  ;;  %v2750_v50 = vrot.slane %v2749_v5, 4  ;;  %v2732_v29 = vmul.f32 %v12922_v42, %v10579_v45  ;;  %v12923_v31 = vperm.slane %v10155_v55, 6  ;;  %v10604_v13 = vpop.permute.xlu2 %2897  ;;  %v12926_v42 = vld [vmem:[#allocation31_spill] sm:$0xff] }
 0xc96   : > { %v2617_v63 = vpop.permute.xlu1 %2616  ;;  %v2391_v28 = vadd.f32 %v2390_v10, %v2389_v7  ;;  %v2744_v16 = vadd.f32 %v2743_v41, %v2742_v58  ;;  %v5459_v17 = vadd.f32 %v5458_v57, %v5457_v52  ;;  %v2417_v21 = vsel %vm2416_vm7, %v10539_v3, %v2415_v62  ;;  %12924 = vst [vmem:[#allocation85_spill] sm:$0xff] %v10604_v13 }
 0xc97   : > { %v5468_v19 = vadd.f32 %v5467_v39, %v5466_v37  ;;  %v2734_v36 = vmul.f32 %v12925_v22, %v10595_v61  ;;  %v2419_v53 = vsel %vm2418_vm9, %v2377_v35, %v2417_v21  ;;  %v10611_v1 = vadd.s32 28, %v12926_v42 }
 0xc98   : > { %v2738_v11 = vrot.slane %v2737_v44, 2  ;;  %v5455_v7 = vrot.slane %v5454_v30, 1  ;;  %v2757_v58 = vrot.slane %v2756_v23, 4  ;;  %v5460_v38 = vrot.slane %v5459_v17, 2 }
 0xc99   : > { %v2770_v0 = vsel %vm12462_vm13, %v2732_v29, 0.0  ;;  %v2421_v3 = vsel %vm2420_vm10, %v10565_v14, %v2419_v53  ;;  %7993 = vset.pattern.permute.xlu0 %v10611_v1  ;;  %v10619_v10 = vmul.f32 %v10369_v20, %v2617_v63  ;;  %v2751_v41 = vadd.f32 %v2750_v50, %v2749_v5 }
 0xc9a   : > { %v2745_v52 = vrot.slane %v2744_v16, 2  ;;  %v5461_v62 = vadd.f32 %v5460_v38, %v5459_v17  ;;  %v2423_v15 = vsel %vm2422_vm11, %v2391_v28, %v2421_v3  ;;  %v5469_v35 = vrot.slane %v5468_v19, 1 }
 0xc9b   : > { %7977 = vset.pattern.permute.xlu2 %v10212_v26  ;;  %v12927_v26 = vld [vmem:[#allocation114_spill] sm:$0xff]  ;;  %v2784_v39 = vsel %vm12462_vm13, %v2734_v36, 0.0  ;;  %v2425_v57 = vsel %vm2424_vm12, %v2398_v24, %v2423_v15  ;;  %v2771_v21 = vrot.slane %v2770_v0, 4  ;;  %v10631_v5 = vpop.permute.xlu0 %2891  ;;  %v10634_v50 = vsel %vm5114_vm8, %v5112_v4, 0.0 }
 0xc9c   : > { %3613 = vperm.xlu1 %7975, %v12923_v31   ;;  %v2731_v37 = vmul.f32 %v12927_v26, %v2617_v63  ;;  %v10628_v31 = vadd.f32 %v5125_v8, %v10571_v54  ;;  %v5462_v20 = vrot.slane %v5461_v62, 1  ;;  %v2427_v63 = vsel %vm2426_vm15, %v2405_v34, %v2425_v57  ;;  %v12929_v34 = vld [vmem:[#allocation54_spill] sm:$0xff]  ;;  %v12932_v26 = vld [vmem:[#allocation55_spill] sm:$0xff] }
 0xc9d   : > { %v5456_v28 = vadd.f32 %v5455_v7, %v5454_v30  ;;  %v2758_v17 = vadd.f32 %v2757_v58, %v2756_v23  ;;  %7491 = vmatmul.msk.f32.vlgmr.msrb.gmra.mxu2 %vm12464_vm1, %v2427_v63  ;;  %v2785_v22 = vrot.slane %v2784_v39, 4  ;;  %v2746_v36 = vadd.f32 %v2745_v52, %v2744_v16  ;;  %v12931_v58 = vld [vmem:[#allocation47_spill] sm:$0xff] }
 0xc9e   : > { %v2763_v29 = vsel %vm12462_vm13, %v2731_v37, 0.0  ;;  %v10625_v14 = vpop.permute.xlu1 %2630  ;;  %v5463_v54 = vadd.f32 %v5462_v20, %v5461_v62  ;;  %v12928_v8 = vunpack.i.l.bf16 %v8562_v32  ;;  %v2739_v42 = vadd.f32 %v2738_v11, %v2737_v44  ;;  %v10649_v37 = vpop.permute.xlu2 %2909 }
 0xc9f   : > { %v2764_v24 = vrot.slane %v2763_v29, 4  ;;  %v2733_v53 = vmul.f32 %v12929_v34, %v10625_v14  ;;  %v2752_v38 = vrot.slane %v2751_v41, 2  ;;  %v5470_v4 = vadd.f32 %v5469_v35, %v5468_v19  ;;  %12933 = vst [vmem:[#allocation98_spill] sm:$0xff] %v10649_v37  ;;  %v12934_v19 = vld [vmem:[#allocation88_spill] sm:$0xff] }
 0xca0   : > { %4491 = vmatpush.msrb.mxu2 %v12928_v8  ;;  %v12930_v23 = vperm.slane %v10155_v55, 7  ;;  %v2772_v30 = vadd.f32 %v2771_v21, %v2770_v0  ;;  %v5803_v7 = vsel %vm2414_vm6, %v5463_v54, %v5456_v28  ;;  %v3024_v16 = vmul.f32 %v12931_v58, %v10604_v13  ;;  %v12936_v8 = vld [vmem:[#allocation79_spill] sm:$0xff] }
 0xca1   : > { %v2765_v3 = vadd.f32 %v2764_v24, %v2763_v29  ;;  %v3023_v32 = vmul.f32 %v12932_v26, %v10631_v5  ;;  %v10654_v44 = vadd.f32 %v5116_v25, %v10574_v49  ;;  %v5109_v11 = vmul.f32 %v12934_v19, %v10475_v2 }
 0xca2   : > { %v10659_v0 = vsel %vm2416_vm7, %v5470_v4, %v5803_v7  ;;  %v12935_v62 = vperm.slane %v10354_v48, 2  ;;  %v2759_v15 = vrot.slane %v2758_v17, 2  ;;  %v2786_v35 = vadd.f32 %v2785_v22, %v2784_v39 }
 0xca3   : > { %3619 = vperm.xlu2 %7977, %v12930_v23   ;;  %v2766_v52 = vrot.slane %v2765_v3, 2  ;;  %v2747_v57 = vrot.slane %v2746_v36, 1  ;;  %v2777_v29 = vsel %vm12462_vm13, %v2733_v53, 0.0  ;;  %v5158_v49 = vrot.slane %v10634_v50, 4  ;;  %v10675_v58 = vpop.permute.xlu0 %2921 }
 0xca4   : > { %7976 = vset.pattern.permute.xlu1 %v10318_v46  ;;  %3971 = vperm.xlu0 %7993, %v12935_v62   ;;  %v2753_v25 = vadd.f32 %v2752_v38, %v2751_v41  ;;  %v2778_v20 = vrot.slane %v2777_v29, 4  ;;  %v2740_v63 = vrot.slane %v2739_v42, 1  ;;  %v2773_v2 = vrot.slane %v2772_v30, 2  ;;  %v12938_v38 = vld [vmem:[#allocation49_spill] sm:$0xff]  ;;  %12939 = vst [vmem:[#allocation96_spill] sm:$0xff] %v10675_v58 }
 0xca5   : > { %v3038_v28 = vsel %vm2349_vm5, %v3024_v16, 0.0  ;;  %v3031_v24 = vsel %vm2349_vm5, %v3023_v32, 0.0  ;;  %v5136_v54 = vsel %vm5114_vm8, %v5109_v11, 0.0  ;;  %v5111_v39 = vmul.f32 %v12936_v8, %v10513_v56 }
 0xca6   : > { %v2767_v22 = vadd.f32 %v2766_v52, %v2765_v3  ;;  %v2779_v34 = vadd.f32 %v2778_v20, %v2777_v29  ;;  %v12937_v53 = vperm.slane %v10354_v48, 4  ;;  %v2760_v4 = vadd.f32 %v2759_v15, %v2758_v17 }
 0xca7   : > { %v2787_v23 = vrot.slane %v2786_v35, 2  ;;  %v2748_v41 = vadd.f32 %v2747_v57, %v2746_v36  ;;  %v3026_v7 = vmul.f32 %v12938_v38, %v10649_v37  ;;  %v2754_v16 = vrot.slane %v2753_v25, 1  ;;  %v12941_v57 = vld [vmem:[#allocation50_spill] sm:$0xff]  ;;  %v10688_v37 = vpop.permute.xlu2 %2927 }
 0xca8   : > { %v3039_v26 = vrot.slane %v3038_v28, 4  ;;  %v3032_v32 = vrot.slane %v3031_v24, 4  ;;  %v2780_v19 = vrot.slane %v2779_v34, 2  ;;  %v5118_v3 = vrot.slane %v10654_v44, 2  ;;  %12943 = vst [vmem:[#allocation164_spill] sm:$0xff] %v10688_v37 }
 0xca9   : > { %v5137_v11 = vrot.slane %v5136_v54, 4  ;;  %v2741_v52 = vadd.f32 %v2740_v63, %v2739_v42  ;;  %v2774_v17 = vadd.f32 %v2773_v2, %v2772_v30  ;;  %v5150_v36 = vsel %vm5114_vm8, %v5111_v39, 0.0 }
 0xcaa   : > { %v2768_v62 = vrot.slane %v2767_v22, 1  ;;  %v2781_v15 = vadd.f32 %v2780_v19, %v2779_v34  ;;  %v3028_v29 = vmul.f32 %v12941_v57, %v10675_v58  ;;  %v12942_v20 = vperm.slane %v10354_v48, 5 }
 0xcab   : > { %7978 = vset.pattern.permute.xlu2 %v10318_v46  ;;  %v2761_v8 = vrot.slane %v2760_v4, 1  ;;  %v3136_v38 = vsel %vm2414_vm6, %v2748_v41, %v2741_v52  ;;  %v3052_v21 = vsel %vm2349_vm5, %v3026_v7, 0.0  ;;  %v10691_v42 = vadd.f32 %v5158_v49, %v10634_v50  ;;  %v12944_v41 = vld [vmem:[#allocation56_spill] sm:$0xff] }
 0xcac   : > { %4284 = vperm.xlu1 %7976, %v12937_v53   ;;  %3992 = vperm.xlu0 %7993, %v12942_v20   ;;  %v2788_v53 = vadd.f32 %v2787_v23, %v2786_v35  ;;  %v2755_v30 = vadd.f32 %v2754_v16, %v2753_v25  ;;  %v3040_v63 = vadd.f32 %v3039_v26, %v3038_v28  ;;  %v5151_v39 = vrot.slane %v5150_v36, 4  ;;  %v12945_v25 = vld [vmem:[#allocation46_spill] sm:$0xff] }
 0xcad   : > { %v3033_v2 = vadd.f32 %v3032_v32, %v3031_v24  ;;  %v2775_v34 = vrot.slane %v2774_v17, 1  ;;  %v2782_v19 = vrot.slane %v2781_v15, 1  ;;  %v3066_v57 = vsel %vm2349_vm5, %v3028_v29, 0.0 }
 0xcae   : > { %v10678_v56 = vpop.permute.xlu1 %2903  ;;  %v3137_v20 = vsel %vm2416_vm7, %v2755_v30, %v3136_v38  ;;  %v2769_v35 = vadd.f32 %v2768_v62, %v2767_v22  ;;  %v3053_v23 = vrot.slane %v3052_v21, 4  ;;  %v3029_v7 = vmul.f32 %v12944_v41, %v10688_v37 }
 0xcaf   : > { %12940 = vst [vmem:[#allocation100_spill] sm:$0xff] %v10678_v56  ;;  %v5138_v52 = vadd.f32 %v5137_v11, %v5136_v54  ;;  %v2762_v50 = vadd.f32 %v2761_v8, %v2760_v4  ;;  %v2789_v49 = vrot.slane %v2788_v53, 1  ;;  %v3025_v28 = vmul.f32 %v12945_v25, %v10678_v56  ;;  %v10711_v56 = vpop.permute.xlu0 %3288 }
 0xcb0   : > { %v3041_v24 = vrot.slane %v3040_v63, 2  ;;  %v3034_v16 = vrot.slane %v3033_v2, 2  ;;  %v3067_v26 = vrot.slane %v3066_v57, 4  ;;  %v3073_v32 = vsel %vm2349_vm5, %v3029_v7, 0.0  ;;  %12949 = vst [vmem:[#allocation104_spill] sm:$0xff] %v10711_v56 }
 0xcb1   : > { %v12946_v29 = vperm.slane %v10354_v48, 5  ;;  %v5152_v62 = vadd.f32 %v5151_v39, %v5150_v36  ;;  %v2776_v38 = vadd.f32 %v2775_v34, %v2774_v17  ;;  %v2783_v30 = vadd.f32 %v2782_v19, %v2781_v15 }
 0xcb2   : > { %v3138_v54 = vsel %vm2418_vm9, %v2762_v50, %v3137_v20  ;;  %v3054_v4 = vadd.f32 %v3053_v23, %v3052_v21  ;;  %v3074_v11 = vrot.slane %v3073_v32, 4  ;;  %v12948_v8 = vperm.slane %v10354_v48, 7 }
 0xcb3   : > { %4290 = vperm.xlu2 %7978, %v12946_v29   ;;  %v3045_v41 = vsel %vm2349_vm5, %v3025_v28, 0.0  ;;  %v3139_v25 = vsel %vm2420_vm10, %v2769_v35, %v3138_v54  ;;  %v5119_v7 = vadd.f32 %v5118_v3, %v10654_v44  ;;  %v5139_v37 = vrot.slane %v5138_v52, 2  ;;  %v12950_v44 = vld [vmem:[#allocation57_spill] sm:$0xff] }
 0xcb4   : > { %7980 = vset.pattern.permute.xlu1 %v10611_v1  ;;  %4006 = vperm.xlu0 %7993, %v12948_v8   ;;  %v2790_v29 = vadd.f32 %v2789_v49, %v2788_v53  ;;  %v3046_v58 = vrot.slane %v3045_v41, 4  ;;  %v3042_v17 = vadd.f32 %v3041_v24, %v3040_v63  ;;  %v3035_v36 = vadd.f32 %v3034_v16, %v3033_v2 }
 0xcb5   : > { %v3068_v15 = vadd.f32 %v3067_v26, %v3066_v57  ;;  %v3140_v21 = vsel %vm2422_vm11, %v2776_v38, %v3139_v25  ;;  %v5153_v39 = vrot.slane %v5152_v62, 2  ;;  %v3055_v20 = vrot.slane %v3054_v4, 2  ;;  %v10726_v49 = vpop.permute.xlu2 %3274  ;;  %v12954_v26 = vld [vmem:[#allocation232_spill] sm:$0xff]  ;;  %v12957_v25 = vld [vmem:[#allocation58_spill] sm:$0xff] }
 0xcb6   : > { %v10703_v22 = vpop.permute.xlu1 %2915  ;;  %v3047_v34 = vadd.f32 %v3046_v58, %v3045_v41  ;;  %v3141_v19 = vsel %vm2424_vm12, %v2783_v30, %v3140_v21  ;;  %v3075_v23 = vadd.f32 %v3074_v11, %v3073_v32  ;;  %v12951_v53 = vperm.slane %v10354_v48, 0  ;;  %12953 = vst [vmem:[#allocation191_spill] sm:$0xff] %v10726_v49 }
 0xcb7   : > { %12947 = vst [vmem:[#allocation101_spill] sm:$0xff] %v10703_v22  ;;  %v3142_v35 = vsel %vm2426_vm15, %v2790_v29, %v3141_v19  ;;  %v3027_v3 = vmul.f32 %v12950_v44, %v10703_v22  ;;  %v12952_v63 = vrot.slane %v10553_v51, 2  ;;  %v5120_v57 = vrot.slane %v5119_v7, 1  ;;  %v13013_v22 = vld [vmem:[#allocation121_spill] sm:$0xff] }
 0xcb8   : > { %v5140_v58 = vadd.f32 %v5139_v37, %v5138_v52  ;;  %v3048_v50 = vrot.slane %v3047_v34, 2  ;;  %7526 = vmatmul.msk.f32.vlgmr.msra.gmra.mxu2 %vm12461_vm2, %v3142_v35  ;;  %v3043_v28 = vrot.slane %v3042_v17, 1  ;;  %v3036_v24 = vrot.slane %v3035_v36, 1 }
 0xcb9   : > { %v10723_v2 = vadd.f32 %v12952_v63, %v10553_v51  ;;  %v3069_v16 = vrot.slane %v3068_v15, 2  ;;  %7630 = vmatpush.msk.msra.mxu2 %vm12460_vm0, %v12954_v26  ;;  %v3059_v32 = vsel %vm2349_vm5, %v3027_v3, 0.0  ;;  %v12956_v51 = vrot.slane %v10628_v31, 1 }
 0xcba   : > { %v5160_v52 = vrot.slane %v10691_v42, 2  ;;  %v3049_v30 = vadd.f32 %v3048_v50, %v3047_v34  ;;  %v3060_v54 = vrot.slane %v3059_v32, 4  ;;  %v5154_v11 = vadd.f32 %v5153_v39, %v5152_v62  ;;  %v12958_v50 = vld [vmem:[#allocation230_spill] sm:$0xff] }
 0xcbb   : > { %7981 = vset.pattern.permute.xlu2 %v10611_v1  ;;  %v5128_v37 = vadd.f32 %v12956_v51, %v10628_v31  ;;  %v3056_v8 = vadd.f32 %v3055_v20, %v3054_v4  ;;  %v3076_v41 = vrot.slane %v3075_v23, 2  ;;  %v5121_v21 = vadd.f32 %v5120_v57, %v5119_v7 }
 0xcbc   : > { %3957 = vperm.xlu1 %7980, %v12951_v53   ;;  %7998 = vset.pattern.permute.xlu0 %v12912_v60  ;;  %v5141_v19 = vrot.slane %v5140_v58, 1  ;;  %v3050_v35 = vrot.slane %v3049_v30, 1  ;;  %v3061_v44 = vadd.f32 %v3060_v54, %v3059_v32  ;;  %v3044_v53 = vadd.f32 %v3043_v28, %v3042_v17  ;;  %v12959_v32 = vld [vmem:[#allocation81_spill] sm:$0xff]  ;;  %v12960_v17 = vld [vmem:[#allocation160_spill] sm:$0xff] }
 0xcbd   : > { %v10741_v3 = vpop.permute.xlu0 %3577  ;;  %v3037_v31 = vadd.f32 %v3036_v24, %v3035_v36  ;;  %v3070_v63 = vadd.f32 %v3069_v16, %v3068_v15  ;;  %v5161_v62 = vadd.f32 %v5160_v52, %v10691_v42  ;;  %vm6234_vm3 = vcmp.eq.s32.totalorder %v12958_v50, %v10386_v43  ;;  %v12962_v16 = vld [vmem:[#allocation212_spill] sm:$0xff] }
 0xcbe   : > { %v10732_v38 = vpop.permute.xlu1 %2933  ;;  %v3051_v4 = vadd.f32 %v3050_v35, %v3049_v30  ;;  %v3062_v39 = vrot.slane %v3061_v44, 2  ;;  %v5155_v51 = vrot.slane %v5154_v11, 1  ;;  %v3057_v7 = vrot.slane %v3056_v8, 1 }
 0xcbf   : > { %12955 = vst [vmem:[#allocation151_spill] sm:$0xff] %v10732_v38  ;;  %v3030_v29 = vmul.f32 %v12957_v25, %v10732_v38  ;;  %v3077_v57 = vadd.f32 %v3076_v41, %v3075_v23  ;;  %v6272_v54 = vmul.f32 %v12959_v32, %v10741_v3  ;;  %vm5405_vm0 = vcmp.eq.s32.totalorder %v12958_v50, %v12960_v17 }
 0xcc0   : > { %v12961_v42 = vrot.slane %v10556_v40, 1  ;;  %v5179_v15 = vsel %vm2414_vm6, %v5128_v37, %v5121_v21  ;;  %v3063_v28 = vadd.f32 %v3062_v39, %v3061_v44  ;;  %vm6186_vm2 = vcmp.eq.s32.totalorder %v12958_v50, %v12962_v16  ;;  %v10764_v21 = vpop.permute.xlu2 %3295 }
 0xcc1   : > { %v3080_v34 = vsel %vm2349_vm5, %v3030_v29, 0.0  ;;  %v5142_v23 = vadd.f32 %v5141_v19, %v5140_v58  ;;  %v3095_v52 = vsel %vm2414_vm6, %v3044_v53, %v3037_v31  ;;  %v3071_v30 = vrot.slane %v3070_v63, 1  ;;  %12964 = vst [vmem:[#allocation155_spill] sm:$0xff] %v10764_v21  ;;  %v12965_v19 = vld [vmem:[#allocation103_spill] sm:$0xff] }
 0xcc2   : > { %v3081_v20 = vrot.slane %v3080_v34, 4  ;;  %v4880_v36 = vadd.f32 %v12961_v42, %v10556_v40  ;;  %v12963_v41 = vperm.slane %v10354_v48, 1  ;;  %v5169_v25 = vrot.slane %v10723_v2, 1 }
 0xcc3   : > { %v3096_v40 = vsel %vm2416_vm7, %v3051_v4, %v3095_v52  ;;  %v3064_v29 = vrot.slane %v3063_v28, 1  ;;  %v5162_v35 = vrot.slane %v5161_v62, 1  ;;  %v5156_v44 = vadd.f32 %v5155_v51, %v5154_v11 }
 0xcc4   : > { %7982 = vset.pattern.permute.xlu1 %v10318_v46  ;;  %v3082_v24 = vadd.f32 %v3081_v20, %v3080_v34  ;;  %v6280_v46 = vsel %vm5114_vm8, %v6272_v54, 0.0  ;;  %3964 = vperm.xlu2 %7981, %v12963_v41   ;;  %v3058_v34 = vadd.f32 %v3057_v7, %v3056_v8  ;;  %v3078_v58 = vrot.slane %v3077_v57, 1 }
 0xcc5   : > { %6182 = vperm.xlu0 %7998, %v12965_v19   ;;  %v3065_v53 = vadd.f32 %v3064_v29, %v3063_v28  ;;  %v6281_v39 = vrot.slane %v6280_v46, 4  ;;  %v5180_v20 = vsel %vm2416_vm7, %v10541_v59, %v5179_v15  ;;  %v3072_v32 = vadd.f32 %v3071_v30, %v3070_v63  ;;  %v12968_v63 = vld [vmem:[#allocation95_spill] sm:$0xff]  ;;  %v12969_v15 = vld [vmem:[#allocation84_spill] sm:$0xff] }
 0xcc6   : > { %v3083_v37 = vrot.slane %v3082_v24, 2  ;;  %v3097_v54 = vsel %vm2418_vm9, %v3058_v34, %v3096_v40  ;;  %v5181_v4 = vsel %vm2418_vm9, %v5142_v23, %v5180_v20  ;;  %v5228_v42 = vsel %vm2418_vm9, %v10543_v47, %v10523_v18 }
 0xcc7   : > { %v12966_v11 = vrot.slane %v10458_v27, 1  ;;  %v4886_v51 = vrot.slane %v10563_v9, 1  ;;  %v3098_v28 = vsel %vm2420_vm10, %v3065_v53, %v3097_v54  ;;  %v12967_v59 = vperm.slane %v10354_v48, 7  ;;  %v12973_v53 = vld [vmem:[#allocation32_spill] sm:$0xff]  ;;  %v12977_v54 = vld [vmem:[#allocation105_spill] sm:$0xff] }
 0xcc8   : > { %v3084_v31 = vadd.f32 %v3083_v37, %v3082_v24  ;;  %v3079_v24 = vadd.f32 %v3078_v58, %v3077_v57  ;;  %v6265_v23 = vadd.f32 %v12969_v15, %v12968_v63  ;;  %v3099_v52 = vsel %vm2422_vm11, %v3072_v32, %v3098_v28  ;;  %v12981_v63 = vld [vmem:[#allocation201_spill] sm:$0xff] }
 0xcc9   : > { %v4873_v8 = vadd.f32 %v12966_v11, %v10458_v27  ;;  %v5182_v18 = vsel %vm2420_vm10, %v10567_v12, %v5181_v4  ;;  %v5163_v47 = vadd.f32 %v5162_v35, %v5161_v62  ;;  %v6282_v27 = vadd.f32 %v6281_v39, %v6280_v46 }
 0xcca   : > { %v3085_v7 = vrot.slane %v3084_v31, 1  ;;  %v5170_v40 = vadd.f32 %v5169_v25, %v10723_v2  ;;  %v12970_v57 = vperm.slane %v10354_v48, 3  ;;  %v3100_v29 = vsel %vm2424_vm12, %v3079_v24, %v3099_v52  ;;  %v12980_v24 = vld [vmem:[#allocation91_spill] sm:$0xff] }
 0xccb   : > { %v5229_v41 = vsel %vm2420_vm10, %v4873_v8, %v5228_v42  ;;  %v5183_v37 = vsel %vm2422_vm11, %v5156_v44, %v5182_v18  ;;  %v12971_v58 = vmov 0.0   ;;  %v4887_v62 = vadd.f32 %v4886_v51, %v10563_v9  ;;  %v12972_v44 = vld [vmem:[#allocation196_spill] sm:$0xff]  ;;  %v12978_v42 = vld [vmem:[#allocation226_spill] sm:$0xff] }
 0xccc   : > { %4302 = vperm.xlu1 %7982, %v12967_v59   ;;  %v3086_v30 = vadd.f32 %v3085_v7, %v3084_v31  ;;  %3978 = vperm.xlu2 %7981, %v12970_v57   ;;  %v5230_v34 = vsel %vm2422_vm11, %v4880_v36, %v5229_v41  ;;  %v7696_v12 = vsel %vm6234_vm3, 1.0, %v12971_v58  ;;  %v5184_v25 = vsel %vm2424_vm12, %v5163_v47, %v5183_v37  ;;  %v12975_v31 = vld [vmem:[#allocation192_spill] sm:$0xff]  ;;  %v12979_v7 = vld [vmem:[#allocation106_spill] sm:$0xff] }
 0xccd   : > { %v10798_v46 = vpop.permute.xlu2 %3583  ;;  %v7645_v35 = vsel %vm5405_vm0, 1.0, %v12971_v58  ;;  %v5399_v36 = vadd.s32 1, %v12972_v44  ;;  %7999 = vset.pattern.permute.xlu0 %v12973_v53  ;;  %v10811_v9 = vsel %vm2426_vm15, %v5170_v40, %v5184_v25  ;;  %v7688_v20 = vsel %vm6186_vm2, 1.0, %v12971_v58  ;;  %v12985_v41 = vld [vmem:[#allocation150_spill] sm:$0xff] }
 0xcce   : > { %v3101_v2 = vsel %vm2426_vm15, %v3086_v30, %v3100_v29  ;;  %v6273_v43 = vmul.f32 %v6265_v23, %v10798_v46  ;;  %12974 = vst [vmem:[#allocation199_spill] sm:$0xff] %v10811_v9  ;;  %v5429_v39 = vmul.f32 %v7645_v35, %v12975_v31  ;;  %v6283_v17 = vrot.slane %v6282_v27, 2  ;;  %v12982_v23 = vld [vmem:[#allocation200_spill] sm:$0xff]  ;;  %v10832_v47 = vpop.permute.xlu1 %3281  ;;  %v12984_v30 = vld [vmem:[#allocation153_spill] sm:$0xff]  ;;  %v12986_v57 = vld [vmem:[#allocation206_spill] sm:$0xff] }
 0xccf   : > { %7525 = vmatmul.msk.f32.vlgmr.msra.gmra.mxu1 %vm12464_vm1, %v3101_v2  ;;  %v10819_v32 = vsel %vm2424_vm12, %v4887_v62, %v5230_v34  ;;  %v3646_v4 = vsub.f32 1.0, %v12977_v54  ;;  %v6210_v11 = vsub.f32 1.0, %v12978_v42  ;;  %v6258_v51 = vmul.f32 %v7696_v12, %v12978_v42  ;;  %12983 = vst [vmem:[#allocation204_spill] sm:$0xff] %v10832_v47  ;;  %v12987_v12 = vld [vmem:[#allocation75_spill] sm:$0xff]  ;;  %v12988_v2 = vld [vmem:[#allocation69_spill] sm:$0xff]  ;;  %v12991_v42 = vld [vmem:[#allocation80_spill] sm:$0xff] }
 0xcd0   : > { %12976 = vst [vmem:[#allocation154_spill] sm:$0xff] %v10819_v32  ;;  %v6287_v8 = vsel %vm5114_vm8, %v6273_v43, 0.0  ;;  %v3647_v28 = vsub.f32 1.0, %v12979_v7  ;;  %vm5359_vm0 = vcmp.eq.s32.totalorder %v12958_v50, %v12972_v44  ;;  %v5437_v16 = vadd.f32 %v5429_v39, %v12980_v24  ;;  %v12990_v39 = vld [vmem:[#allocation63_spill] sm:$0xff]  ;;  %v12992_v44 = vld [vmem:[#allocation205_spill] sm:$0xff] }
 0xcd1   : > { %v6288_v59 = vrot.slane %v6287_v8, 4  ;;  %v5400_v15 = vadd.s32 1, %v12981_v63  ;;  %vm5407_vm2 = vcmp.eq.s32.totalorder %v12958_v50, %v5399_v36  ;;  %v5383_v52 = vsub.f32 1.0, %v12982_v23  ;;  %v13052_v9 = vld [vmem:[#allocation33_spill] sm:$0xff] }
 0xcd2   : > { %v6218_v18 = vmul.f32 %v7688_v20, %v6210_v11  ;;  %v10837_v40 = vmul.f32 %v12985_v41, %v12977_v54  ;;  %v5401_v29 = vadd.s32 1, %v12986_v57  ;;  %v6284_v37 = vadd.f32 %v6283_v17, %v6282_v27 }
 0xcd3   : > { %v6289_v34 = vadd.f32 %v6288_v59, %v6287_v8  ;;  %v10841_v62 = vmul.f32 %v12987_v12, %v3646_v4  ;;  %v10845_v25 = vmul.f32 %v12988_v2, %v12979_v7  ;;  %v5445_v35 = vmul.f32 %v5437_v16, %v10545_v33  ;;  %v12993_v7 = vld [vmem:[#allocation167_spill] sm:$0xff] }
 0xcd4   : > { %7983 = vset.pattern.permute.xlu1 %v12984_v30  ;;  %v12989_v43 = vperm.slane %v10354_v48, 4  ;;  %v6266_v31 = vadd.f32 %v6258_v51, %v6218_v18  ;;  %v3655_v20 = vmul.f32 %v12990_v39, %v3647_v28  ;;  %v7639_v27 = vsel %vm5359_vm0, 1.0, %v12971_v58  ;;  %v12994_v28 = vld [vmem:[#allocation223_spill] sm:$0xff] }
 0xcd5   : > { %v7647_v17 = vsel %vm5407_vm2, 1.0, %v12971_v58  ;;  %v6290_v54 = vrot.slane %v6289_v34, 2  ;;  %v10858_v4 = vpop.permute.xlu2 %3589  ;;  %vm5360_vm3 = vcmp.eq.s32.totalorder %v12958_v50, %v12981_v63  ;;  %v5391_v33 = vmul.f32 %v7639_v27, %v5383_v52  ;;  %5570 = vperm.xlu0 %7999, %v12991_v42   ;;  %v12996_v27 = vld [vmem:[#allocation228_spill] sm:$0xff] }
 0xcd6   : > { %3985 = vperm.xlu2 %7981, %v12989_v43   ;;  %vm5408_vm13 = vcmp.eq.s32.totalorder %v12958_v50, %v5400_v15  ;;  %v6274_v11 = vmul.f32 %v6266_v31, %v10858_v4  ;;  %vm5409_vm14 = vcmp.eq.s32.totalorder %v12958_v50, %v5401_v29  ;;  %v5384_v8 = vsub.f32 1.0, %v12992_v44  ;;  %v12997_v15 = vld [vmem:[#allocation220_spill] sm:$0xff] }
 0xcd7   : > { %v6285_v51 = vrot.slane %v6284_v37, 1  ;;  %v6291_v36 = vadd.f32 %v6290_v54, %v6289_v34  ;;  %vm3626_vm0 = vcmp.eq.s32.totalorder %v12958_v50, %v12993_v7  ;;  %vm6187_vm2 = vcmp.eq.s32.totalorder %v12958_v50, %v12994_v28  ;;  %v10887_v54 = vpop.permute.xlu1 %3302 }
 0xcd8   : > { %v5431_v24 = vmul.f32 %v7647_v17, %v12982_v23  ;;  %v5471_v16 = vsel %vm4838_vm4, %v5445_v35, 0.0  ;;  %v6294_v59 = vsel %vm5114_vm8, %v6274_v11, 0.0  ;;  %v6227_v63 = vadd.s32 1, %v12994_v28 }
 0xcd9   : > { %v7640_v52 = vsel %vm5360_vm3, 1.0, %v12971_v58  ;;  %vm5361_vm1 = vcmp.eq.s32.totalorder %v12958_v50, %v12986_v57  ;;  %v6292_v18 = vrot.slane %v6291_v36, 1  ;;  %v7649_v41 = vsel %vm5409_vm14, 1.0, %v12971_v58 }
 0xcda   : > { %v7648_v29 = vsel %vm5408_vm13, 1.0, %v12971_v58  ;;  %v5439_v34 = vadd.f32 %v5431_v24, %v5391_v33  ;;  %v6295_v23 = vrot.slane %v6294_v59, 4  ;;  %v12995_v12 = vperm.slane %v10155_v55, 5 }
 0xcdb   : > { %v5392_v2 = vmul.f32 %v7640_v52, %v5384_v8  ;;  %v5472_v35 = vrot.slane %v5471_v16, 4  ;;  %v6286_v43 = vadd.f32 %v6285_v51, %v6284_v37  ;;  %v6293_v31 = vadd.f32 %v6292_v18, %v6291_v36  ;;  %v12998_v36 = vld [vmem:[#allocation41_spill] sm:$0xff] }
 0xcdc   : > { %3309 = vperm.xlu1 %7983, %v12995_v12   ;;  %v7641_v39 = vsel %vm5361_vm1, 1.0, %v12971_v58  ;;  %v6211_v57 = vsub.f32 1.0, %v12996_v27  ;;  %v5447_v17 = vmul.f32 %v5439_v34, %v10579_v45  ;;  %v6296_v42 = vadd.f32 %v6295_v23, %v6294_v59  ;;  %v12999_v23 = vld [vmem:[#allocation170_spill] sm:$0xff] }
 0xcdd   : > { %v5385_v33 = vsub.f32 1.0, %v12997_v15  ;;  %v5432_v11 = vmul.f32 %v7648_v29, %v12992_v44  ;;  %v5478_v8 = vsel %vm4838_vm4, %v10619_v10, 0.0  ;;  %v6344_v37 = vsel %vm2414_vm6, %v6293_v31, %v6286_v43  ;;  %5516 = vperm.xlu0 %7999, %v12998_v36  }
 0xcde   : > { %7984 = vset.pattern.permute.xlu2 %v12984_v30  ;;  %v3666_v51 = vadd.s32 1, %v12993_v7  ;;  %vm6235_vm1 = vcmp.eq.s32.totalorder %v12958_v50, %v6227_v63  ;;  %v5433_v45 = vmul.f32 %v7649_v41, %v12997_v15  ;;  %v6297_v24 = vrot.slane %v6296_v42, 2  ;;  %v13003_v15 = vld [vmem:[#allocation111_spill] sm:$0xff] }
 0xcdf   : > { %v7689_v30 = vsel %vm6187_vm2, 1.0, %v12971_v58  ;;  %v5393_v44 = vmul.f32 %v7641_v39, %v5385_v33  ;;  %v5473_v59 = vadd.f32 %v5472_v35, %v5471_v16  ;;  %v5440_v52 = vadd.f32 %v5432_v11, %v5392_v2  ;;  %v13004_v11 = vld [vmem:[#allocation90_spill] sm:$0xff] }
 0xce0   : > { %v6219_v10 = vmul.f32 %v7689_v30, %v6211_v57  ;;  %v5485_v18 = vsel %vm4838_vm4, %v5447_v17, 0.0  ;;  %v5479_v29 = vrot.slane %v5478_v8, 4  ;;  %v6298_v34 = vadd.f32 %v6297_v24, %v6296_v42  ;;  %v13002_v42 = vld [vmem:[#allocation107_spill] sm:$0xff] }
 0xce1   : > { %v3667_v63 = vadd.s32 1, %v12999_v23  ;;  %v7697_v41 = vsel %vm6235_vm1, 1.0, %v12971_v58  ;;  %v5448_v12 = vmul.f32 %v5440_v52, %v10625_v14  ;;  %v10909_v43 = vadd.f32 %v10837_v40, %v10841_v62 }
 0xce2   : > { %v6259_v28 = vmul.f32 %v7697_v41, %v12996_v27  ;;  %v5441_v31 = vadd.f32 %v5433_v45, %v5393_v44  ;;  %v10913_v16 = vadd.f32 %v10845_v25, %v3655_v20  ;;  %v6299_v2 = vrot.slane %v6298_v34, 1  ;;  %v13005_v45 = vld [vmem:[#allocation173_spill] sm:$0xff] }
 0xce3   : > { %v13000_v35 = vperm.slane %v10155_v55, 6  ;;  %v7548_v39 = vsel %vm3626_vm0, 1.0, %v12971_v58  ;;  %vm3674_vm14 = vcmp.eq.s32.totalorder %v12958_v50, %v3666_v51  ;;  %v5474_v14 = vrot.slane %v5473_v59, 2  ;;  %v13006_v51 = vld [vmem:[#allocation117_spill] sm:$0xff] }
 0xce4   : > { %v5486_v40 = vrot.slane %v5485_v18, 4  ;;  %v5449_v62 = vmul.f32 %v5441_v31, %v10595_v61  ;;  %v5480_v27 = vadd.f32 %v5479_v29, %v5478_v8  ;;  %v6300_v57 = vadd.f32 %v6299_v2, %v6298_v34 }
 0xce5   : > { %3316 = vperm.xlu1 %7983, %v13000_v35   ;;  %v13001_v25 = vperm.slane %v10155_v55, 7  ;;  %v6267_v20 = vadd.f32 %v6259_v28, %v6219_v10  ;;  %vm3627_vm13 = vcmp.eq.s32.totalorder %v12958_v50, %v12999_v23  ;;  %vm4304_vm3 = vcmp.eq.s32.totalorder %v12958_v50, %v13002_v42  ;;  %5534 = vperm.xlu0 %7999, %v13004_v11  }
 0xce6   : > { %v10925_v17 = vpop.permute.xlu1 %3595  ;;  %vm3675_vm0 = vcmp.eq.s32.totalorder %v12958_v50, %v3667_v63  ;;  %v5492_v7 = vsel %vm4838_vm4, %v5448_v12, 0.0  ;;  %v4344_v61 = vadd.s32 1, %v13002_v42  ;;  %v4346_v33 = vadd.s32 1, %v13003_v15 }
 0xce7   : > { %3323 = vperm.xlu2 %7984, %v13001_v25   ;;  %v10936_v55 = vsel %vm2416_vm7, %v6300_v57, %v6344_v37  ;;  %v6275_v8 = vmul.f32 %v6267_v20, %v10925_v17  ;;  %vm4306_vm2 = vcmp.eq.s32.totalorder %v12958_v50, %v13003_v15  ;;  %v3650_v24 = vsub.f32 1.0, %v13005_v45  ;;  %v13007_v25 = vld [vmem:[#allocation115_spill] sm:$0xff] }
 0xce8   : > { %v5475_v30 = vadd.f32 %v5474_v14, %v5473_v59  ;;  %v5487_v44 = vadd.f32 %v5486_v40, %v5485_v18  ;;  %v5499_v52 = vsel %vm4838_vm4, %v5449_v62, 0.0  ;;  %v5481_v10 = vrot.slane %v5480_v27, 2 }
 0xce9   : > { %v5493_v29 = vrot.slane %v5492_v7, 4  ;;  %v6301_v34 = vsel %vm5114_vm8, %v6275_v8, 0.0  ;;  %v10949_v37 = vsel %vm3627_vm13, 1.0, %v12971_v58  ;;  %v7556_v41 = vsel %vm3674_vm14, 1.0, %v12971_v58  ;;  %v13011_v8 = vld [vmem:[#allocation67_spill] sm:$0xff] }
 0xcea   : > { %v10957_v59 = vsel %vm3675_vm0, 1.0, %v12971_v58  ;;  %v6302_v18 = vrot.slane %v6301_v34, 4  ;;  %v7577_v12 = vsel %vm4304_vm3, 1.0, %v12971_v58  ;;  %v10964_v28 = vsel %vm4306_vm2, 1.0, %v12971_v58 }
 0xceb   : > { %vm4352_vm1 = vcmp.eq.s32.totalorder %v12958_v50, %v4344_v61  ;;  %vm4354_vm13 = vcmp.eq.s32.totalorder %v12958_v50, %v4346_v33  ;;  %v3648_v23 = vsub.f32 1.0, %v13006_v51  ;;  %v5488_v63 = vrot.slane %v5487_v44, 2  ;;  %v13008_v33 = vld [vmem:[#allocation112_spill] sm:$0xff] }
 0xcec   : > { %v5500_v31 = vrot.slane %v5499_v52, 4  ;;  %v6303_v2 = vadd.f32 %v6302_v18, %v6301_v34  ;;  %v3658_v35 = vmul.f32 %v7548_v39, %v3650_v24  ;;  %v5476_v14 = vrot.slane %v5475_v30, 1 }
 0xced   : > { %7986 = vset.pattern.permute.xlu1 %v10611_v1  ;;  %v5482_v40 = vadd.f32 %v5481_v10, %v5480_v27  ;;  %v5494_v62 = vadd.f32 %v5493_v29, %v5492_v7  ;;  %v7585_v57 = vsel %vm4352_vm1, 1.0, %v12971_v58  ;;  %v4328_v20 = vsub.f32 1.0, %v13007_v25  ;;  %v10983_v27 = vpop.permute.xlu2 %3601  ;;  %v13010_v7 = vld [vmem:[#allocation108_spill] sm:$0xff] }
 0xcee   : > { %v10974_v42 = vsel %vm4354_vm13, 1.0, %v12971_v58  ;;  %v6304_v61 = vrot.slane %v6303_v2, 2  ;;  %v3698_v1 = vmul.f32 %v7556_v41, %v13005_v45  ;;  %v10978_v15 = vmul.f32 %v7585_v57, %v13007_v25  ;;  %13009 = vst [vmem:[#allocation209_spill] sm:$0xff] %v10983_v27  ;;  %5552 = vperm.xlu0 %7999, %v13010_v7   ;;  %v13012_v25 = vld [vmem:[#allocation76_spill] sm:$0xff] }
 0xcef   : > { %7985 = vset.pattern.permute.xlu2 %v12912_v60  ;;  %vm3625_vm14 = vcmp.eq.s32.totalorder %v12958_v50, %v13008_v33  ;;  %v3665_v39 = vadd.s32 1, %v13008_v33  ;;  %v3656_v24 = vmul.f32 %v13011_v8, %v3648_v23  ;;  %v5489_v10 = vadd.f32 %v5488_v63, %v5487_v44  ;;  %v13014_v44 = vld [vmem:[#allocation119_spill] sm:$0xff] }
 0xcf0   : > { %v5501_v29 = vadd.f32 %v5500_v31, %v5499_v52  ;;  %v6305_v34 = vadd.f32 %v6304_v61, %v6303_v2  ;;  %v5477_v18 = vadd.f32 %v5476_v14, %v5475_v30  ;;  %v5483_v26 = vrot.slane %v5482_v40, 1  ;;  %v11002_v31 = vpop.permute.xlu0 %4266  ;;  %v13016_v14 = vld [vmem:[#allocation124_spill] sm:$0xff] }
 0xcf1   : > { %v5495_v45 = vrot.slane %v5494_v62, 2  ;;  %v10987_v41 = vadd.f32 %v3698_v1, %v3658_v35  ;;  %v4336_v57 = vmul.f32 %v7577_v12, %v4328_v20  ;;  %v3696_v38 = vmul.f32 %v13012_v25, %v13006_v51 }
 0xcf2   : > { %v3649_v32 = vsub.f32 1.0, %v13013_v22  ;;  %v6306_v13 = vrot.slane %v6305_v34, 1  ;;  %v7547_v23 = vsel %vm3625_vm14, 1.0, %v12971_v58  ;;  %v4347_v52 = vadd.s32 1, %v13014_v44 }
 0xcf3   : > { %vm3673_vm3 = vcmp.eq.s32.totalorder %v12958_v50, %v3665_v39  ;;  %v13015_v30 = vperm.slane %v10354_v48, 6  ;;  %v5805_v12 = vsel %vm2418_vm9, %v5477_v18, %v10659_v0  ;;  %v5490_v63 = vrot.slane %v5489_v10, 1  ;;  %v13017_v39 = vld [vmem:[#allocation43_spill] sm:$0xff] }
 0xcf4   : > { %v5502_v51 = vrot.slane %v5501_v29, 2  ;;  %v3704_v2 = vadd.f32 %v3696_v38, %v3656_v24  ;;  %v6307_v35 = vadd.f32 %v6306_v13, %v6305_v34  ;;  %v3668_v20 = vadd.s32 1, %v13016_v14  ;;  %v13019_v13 = vld [vmem:[#allocation132_spill] sm:$0xff] }
 0xcf5   : > { %3999 = vperm.xlu1 %7986, %v13015_v30   ;;  %v5484_v61 = vadd.f32 %v5483_v26, %v5482_v40  ;;  %v5496_v1 = vadd.f32 %v5495_v45, %v5494_v62  ;;  %v3710_v33 = vmul.f32 %v10909_v43, %v10798_v46  ;;  %v7555_v48 = vsel %vm3673_vm3, 1.0, %v12971_v58  ;;  %v13020_v38 = vld [vmem:[#allocation72_spill] sm:$0xff]  ;;  %v13021_v40 = vld [vmem:[#allocation35_spill] sm:$0xff] }
 0xcf6   : > { %v3657_v8 = vmul.f32 %v7547_v23, %v3649_v32  ;;  %v3711_v0 = vmul.f32 %v10913_v16, %v10858_v4  ;;  %v11013_v18 = vsel %vm2418_vm9, %v6307_v35, %v10936_v55  ;;  %vm3628_vm0 = vcmp.eq.s32.totalorder %v12958_v50, %v13016_v14  ;;  %8002 = vset.pattern.permute.xlu0 %v13021_v40  ;;  %v11022_v32 = vpop.permute.xlu2 %4278 }
 0xcf7   : > { %6170 = vperm.xlu2 %7985, %v13017_v39   ;;  %13018 = vst [vmem:[#allocation156_spill] sm:$0xff] %v11013_v18  ;;  %v3652_v26 = vsub.f32 1.0, %v13019_v13  ;;  %v3709_v46 = vmul.f32 %v13020_v38, %v10741_v3  ;;  %v3712_v43 = vmul.f32 %v3704_v2, %v10925_v17  ;;  %vm4307_vm2 = vcmp.eq.s32.totalorder %v12958_v50, %v13014_v44  ;;  %v13045_v18 = vld [vmem:[#allocation126_spill] sm:$0xff] }
 0xcf8   : > { %13022 = vst [vmem:[#allocation158_spill] sm:$0xff] %v11022_v32  ;;  %v3697_v4 = vmul.f32 %v7555_v48, %v13013_v22  ;;  %v5491_v16 = vadd.f32 %v5490_v63, %v5489_v10  ;;  %v5503_v55 = vadd.f32 %v5502_v51, %v5501_v29  ;;  %vm3676_vm1 = vcmp.eq.s32.totalorder %v12958_v50, %v3668_v20  ;;  %v11036_v29 = vpop.permute.xlu1 %4260  ;;  %v11041_v2 = vpop.permute.xlu0 %3607 }
 0xcf9   : > { %v5497_v62 = vrot.slane %v5496_v1, 1  ;;  %v3724_v24 = vsel %vm2349_vm5, %v3710_v33, 0.0  ;;  %v5806_v3 = vsel %vm2420_vm10, %v5484_v61, %v5805_v12  ;;  %v7550_v17 = vsel %vm3628_vm0, 1.0, %v12971_v58  ;;  %13023 = vst [vmem:[#allocation165_spill] sm:$0xff] %v11036_v29 }
 0xcfa   : > { %v3731_v34 = vsel %vm2349_vm5, %v3711_v0, 0.0  ;;  %v3705_v45 = vadd.f32 %v3697_v4, %v3657_v8  ;;  %v5807_v25 = vsel %vm2422_vm11, %v5491_v16, %v5806_v3  ;;  %vm4355_vm13 = vcmp.eq.s32.totalorder %v12958_v50, %v4347_v52  ;;  %13024 = vst [vmem:[#allocation157_spill] sm:$0xff] %v11041_v2  ;;  %v13028_v4 = vld [vmem:[#allocation180_spill] sm:$0xff] }
 0xcfb   : > { %v3660_v23 = vmul.f32 %v7550_v17, %v3652_v26  ;;  %v3717_v22 = vsel %vm2349_vm5, %v3709_v46, 0.0  ;;  %v3738_v10 = vsel %vm2349_vm5, %v3712_v43, 0.0  ;;  %v7558_v30 = vsel %vm3676_vm1, 1.0, %v12971_v58 }
 0xcfc   : > { %v5504_v12 = vrot.slane %v5503_v55, 1  ;;  %v3725_v63 = vrot.slane %v3724_v24, 4  ;;  %v3713_v51 = vmul.f32 %v3705_v45, %v10983_v27  ;;  %v3700_v35 = vmul.f32 %v7558_v30, %v13019_v13  ;;  %v13029_v45 = vld [vmem:[#allocation120_spill] sm:$0xff] }
 0xcfd   : > { %7987 = vset.pattern.permute.xlu1 %v13021_v40  ;;  %v5498_v14 = vadd.f32 %v5497_v62, %v5496_v1  ;;  %v3732_v20 = vrot.slane %v3731_v34, 4  ;;  %v11045_v61 = vadd.f32 %v10978_v15, %v4336_v57  ;;  %v11052_v33 = vsel %vm4307_vm2, 1.0, %v12971_v58  ;;  %v13025_v1 = vld [vmem:[#allocation176_spill] sm:$0xff]  ;;  %v13026_v15 = vld [vmem:[#allocation122_spill] sm:$0xff] }
 0xcfe   : > { %v11057_v48 = vsel %vm4355_vm13, 1.0, %v12971_v58  ;;  %v3718_v8 = vrot.slane %v3717_v22, 4  ;;  %v3739_v0 = vrot.slane %v3738_v10, 4  ;;  %vm4309_vm14 = vcmp.eq.s32.totalorder %v12958_v50, %v13025_v1  ;;  %6679 = vperm.xlu0 %8002, %v12998_v36   ;;  %v11065_v26 = vpop.permute.xlu2 %3619 }
 0xcff   : > { %7988 = vset.pattern.permute.xlu2 %v13021_v40  ;;  %v4330_v57 = vsub.f32 1.0, %v13026_v15  ;;  %v3714_v13 = vmul.f32 %v10987_v41, %v11041_v2  ;;  %v3708_v44 = vadd.f32 %v3700_v35, %v3660_v23  ;;  %13027 = vst [vmem:[#allocation161_spill] sm:$0xff] %v11065_v26  ;;  %v4349_v38 = vadd.s32 1, %v13025_v1 }
 0xd00   : > { %v5505_v52 = vadd.f32 %v5504_v12, %v5503_v55  ;;  %v3726_v46 = vadd.f32 %v3725_v63, %v3724_v24  ;;  %v3745_v43 = vsel %vm2349_vm5, %v3713_v51, 0.0  ;;  %v4351_v16 = vadd.s32 1, %v13028_v4  ;;  %v13031_v55 = vld [vmem:[#allocation127_spill] sm:$0xff]  ;;  %v13032_v51 = vld [vmem:[#allocation78_spill] sm:$0xff] }
 0xd01   : > { %v3733_v62 = vadd.f32 %v3732_v20, %v3731_v34  ;;  %v3716_v3 = vmul.f32 %v3708_v44, %v11065_v26  ;;  %v5808_v17 = vsel %vm2424_vm12, %v5498_v14, %v5807_v25  ;;  %v4329_v41 = vsub.f32 1.0, %v13029_v45  ;;  %v13034_v20 = vld [vmem:[#allocation83_spill] sm:$0xff] }
 0xd02   : > { %v3719_v30 = vadd.f32 %v3718_v8, %v3717_v22  ;;  %v3740_v36 = vadd.f32 %v3739_v0, %v3738_v10  ;;  %v11074_v23 = vsel %vm2426_vm15, %v5505_v52, %v5808_v17  ;;  %v4338_v35 = vmul.f32 %v10964_v28, %v4330_v57  ;;  %v11092_v10 = vpop.permute.xlu1 %4272  ;;  %v13035_v8 = vld [vmem:[#allocation70_spill] sm:$0xff] }
 0xd03   : > { %13030 = vst [vmem:[#allocation159_spill] sm:$0xff] %v11074_v23  ;;  %v3651_v24 = vsub.f32 1.0, %v13031_v55  ;;  %v3746_v12 = vrot.slane %v3745_v43, 4  ;;  %v3752_v63 = vsel %vm2349_vm5, %v3714_v13, 0.0  ;;  %v11084_v34 = vsel %vm4309_vm14, 1.0, %v12971_v58 }
 0xd04   : > { %v4378_v25 = vmul.f32 %v10974_v42, %v13026_v15  ;;  %vm4357_vm3 = vcmp.eq.s32.totalorder %v12958_v50, %v4349_v38  ;;  %v3727_v22 = vrot.slane %v3726_v46, 2  ;;  %vm4311_vm0 = vcmp.eq.s32.totalorder %v12958_v50, %v13028_v4  ;;  %13033 = vst [vmem:[#allocation213_spill] sm:$0xff] %v11092_v10  ;;  %v13036_v4 = vld [vmem:[#allocation74_spill] sm:$0xff] }
 0xd05   : > { %6673 = vperm.xlu1 %7987, %v13032_v51   ;;  %vm4359_vm2 = vcmp.eq.s32.totalorder %v12958_v50, %v4351_v16  ;;  %v3734_v28 = vrot.slane %v3733_v62, 2  ;;  %v3766_v14 = vsel %vm2349_vm5, %v3716_v3, 0.0  ;;  %v4337_v0 = vmul.f32 %v13035_v8, %v4329_v41  ;;  %v13038_v8 = vld [vmem:[#allocation183_spill] sm:$0xff] }
 0xd06   : > { %v3720_v1 = vrot.slane %v3719_v30, 2  ;;  %v3753_v57 = vrot.slane %v3752_v63, 4  ;;  %v3741_v42 = vrot.slane %v3740_v36, 2  ;;  %v3659_v15 = vmul.f32 %v10949_v37, %v3651_v24  ;;  %6757 = vperm.xlu0 %8002, %v12917_v6   ;;  %v13037_v37 = vld [vmem:[#allocation129_spill] sm:$0xff]  ;;  %v13040_v16 = vld [vmem:[#allocation123_spill] sm:$0xff] }
 0xd07   : > { %6739 = vperm.xlu2 %7988, %v13034_v20   ;;  %v11099_v13 = vsel %vm4357_vm3, 1.0, %v12971_v58  ;;  %v3747_v44 = vadd.f32 %v3746_v12, %v3745_v43  ;;  %v11102_v38 = vadd.f32 %v4378_v25, %v4338_v35  ;;  %v11105_v52 = vsel %vm4311_vm0, 1.0, %v12971_v58 }
 0xd08   : > { %v4377_v3 = vmul.f32 %v13036_v4, %v13029_v45  ;;  %v3728_v17 = vadd.f32 %v3727_v22, %v3726_v46  ;;  %v3767_v41 = vrot.slane %v3766_v14, 4  ;;  %v3699_v51 = vmul.f32 %v10957_v59, %v13031_v55  ;;  %v13039_v46 = vld [vmem:[#allocation189_spill] sm:$0xff]  ;;  %v13044_v45 = vld [vmem:[#allocation131_spill] sm:$0xff] }
 0xd09   : > { %v4350_v24 = vadd.s32 1, %v13037_v37  ;;  %v11115_v43 = vsel %vm4359_vm2, 1.0, %v12971_v58  ;;  %v3735_v6 = vadd.f32 %v3734_v28, %v3733_v62  ;;  %v3721_v35 = vadd.f32 %v3720_v1, %v3719_v30  ;;  %v13041_v28 = vld [vmem:[#allocation186_spill] sm:$0xff] }
 0xd0a   : > { %v11117_v12 = vadd.f32 %v4377_v3, %v4337_v0  ;;  %v3754_v25 = vadd.f32 %v3753_v57, %v3752_v63  ;;  %v3742_v20 = vadd.f32 %v3741_v42, %v3740_v36  ;;  %vm4015_vm1 = vcmp.eq.s32.totalorder %v12958_v50, %v13039_v46 }
 0xd0b   : > { %v3748_v22 = vrot.slane %v3747_v44, 2  ;;  %v3707_v59 = vadd.f32 %v3699_v51, %v3659_v15  ;;  %vm4310_vm13 = vcmp.eq.s32.totalorder %v12958_v50, %v13037_v37  ;;  %v4348_v55 = vadd.s32 1, %v13040_v16  ;;  %v13043_v51 = vld [vmem:[#allocation94_spill] sm:$0xff] }
 0xd0c   : > { %v3729_v62 = vrot.slane %v3728_v17, 1  ;;  %v3768_v30 = vadd.f32 %v3767_v41, %v3766_v14  ;;  %v11128_v36 = vadd.s32 1, %v13039_v46  ;;  %vm4358_vm14 = vcmp.eq.s32.totalorder %v12958_v50, %v4350_v24 }
 0xd0d   : > { %7989 = vset.pattern.permute.xlu1 %v12973_v53  ;;  %v3736_v63 = vrot.slane %v3735_v6, 1  ;;  %v3722_v57 = vrot.slane %v3721_v35, 1  ;;  %v3755_v42 = vrot.slane %v3754_v25, 2  ;;  %v3743_v15 = vrot.slane %v3742_v20, 1 }
 0xd0e   : > { %v11132_v1 = vpop.permute.xlu1 %3613  ;;  %v11139_v14 = vsel %vm4015_vm1, 1.0, %v12971_v58  ;;  %v7583_v3 = vsel %vm4310_vm13, 1.0, %v12971_v58  ;;  %vm4308_vm3 = vcmp.eq.s32.totalorder %v12958_v50, %v13040_v16  ;;  %v3749_v41 = vadd.f32 %v3748_v22, %v3747_v44  ;;  %6703 = vperm.xlu0 %8002, %v13043_v51  }
 0xd0f   : > { %7990 = vset.pattern.permute.xlu2 %v12973_v53  ;;  %13042 = vst [vmem:[#allocation92_spill] sm:$0xff] %v11132_v1  ;;  %v3715_v4 = vmul.f32 %v3707_v59, %v11132_v1  ;;  %vm4356_vm0 = vcmp.eq.s32.totalorder %v12958_v50, %v4348_v55  ;;  %v3730_v37 = vadd.f32 %v3729_v62, %v3728_v17  ;;  %v3769_v0 = vrot.slane %v3768_v30, 2 }
 0xd10   : > { %v4049_v23 = vadd.s32 1, %v13044_v45  ;;  %v7591_v46 = vsel %vm4358_vm14, 1.0, %v12971_v58  ;;  %v3737_v26 = vadd.f32 %v3736_v63, %v3735_v6  ;;  %v7581_v2 = vsel %vm4308_vm3, 1.0, %v12971_v58  ;;  %v11165_v63 = vpop.permute.xlu0 %4296 }
 0xd11   : > { %v3759_v59 = vsel %vm2349_vm5, %v3715_v4, 0.0  ;;  %v3723_v16 = vadd.f32 %v3722_v57, %v3721_v35  ;;  %v3756_v44 = vadd.f32 %v3755_v42, %v3754_v25  ;;  %v3744_v22 = vadd.f32 %v3743_v15, %v3742_v20  ;;  %v13046_v35 = vld [vmem:[#allocation135_spill] sm:$0xff]  ;;  %13047 = vst [vmem:[#allocation162_spill] sm:$0xff] %v11165_v63  ;;  %v13049_v57 = vld [vmem:[#allocation134_spill] sm:$0xff] }
 0xd12   : > { %v3760_v1 = vrot.slane %v3759_v59, 4  ;;  %v4331_v27 = vsub.f32 1.0, %v13045_v18  ;;  %v7589_v17 = vsel %vm4356_vm0, 1.0, %v12971_v58  ;;  %v3750_v55 = vrot.slane %v3749_v41, 1 }
 0xd13   : > { %v4379_v4 = vmul.f32 %v11057_v48, %v13045_v18  ;;  %vm4009_vm2 = vcmp.eq.s32.totalorder %v12958_v50, %v13044_v45  ;;  %vm4063_vm1 = vcmp.eq.s32.totalorder %v12958_v50, %v11128_v36  ;;  %v3781_v24 = vsel %vm2414_vm6, %v3730_v37, %v3723_v16  ;;  %v13048_v18 = vld [vmem:[#allocation130_spill] sm:$0xff]  ;;  %v13050_v37 = vld [vmem:[#allocation137_spill] sm:$0xff] }
 0xd14   : > { %v3761_v62 = vadd.f32 %v3760_v1, %v3759_v59  ;;  %v3770_v6 = vadd.f32 %v3769_v0, %v3768_v30  ;;  %vm4057_vm13 = vcmp.eq.s32.totalorder %v12958_v50, %v4049_v23  ;;  %v4048_v25 = vadd.s32 1, %v13046_v35  ;;  %v13051_v0 = vld [vmem:[#allocation142_spill] sm:$0xff]  ;;  %v13059_v36 = vld [vmem:[#allocation229_spill] sm:$0xff] }
 0xd15   : > { %5540 = vperm.xlu1 %7989, %v13043_v51   ;;  %v3782_v20 = vsel %vm2416_vm7, %v3737_v26, %v3781_v24  ;;  %v4332_v48 = vsub.f32 1.0, %v13048_v18  ;;  %v4334_v42 = vsub.f32 1.0, %v13049_v57  ;;  %v3757_v15 = vrot.slane %v3756_v44, 1 }
 0xd16   : > { %v3762_v1 = vrot.slane %v3761_v62, 2  ;;  %v3783_v59 = vsel %vm2418_vm9, %v3744_v22, %v3782_v20  ;;  %v4033_v30 = vsub.f32 1.0, %v13050_v37  ;;  %v4052_v16 = vadd.s32 1, %v13051_v0  ;;  %8013 = vset.pattern.permute.xlu0 %v13052_v9 }
 0xd17   : > { %5600 = vperm.xlu2 %7990, %v12965_v19   ;;  %v3751_v7 = vadd.f32 %v3750_v55, %v3749_v41  ;;  %v4339_v24 = vmul.f32 %v11052_v33, %v4331_v27  ;;  %v7562_v19 = vsel %vm4009_vm2, 1.0, %v12971_v58  ;;  %v7570_v39 = vsel %vm4057_vm13, 1.0, %v12971_v58 }
 0xd18   : > { %v3763_v26 = vadd.f32 %v3762_v1, %v3761_v62  ;;  %v3771_v22 = vrot.slane %v3770_v6, 1  ;;  %v4380_v20 = vmul.f32 %v7589_v17, %v13048_v18  ;;  %vm4056_vm14 = vcmp.eq.s32.totalorder %v12958_v50, %v4048_v25  ;;  %v13053_v17 = vld [vmem:[#allocation140_spill] sm:$0xff] }
 0xd19   : > { %v3784_v55 = vsel %vm2420_vm10, %v3751_v7, %v3783_v59  ;;  %v4340_v62 = vmul.f32 %v7581_v2, %v4332_v48  ;;  %v4342_v1 = vmul.f32 %v7583_v3, %v4334_v42  ;;  %v4382_v27 = vmul.f32 %v7591_v46, %v13049_v57  ;;  %v13054_v2 = vld [vmem:[#allocation138_spill] sm:$0xff] }
 0xd1a   : > { %v3764_v41 = vrot.slane %v3763_v26, 1  ;;  %v3758_v33 = vadd.f32 %v3757_v15, %v3756_v44  ;;  %v4041_v9 = vmul.f32 %v7562_v19, %v4033_v30  ;;  %vm4008_vm3 = vcmp.eq.s32.totalorder %v12958_v50, %v13046_v35  ;;  %v13055_v19 = vld [vmem:[#allocation143_spill] sm:$0xff]  ;;  %v11197_v44 = vpop.permute.xlu0 %6176 }
 0xd1b   : > { %vm4060_vm0 = vcmp.eq.s32.totalorder %v12958_v50, %v4052_v16  ;;  %v7569_v45 = vsel %vm4056_vm14, 1.0, %v12971_v58  ;;  %v4335_v25 = vsub.f32 1.0, %v13053_v17  ;;  %v3772_v18 = vadd.f32 %v3771_v22, %v3770_v6  ;;  %13056 = vst [vmem:[#allocation163_spill] sm:$0xff] %v11197_v44  ;;  %v13057_v16 = vld [vmem:[#allocation102_spill] sm:$0xff] }
 0xd1c   : > { %v3765_v23 = vadd.f32 %v3764_v41, %v3763_v26  ;;  %v3785_v7 = vsel %vm2422_vm11, %v3758_v33, %v3784_v55  ;;  %v4333_v3 = vsub.f32 1.0, %v13054_v2  ;;  %vm4012_vm2 = vcmp.eq.s32.totalorder %v12958_v50, %v13051_v0  ;;  %v13062_v55 = vld [vmem:[#allocation141_spill] sm:$0xff]  ;;  %v13065_v33 = vld [vmem:[#allocation146_spill] sm:$0xff] }
 0xd1d   : > { %7991 = vset.pattern.permute.xlu1 %v12912_v60  ;;  %v4051_v46 = vadd.s32 1, %v13055_v19  ;;  %v4081_v48 = vmul.f32 %v7570_v39, %v13050_v37  ;;  %v7561_v57 = vsel %vm4008_vm3, 1.0, %v12971_v58  ;;  %v7573_v6 = vsel %vm4060_vm0, 1.0, %v12971_v58 }
 0xd1e   : > { %v3786_v35 = vsel %vm2424_vm12, %v3765_v23, %v3785_v7  ;;  %v11209_v15 = vsel %vm4063_vm1, 1.0, %v12971_v58  ;;  %v4387_v59 = vadd.f32 %v4379_v4, %v4339_v24  ;;  %v11211_v30 = vadd.f32 %v4382_v27, %v4342_v1  ;;  %5850 = vperm.xlu0 %8013, %v13057_v16   ;;  %v13063_v27 = vld [vmem:[#allocation231_spill] sm:$0xff] }
 0xd1f   : > { %7994 = vset.pattern.permute.xlu2 %v13021_v40  ;;  %v3787_v42 = vsel %vm2426_vm15, %v3772_v18, %v3786_v35  ;;  %v4388_v26 = vadd.f32 %v4380_v20, %v4340_v62  ;;  %vm13058_vm13 = vcmask 64512   ;;  %v4343_v39 = vmul.f32 %v11105_v52, %v4335_v25  ;;  %v13068_v18 = vld [vmem:[#allocation144_spill] sm:$0xff] }
 0xd20   : > { %7559 = vmatmul.msk.f32.vlgmr.msrb.gmra.mxu0 %vm13058_vm13, %v3787_v42  ;;  %v7565_v37 = vsel %vm4012_vm2, 1.0, %v12971_v58  ;;  %v11220_v22 = vadd.f32 %v4081_v48, %v4041_v9  ;;  %vm13060_vm1 = vcmask 1043456   ;;  %v4080_v4 = vmul.f32 %v7569_v45, %v13038_v8  ;;  %v11245_v45 = vpop.permute.xlu2 %4290 }
 0xd21   : > { %7632 = vmatpush.msk.msrb.mxu0 %vm13060_vm1, %v13059_v36  ;;  %v13061_v24 = vsub.f32 1.0, %v13038_v8  ;;  %v4341_v20 = vmul.f32 %v11084_v34, %v4333_v3  ;;  %vm4059_vm14 = vcmp.eq.s32.totalorder %v12958_v50, %v4051_v46  ;;  %v4084_v52 = vmul.f32 %v7573_v6, %v13041_v28  ;;  %13066 = vst [vmem:[#allocation166_spill] sm:$0xff] %v11245_v45  ;;  %v13069_v3 = vld [vmem:[#allocation82_spill] sm:$0xff] }
 0xd22   : > { %v4383_v0 = vmul.f32 %v11115_v43, %v13053_v17  ;;  %v4381_v9 = vmul.f32 %v11099_v13, %v13054_v2  ;;  %v4050_v62 = vadd.s32 1, %v13062_v55  ;;  %v4392_v1 = vmul.f32 %v11045_v61, %v11036_v29  ;;  %v11251_v17 = vpop.permute.xlu1 %4284  ;;  %v11260_v2 = vpop.permute.xlu0 %3971 }
 0xd23   : > { %v4040_v41 = vmul.f32 %v7561_v57, %v13061_v24  ;;  %5253 = vmatpush.msrb.mxu0 %v13063_v27  ;;  %v13064_v8 = vsub.f32 1.0, %v13041_v28  ;;  %vm4011_vm3 = vcmp.eq.s32.totalorder %v12958_v50, %v13055_v19  ;;  %v4054_v23 = vadd.s32 1, %v13065_v33  ;;  %13067 = vst [vmem:[#allocation172_spill] sm:$0xff] %v11251_v17  ;;  %v13070_v57 = vld [vmem:[#allocation66_spill] sm:$0xff] }
 0xd24   : > { %v4394_v43 = vmul.f32 %v11102_v38, %v11092_v10  ;;  %v7572_v13 = vsel %vm4059_vm14, 1.0, %v12971_v58  ;;  %v4393_v61 = vmul.f32 %v11117_v12, %v11002_v31  ;;  %v11255_v25 = vadd.f32 %v4383_v0, %v4343_v39  ;;  %v13071_v39 = vld [vmem:[#allocation197_spill] sm:$0xff] }
 0xd25   : > { %v4044_v34 = vmul.f32 %v7565_v37, %v13064_v8  ;;  %6116 = vperm.xlu1 %7991, %v13004_v11   ;;  %v11253_v28 = vadd.f32 %v4080_v4, %v4040_v41  ;;  %vm4010_vm0 = vcmp.eq.s32.totalorder %v12958_v50, %v13062_v55  ;;  %v4035_v38 = vsub.f32 1.0, %v13068_v18 }
 0xd26   : > { %v4389_v7 = vadd.f32 %v4381_v9, %v4341_v20  ;;  %v7564_v12 = vsel %vm4011_vm3, 1.0, %v12971_v58  ;;  %vm4014_vm2 = vcmp.eq.s32.totalorder %v12958_v50, %v13065_v33  ;;  %vm4058_vm13 = vcmp.eq.s32.totalorder %v12958_v50, %v4050_v62  ;;  %5916 = vperm.xlu0 %8013, %v13070_v57  }
 0xd27   : > { %6685 = vperm.xlu2 %7994, %v13069_v3   ;;  %v11263_v46 = vadd.f32 %v4084_v52, %v4044_v34  ;;  %v4400_v35 = vsel %vm2349_vm5, %v4392_v1, 0.0  ;;  %vm4062_vm1 = vcmp.eq.s32.totalorder %v12958_v50, %v4054_v23  ;;  %v4414_v48 = vsel %vm2349_vm5, %v4394_v43, 0.0  ;;  %v13073_v1 = vld [vmem:[#allocation145_spill] sm:$0xff]  ;;  %v13075_v3 = vld [vmem:[#allocation147_spill] sm:$0xff] }
 0xd28   : > { %v4396_v6 = vmul.f32 %v4388_v26, %v11251_v17  ;;  %v4083_v42 = vmul.f32 %v7572_v13, %v13068_v18  ;;  %v7563_v19 = vsel %vm4010_vm0, 1.0, %v12971_v58  ;;  %v5642_v37 = vadd.s32 1, %v13071_v39  ;;  %v13072_v26 = vld [vmem:[#allocation210_spill] sm:$0xff]  ;;  %v11294_v33 = vpop.permute.xlu2 %3964  ;;  %v13074_v18 = vld [vmem:[#allocation148_spill] sm:$0xff] }
 0xd29   : > { %v4407_v4 = vsel %vm2349_vm5, %v4393_v61, 0.0  ;;  %v4395_v24 = vmul.f32 %v4387_v59, %v11022_v32  ;;  %v4043_v41 = vmul.f32 %v7564_v12, %v4035_v38  ;;  %v11283_v20 = vsel %vm4014_vm2, 1.0, %v12971_v58 }
 0xd2a   : > { %v7571_v52 = vsel %vm4058_vm13, 1.0, %v12971_v58  ;;  %v4401_v0 = vrot.slane %v4400_v35, 4  ;;  %v11287_v9 = vsel %vm4062_vm1, 1.0, %v12971_v58  ;;  %vm5602_vm14 = vcmp.eq.s32.totalorder %v12958_v50, %v13071_v39  ;;  %v11312_v36 = vpop.permute.xlu0 %3992 }
 0xd2b   : > { %v5626_v55 = vsub.f32 1.0, %v13072_v26  ;;  %v4415_v62 = vrot.slane %v4414_v48, 4  ;;  %v4034_v8 = vsub.f32 1.0, %v13073_v1  ;;  %v4408_v34 = vrot.slane %v4407_v4, 4 }
 0xd2c   : > { %v4428_v59 = vsel %vm2349_vm5, %v4396_v6, 0.0  ;;  %v11296_v23 = vadd.f32 %v4083_v42, %v4043_v41  ;;  %v4082_v43 = vmul.f32 %v7571_v52, %v13073_v1  ;;  %vm5650_vm3 = vcmp.eq.s32.totalorder %v12958_v50, %v5642_v37 }
 0xd2d   : > { %7995 = vset.pattern.permute.xlu1 %v13021_v40  ;;  %v4421_v13 = vsel %vm2349_vm5, %v4395_v24, 0.0  ;;  %v4397_v61 = vmul.f32 %v4389_v7, %v11245_v45  ;;  %v4039_v38 = vsub.f32 1.0, %v13074_v18  ;;  %v4053_v12 = vadd.s32 1, %v13075_v3  ;;  %v13076_v45 = vld [vmem:[#allocation133_spill] sm:$0xff] }
 0xd2e   : > { %v7650_v6 = vsel %vm5602_vm14, 1.0, %v12971_v58  ;;  %v4402_v39 = vadd.f32 %v4401_v0, %v4400_v35  ;;  %vm4013_vm0 = vcmp.eq.s32.totalorder %v12958_v50, %v13075_v3  ;;  %v4416_v41 = vadd.f32 %v4415_v62, %v4414_v48  ;;  %5934 = vperm.xlu0 %8013, %v13076_v45   ;;  %v13077_v35 = vld [vmem:[#allocation149_spill] sm:$0xff] }
 0xd2f   : > { %7996 = vset.pattern.permute.xlu2 %v12973_v53  ;;  %v5634_v42 = vmul.f32 %v7650_v6, %v5626_v55  ;;  %v4429_v52 = vrot.slane %v4428_v59, 4  ;;  %v7658_v37 = vsel %vm5650_vm3, 1.0, %v12971_v58  ;;  %v4409_v24 = vadd.f32 %v4408_v34, %v4407_v4 }
 0xd30   : > { %v4422_v1 = vrot.slane %v4421_v13, 4  ;;  %v4398_v7 = vmul.f32 %v11211_v30, %v11165_v63  ;;  %v4087_v53 = vmul.f32 %v11209_v15, %v13074_v18  ;;  %v4037_v0 = vsub.f32 1.0, %v13077_v35 }
 0xd31   : > { %v5674_v55 = vmul.f32 %v7658_v37, %v13072_v26  ;;  %v4435_v48 = vsel %vm2349_vm5, %v4397_v61, 0.0  ;;  %v4042_v62 = vmul.f32 %v7563_v19, %v4034_v8  ;;  %v4047_v4 = vmul.f32 %v11139_v14, %v4039_v38  ;;  %v13078_v61 = vld [vmem:[#allocation87_spill] sm:$0xff]  ;;  %v13079_v8 = vld [vmem:[#allocation194_spill] sm:$0xff] }
 0xd32   : > { %vm4061_vm2 = vcmp.eq.s32.totalorder %v12958_v50, %v4053_v12  ;;  %v4403_v34 = vrot.slane %v4402_v39, 2  ;;  %v7566_v30 = vsel %vm4013_vm0, 1.0, %v12971_v58  ;;  %v4417_v63 = vrot.slane %v4416_v41, 2 }
 0xd33   : > { %v5682_v6 = vadd.f32 %v5674_v55, %v5634_v42  ;;  %v4430_v15 = vadd.f32 %v4429_v52, %v4428_v59  ;;  %v4410_v18 = vrot.slane %v4409_v24, 2  ;;  %v4423_v17 = vadd.f32 %v4422_v1, %v4421_v13  ;;  %v13080_v42 = vld [vmem:[#allocation128_spill] sm:$0xff]  ;;  %v11336_v13 = vpop.permute.xlu2 %3978  ;;  %v11338_v1 = vpop.permute.xlu1 %3957 }
 0xd34   : > { %v4442_v26 = vsel %vm2349_vm5, %v4398_v7, 0.0  ;;  %v4436_v37 = vrot.slane %v4435_v48, 4  ;;  %v7574_v14 = vsel %vm4061_vm2, 1.0, %v12971_v58  ;;  %v4045_v19 = vmul.f32 %v7566_v30, %v4037_v0  ;;  %v13081_v7 = vld [vmem:[#allocation52_spill] sm:$0xff] }
 0xd35   : > { %6745 = vperm.xlu1 %7995, %v13078_v61   ;;  %v4789_v38 = vadd.s32 1, %v13079_v8  ;;  %v5690_v12 = vmul.f32 %v5682_v6, %v10631_v5  ;;  %v4085_v3 = vmul.f32 %v7574_v14, %v13077_v35  ;;  %v3415_v55 = vmul.f32 %v13080_v42, %v10711_v56  ;;  %v13082_v61 = vld [vmem:[#allocation152_spill] sm:$0xff]  ;;  %v13087_v56 = vld [vmem:[#allocation217_spill] sm:$0xff] }
 0xd36   : > { %v4404_v59 = vadd.f32 %v4403_v34, %v4402_v39  ;;  %v11334_v52 = vadd.f32 %v4082_v43, %v4042_v62  ;;  %v4038_v0 = vsub.f32 1.0, %v13082_v61  ;;  %v4443_v30 = vrot.slane %v4442_v26, 4  ;;  %v13083_v42 = vld [vmem:[#allocation36_spill] sm:$0xff]  ;;  %v11358_v34 = vpop.permute.xlu0 %4006 }
 0xd37   : > { %5546 = vperm.xlu2 %7996, %v13081_v7   ;;  %v4418_v27 = vadd.f32 %v4417_v63, %v4416_v41  ;;  %v4431_v32 = vrot.slane %v4430_v15, 2  ;;  %v4411_v5 = vadd.f32 %v4410_v18, %v4409_v24  ;;  %v4424_v6 = vrot.slane %v4423_v17, 2  ;;  %8026 = vset.pattern.permute.xlu0 %v13083_v42  ;;  %v13085_v41 = vld [vmem:[#allocation59_spill] sm:$0xff] }
 0xd38   : > { %v4437_v35 = vadd.f32 %v4436_v37, %v4435_v48  ;;  %v11342_v14 = vadd.f32 %v4087_v53, %v4047_v4  ;;  %v11347_v43 = vmul.f32 %v11287_v9, %v13082_v61  ;;  %vm4797_vm13 = vcmp.eq.s32.totalorder %v12958_v50, %v4789_v38  ;;  %v13086_v53 = vld [vmem:[#allocation51_spill] sm:$0xff] }
 0xd39   : > { %v5698_v39 = vsel %vm5114_vm8, %v5690_v12, 0.0  ;;  %v11351_v62 = vadd.f32 %v4085_v3, %v4045_v19  ;;  %vm13084_vm1 = vcmask 123904   ;;  %v3413_v24 = vmul.f32 %v13085_v41, %v10726_v49 }
 0xd3a   : > { %v3435_v63 = vsel %vm13084_vm1, %v3415_v55, 0.0  ;;  %v3414_v48 = vmul.f32 %v13086_v53, %v10832_v47  ;;  %v4405_v4 = vrot.slane %v4404_v59, 1  ;;  %v4046_v9 = vmul.f32 %v11283_v20, %v4038_v0  ;;  %vm13088_vm3 = vmmov %vm13084_vm1 }
 0xd3b   : > { %v4444_v18 = vadd.f32 %v4443_v30, %v4442_v26  ;;  %v4419_v37 = vrot.slane %v4418_v27, 1  ;;  %v4432_v61 = vadd.f32 %v4431_v32, %v4430_v15  ;;  %v4773_v12 = vsub.f32 1.0, %v13087_v56  ;;  %v13089_v32 = vld [vmem:[#allocation64_spill] sm:$0xff]  ;;  %vm13090_vm0 = vmmov %vm13084_vm1  ;;  %v11378_v44 = vpop.permute.xlu2 %3985 }
 0xd3c   : > { %v4412_v19 = vrot.slane %v4411_v5, 1  ;;  %v4425_v3 = vadd.f32 %v4424_v6, %v4423_v17  ;;  %v4438_v16 = vrot.slane %v4437_v35, 2  ;;  %vm4749_vm14 = vcmp.eq.s32.totalorder %v12958_v50, %v13079_v8  ;;  %vm13094_vm2 = vmmov %vm13090_vm0 }
 0xd3d   : > { %7997 = vset.pattern.permute.xlu1 %v12912_v60  ;;  %v7612_v55 = vsel %vm4797_vm13, 1.0, %v12971_v58  ;;  %v5699_v41 = vrot.slane %v5698_v39, 4  ;;  %v3436_v53 = vrot.slane %v3435_v63, 4  ;;  %v3421_v20 = vsel %vm13088_vm3, %v3413_v24, 0.0  ;;  %vm13102_vm3 = vmmov %vm13090_vm0 }
 0xd3e   : > { %v3416_v15 = vmul.f32 %v13089_v32, %v10764_v21  ;;  %v3428_v26 = vsel %vm13090_vm0, %v3414_v48, 0.0  ;;  %v4406_v17 = vadd.f32 %v4405_v4, %v4404_v59  ;;  %v11373_v0 = vpop.permute.xlu1 %4302  ;;  %v4445_v30 = vrot.slane %v4444_v18, 2  ;;  %v13092_v32 = vld [vmem:[#allocation113_spill] sm:$0xff] }
 0xd3f   : > { %8000 = vset.pattern.permute.xlu2 %v13021_v40  ;;  %13091 = vst [vmem:[#allocation168_spill] sm:$0xff] %v11373_v0  ;;  %v4420_v8 = vadd.f32 %v4419_v37, %v4418_v27  ;;  %v4433_v6 = vrot.slane %v4432_v61, 1  ;;  %v4399_v38 = vmul.f32 %v11255_v25, %v11373_v0  ;;  %v7604_v49 = vsel %vm4749_vm14, 1.0, %v12971_v58  ;;  %6491 = vperm.xlu0 %8026, %v13092_v32   ;;  %v11384_v25 = vpop.permute.xlu0 %6182  ;;  %v13095_v32 = vld [vmem:[#allocation53_spill] sm:$0xff]  ;;  %vm13100_vm14 = vmmov %vm13090_vm0 }
 0xd40   : > { %v4413_v47 = vadd.f32 %v4412_v19, %v4411_v5  ;;  %v4426_v24 = vrot.slane %v4425_v3, 1  ;;  %v4439_v10 = vadd.f32 %v4438_v16, %v4437_v35  ;;  %v4821_v59 = vmul.f32 %v7612_v55, %v13087_v56  ;;  %13093 = vst [vmem:[#allocation171_spill] sm:$0xff] %v11384_v25 }
 0xd41   : > { %v3437_v48 = vadd.f32 %v3436_v53, %v3435_v63  ;;  %v3422_v4 = vrot.slane %v3421_v20, 4  ;;  %v4449_v21 = vsel %vm2349_vm5, %v4399_v38, 0.0  ;;  %v5700_v27 = vadd.f32 %v5699_v41, %v5698_v39  ;;  %v13096_v41 = vld [vmem:[#allocation203_spill] sm:$0xff]  ;;  %vm13098_vm5 = vmmov %vm13090_vm0 }
 0xd42   : > { %v3429_v37 = vrot.slane %v3428_v26, 4  ;;  %v4464_v42 = vsel %vm2414_vm6, %v4413_v47, %v4406_v17  ;;  %v4450_v0 = vrot.slane %v4449_v21, 4  ;;  %v3442_v5 = vsel %vm13094_vm2, %v3416_v15, 0.0  ;;  %v13097_v15 = vld [vmem:[#allocation86_spill] sm:$0xff] }
 0xd43   : > { %v4446_v16 = vadd.f32 %v4445_v30, %v4444_v18  ;;  %v4465_v35 = vsel %vm2416_vm7, %v4420_v8, %v4464_v42  ;;  %v4434_v19 = vadd.f32 %v4433_v6, %v4432_v61  ;;  %v3417_v56 = vmul.f32 %v13095_v32, %v10887_v54 }
 0xd44   : > { %v4427_v63 = vadd.f32 %v4426_v24, %v4425_v3  ;;  %v4440_v55 = vrot.slane %v4439_v10, 1  ;;  %v4451_v53 = vadd.f32 %v4450_v0, %v4449_v21  ;;  %v4781_v39 = vmul.f32 %v7604_v49, %v4773_v12 }
 0xd45   : > { %6122 = vperm.xlu1 %7997, %v13043_v51   ;;  %v5643_v47 = vadd.s32 1, %v13096_v41  ;;  %v3438_v17 = vrot.slane %v3437_v48, 2  ;;  %v3423_v38 = vadd.f32 %v3422_v4, %v3421_v20  ;;  %v3430_v25 = vadd.f32 %v3429_v37, %v3428_v26  ;;  %v11400_v26 = vpop.permute.xlu2 %3323 }
 0xd46   : > { %v4452_v29 = vrot.slane %v4451_v53, 2  ;;  %v4466_v42 = vsel %vm2418_vm9, %v4427_v63, %v4465_v35  ;;  %v11395_v18 = vadd.f32 %v11347_v43, %v4046_v9  ;;  %v4829_v61 = vadd.f32 %v4821_v59, %v4781_v39  ;;  %v13099_v59 = vld [vmem:[#allocation68_spill] sm:$0xff] }
 0xd47   : > { %6691 = vperm.xlu2 %8000, %v13097_v15   ;;  %v3443_v3 = vrot.slane %v3442_v5, 4  ;;  %v4447_v30 = vrot.slane %v4446_v16, 1  ;;  %v4467_v21 = vsel %vm2420_vm10, %v4434_v19, %v4466_v42  ;;  %v5701_v51 = vrot.slane %v5700_v27, 2  ;;  %6497 = vperm.xlu0 %8026, %v13070_v57   ;;  %v11407_v24 = vpop.permute.xlu0 %5570  ;;  %v13103_v15 = vld [vmem:[#allocation61_spill] sm:$0xff] }
 0xd48   : > { %v3449_v49 = vsel %vm13098_vm5, %v3417_v56, 0.0  ;;  %v4441_v12 = vadd.f32 %v4440_v55, %v4439_v10  ;;  %v4453_v20 = vadd.f32 %v4452_v29, %v4451_v53  ;;  %vm5603_vm13 = vcmp.eq.s32.totalorder %v12958_v50, %v13096_v41  ;;  %v13101_v53 = vld [vmem:[#allocation33_spill] sm:$0xff]  ;;  %vm13107_vm5 = vmmov %vm13094_vm2 }
 0xd49   : > { %v3439_v0 = vadd.f32 %v3438_v17, %v3437_v48  ;;  %v3424_v43 = vrot.slane %v3423_v38, 2  ;;  %vm5651_vm1 = vcmp.eq.s32.totalorder %v12958_v50, %v5643_v47  ;;  %v3431_v9 = vrot.slane %v3430_v25, 2  ;;  %v13105_v42 = vld [vmem:[#allocation93_spill] sm:$0xff] }
 0xd4a   : > { %v4096_v8 = vmul.f32 %v11253_v28, %v11338_v1  ;;  %v4454_v6 = vrot.slane %v4453_v20, 1  ;;  %v4468_v10 = vsel %vm2422_vm11, %v4441_v12, %v4467_v21  ;;  %v3444_v57 = vadd.f32 %v3443_v3, %v3442_v5  ;;  %v13106_v21 = vld [vmem:[#allocation60_spill] sm:$0xff] }
 0xd4b   : > { %v3450_v29 = vrot.slane %v3449_v49, 4  ;;  %v4448_v32 = vadd.f32 %v4447_v30, %v4446_v16  ;;  %v3420_v4 = vmul.f32 %v13099_v59, %v11400_v26  ;;  %v7651_v48 = vsel %vm5603_vm13, 1.0, %v12971_v58  ;;  %vm13108_vm13 = vmmov %vm13094_vm2 }
 0xd4c   : > { %v11413_v37 = vadd.f32 %v5701_v51, %v5700_v27  ;;  %v4097_v35 = vmul.f32 %v11220_v22, %v11294_v33  ;;  %v4455_v19 = vadd.f32 %v4454_v6, %v4453_v20  ;;  %v3440_v28 = vrot.slane %v3439_v0, 1 }
 0xd4d   : > { %8001 = vset.pattern.permute.xlu1 %v13021_v40  ;;  %v4098_v56 = vmul.f32 %v11334_v52, %v11260_v2  ;;  %v7659_v5 = vsel %vm5651_vm1, 1.0, %v12971_v58  ;;  %v4469_v16 = vsel %vm2424_vm12, %v4448_v32, %v4468_v10  ;;  %v3425_v63 = vadd.f32 %v3424_v43, %v3423_v38  ;;  %vm13109_vm1 = vmmov %vm13094_vm2 }
 0xd4e   : > { %v3432_v55 = vadd.f32 %v3431_v9, %v3430_v25  ;;  %v4104_v27 = vsel %vm13100_vm14, %v4096_v8, 0.0  ;;  %v11426_v22 = vpop.permute.xlu1 %3309  ;;  %v4470_v39 = vsel %vm2426_vm15, %v4455_v19, %v4469_v16  ;;  %v3445_v41 = vrot.slane %v3444_v57, 2 }
 0xd4f   : > { %8003 = vset.pattern.permute.xlu2 %v13101_v53  ;;  %v3451_v17 = vadd.f32 %v3450_v29, %v3449_v49  ;;  %v3470_v52 = vsel %vm13102_vm3, %v3420_v4, 0.0  ;;  %v3418_v47 = vmul.f32 %v13103_v15, %v11426_v22  ;;  %vm13104_vm0 = vcmask 64512   ;;  %6443 = vperm.xlu0 %8026, %v13106_v21   ;;  %v5517_v8 = vpop.permute.xlu0 %5516  ;;  %vm13114_vm3 = vmmov %vm13109_vm1 }
 0xd50   : > { %7593 = vmatmul.msk.f32.vlgmr.msrb.gmra.mxu2 %vm13104_vm0, %v4470_v39  ;;  %v11434_v38 = vmul.f32 %v4829_v61, %v13105_v42  ;;  %v4111_v3 = vsel %vm13094_vm2, %v4097_v35, 0.0  ;;  %v4099_v30 = vmul.f32 %v11296_v23, %v11336_v13  ;;  %v11441_v51 = vadd.f32 %v3440_v28, %v3439_v0  ;;  %v13110_v0 = vld [vmem:[#allocation43_spill] sm:$0xff]  ;;  %vm13116_vm0 = vmmov %vm13109_vm1 }
 0xd51   : > { %v4118_v49 = vsel %vm13107_vm5, %v4098_v56, 0.0  ;;  %v4105_v12 = vrot.slane %v4104_v27, 4  ;;  %v3456_v20 = vsel %vm13108_vm13, %v3418_v47, 0.0  ;;  %v3426_v43 = vrot.slane %v3425_v63, 1  ;;  %vm13117_vm2 = vmmov %vm13116_vm0 }
 0xd52   : > { %v3433_v9 = vrot.slane %v3432_v55, 1  ;;  %v3471_v61 = vrot.slane %v3470_v52, 4  ;;  %v3457_v6 = vrot.slane %v3456_v20, 4  ;;  %v3446_v10 = vadd.f32 %v3445_v41, %v3444_v57  ;;  %v13111_v41 = vld [vmem:[#allocation48_spill] sm:$0xff]  ;;  %vm13118_vm5 = vmmov %vm13116_vm0 }
 0xd53   : > { %v3452_v29 = vrot.slane %v3451_v17, 2  ;;  %v4112_v32 = vrot.slane %v4111_v3, 4  ;;  %v5627_v59 = vsub.f32 1.0, %v5517_v8  ;;  %v4119_v4 = vrot.slane %v4118_v49, 4  ;;  %vm13121_vm13 = vmmov %vm13116_vm0 }
 0xd54   : > { %v4125_v23 = vsel %vm13109_vm1, %v4099_v30, 0.0  ;;  %v3458_v35 = vadd.f32 %v3457_v6, %v3456_v20  ;;  %vm5192_vm14 = vcmask 48128   ;;  %v4106_v19 = vadd.f32 %v4105_v12, %v4104_v27  ;;  %v13112_v6 = vld [vmem:[#allocation65_spill] sm:$0xff]  ;;  %v13113_v27 = vld [vmem:[#allocation199_spill] sm:$0xff] }
 0xd55   : > { %6751 = vperm.xlu1 %8001, %v13110_v0   ;;  %v4100_v28 = vmul.f32 %v11263_v46, %v11378_v44  ;;  %v5635_v56 = vmul.f32 %v7651_v48, %v5627_v59  ;;  %v5675_v16 = vmul.f32 %v7659_v5, %v5517_v8  ;;  %v3427_v39 = vadd.f32 %v3426_v43, %v3425_v63 }
 0xd56   : > { %v3434_v15 = vadd.f32 %v3433_v9, %v3432_v55  ;;  %v3472_v47 = vadd.f32 %v3471_v61, %v3470_v52  ;;  %v3459_v57 = vrot.slane %v3458_v35, 2  ;;  %v3453_v25 = vadd.f32 %v3452_v29, %v3451_v17  ;;  %v13115_v52 = vld [vmem:[#allocation85_spill] sm:$0xff] }
 0xd57   : > { %5892 = vperm.xlu2 %8003, %v13111_v41   ;;  %v11450_v42 = vpop.permute.xlu1 %3316  ;;  %v4113_v30 = vadd.f32 %v4112_v32, %v4111_v3  ;;  %v5683_v20 = vadd.f32 %v5675_v16, %v5635_v56  ;;  %v4120_v46 = vadd.f32 %v4119_v4, %v4118_v49  ;;  %v4101_v48 = vmul.f32 %v11351_v62, %v11312_v36 }
 0xd58   : > { %v3419_v0 = vmul.f32 %v13112_v6, %v11450_v42  ;;  %7631 = vmatmul.msk.f32.vlgmr.msra.gmra.mxu2 %vm5192_vm14, %v13113_v27  ;;  %v4103_v5 = vmul.f32 %v11342_v14, %v11358_v34  ;;  %v4126_v63 = vrot.slane %v4125_v23, 4  ;;  %6515 = vperm.xlu0 %8026, %v13076_v45   ;;  %v4107_v55 = vrot.slane %v4106_v19, 2 }
 0xd59   : > { %v4132_v17 = vsel %vm13114_vm3, %v4100_v28, 0.0  ;;  %v5691_v3 = vmul.f32 %v5683_v20, %v13115_v52  ;;  %v3447_v43 = vrot.slane %v3446_v10, 1  ;;  %v3473_v9 = vrot.slane %v3472_v47, 2 }
 0xd5a   : > { %v3463_v12 = vsel %vm13116_vm0, %v3419_v0, 0.0  ;;  %v3460_v61 = vadd.f32 %v3459_v57, %v3458_v35  ;;  %v3821_v8 = vsel %vm2414_vm6, %v3434_v15, %v3427_v39  ;;  %v3454_v62 = vrot.slane %v3453_v25, 1 }
 0xd5b   : > { %v3464_v49 = vrot.slane %v3463_v12, 4  ;;  %v4114_v29 = vrot.slane %v4113_v30, 2  ;;  %v5705_v14 = vsel %vm5114_vm8, %v5691_v3, 0.0  ;;  %v4139_v32 = vsel %vm13117_vm2, %v4101_v48, 0.0 }
 0xd5c   : > { %v4133_v45 = vrot.slane %v4132_v17, 4  ;;  %v5706_v59 = vrot.slane %v5705_v14, 4  ;;  %v4121_v28 = vrot.slane %v4120_v46, 2  ;;  %v4153_v56 = vsel %vm13118_vm5, %v4103_v5, 0.0  ;;  %v11474_v5 = vpop.permute.xlu0 %5534 }
 0xd5d   : > { %v3465_v4 = vadd.f32 %v3464_v49, %v3463_v12  ;;  %8004 = vset.pattern.permute.xlu1 %v13101_v53  ;;  %v4127_v16 = vadd.f32 %v4126_v63, %v4125_v23  ;;  %v4108_v20 = vadd.f32 %v4107_v55, %v4106_v19  ;;  %v3474_v35 = vadd.f32 %v3473_v9, %v3472_v47  ;;  %v11472_v49 = vpop.permute.xlu2 %6170 }
 0xd5e   : > { %v5707_v57 = vadd.f32 %v5706_v59, %v5705_v14  ;;  %v3461_v6 = vrot.slane %v3460_v61, 1  ;;  %v3448_v15 = vadd.f32 %v3447_v43, %v3446_v10  ;;  %v3822_v0 = vsel %vm2416_vm7, %v11441_v51, %v3821_v8 }
 0xd5f   : > { %v3466_v39 = vrot.slane %v3465_v4, 2  ;;  %8005 = vset.pattern.permute.xlu2 %v12912_v60  ;;  %v4140_v27 = vrot.slane %v4139_v32, 4  ;;  %v4115_v48 = vadd.f32 %v4114_v29, %v4113_v30  ;;  %v3455_v52 = vadd.f32 %v3454_v62, %v3453_v25 }
 0xd60   : > { %v4134_v3 = vadd.f32 %v4133_v45, %v4132_v17  ;;  %v5708_v12 = vrot.slane %v5707_v57, 2  ;;  %8030 = vset.pattern.permute.xlu0 %v13021_v40  ;;  %v4122_v19 = vadd.f32 %v4121_v28, %v4120_v46  ;;  %v4154_v47 = vrot.slane %v4153_v56, 4  ;;  %v13120_v46 = vld [vmem:[#allocation97_spill] sm:$0xff] }
 0xd61   : > { %v3467_v23 = vadd.f32 %v3466_v39, %v3465_v4  ;;  %v4128_v63 = vrot.slane %v4127_v16, 2  ;;  %v4109_v55 = vrot.slane %v4108_v20, 1  ;;  %v3475_v10 = vrot.slane %v3474_v35, 1 }
 0xd62   : > { %v5709_v43 = vadd.f32 %v5708_v12, %v5707_v57  ;;  %v3462_v9 = vadd.f32 %v3461_v6, %v3460_v61  ;;  %v4888_v25 = vsel %vm4838_vm4, %v11434_v38, 0.0  ;;  %v13119_v30 = vrot.slane %v11413_v37, 1 }
 0xd63   : > { %v3468_v51 = vrot.slane %v3467_v23, 1  ;;  %v4141_v8 = vadd.f32 %v4140_v27, %v4139_v32  ;;  %v4116_v62 = vrot.slane %v4115_v48, 1  ;;  %v4135_v29 = vrot.slane %v4134_v3, 2 }
 0xd64   : > { %v5704_v17 = vadd.f32 %v13119_v30, %v11413_v37  ;;  %v5710_v14 = vrot.slane %v5709_v43, 1  ;;  %v3823_v59 = vsel %vm2418_vm9, %v3448_v15, %v3822_v0  ;;  %v4123_v4 = vrot.slane %v4122_v19, 1 }
 0xd65   : > { %v3469_v45 = vadd.f32 %v3468_v51, %v3467_v23  ;;  %5898 = vperm.xlu1 %8004, %v13120_v46   ;;  %v4129_v28 = vadd.f32 %v4128_v63, %v4127_v16  ;;  %v4110_v61 = vadd.f32 %v4109_v55, %v4108_v20  ;;  %v3824_v57 = vsel %vm2420_vm10, %v3455_v52, %v3823_v59  ;;  %v5553_v55 = vpop.permute.xlu0 %5552  ;;  %v13124_v59 = vld [vmem:[#allocation216_spill] sm:$0xff] }
 0xd66   : > { %v4155_v6 = vadd.f32 %v4154_v47, %v4153_v56  ;;  %v3476_v38 = vadd.f32 %v3475_v10, %v3474_v35  ;;  %v5711_v39 = vadd.f32 %v5710_v14, %v5709_v43  ;;  %v3825_v32 = vsel %vm2422_vm11, %v3462_v9, %v3824_v57  ;;  %v11495_v56 = vpop.permute.xlu2 %6739  ;;  %v13123_v43 = vld [vmem:[#allocation221_spill] sm:$0xff] }
 0xd67   : > { %6128 = vperm.xlu2 %8005, %v13081_v7   ;;  %v11486_v37 = vpop.permute.xlu1 %3999  ;;  %v4142_v27 = vrot.slane %v4141_v8, 2  ;;  %v4117_v12 = vadd.f32 %v4116_v62, %v4115_v48  ;;  %v3826_v15 = vsel %vm2424_vm12, %v3469_v45, %v3825_v32  ;;  %v4136_v16 = vadd.f32 %v4135_v29, %v4134_v3 }
 0xd68   : > { %v4102_v23 = vmul.f32 %v11395_v18, %v11486_v37  ;;  %v11493_v20 = vsel %vm2414_vm6, %v5711_v39, %v5704_v17  ;;  %v3827_v35 = vsel %vm2426_vm15, %v3476_v38, %v3826_v15  ;;  %v4889_v0 = vrot.slane %v4888_v25, 4 }
 0xd69   : > { %v4130_v52 = vrot.slane %v4129_v28, 1  ;;  %v4504_v47 = vsel %vm2414_vm6, %v4117_v12, %v4110_v61  ;;  %vm13122_vm1 = vcmask 130048   ;;  %v4124_v48 = vadd.f32 %v4123_v4, %v4122_v19 }
 0xd6a   : > { %v4146_v63 = vsel %vm13121_vm13, %v4102_v23, 0.0  ;;  %7560 = vmatmul.msk.f32.vlgmr.msrb.gmra.mxu1 %vm13122_vm1, %v3827_v35  ;;  %v4156_v18 = vrot.slane %v4155_v6, 2  ;;  %v4143_v3 = vadd.f32 %v4142_v27, %v4141_v8  ;;  %v6806_v9 = vadd.s32 1, %v13123_v43 }
 0xd6b   : > { %v4147_v10 = vrot.slane %v4146_v63, 4  ;;  %v4505_v51 = vsel %vm2416_vm7, %v4124_v48, %v4504_v47  ;;  %v4137_v30 = vrot.slane %v4136_v16, 1  ;;  %v4890_v62 = vadd.f32 %v4889_v0, %v4888_v25 }
 0xd6c   : > { %v4131_v29 = vadd.f32 %v4130_v52, %v4129_v28  ;;  %v4157_v14 = vadd.f32 %v4156_v18, %v4155_v6  ;;  %vm6765_vm3 = vcmp.eq.s32.totalorder %v12958_v50, %v13124_v59  ;;  %v6805_v19 = vadd.s32 1, %v13124_v59  ;;  %v13127_v59 = vld [vmem:[#allocation165_spill] sm:$0xff] }
 0xd6d   : > { %v4148_v17 = vadd.f32 %v4147_v10, %v4146_v63  ;;  %8006 = vset.pattern.permute.xlu1 %v13021_v40  ;;  %v4144_v8 = vrot.slane %v4143_v3, 1  ;;  %vm6766_vm0 = vcmp.eq.s32.totalorder %v12958_v50, %v13123_v43  ;;  %v4138_v61 = vadd.f32 %v4137_v30, %v4136_v16 }
 0xd6e   : > { %v4506_v4 = vsel %vm2418_vm9, %v4131_v29, %v4505_v51  ;;  %vm6814_vm2 = vcmp.eq.s32.totalorder %v12958_v50, %v6806_v9  ;;  %v4891_v28 = vrot.slane %v4890_v62, 2  ;;  %v5633_v6 = vsub.f32 1.0, %v5553_v55 }
 0xd6f   : > { %v4149_v45 = vrot.slane %v4148_v17, 2  ;;  %8007 = vset.pattern.permute.xlu2 %v13101_v53  ;;  %v4158_v39 = vrot.slane %v4157_v14, 1  ;;  %v4507_v23 = vsel %vm2420_vm10, %v4138_v61, %v4506_v4  ;;  %v4145_v15 = vadd.f32 %v4144_v8, %v4143_v3 }
 0xd70   : > { %v6680_v27 = vpop.permute.xlu0 %6679  ;;  %v7723_v16 = vsel %vm6766_vm0, 1.0, %v12971_v58  ;;  %v7731_v47 = vsel %vm6814_vm2, 1.0, %v12971_v58  ;;  %v4892_v51 = vadd.f32 %v4891_v28, %v4890_v62  ;;  %vm6813_vm1 = vcmp.eq.s32.totalorder %v12958_v50, %v6805_v19 }
 0xd71   : > { %v4150_v57 = vadd.f32 %v4149_v45, %v4148_v17  ;;  %v5601_v25 = vpop.permute.xlu2 %5600  ;;  %v6790_v35 = vsub.f32 1.0, %v6680_v27  ;;  %v6838_v18 = vmul.f32 %v7731_v47, %v6680_v27  ;;  %v4508_v3 = vsel %vm2422_vm11, %v4145_v15, %v4507_v23  ;;  %v13125_v17 = vld [vmem:[#allocation99_spill] sm:$0xff] }
 0xd72   : > { %vm5609_vm5 = vcmp.eq.s32.totalorder %v12958_v50, %v5601_v25  ;;  %v5649_v38 = vadd.s32 1, %v5601_v25  ;;  %v4159_v30 = vadd.f32 %v4158_v39, %v4157_v14  ;;  %v7730_v14 = vsel %vm6813_vm1, 1.0, %v12971_v58  ;;  %v13128_v39 = vld [vmem:[#allocation36_spill] sm:$0xff] }
 0xd73   : > { %v4151_v32 = vrot.slane %v4150_v57, 1  ;;  %v7657_v12 = vsel %vm5609_vm5, 1.0, %v12971_v58  ;;  %v6798_v48 = vmul.f32 %v7723_v16, %v6790_v35  ;;  %vm13126_vm0 = vcmask 130048   ;;  %v13130_v16 = vld [vmem:[#allocation108_spill] sm:$0xff] }
 0xd74   : > { %v5641_v0 = vmul.f32 %v7657_v12, %v5633_v6  ;;  %vm5657_vm13 = vcmp.eq.s32.totalorder %v12958_v50, %v5649_v38  ;;  %v4893_v19 = vrot.slane %v4892_v51, 1  ;;  %v13129_v12 = vld [vmem:[#allocation154_spill] sm:$0xff]  ;;  %v5644_v35 = vadd.s32 1, %v11407_v24 }
 0xd75   : > { %v4152_v52 = vadd.f32 %v4151_v32, %v4150_v57  ;;  %v7665_v63 = vsel %vm5657_vm13, 1.0, %v12971_v58  ;;  %6697 = vperm.xlu1 %8006, %v13004_v11   ;;  %v6846_v9 = vadd.f32 %v6838_v18, %v6798_v48  ;;  %v7722_v11 = vsel %vm6765_vm3, 1.0, %v12971_v58  ;;  %v13131_v48 = vld [vmem:[#allocation207_spill] sm:$0xff] }
 0xd76   : > { %v5681_v10 = vmul.f32 %v7665_v63, %v5553_v55  ;;  %v4894_v32 = vadd.f32 %v4893_v19, %v4892_v51  ;;  %vm5233_vm3 = vcmask 97280   ;;  %vm5652_vm2 = vcmp.eq.s32.totalorder %v12958_v50, %v5644_v35  ;;  %v13132_v51 = vld [vmem:[#allocation215_spill] sm:$0xff] }
 0xd77   : > { %5904 = vperm.xlu2 %8007, %v13125_v17   ;;  %v6674_v43 = vpop.permute.xlu1 %6673  ;;  %v4509_v29 = vsel %vm2424_vm12, %v4152_v52, %v4508_v3  ;;  %v6854_v62 = vmul.f32 %v6846_v9, %v11002_v31  ;;  %vm5604_vm5 = vcmp.eq.s32.totalorder %v12958_v50, %v11407_v24  ;;  %v5645_v18 = vadd.s32 1, %v13131_v48 }
 0xd78   : > { %v11529_v45 = vadd.f32 %v5681_v10, %v5641_v0  ;;  %v6789_v8 = vsub.f32 1.0, %v6674_v43  ;;  %v4510_v55 = vsel %vm2426_vm15, %v4159_v30, %v4509_v29  ;;  %v6837_v61 = vmul.f32 %v7730_v14, %v6674_v43  ;;  %v13133_v43 = vld [vmem:[#allocation219_spill] sm:$0xff] }
 0xd79   : > { %7594 = vmatmul.msk.f32.vlgmr.msra.gmra.mxu0 %vm13126_vm0, %v4510_v55  ;;  %v6868_v57 = vsel %vm5114_vm8, %v6854_v62, 0.0  ;;  %v5232_v23 = vsel %vm2426_vm15, %v4894_v32, %v13129_v12  ;;  %v7660_v10 = vsel %vm5652_vm2, 1.0, %v12971_v58  ;;  %vm5605_vm13 = vcmp.eq.s32.totalorder %v12958_v50, %v13131_v48  ;;  %v13135_v12 = vld [vmem:[#allocation100_spill] sm:$0xff]  ;;  %v13138_v48 = vld [vmem:[#allocation101_spill] sm:$0xff] }
 0xd7a   : > { %v6797_v4 = vmul.f32 %v7722_v11, %v6789_v8  ;;  %v6869_v25 = vrot.slane %v6868_v57, 4  ;;  %v5646_v30 = vadd.s32 1, %v13132_v51  ;;  %v5629_v29 = vsub.f32 1.0, %v13133_v43  ;;  %v13134_v11 = vld [vmem:[#allocation211_spill] sm:$0xff] }
 0xd7b   : > { %v7652_v9 = vsel %vm5604_vm5, 1.0, %v12971_v58  ;;  %v5628_v55 = vsub.f32 1.0, %v13134_v11  ;;  %v5676_v24 = vmul.f32 %v7660_v10, %v13134_v11  ;;  %vm5606_vm1 = vcmp.eq.s32.totalorder %v12958_v50, %v13132_v51 }
 0xd7c   : > { %v6845_v28 = vadd.f32 %v6837_v61, %v6797_v4  ;;  %v6870_v6 = vadd.f32 %v6869_v25, %v6868_v57  ;;  %vm5653_vm0 = vcmp.eq.s32.totalorder %v12958_v50, %v5645_v18  ;;  %v5630_v62 = vsub.f32 1.0, %v11474_v5 }
 0xd7d   : > { %8008 = vset.pattern.permute.xlu1 %v12912_v60  ;;  %v7653_v4 = vsel %vm5605_vm13, 1.0, %v12971_v58  ;;  %v5636_v19 = vmul.f32 %v7652_v9, %v5628_v55  ;;  %vm5654_vm2 = vcmp.eq.s32.totalorder %v12958_v50, %v5646_v30  ;;  %v7654_v57 = vsel %vm5606_vm1, 1.0, %v12971_v58 }
 0xd7e   : > { %v6853_v38 = vmul.f32 %v6845_v28, %v13127_v59  ;;  %v6871_v31 = vrot.slane %v6870_v6, 2  ;;  %v5637_v61 = vmul.f32 %v7653_v4, %v5629_v29  ;;  %v7661_v25 = vsel %vm5653_vm0, 1.0, %v12971_v58 }
 0xd7f   : > { %8009 = vset.pattern.permute.xlu2 %v13128_v39  ;;  %v5684_v28 = vadd.f32 %v5676_v24, %v5636_v19  ;;  %v5677_v59 = vmul.f32 %v7661_v25, %v13133_v43  ;;  %v7662_v32 = vsel %vm5654_vm2, 1.0, %v12971_v58  ;;  %v6808_v10 = vadd.s32 1, %v11495_v56 }
 0xd80   : > { %v6861_v27 = vsel %vm5114_vm8, %v6853_v38, 0.0  ;;  %v6872_v0 = vadd.f32 %v6871_v31, %v6870_v6  ;;  %v5638_v38 = vmul.f32 %v7654_v57, %v5630_v62  ;;  %vm6768_vm13 = vcmp.eq.s32.totalorder %v12958_v50, %v11495_v56  ;;  %v13140_v56 = vld [vmem:[#allocation113_spill] sm:$0xff] }
 0xd81   : > { %v6862_v15 = vrot.slane %v6861_v27, 4  ;;  %7633 = vmatmul.msk.f32.vlgmr.msrb.gmra.mxu0 %vm5233_vm3, %v5232_v23  ;;  %v11575_v6 = vpop.permute.xlu2 %6685  ;;  %v5685_v31 = vadd.f32 %v5677_v59, %v5637_v61  ;;  %v5692_v23 = vmul.f32 %v5684_v28, %v13135_v12  ;;  %vm6816_vm5 = vcmp.eq.s32.totalorder %v12958_v50, %v6808_v10  ;;  %v13139_v61 = vld [vmem:[#allocation110_spill] sm:$0xff] }
 0xd82   : > { %v6873_v47 = vrot.slane %v6872_v0, 1  ;;  %v7733_v9 = vsel %vm6816_vm5, 1.0, %v12971_v58  ;;  %v7725_v55 = vsel %vm6768_vm13, 1.0, %v12971_v58  ;;  %vm6189_vm0 = vcmp.eq.s32.totalorder %v12958_v50, %v11472_v49 }
 0xd83   : > { %v6863_v60 = vadd.f32 %v6862_v15, %v6861_v27  ;;  %v5678_v27 = vmul.f32 %v7662_v32, %v11474_v5  ;;  %v13136_v15 = vld [vmem:[#allocation98_spill] sm:$0xff] }
 0xd84   : > { %v5693_v35 = vmul.f32 %v5685_v31, %v13136_v15  ;;  %v6229_v15 = vadd.s32 1, %v11472_v49 }
 0xd85   : > { %6134 = vperm.xlu1 %8008, %v13130_v16   ;;  %v6864_v52 = vrot.slane %v6863_v60, 2 }
 0xd86   : > { %vm6237_vm1 = vcmp.eq.s32.totalorder %v12958_v50, %v6229_v15 }
 0xd87   : > { %6473 = vperm.xlu2 %8009, %v13111_v41   ;;  %v6865_v63 = vadd.f32 %v6864_v52, %v6863_v60  ;;  %v6874_v41 = vadd.f32 %v6873_v47, %v6872_v0  ;;  %v5686_v0 = vadd.f32 %v5678_v27, %v5638_v38  ;;  %v13137_v60 = vld [vmem:[#allocation103_spill] sm:$0xff]  ;;  %v5712_v52 = vsel %vm5114_vm8, %v5692_v23, 0.0  ;;  %v11593_v51 = vpop.permute.xlu1 %5540 }
 0xd88   : > { %v5713_v5 = vrot.slane %v5712_v52, 4 }
 0xd89   : > { %v6866_v3 = vrot.slane %v6865_v63, 1  ;;  %v5694_v18 = vmul.f32 %v5686_v0, %v13138_v48 }
 0xd8a   : > { %v5714_v30 = vadd.f32 %v5713_v5, %v5712_v52 }
 0xd8b   : > { %v6867_v8 = vadd.f32 %v6866_v3, %v6865_v63  ;;  %v5719_v63 = vsel %vm5114_vm8, %v5693_v35, 0.0 }
 0xd8c   : > { %v5720_v3 = vrot.slane %v5719_v63, 4  ;;  %v5715_v24 = vrot.slane %v5714_v30, 2 }
 0xd8d   : > { %8010 = vset.pattern.permute.xlu1 %v13128_v39  ;;  %v11568_v14 = vsel %vm2414_vm6, %v6874_v41, %v6867_v8 }
 0xd8e   : > { %v5721_v43 = vadd.f32 %v5720_v3, %v5719_v63  ;;  %v5716_v28 = vadd.f32 %v5715_v24, %v5714_v30  ;;  %v7691_v3 = vsel %vm6189_vm0, 1.0, %v12971_v58  ;;  %v13141_v30 = vld [vmem:[#allocation163_spill] sm:$0xff] }
 0xd8f   : > { %8011 = vset.pattern.permute.xlu2 %v13021_v40  ;;  %vm6190_vm13 = vcmp.eq.s32.totalorder %v12958_v50, %v13141_v30 }
 0xd90   : > { %v5722_v4 = vrot.slane %v5721_v43, 2  ;;  %v5717_v32 = vrot.slane %v5716_v28, 1 }
 0xd91   : > { %v11585_v47 = vpop.permute.xlu2 %5546 }
 0xd92   : > { %v5723_v59 = vadd.f32 %v5722_v4, %v5721_v43  ;;  %v5718_v23 = vadd.f32 %v5717_v32, %v5716_v28  ;;  %v6230_v43 = vadd.s32 1, %v13141_v30  ;;  %v7692_v4 = vsel %vm6190_vm13, 1.0, %v12971_v58  ;;  %v13143_v28 = vld [vmem:[#allocation224_spill] sm:$0xff] }
 0xd93   : > { %vm5607_vm0 = vcmp.eq.s32.totalorder %v12958_v50, %v13143_v28  ;;  %v5632_v30 = vsub.f32 1.0, %v11585_v47 }
 0xd94   : > { %v5724_v31 = vrot.slane %v5723_v59, 1  ;;  %vm6238_vm5 = vcmp.eq.s32.totalorder %v12958_v50, %v6230_v43 }
 0xd95   : > { %6479 = vperm.xlu1 %8010, %v13120_v46   ;;  %v5726_v46 = vsel %vm5114_vm8, %v5694_v18, 0.0  ;;  %v7699_v18 = vsel %vm6237_vm1, 1.0, %v12971_v58 }
 0xd96   : > { %v5727_v29 = vrot.slane %v5726_v46, 4  ;;  %v5725_v35 = vadd.f32 %v5724_v31, %v5723_v59  ;;  %v5647_v59 = vadd.s32 1, %v13143_v28  ;;  %v13144_v31 = vld [vmem:[#allocation116_spill] sm:$0xff] }
 0xd97   : > { %6763 = vperm.xlu2 %8011, %v13137_v60   ;;  %v11603_v25 = vpop.permute.xlu1 %6116  ;;  %v5763_v60 = vsel %vm2416_vm7, %v5718_v23, %v11493_v20  ;;  %v5631_v23 = vsub.f32 1.0, %v11593_v51 }
 0xd98   : > { %v5728_v19 = vadd.f32 %v5727_v29, %v5726_v46  ;;  %v5764_v52 = vsel %vm2418_vm9, %v5725_v35, %v5763_v60  ;;  %v13142_v29 = vld [vmem:[#allocation227_spill] sm:$0xff]  ;;  %v7655_v35 = vsel %vm5607_vm0, 1.0, %v12971_v58 }
 0xd99   : > { %vm6767_vm2 = vcmp.eq.s32.totalorder %v12958_v50, %v13142_v29 }
 0xd9a   : > { %v5729_v38 = vrot.slane %v5728_v19, 2 }
 0xd9c   : > { %v5730_v27 = vadd.f32 %v5729_v38, %v5728_v19  ;;  %v11642_v19 = vpop.permute.xlu0 %6757 }
 0xd9d   : > { %8012 = vset.pattern.permute.xlu1 %v13101_v53 }
 0xd9e   : > { %v5731_v0 = vrot.slane %v5730_v27, 1 }
 0xd9f   : > { %8014 = vset.pattern.permute.xlu2 %v13101_v53 }
 0xda0   : > { %v5732_v63 = vadd.f32 %v5731_v0, %v5730_v27  ;;  %v13145_v0 = vld [vmem:[#allocation213_spill] sm:$0xff] }
 0xda1   : > { %v6692_v41 = vpop.permute.xlu2 %6691 }
 0xda2   : > { %v6792_v8 = vsub.f32 1.0, %v6692_v41  ;;  %v6840_v11 = vmul.f32 %v7733_v9, %v6692_v41  ;;  %v11624_v46 = vsel %vm2420_vm10, %v5732_v63, %v5764_v52  ;;  %v6807_v9 = vadd.s32 1, %v13142_v29  ;;  %v13148_v29 = vld [vmem:[#allocation222_spill] sm:$0xff] }
 0xda3   : > { %v7724_v41 = vsel %vm6767_vm2, 1.0, %v12971_v58  ;;  %vm5655_vm2 = vcmp.eq.s32.totalorder %v12958_v50, %v5647_v59 }
 0xda4   : > { %v6800_v62 = vmul.f32 %v7725_v55, %v6792_v8  ;;  %vm6815_vm1 = vcmp.eq.s32.totalorder %v12958_v50, %v6807_v9  ;;  %v7663_v52 = vsel %vm5655_vm2, 1.0, %v12971_v58  ;;  %v6228_v9 = vadd.s32 1, %v13148_v29 }
 0xda5   : > { %5844 = vperm.xlu1 %8012, %v13139_v61   ;;  %v5679_v63 = vmul.f32 %v7663_v52, %v11593_v51  ;;  %v13147_v51 = vld [vmem:[#allocation96_spill] sm:$0xff] }
 0xda6   : > { %v11601_v57 = vadd.f32 %v6840_v11, %v6800_v62  ;;  %v7700_v11 = vsel %vm6238_vm5, 1.0, %v12971_v58  ;;  %vm6236_vm0 = vcmp.eq.s32.totalorder %v12958_v50, %v6228_v9 }
 0xda7   : > { %5910 = vperm.xlu2 %8014, %v13140_v56   ;;  %v11607_v12 = vpop.permute.xlu1 %6745  ;;  %v7732_v56 = vsel %vm6815_vm1, 1.0, %v12971_v58  ;;  %vm6188_vm1 = vcmp.eq.s32.totalorder %v12958_v50, %v13148_v29  ;;  %v11698_v29 = vpop.f32.mrf.mxu1 }
 0xda8   : > { %v6839_v38 = vmul.f32 %v7732_v56, %v11575_v6 }
 0xdad   : > { %8015 = vset.pattern.permute.xlu1 %v13128_v39 }
 0xdaf   : > { %8016 = vset.pattern.permute.xlu2 %v13021_v40 }
 0xdb1   : > { %v11621_v20 = vpop.permute.xlu2 %5892 }
 0xdb5   : > { %6485 = vperm.xlu1 %8015, %v13125_v17  }
 0xdb7   : > { %6709 = vperm.xlu2 %8016, %v13081_v7   ;;  %v6123_v48 = vpop.permute.xlu1 %6122  ;;  %v6791_v7 = vsub.f32 1.0, %v11575_v6  ;;  %v5639_v6 = vmul.f32 %v7655_v35, %v5631_v23 }
 0xdb8   : > { %v6213_v10 = vsub.f32 1.0, %v6123_v48  ;;  %v6261_v5 = vmul.f32 %v7699_v18, %v6123_v48  ;;  %v11659_v48 = vpop.permute.xlu0 %6703  ;;  %v13146_v18 = vld [vmem:[#allocation225_spill] sm:$0xff] }
 0xdb9   : > { %v6799_v55 = vmul.f32 %v7724_v41, %v6791_v7  ;;  %vm5608_vm5 = vcmp.eq.s32.totalorder %v12958_v50, %v13146_v18 }
 0xdba   : > { %v6221_v17 = vmul.f32 %v7691_v3, %v6213_v10  ;;  %v5648_v10 = vadd.s32 1, %v13146_v18  ;;  %v7656_v7 = vsel %vm5608_vm5, 1.0, %v12971_v58 }
 0xdbb   : > { %v6847_v27 = vadd.f32 %v6839_v38, %v6799_v55  ;;  %v5640_v41 = vmul.f32 %v7656_v7, %v5632_v30 }
 0xdbc   : > { %v11628_v49 = vadd.f32 %v6261_v5, %v6221_v17  ;;  %vm5656_vm13 = vcmp.eq.s32.totalorder %v12958_v50, %v5648_v10  ;;  %v13151_v10 = vld [vmem:[#allocation151_spill] sm:$0xff] }
 0xdbd   : > { %8017 = vset.pattern.permute.xlu1 %v13101_v53  ;;  %v6855_v60 = vmul.f32 %v6847_v27, %v13145_v0  ;;  %v7664_v55 = vsel %vm5656_vm13, 1.0, %v12971_v58 }
 0xdbf   : > { %8018 = vset.pattern.permute.xlu2 %v13128_v39  ;;  %v6875_v5 = vsel %vm5114_vm8, %v6855_v60, 0.0  ;;  %v7698_v60 = vsel %vm6236_vm0, 1.0, %v12971_v58 }
 0xdc0   : > { %v6876_v43 = vrot.slane %v6875_v5, 4 }
 0xdc1   : > { %v6129_v8 = vpop.permute.xlu2 %6128 }
 0xdc2   : > { %v6214_v24 = vsub.f32 1.0, %v6129_v8  ;;  %v6262_v62 = vmul.f32 %v7700_v11, %v6129_v8  ;;  %v6877_v8 = vadd.f32 %v6876_v43, %v6875_v5  ;;  %v5851_v11 = vpop.permute.xlu0 %5850  ;;  %v5697_v5 = vmul.f32 %v11529_v45, %v13151_v10  ;;  %v11694_v43 = vpop.f32.mrf.mxu0 }
 0xdc3   : > { %v5961_v28 = vsub.f32 1.0, %v5851_v11 }
 0xdc4   : > { %v6222_v32 = vmul.f32 %v7692_v4, %v6214_v24  ;;  %v6212_v4 = vsub.f32 1.0, %v11603_v25  ;;  %v6878_v27 = vrot.slane %v6877_v8, 2  ;;  %v5747_v7 = vsel %vm5114_vm8, %v5697_v5, 0.0 }
 0xdc5   : > { %5856 = vperm.xlu1 %8017, %v13144_v31  }
 0xdc6   : > { %v11651_v15 = vadd.f32 %v6262_v62, %v6222_v32  ;;  %v5680_v62 = vmul.f32 %v7664_v55, %v11585_v47  ;;  %v7690_v32 = vsel %vm6188_vm1, 1.0, %v12971_v58  ;;  %vm6769_vm1 = vcmp.eq.s32.totalorder %v12958_v50, %v11607_v12 }
 0xdc7   : > { %6425 = vperm.xlu2 %8018, %v13139_v61   ;;  %v5687_v61 = vadd.f32 %v5679_v63, %v5639_v6  ;;  %v11664_v3 = vpop.permute.xlu1 %6751  ;;  %v6220_v0 = vmul.f32 %v7690_v32, %v6212_v4  ;;  %v13150_v6 = vld [vmem:[#allocation164_spill] sm:$0xff]  ;;  %v6260_v63 = vmul.f32 %v7698_v60, %v11603_v25  ;;  %v6809_v25 = vadd.s32 1, %v11607_v12 }
 0xdc8   : > { %v5688_v59 = vadd.f32 %v5680_v62, %v5640_v41 }
 0xdc9   : > { %v5695_v17 = vmul.f32 %v5687_v61, %v13147_v51  ;;  %v6879_v61 = vadd.f32 %v6878_v27, %v6877_v8  ;;  %v6268_v51 = vadd.f32 %v6260_v63, %v6220_v0  ;;  %v13152_v8 = vld [vmem:[#allocation209_spill] sm:$0xff]  ;;  %vm6817_vm13 = vcmp.eq.s32.totalorder %v12958_v50, %v6809_v25  ;;  %v13155_v25 = vld [vmem:[#allocation62_spill] sm:$0xff] }
 0xdca   : > { %v5696_v52 = vmul.f32 %v5688_v59, %v13150_v6  ;;  %v13153_v59 = vld [vmem:[#allocation125_spill] sm:$0xff]  ;;  %v7734_v32 = vsel %vm6817_vm13, 1.0, %v12971_v58  ;;  %vm6771_vm13 = vcmp.eq.s32.totalorder %v12958_v50, %v11642_v19 }
 0xdcb   : > { %v5733_v24 = vsel %vm5114_vm8, %v5695_v17, 0.0  ;;  %v6880_v45 = vrot.slane %v6879_v61, 1 }
 0xdcc   : > { %v5734_v23 = vrot.slane %v5733_v24, 4  ;;  %v5740_v9 = vsel %vm5114_vm8, %v5696_v52, 0.0  ;;  %v13154_v52 = vld [vmem:[#allocation158_spill] sm:$0xff] }
 0xdcd   : > { %8019 = vset.pattern.permute.xlu1 %v13128_v39  ;;  %v5741_v55 = vrot.slane %v5740_v9, 4  ;;  %v6856_v12 = vmul.f32 %v11601_v57, %v13154_v52 }
 0xdce   : > { %v5735_v30 = vadd.f32 %v5734_v23, %v5733_v24  ;;  %v6881_v24 = vadd.f32 %v6880_v45, %v6879_v61 }
 0xdcf   : > { %8020 = vset.pattern.permute.xlu2 %v13021_v40  ;;  %v13149_v40 = vld [vmem:[#allocation102_spill] sm:$0xff] }
 0xdd0   : > { %v5736_v41 = vrot.slane %v5735_v30, 2  ;;  %v6926_v6 = vsel %vm2416_vm7, %v6881_v24, %v11568_v14  ;;  %v13156_v14 = vld [vmem:[#allocation171_spill] sm:$0xff] }
 0xdd2   : > { %v5737_v62 = vadd.f32 %v5736_v41, %v5735_v30 }
 0xdd4   : > { %v5738_v60 = vrot.slane %v5737_v62, 1 }
 0xdd5   : > { %6431 = vperm.xlu1 %8019, %v13149_v40   ;;  %v5748_v40 = vrot.slane %v5747_v7, 4 }
 0xdd6   : > { %v5739_v61 = vadd.f32 %v5738_v60, %v5737_v62 }
 0xdd7   : > { %6715 = vperm.xlu2 %8020, %v13130_v16   ;;  %v5899_v56 = vpop.permute.xlu1 %5898  ;;  %v5749_v23 = vadd.f32 %v5748_v40, %v5747_v7  ;;  %v6231_v7 = vadd.s32 1, %v13156_v14 }
 0xdd8   : > { %vm5937_vm2 = vcmp.eq.s32.totalorder %v12958_v50, %v5899_v56  ;;  %v5977_v38 = vadd.s32 1, %v5899_v56  ;;  %v3810_v56 = vpop.f32.mrf.mxu0 }
 0xdd9   : > { %v7671_v35 = vsel %vm5937_vm2, 1.0, %v12971_v58  ;;  %v5750_v10 = vrot.slane %v5749_v23, 2  ;;  %vm6239_vm0 = vcmp.eq.s32.totalorder %v12958_v50, %v6231_v7  ;;  %vm6191_vm2 = vcmp.eq.s32.totalorder %v12958_v50, %v13156_v14  ;;  %v13161_v7 = vld [vmem:[#allocation136_spill] sm:$0xff] }
 0xdda   : > { %v5969_v47 = vmul.f32 %v7671_v35, %v5961_v28  ;;  %vm5985_vm5 = vcmp.eq.s32.totalorder %v12958_v50, %v5977_v38  ;;  %v5742_v28 = vadd.f32 %v5741_v55, %v5740_v9  ;;  %v13157_v55 = vld [vmem:[#allocation231_spill] sm:$0xff] }
 0xddb   : > { %v7679_v16 = vsel %vm5985_vm5, 1.0, %v12971_v58  ;;  %v5751_v45 = vadd.f32 %v5750_v10, %v5749_v23  ;;  %v7693_v23 = vsel %vm6191_vm2, 1.0, %v12971_v58 }
 0xddc   : > { %v6009_v18 = vmul.f32 %v7679_v16, %v5851_v11  ;;  %v6276_v11 = vmul.f32 %v6268_v51, %v13152_v8  ;;  %v6882_v51 = vsel %vm5114_vm8, %v6856_v12, 0.0  ;;  %v11724_v8 = vpop.permute.xlu2 %5904 }
 0xddd   : > { %8021 = vset.pattern.permute.xlu1 %v13101_v53  ;;  %v6883_v41 = vrot.slane %v6882_v51, 4  ;;  %v5752_v24 = vrot.slane %v5751_v45, 1 }
 0xdde   : > { %v11696_v17 = vadd.f32 %v6009_v18, %v5969_v47  ;;  %v6308_v4 = vsel %vm5114_vm8, %v6276_v11, 0.0  ;;  %v5743_v18 = vrot.slane %v5742_v28, 2  ;;  %v5766_v11 = vsel %vm2422_vm11, %v5739_v61, %v11624_v46  ;;  %v13159_v61 = vld [vmem:[#allocation156_spill] sm:$0xff] }
 0xddf   : > { %8022 = vset.pattern.permute.xlu2 %v13101_v53  ;;  %v6309_v16 = vrot.slane %v6308_v4, 4 }
 0xde0   : > { %v5744_v9 = vadd.f32 %v5743_v18, %v5742_v28  ;;  %v7701_v28 = vsel %vm6239_vm0, 1.0, %v12971_v58  ;;  %vm5936_vm0 = vcmp.eq.s32.totalorder %v12958_v50, %v11621_v20 }
 0xde1   : > { %v6310_v30 = vadd.f32 %v6309_v16, %v6308_v4  ;;  %v6884_v4 = vadd.f32 %v6883_v41, %v6882_v51  ;;  %v13158_v16 = vld [vmem:[#allocation232_spill] sm:$0xff]  ;;  %v13160_v51 = vld [vmem:[#allocation157_spill] sm:$0xff] }
 0xde2   : > { %v5745_v40 = vrot.slane %v5744_v9, 1 }
 0xde3   : > { %v6311_v57 = vrot.slane %v6310_v30, 2 }
 0xde4   : > { %v5746_v46 = vadd.f32 %v5745_v40, %v5744_v9  ;;  %v6277_v9 = vmul.f32 %v11628_v49, %v13160_v51  ;;  %v13162_v40 = vld [vmem:[#allocation92_spill] sm:$0xff] }
 0xde5   : > { %5862 = vperm.xlu1 %8021, %v13106_v21   ;;  %v7726_v21 = vsel %vm6769_vm1, 1.0, %v12971_v58  ;;  %v6312_v62 = vadd.f32 %v6311_v57, %v6310_v30  ;;  %v6278_v49 = vmul.f32 %v11651_v15, %v13162_v40 }
 0xde7   : > { %5922 = vperm.xlu2 %8022, %v13153_v59   ;;  %v3853_v38 = vpop.f32.mrf.mxu1  ;;  %v6698_v27 = vpop.permute.xlu1 %6697 }
 0xde8   : > { %v3854_v35 = vadd.f32 %v3853_v38, %v3810_v56  ;;  %v6793_v0 = vsub.f32 1.0, %v6698_v27  ;;  %v6841_v47 = vmul.f32 %v7734_v32, %v6698_v27  ;;  %v5753_v27 = vadd.f32 %v5752_v24, %v5751_v45 }
 0xde9   : > { %v6315_v45 = vsel %vm5114_vm8, %v6277_v9, 0.0  ;;  %v7670_v9 = vsel %vm5936_vm0, 1.0, %v12971_v58 }
 0xdea   : > { %v6801_v63 = vmul.f32 %v7726_v21, %v6793_v0  ;;  %4544 = vrot.lane.b32.xlu0 %v3854_v35, %s8200_s16  ;;  %v6313_v35 = vrot.slane %v6312_v62, 1  ;;  %v6885_v0 = vrot.slane %v6884_v4, 2 }
 0xdec   : > { %v11718_v5 = vadd.f32 %v6841_v47, %v6801_v63  ;;  %v11737_v47 = vpop.permute.xlu2 %6473  ;;  %v6314_v12 = vadd.f32 %v6313_v35, %v6312_v62  ;;  %v6886_v63 = vadd.f32 %v6885_v0, %v6884_v4  ;;  %v13163_v62 = vld [vmem:[#allocation139_spill] sm:$0xff] }
 0xded   : > { %8023 = vset.pattern.permute.xlu1 %v13128_v39 }
 0xdee   : > { %v6887_v18 = vrot.slane %v6886_v63, 1  ;;  %v6347_v30 = vsel %vm2420_vm10, %v6314_v12, %v13159_v61  ;;  %v13165_v12 = vld [vmem:[#allocation71_spill] sm:$0xff] }
 0xdef   : > { %5868 = vperm.xlu2 %8022, %v13155_v25  }
 0xdf0   : > { %v6888_v14 = vadd.f32 %v6887_v18, %v6886_v63 }
 0xdf2   : > { %5811 = vrot.lane.b32.xlu0 %v13157_v55, %s8194_s3  ;;  %v11763_v41 = vsel %vm2418_vm9, %v6888_v14, %v6926_v6  ;;  %v5976_v6 = vadd.s32 1, %v11621_v20 }
 0xdf4   : > { %v11749_v10 = vpop.permute.xlu2 %6763  ;;  %vm5984_vm1 = vcmp.eq.s32.totalorder %v12958_v50, %v5976_v6 }
 0xdf5   : > { %6437 = vperm.xlu1 %8023, %v13144_v31   ;;  %v5767_v31 = vsel %vm2424_vm12, %v5746_v46, %v5766_v11  ;;  %v6811_v11 = vadd.s32 1, %v11642_v19  ;;  %v7678_v18 = vsel %vm5984_vm1, 1.0, %v12971_v58  ;;  %vm6770_vm1 = vcmp.eq.s32.totalorder %v12958_v50, %v11664_v3 }
 0xdf6   : > { %v11743_v21 = vsel %vm2426_vm15, %v5753_v27, %v5767_v31 }
 0xdf7   : > { %8025 = vset.pattern.permute.xlu2 %v13128_v39  ;;  %v6135_v56 = vpop.permute.xlu1 %6134  ;;  %vm6819_vm5 = vcmp.eq.s32.totalorder %v12958_v50, %v6811_v11 }
 0xdf8   : > { %v6215_v38 = vsub.f32 1.0, %v6135_v56  ;;  %v6263_v32 = vmul.f32 %v7701_v28, %v6135_v56  ;;  %v13164_v56 = vld [vmem:[#allocation204_spill] sm:$0xff] }
 0xdf9   : > { %v6025_v28 = vmul.f32 %v11696_v17, %v13164_v56 }
 0xdfa   : > { %v6223_v60 = vmul.f32 %v7693_v23, %v6215_v38  ;;  %6932 = vrot.lane.b32.xlu0 %v13158_v16, %s8197_s8  ;;  %v7736_v38 = vsel %vm6819_vm5, 1.0, %v12971_v58  ;;  %v7728_v23 = vsel %vm6771_vm13, 1.0, %v12971_v58  ;;  %vm6517_vm5 = vcmp.eq.s32.totalorder %v12958_v50, %v11737_v47 }
 0xdfc   : > { %v11745_v52 = vadd.f32 %v6263_v32, %v6223_v60 }
 0xdfd   : > { %8024 = vset.pattern.permute.xlu1 %v13101_v53 }
 0xdff   : > { %6503 = vperm.xlu2 %8025, %v13153_v59   ;;  %v6316_v59 = vrot.slane %v6315_v45, 4 }
 0xe01   : > { %v11760_v57 = vpop.permute.xlu2 %5910  ;;  %v6317_v24 = vadd.f32 %v6316_v59, %v6315_v45  ;;  %v6557_v45 = vadd.s32 1, %v11737_v47 }
 0xe02   : > { %6392 = vrot.lane.b32.xlu0 %v13157_v55, %s8195_s5 }
 0xe03   : > { %v6318_v15 = vrot.slane %v6317_v24, 2  ;;  %vm6565_vm2 = vcmp.eq.s32.totalorder %v12958_v50, %v6557_v45 }
 0xe05   : > { %5928 = vperm.xlu1 %8024, %v13161_v7   ;;  %v6319_v19 = vadd.f32 %v6318_v15, %v6317_v24  ;;  %v13166_v24 = vld [vmem:[#allocation191_spill] sm:$0xff] }
 0xe07   : > { %6449 = vperm.xlu2 %8025, %v13155_v25   ;;  %v11770_v4 = vpop.permute.xlu1 %6479  ;;  %v6322_v25 = vsel %vm5114_vm8, %v6278_v49, 0.0  ;;  %v6320_v14 = vrot.slane %v6319_v19, 1 }
 0xe08   : > { %v6323_v35 = vrot.slane %v6322_v25, 4 }
 0xe09   : > { %v6321_v49 = vadd.f32 %v6320_v14, %v6319_v19  ;;  %v7706_v19 = vsel %vm6517_vm5, 1.0, %v12971_v58 }
 0xe0a   : > { %v6324_v31 = vadd.f32 %v6323_v35, %v6322_v25 }
 0xe0c   : > { %v6325_v11 = vrot.slane %v6324_v31, 2 }
 0xe0d   : > { %5874 = vperm.xlu1 %8024, %v13163_v62  }
 0xe0e   : > { %v6326_v25 = vadd.f32 %v6325_v11, %v6324_v31 }
 0xe0f   : > { %8028 = vset.pattern.permute.xlu2 %v13101_v53  ;;  %v6039_v53 = vsel %vm4838_vm4, %v6025_v28, 0.0  ;;  %v13167_v28 = vld [vmem:[#allocation73_spill] sm:$0xff] }
 0xe10   : > { %v6040_v60 = vrot.slane %v6039_v53, 4 }
 0xe11   : > { %v6710_v46 = vpop.permute.xlu2 %6709 }
 0xe12   : > { %v6795_v32 = vsub.f32 1.0, %v6710_v46  ;;  %v6843_v27 = vmul.f32 %v7736_v38, %v6710_v46  ;;  %v6041_v40 = vadd.f32 %v6040_v60, %v6039_v53  ;;  %v7714_v38 = vsel %vm6565_vm2, 1.0, %v12971_v58  ;;  %v11803_v60 = vpop.f32.mrf.mxu2 }
 0xe13   : > { %v6327_v53 = vrot.slane %v6326_v25, 1  ;;  %vm6772_vm2 = vcmp.eq.s32.totalorder %v12958_v50, %v11749_v10 }
 0xe14   : > { %v6803_v0 = vmul.f32 %v7728_v23, %v6795_v32  ;;  %v6042_v56 = vrot.slane %v6041_v40, 2 }
 0xe15   : > { %8027 = vset.pattern.permute.xlu1 %v13128_v39 }
 0xe16   : > { %v11786_v17 = vadd.f32 %v6843_v27, %v6803_v0  ;;  %v6348_v27 = vsel %vm2422_vm11, %v6321_v49, %v6347_v30  ;;  %v6043_v0 = vadd.f32 %v6042_v56, %v6041_v40  ;;  %v6794_v49 = vsub.f32 1.0, %v11659_v48 }
 0xe17   : > { %5880 = vperm.xlu2 %8028, %v13165_v12   ;;  %v5845_v63 = vpop.permute.xlu1 %5844 }
 0xe18   : > { %v5960_v61 = vsub.f32 1.0, %v5845_v63  ;;  %v6008_v51 = vmul.f32 %v7678_v18, %v5845_v63 }
 0xe1a   : > { %v5968_v59 = vmul.f32 %v7670_v9, %v5960_v61  ;;  %v6044_v61 = vrot.slane %v6043_v0, 1  ;;  %v3170_v40 = vpop.f32.mrf.mxu2 }
 0xe1c   : > { %v6016_v20 = vadd.f32 %v6008_v51, %v5968_v59  ;;  %v6328_v51 = vadd.f32 %v6327_v53, %v6326_v25  ;;  %v6812_v59 = vadd.s32 1, %v11749_v10  ;;  %v5978_v25 = vadd.s32 1, %v11724_v8  ;;  %v13169_v53 = vld [vmem:[#allocation166_spill] sm:$0xff] }
 0xe1d   : > { %6509 = vperm.xlu1 %8027, %v13161_v7   ;;  %v6810_v7 = vadd.s32 1, %v11664_v3 }
 0xe1e   : > { %v6024_v6 = vmul.f32 %v6016_v20, %v13166_v24  ;;  %v11811_v14 = vsel %vm2424_vm12, %v6328_v51, %v6348_v27  ;;  %v7727_v20 = vsel %vm6770_vm1, 1.0, %v12971_v58  ;;  %vm6820_vm0 = vcmp.eq.s32.totalorder %v12958_v50, %v6812_v59 }
 0xe1f   : > { %5886 = vperm.xlu2 %8028, %v13167_v28   ;;  %vm6818_vm13 = vcmp.eq.s32.totalorder %v12958_v50, %v6810_v7  ;;  %v6802_v3 = vmul.f32 %v7727_v20, %v6794_v49  ;;  %v3171_v7 = vadd.f32 %v3170_v40, %v11698_v29  ;;  %vm5986_vm5 = vcmp.eq.s32.totalorder %v12958_v50, %v5978_v25 }
 0xe20   : > { %v6032_v15 = vsel %vm4838_vm4, %v6024_v6, 0.0  ;;  %v7735_v45 = vsel %vm6818_vm13, 1.0, %v12971_v58  ;;  %vm5938_vm13 = vcmp.eq.s32.totalorder %v12958_v50, %v11724_v8  ;;  %v6558_v40 = vadd.s32 1, %v11770_v4 }
 0xe21   : > { %v6033_v46 = vrot.slane %v6032_v15, 4  ;;  %v6426_v32 = vpop.permute.xlu2 %6425 }
 0xe22   : > { %v6541_v23 = vsub.f32 1.0, %v6426_v32  ;;  %v6589_v35 = vmul.f32 %v7714_v38, %v6426_v32  ;;  %vm6566_vm1 = vcmp.eq.s32.totalorder %v12958_v50, %v6558_v40 }
 0xe23   : > { %v6034_v31 = vadd.f32 %v6033_v46, %v6032_v15  ;;  %v13168_v46 = vld [vmem:[#allocation172_spill] sm:$0xff] }
 0xe24   : > { %v6549_v47 = vmul.f32 %v7706_v19, %v6541_v23  ;;  %v6857_v38 = vmul.f32 %v11718_v5, %v13168_v46  ;;  %v7729_v23 = vsel %vm6772_vm2, 1.0, %v12971_v58 }
 0xe25   : > { %v6035_v63 = vrot.slane %v6034_v31, 2  ;;  %6455 = vperm.xlu1 %8027, %v13163_v62   ;;  %v6045_v62 = vadd.f32 %v6044_v61, %v6043_v0 }
 0xe26   : > { %v6597_v18 = vadd.f32 %v6589_v35, %v6549_v47  ;;  %v6889_v5 = vsel %vm5114_vm8, %v6857_v38, 0.0 }
 0xe27   : > { %v6036_v30 = vadd.f32 %v6035_v63, %v6034_v31  ;;  %8029 = vset.pattern.permute.xlu2 %v13128_v39  ;;  %v6842_v39 = vmul.f32 %v7735_v45, %v11659_v48  ;;  %v11823_v6 = vpop.permute.xlu1 %6485  ;;  %v7737_v48 = vsel %vm6820_vm0, 1.0, %v12971_v58  ;;  %v7680_v31 = vsel %vm5986_vm5, 1.0, %v12971_v58 }
 0xe28   : > { %v6890_v51 = vrot.slane %v6889_v5, 4  ;;  %v6605_v20 = vmul.f32 %v6597_v18, %v11338_v1  ;;  %vm6518_vm0 = vcmp.eq.s32.totalorder %v12958_v50, %v11770_v4  ;;  %v7715_v1 = vsel %vm6566_vm1, 1.0, %v12971_v58 }
 0xe29   : > { %v6037_v9 = vrot.slane %v6036_v30, 1  ;;  %v6850_v56 = vadd.f32 %v6842_v39, %v6802_v3  ;;  %vm6519_vm1 = vcmp.eq.s32.totalorder %v12958_v50, %v11823_v6 }
 0xe2a   : > { %v6891_v8 = vadd.f32 %v6890_v51, %v6889_v5  ;;  %v6613_v3 = vsel %vm4838_vm4, %v6605_v20, 0.0 }
 0xe2b   : > { %v6038_v11 = vadd.f32 %v6037_v9, %v6036_v30  ;;  %v6858_v10 = vmul.f32 %v6850_v56, %v13169_v53  ;;  %v7672_v30 = vsel %vm5938_vm13, 1.0, %v12971_v58  ;;  %v13172_v56 = vld [vmem:[#allocation161_spill] sm:$0xff] }
 0xe2c   : > { %v6892_v49 = vrot.slane %v6891_v8, 2 }
 0xe2d   : > { %v11819_v24 = vsel %vm2414_vm6, %v6045_v62, %v6038_v11  ;;  %6461 = vperm.xlu1 %8027, %v13165_v12   ;;  %v4536_v12 = vpop.f32.mrf.mxu0  ;;  %v6896_v61 = vsel %vm5114_vm8, %v6858_v10, 0.0  ;;  %v13171_v62 = vld [vmem:[#allocation229_spill] sm:$0xff] }
 0xe2e   : > { %v6897_v45 = vrot.slane %v6896_v61, 4  ;;  %v6893_v25 = vadd.f32 %v6892_v49, %v6891_v8 }
 0xe2f   : > { %6467 = vperm.xlu2 %8029, %v13167_v28   ;;  %v4493_v28 = vpop.f32.mrf.mxu2 }
 0xe30   : > { %v4537_v0 = vadd.f32 %v4536_v12, %v4493_v28  ;;  %v6898_v11 = vadd.f32 %v6897_v45, %v6896_v61 }
 0xe31   : > { %v6716_v15 = vpop.permute.xlu2 %6715 }
 0xe32   : > { %v6796_v32 = vsub.f32 1.0, %v6716_v15  ;;  %v6844_v27 = vmul.f32 %v7737_v48, %v6716_v15  ;;  %v6899_v39 = vrot.slane %v6898_v11, 2  ;;  %v6279_v48 = vmul.f32 %v11745_v52, %v13172_v56 }
 0xe33   : > { %v6614_v15 = vrot.slane %v6613_v3, 4 }
 0xe34   : > { %v6804_v35 = vmul.f32 %v7729_v23, %v6796_v32  ;;  %v6900_v46 = vadd.f32 %v6899_v39, %v6898_v11  ;;  %v6894_v32 = vrot.slane %v6893_v25, 1  ;;  %v13173_v39 = vld [vmem:[#allocation162_spill] sm:$0xff] }
 0xe35   : > { %4540 = vrot.lane.b32.xlu1 %v3171_v7, %s8202_s22  ;;  %v6615_v52 = vadd.f32 %v6614_v15, %v6613_v3 }
 0xe36   : > { %v11840_v19 = vadd.f32 %v6844_v27, %v6804_v35  ;;  %v7707_v27 = vsel %vm6518_vm0, 1.0, %v12971_v58  ;;  %v6901_v23 = vrot.slane %v6900_v46, 1  ;;  %v6895_v4 = vadd.f32 %v6894_v32, %v6893_v25 }
 0xe37   : > { %4548 = vrot.lane.b32.xlu2 %v4537_v0, %s13170_s2  ;;  %v5857_v29 = vpop.permute.xlu1 %5856  ;;  %v6616_v10 = vrot.slane %v6615_v52, 2 }
 0xe38   : > { %v5962_v47 = vsub.f32 1.0, %v5857_v29  ;;  %v6010_v63 = vmul.f32 %v7680_v31, %v5857_v29  ;;  %v6902_v5 = vadd.f32 %v6901_v23, %v6900_v46 }
 0xe3a   : > { %v5970_v9 = vmul.f32 %v7672_v30, %v5962_v47  ;;  %v6928_v47 = vsel %vm2420_vm10, %v6895_v4, %v11763_v41  ;;  %v6617_v30 = vadd.f32 %v6616_v10, %v6615_v52  ;;  %v6859_v41 = vmul.f32 %v11786_v17, %v13173_v39 }
 0xe3b   : > { %v11876_v61 = vsel %vm2422_vm11, %v6902_v5, %v6928_v47  ;;  %v5979_v17 = vadd.s32 1, %v11760_v57 }
 0xe3c   : > { %v11846_v59 = vadd.f32 %v6010_v63, %v5970_v9  ;;  %v5917_v63 = vpop.permute.xlu0 %5916  ;;  %v6618_v8 = vrot.slane %v6617_v30, 1  ;;  %v6903_v15 = vsel %vm5114_vm8, %v6859_v41, 0.0 }
 0xe3d   : > { %5813 = vrot.lane.b32.xlu1 %v13171_v62, %s8194_s3  ;;  %vm5940_vm2 = vcmp.eq.s32.totalorder %v12958_v50, %v5917_v63  ;;  %vm5987_vm5 = vcmp.eq.s32.totalorder %v12958_v50, %v5979_v17 }
 0xe3e   : > { %v6619_v40 = vadd.f32 %v6618_v8, %v6617_v30 }
 0xe3f   : > { %5769 = vrot.lane.b32.xlu2 %v13158_v16, %s8194_s3  ;;  %s13189_s3 = sld [smem:[#allocation16_spill]] }
 0xe41   : > { %v11878_v51 = vpop.permute.xlu2 %5922 }
 0xe44   : > { %v11880_v49 = vpop.permute.xlu0 %5934 }
 0xe45   : > { %6351 = vrot.lane.b32.xlu1 %v13158_v16, %s8195_s5  ;;  %v6329_v16 = vsel %vm5114_vm8, %v6279_v48, 0.0 }
 0xe46   : > { %v6330_v35 = vrot.slane %v6329_v16, 4 }
 0xe47   : > { %6394 = vrot.lane.b32.xlu2 %v13171_v62, %s8195_s5  ;;  %v6432_v18 = vpop.permute.xlu1 %6431  ;;  %s13174_s5 = sld [smem:[#allocation15_spill]] }
 0xe48   : > { %v6542_v38 = vsub.f32 1.0, %v6432_v18  ;;  %v6590_v12 = vmul.f32 %v7715_v1, %v6432_v18  ;;  %v6331_v29 = vadd.f32 %v6330_v35, %v6329_v16  ;;  %v6904_v18 = vrot.slane %v6903_v15, 4 }
 0xe49   : > { %v5869_v25 = vpop.permute.xlu2 %5868  ;;  %v5980_v16 = vadd.s32 1, %v5917_v63 }
 0xe4a   : > { %v6550_v7 = vmul.f32 %v7707_v27, %v6542_v38  ;;  %v6332_v9 = vrot.slane %v6331_v29, 2  ;;  %v5964_v4 = vsub.f32 1.0, %v5869_v25 }
 0xe4b   : > { %vm5988_vm13 = vcmp.eq.s32.totalorder %v12958_v50, %v5980_v16 }
 0xe4c   : > { %v6598_v28 = vadd.f32 %v6590_v12, %v6550_v7  ;;  %v6492_v46 = vpop.permute.xlu0 %6491  ;;  %v6905_v12 = vadd.f32 %v6904_v18, %v6903_v15 }
 0xe4d   : > { %6975 = vrot.lane.b32.xlu1 %v13171_v62, %s8197_s8  ;;  %v6333_v62 = vadd.f32 %v6332_v9, %v6331_v29  ;;  %v7681_v29 = vsel %vm5987_vm5, 1.0, %v12971_v58  ;;  %v6560_v30 = vadd.s32 1, %v6492_v46  ;;  %v11922_v39 = vld [vmem:[%s13174_s5 + $0x10] sm:$0xff]  ;;  %v11936_v17 = vld [vmem:[%s13174_s5 + $0x8] sm:$0xff]  ;;  %vm5941_vm5 = vcmp.eq.s32.totalorder %v12958_v50, %v11878_v51 }
 0xe4e   : > { %v6606_v53 = vmul.f32 %v6598_v28, %v11294_v33  ;;  %v6906_v27 = vrot.slane %v6905_v12, 2 }
 0xe4f   : > { %6973 = vrot.lane.b32.xlu2 %v13157_v55, %s8197_s8  ;;  %v6334_v56 = vrot.slane %v6333_v62, 1  ;;  %s13200_s8 = sld [smem:[#allocation17_spill]] }
 0xe50   : > { %v6620_v0 = vsel %vm4838_vm4, %v6606_v53, 0.0  ;;  %v6907_v52 = vadd.f32 %v6906_v27, %v6905_v12  ;;  %v7674_v53 = vsel %vm5940_vm2, 1.0, %v12971_v58  ;;  %vm6568_vm2 = vcmp.eq.s32.totalorder %v12958_v50, %v6560_v30  ;;  %v13176_v12 = vld [vmem:[#allocation155_spill] sm:$0xff] }
 0xe51   : > { %v6621_v31 = vrot.slane %v6620_v0, 4  ;;  %v6335_v48 = vadd.f32 %v6334_v56, %v6333_v62  ;;  %v5972_v5 = vmul.f32 %v7674_v53, %v5964_v4  ;;  %v13177_v4 = vld [vmem:[#allocation168_spill] sm:$0xff] }
 0xe52   : > { %v6908_v10 = vrot.slane %v6907_v52, 1 }
 0xe53   : > { %v6622_v33 = vadd.f32 %v6621_v31, %v6620_v0  ;;  %v11890_v1 = vsel %vm2426_vm15, %v6335_v48, %v11811_v14  ;;  %v6559_v0 = vadd.s32 1, %v11823_v6  ;;  %v7682_v31 = vsel %vm5988_vm13, 1.0, %v12971_v58 }
 0xe54   : > { %v11895_v7 = vpop.permute.xlu0 %6497  ;;  %v7708_v6 = vsel %vm6519_vm1, 1.0, %v12971_v58  ;;  %v5981_v48 = vadd.s32 1, %v11878_v51 }
 0xe55   : > { %v6623_v45 = vrot.slane %v6622_v33, 2  ;;  %vm6567_vm0 = vcmp.eq.s32.totalorder %v12958_v50, %v6559_v0  ;;  %vm6521_vm1 = vcmp.eq.s32.totalorder %v12958_v50, %v11895_v7 }
 0xe56   : > { %v7716_v15 = vsel %vm6567_vm0, 1.0, %v12971_v58  ;;  %vm5989_vm13 = vcmp.eq.s32.totalorder %v12958_v50, %v5981_v48 }
 0xe57   : > { %v6624_v55 = vadd.f32 %v6623_v45, %v6622_v33  ;;  %v5863_v32 = vpop.permute.xlu1 %5862  ;;  %v6012_v33 = vmul.f32 %v7682_v31, %v5869_v25  ;;  %v13175_v25 = vld [vmem:[#allocation104_spill] sm:$0xff] }
 0xe58   : > { %v5963_v23 = vsub.f32 1.0, %v5863_v32  ;;  %v6011_v47 = vmul.f32 %v7681_v29, %v5863_v32  ;;  %v6026_v56 = vmul.f32 %v11846_v59, %v13175_v25 }
 0xe59   : > { %v6625_v11 = vrot.slane %v6624_v55, 1  ;;  %v11892_v38 = vpop.permute.xlu2 %6503 }
 0xe5b   : > { %v6626_v20 = vadd.f32 %v6625_v11, %v6624_v55  ;;  %v6909_v55 = vadd.f32 %v6908_v10, %v6907_v52  ;;  %v6020_v11 = vadd.f32 %v6012_v33, %v5972_v5  ;;  %v7717_v52 = vsel %vm6568_vm2, 1.0, %v12971_v58 }
 0xe5c   : > { %v6444_v62 = vpop.permute.xlu0 %6443  ;;  %v7675_v5 = vsel %vm5941_vm5, 1.0, %v12971_v58 }
 0xe5d   : > { %v11885_v3 = vsel %vm2414_vm6, %v6626_v20, %v6619_v40  ;;  %vm5939_vm6 = vcmp.eq.s32.totalorder %v12958_v50, %v11760_v57  ;;  %v11919_v20 = vld [vmem:[%s13174_s5 + $0x18] sm:$0xff]  ;;  %v11926_v41 = vsel %vm2424_vm12, %v6909_v55, %v11876_v61  ;;  %v6544_v18 = vsub.f32 1.0, %v6444_v62 }
 0xe5e   : > { %v7673_v35 = vsel %vm5939_vm6, 1.0, %v12971_v58  ;;  %vm6520_vm6 = vcmp.eq.s32.totalorder %v12958_v50, %v6492_v46  ;;  %4577 = vmatpush.msra.mxu1 %v11919_v20  ;;  %v6561_v61 = vadd.s32 1, %v11895_v7  ;;  %v6028_v16 = vmul.f32 %v6020_v11, %v10887_v54 }
 0xe5f   : > { %v5971_v57 = vmul.f32 %v7673_v35, %v5963_v23  ;;  %v7709_v59 = vsel %vm6520_vm6, 1.0, %v12971_v58  ;;  %v6860_v35 = vmul.f32 %v11840_v19, %v13177_v4  ;;  %v6592_v46 = vmul.f32 %v7717_v52, %v6444_v62 }
 0xe60   : > { %4578 = vmatpush.msra.mxu1 %v11922_v39  ;;  %v6552_v54 = vmul.f32 %v7709_v59, %v6544_v18  ;;  %v6060_v0 = vsel %vm4838_vm4, %v6028_v16, 0.0  ;;  %vm6569_vm0 = vcmp.eq.s32.totalorder %v12958_v50, %v6561_v61  ;;  %v7710_v55 = vsel %vm6521_vm1, 1.0, %v12971_v58 }
 0xe61   : > { %v11899_v28 = vpop.permute.xlu2 %6449  ;;  %v6019_v9 = vadd.f32 %v6011_v47, %v5971_v57  ;;  %v7683_v47 = vsel %vm5989_vm13, 1.0, %v12971_v58  ;;  %v6061_v62 = vrot.slane %v6060_v0, 4  ;;  %vm6522_vm1 = vcmp.eq.s32.totalorder %v12958_v50, %v11892_v38 }
 0xe62   : > { %4579 = vmatpush.msra.mxu1 %v11936_v17  ;;  %v6545_v19 = vsub.f32 1.0, %v11899_v28 }
 0xe63   : > { %v6027_v32 = vmul.f32 %v6019_v9, %v13176_v12  ;;  %v6062_v7 = vadd.f32 %v6061_v62, %v6060_v0 }
 0xe64   : > { %v6553_v11 = vmul.f32 %v7710_v55, %v6545_v19 }
 0xe65   : > { %v6053_v53 = vsel %vm4838_vm4, %v6027_v32, 0.0  ;;  %v11974_v32 = vpop.permute.xlu0 %6515 }
 0xe66   : > { %v6054_v30 = vrot.slane %v6053_v53, 4  ;;  %vm6524_vm13 = vcmp.eq.s32.totalorder %v12958_v50, %v11974_v32 }
 0xe67   : > { %v6438_v14 = vpop.permute.xlu1 %6437 }
 0xe68   : > { %v6543_v63 = vsub.f32 1.0, %v6438_v14  ;;  %v6591_v27 = vmul.f32 %v7716_v15, %v6438_v14  ;;  %v6046_v14 = vsel %vm4838_vm4, %v6026_v56, 0.0  ;;  %v7718_v56 = vsel %vm6569_vm0, 1.0, %v12971_v58 }
 0xe69   : > { %v6047_v51 = vrot.slane %v6046_v14, 4  ;;  %v6055_v15 = vadd.f32 %v6054_v30, %v6053_v53  ;;  %v6593_v18 = vmul.f32 %v7718_v56, %v11899_v28  ;;  %v5983_v28 = vadd.s32 1, %v11880_v49 }
 0xe6a   : > { %v6551_v40 = vmul.f32 %v7708_v6, %v6543_v63  ;;  %v6910_v63 = vsel %vm5114_vm8, %v6860_v35, 0.0  ;;  %v6600_v6 = vadd.f32 %v6592_v46, %v6552_v54  ;;  %vm5943_vm8 = vcmp.eq.s32.totalorder %v12958_v50, %v11880_v49 }
 0xe6b   : > { %v6911_v25 = vrot.slane %v6910_v63, 4  ;;  %v6601_v59 = vadd.f32 %v6593_v18, %v6553_v11  ;;  %v6063_v54 = vrot.slane %v6062_v7, 2  ;;  %v7677_v49 = vsel %vm5943_vm8, 1.0, %v12971_v58 }
 0xe6c   : > { %v6599_v23 = vadd.f32 %v6591_v27, %v6551_v40  ;;  %v6608_v16 = vmul.f32 %v6600_v6, %v11336_v13  ;;  %v11986_v13 = vld [vmem:[%s13174_s5] sm:$0xff]  ;;  %vm5991_vm5 = vcmp.eq.s32.totalorder %v12958_v50, %v5983_v28  ;;  %v6564_v56 = vadd.s32 1, %v11974_v32 }
 0xe6d   : > { %4580 = vmatpush.msra.mxu1 %v11986_v13  ;;  %v11995_v30 = vpop.permute.xlu0 %4544 }
 0xe6e   : > { %v6607_v29 = vmul.f32 %v6599_v23, %v11260_v2  ;;  %v6048_v2 = vadd.f32 %v6047_v51, %v6046_v14  ;;  %v6912_v23 = vadd.f32 %v6911_v25, %v6910_v63  ;;  %v6634_v53 = vsel %vm4838_vm4, %v6608_v16, 0.0 }
 0xe6f   : > { %v6064_v63 = vadd.f32 %v6063_v54, %v6062_v7  ;;  %v7711_v54 = vsel %vm6522_vm1, 1.0, %v12971_v58  ;;  %vm6572_vm0 = vcmp.eq.s32.totalorder %v12958_v50, %v6564_v56  ;;  %vm13181_vm1 = vcmask 195584  }
 0xe70   : > { %v6627_v48 = vsel %vm4838_vm4, %v6607_v29, 0.0  ;;  %v6049_v4 = vrot.slane %v6048_v2, 2  ;;  %v6913_v19 = vrot.slane %v6912_v23, 2 }
 0xe71   : > { %v11912_v45 = vpop.permute.xlu2 %5880  ;;  %v6628_v52 = vrot.slane %v6627_v48, 4  ;;  %v6065_v18 = vrot.slane %v6064_v63, 1 }
 0xe72   : > { %v6914_v6 = vadd.f32 %v6913_v19, %v6912_v23 }
 0xe73   : > { %v6629_v0 = vadd.f32 %v6628_v52, %v6627_v48 }
 0xe77   : > { %v11914_v8 = vpop.permute.xlu1 %5928 }
 0xe78   : > { %v5982_v27 = vadd.s32 1, %v11914_v8  ;;  %vm5942_vm2 = vcmp.eq.s32.totalorder %v12958_v50, %v11914_v8 }
 0xe79   : > { %v11960_v31 = vpop.permute.xlu2 %5886  ;;  %v7676_v55 = vsel %vm5942_vm2, 1.0, %v12971_v58 }
 0xe7a   : > { %vm5990_vm6 = vcmp.eq.s32.totalorder %v12958_v50, %v5982_v27 }
 0xe7b   : > { %v7684_v29 = vsel %vm5990_vm6, 1.0, %v12971_v58  ;;  %vm13178_vm6 = vcmask 1045504  }
 0xe7c   : > { %v6014_v25 = vmul.f32 %v7684_v29, %v11912_v45 }
 0xe7f   : > { %v5875_v10 = vpop.permute.xlu1 %5874 }
 0xe80   : > { %v5965_v57 = vsub.f32 1.0, %v5875_v10  ;;  %v6013_v9 = vmul.f32 %v7683_v47, %v5875_v10  ;;  %v6609_v10 = vmul.f32 %v6601_v59, %v11378_v44  ;;  %v6635_v47 = vrot.slane %v6634_v53, 4 }
 0xe81   : > { %v5967_v44 = vsub.f32 1.0, %v11960_v31 }
 0xe82   : > { %v5973_v33 = vmul.f32 %v7675_v5, %v5965_v57  ;;  %v6050_v57 = vadd.f32 %v6049_v4, %v6048_v2  ;;  %v6641_v8 = vsel %vm4838_vm4, %v6609_v10, 0.0  ;;  %v6636_v16 = vadd.f32 %v6635_v47, %v6634_v53 }
 0xe83   : > { %v5975_v27 = vmul.f32 %v7677_v49, %v5967_v44  ;;  %v12021_v49 = vpop.permute.xlu0 %5811 }
 0xe84   : > { %v6021_v40 = vadd.f32 %v6013_v9, %v5973_v33  ;;  %v6630_v9 = vrot.slane %v6629_v0, 2  ;;  %v6051_v11 = vrot.slane %v6050_v57, 1 }
 0xe86   : > { %v6029_v12 = vmul.f32 %v6021_v40, %v11426_v22  ;;  %v6056_v22 = vrot.slane %v6055_v15, 2  ;;  %v5966_v40 = vsub.f32 1.0, %v11912_v45  ;;  %v6631_v59 = vadd.f32 %v6630_v9, %v6629_v0 }
 0xe87   : > { %v7685_v45 = vsel %vm5991_vm5, 1.0, %v12971_v58 }
 0xe88   : > { %v6067_v61 = vsel %vm4838_vm4, %v6029_v12, 0.0  ;;  %v6057_v5 = vadd.f32 %v6056_v22, %v6055_v15  ;;  %v6562_v15 = vadd.s32 1, %v11892_v38  ;;  %v6642_v12 = vrot.slane %v6641_v8, 4 }
 0xe89   : > { %v6068_v35 = vrot.slane %v6067_v61, 4  ;;  %v11979_v14 = vpop.permute.xlu2 %6467  ;;  %v5974_v7 = vmul.f32 %v7676_v55, %v5966_v40  ;;  %v6015_v4 = vmul.f32 %v7685_v45, %v11960_v31  ;;  %v6066_v38 = vadd.f32 %v6065_v18, %v6064_v63 }
 0xe8a   : > { %v6058_v48 = vrot.slane %v6057_v5, 1  ;;  %vm6570_vm8 = vcmp.eq.s32.totalorder %v12958_v50, %v6562_v15  ;;  %v6632_v28 = vrot.slane %v6631_v59, 1  ;;  %v7721_v18 = vsel %vm6572_vm0, 1.0, %v12971_v58 }
 0xe8b   : > { %v6069_v46 = vadd.f32 %v6068_v35, %v6067_v61  ;;  %v6052_v61 = vadd.f32 %v6051_v11, %v6050_v57  ;;  %v6022_v23 = vadd.f32 %v6014_v25, %v5974_v7  ;;  %v6915_v35 = vrot.slane %v6914_v6, 1 }
 0xe8c   : > { %v6059_v22 = vadd.f32 %v6058_v48, %v6057_v5  ;;  %v6023_v53 = vadd.f32 %v6015_v4, %v5975_v27  ;;  %v6548_v57 = vsub.f32 1.0, %v11979_v14  ;;  %v7719_v29 = vsel %vm6570_vm8, 1.0, %v12971_v58 }
 0xe8d   : > { %v6070_v51 = vrot.slane %v6069_v46, 2  ;;  %v6916_v0 = vadd.f32 %v6915_v35, %v6914_v6  ;;  %v6030_v31 = vmul.f32 %v6022_v23, %v11450_v42  ;;  %v6386_v63 = vsel %vm2416_vm7, %v6052_v61, %v11819_v24 }
 0xe8e   : > { %v6387_v9 = vsel %vm2418_vm9, %v6059_v22, %v6386_v63  ;;  %v7713_v42 = vsel %vm6524_vm13, 1.0, %v12971_v58  ;;  %v6031_v6 = vmul.f32 %v6023_v53, %v11400_v26  ;;  %v6633_v15 = vadd.f32 %v6632_v28, %v6631_v59 }
 0xe8f   : > { %v11999_v33 = vpop.permute.xlu1 %6509  ;;  %v6071_v62 = vadd.f32 %v6070_v51, %v6069_v46  ;;  %v6643_v46 = vadd.f32 %v6642_v12, %v6641_v8  ;;  %v12032_v55 = vsel %vm2426_vm15, %v6916_v0, %v11926_v41  ;;  %v6388_v24 = vsel %vm2420_vm10, %v6066_v38, %v6387_v9 }
 0xe90   : > { %v6563_v5 = vadd.s32 1, %v11999_v33  ;;  %v6556_v11 = vmul.f32 %v7713_v42, %v6548_v57  ;;  %v6074_v41 = vsel %vm4838_vm4, %v6030_v31, 0.0  ;;  %v6596_v32 = vmul.f32 %v7721_v18, %v11979_v14 }
 0xe91   : > { %v12007_v2 = vpop.permute.xlu2 %4548  ;;  %v6072_v52 = vrot.slane %v6071_v62, 1  ;;  %v6644_v48 = vrot.slane %v6643_v46, 2  ;;  %vm6523_vm2 = vcmp.eq.s32.totalorder %v12958_v50, %v11999_v33  ;;  %v6081_v7 = vsel %vm4838_vm4, %v6031_v6, 0.0 }
 0xe92   : > { %vm6571_vm5 = vcmp.eq.s32.totalorder %v12958_v50, %v6563_v5  ;;  %v6075_v59 = vrot.slane %v6074_v41, 4  ;;  %v6604_v45 = vadd.f32 %v6596_v32, %v6556_v11  ;;  %v7712_v56 = vsel %vm6523_vm2, 1.0, %v12971_v58 }
 0xe93   : > { %v6073_v19 = vadd.f32 %v6072_v52, %v6071_v62  ;;  %v6637_v62 = vrot.slane %v6636_v16, 2  ;;  %v7720_v14 = vsel %vm6571_vm5, 1.0, %v12971_v58  ;;  %v6645_v4 = vadd.f32 %v6644_v48, %v6643_v46 }
 0xe94   : > { %v6967_v50 = vsel %vm2416_vm7, %v6633_v15, %v11885_v3  ;;  %v6082_v22 = vrot.slane %v6081_v7, 4  ;;  %v6076_v38 = vadd.f32 %v6075_v59, %v6074_v41  ;;  %v6612_v53 = vmul.f32 %v6604_v45, %v11358_v34 }
 0xe95   : > { %v12041_v25 = vsel %vm2422_vm11, %v6073_v19, %v6388_v24  ;;  %v6638_v12 = vadd.f32 %v6637_v62, %v6636_v16  ;;  %v6933_v16 = vpop.permute.xlu0 %6932  ;;  %v2485_v28 = vadd.f32 %v11694_v43, %v11803_v60  ;;  %v6646_v19 = vrot.slane %v6645_v4, 1 }
 0xe96   : > { %v6083_v57 = vadd.f32 %v6082_v22, %v6081_v7  ;;  %v6077_v3 = vrot.slane %v6076_v38, 2  ;;  %v6662_v5 = vsel %vm4838_vm4, %v6612_v53, 0.0  ;;  %vm13179_vm7 = vcmask 64512   ;;  %v8038_v53 = vld [vmem:[%s13189_s3] ss:$0 sm:$0xff]  ;;  %s13206_s3 = sld [smem:[#allocation20_spill]] }
 0xe97   : > { %v6456_v10 = vpop.permute.xlu1 %6455  ;;  %vm13180_vm13 = vcmask 130048   ;;  %v6647_v60 = vadd.f32 %v6646_v19, %v6645_v4  ;;  %vm13182_vm0 = vcmask 261120   ;;  %v6663_v6 = vrot.slane %v6662_v5, 4  ;;  %v5255_v4 = vpop.f32.mrf.mxu0 }
 0xe98   : > { %v6546_v51 = vsub.f32 1.0, %v6456_v10  ;;  %v6594_v8 = vmul.f32 %v7719_v29, %v6456_v10  ;;  %v6084_v42 = vrot.slane %v6083_v57, 2  ;;  %vm13197_vm2 = vmmov %vm13182_vm0 }
 0xe99   : > { %v5770_v47 = vpop.permute.xlu2 %5769  ;;  %vm13198_vm5 = vmmov %vm13182_vm0 }
 0xe9a   : > { %v6554_v44 = vmul.f32 %v7711_v54, %v6546_v51  ;;  %7666 = vmatpush.msk.msrb.mxu1 %vm13178_vm6, %v5770_v47  ;;  %v6085_v41 = vadd.f32 %v6084_v42, %v6083_v57 }
 0xe9c   : > { %v6602_v40 = vadd.f32 %v6594_v8, %v6554_v44  ;;  %v6086_v7 = vrot.slane %v6085_v41, 1 }
 0xe9d   : > { %v6393_v11 = vpop.permute.xlu0 %6392 }
 0xe9e   : > { %v6610_v26 = vmul.f32 %v6602_v40, %v11312_v36  ;;  %v6639_v36 = vrot.slane %v6638_v12, 1  ;;  %v6078_v40 = vadd.f32 %v6077_v3, %v6076_v38 }
 0xe9f   : > { %v6462_v27 = vpop.permute.xlu1 %6461 }
 0xea0   : > { %v6648_v52 = vsel %vm4838_vm4, %v6610_v26, 0.0  ;;  %v6547_v61 = vsub.f32 1.0, %v6462_v27  ;;  %v6595_v35 = vmul.f32 %v7720_v14, %v6462_v27  ;;  %v6640_v46 = vadd.f32 %v6639_v36, %v6638_v12  ;;  %v13185_v26 = vld [vmem:[#allocation159_spill] sm:$0xff]  ;;  %v5215_v14 = vpop.f32.mrf.mxu2 }
 0xea1   : > { %v6649_v23 = vrot.slane %v6648_v52, 4  ;;  %v6395_v62 = vpop.permute.xlu2 %6394  ;;  %v6079_v18 = vrot.slane %v6078_v40, 1 }
 0xea2   : > { %v6555_v33 = vmul.f32 %v7712_v56, %v6547_v61  ;;  %v6968_v43 = vsel %vm2418_vm9, %v6640_v46, %v6967_v50 }
 0xea3   : > { %v6650_v54 = vadd.f32 %v6649_v23, %v6648_v52  ;;  %v6969_v24 = vsel %vm2420_vm10, %v6647_v60, %v6968_v43  ;;  %vm13186_vm10 = vmmov %vm13178_vm6  ;;  %v6080_v27 = vadd.f32 %v6079_v18, %v6078_v40 }
 0xea4   : > { %v6603_v10 = vadd.f32 %v6595_v35, %v6555_v33 }
 0xea5   : > { %v6651_v0 = vrot.slane %v6650_v54, 2 }
 0xea6   : > { %v6611_v58 = vmul.f32 %v6603_v10, %v11486_v37 }
 0xea7   : > { %v6652_v51 = vadd.f32 %v6651_v0, %v6650_v54  ;;  %v4541_v31 = vpop.permute.xlu1 %4540  ;;  %v13190_v0 = vld [vmem:[#allocation30_spill] sm:$0xff] }
 0xea8   : > { %v6655_v29 = vsel %vm4838_vm4, %v6611_v58, 0.0  ;;  %v4551_v47 = vsel %vm13179_vm7, %v2485_v28, %v4541_v31  ;;  %vm13183_vm4 = vcmask 1043456   ;;  %v5256_v58 = vadd.f32 %v5255_v4, %v5215_v14 }
 0xea9   : > { %v6653_v34 = vrot.slane %v6652_v51, 1  ;;  %v6656_v63 = vrot.slane %v6655_v29, 4  ;;  %v4552_v44 = vsel %vm13180_vm13, %v4551_v47, %v11995_v30  ;;  %vm13184_vm9 = vmmov %vm13183_vm4  ;;  %v6974_v23 = vpop.permute.xlu2 %6973 }
 0xeaa   : > { %v4553_v37 = vsel %vm13181_vm1, %v4552_v44, %v12007_v2  ;;  %v6664_v2 = vadd.f32 %v6663_v6, %v6662_v5  ;;  %vm13188_vm8 = vmmov %vm13183_vm4 }
 0xeab   : > { %v6654_v8 = vadd.f32 %v6653_v34, %v6652_v51  ;;  %v6657_v9 = vadd.f32 %v6656_v63, %v6655_v29  ;;  %7595 = vmatmul.msk.f32.vlgmr.msra.gmra.mxu1 %vm13182_vm0, %v4553_v37  ;;  %v13196_v34 = vld [vmem:[#allocation29_spill] sm:$0xff] }
 0xeac   : > { %7704 = vmatpush.msk.msra.mxu1 %vm13183_vm4, %v6395_v62  ;;  %v6665_v12 = vrot.slane %v6664_v2, 2 }
 0xead   : > { %v6970_v30 = vsel %vm2422_vm11, %v6654_v8, %v6969_v24  ;;  %v6658_v48 = vrot.slane %v6657_v9, 2  ;;  %vm13187_vm11 = vmmov %vm13178_vm6 }
 0xeae   : > { %6416 = vmatpush.msra.mxu1 %v6393_v11  ;;  %v6666_v52 = vadd.f32 %v6665_v12, %v6664_v2  ;;  %vm13195_vm6 = vmmov %vm13182_vm0 }
 0xeaf   : > { %v5814_v15 = vpop.permute.xlu1 %5813  ;;  %v6659_v32 = vadd.f32 %v6658_v48, %v6657_v9 }
 0xeb0   : > { %7668 = vmatpush.msk.msrb.mxu2 %vm13184_vm9, %v5814_v15 }
 0xeb1   : > { %v6660_v59 = vrot.slane %v6659_v32, 1 }
 0xeb2   : > { %5835 = vmatpush.msrb.mxu2 %v12021_v49  ;;  %v6390_v49 = vsel %vm2424_vm12, %v6080_v27, %v12041_v25  ;;  %v8039_v27 = vld [vmem:[%s13200_s8] ss:$0 sm:$0xff]  ;;  %s13207_s8 = sld [smem:[#allocation25_spill]] }
 0xeb3   : > { %7667 = vmatmul.msk.f32.vlgmr.msrb.gmra.mxu1 %vm5192_vm14, %v11743_v21  ;;  %7669 = vmatmul.msk.f32.vlgmr.msrb.gmra.mxu2 %vm5233_vm3, %v13185_v26  ;;  %v6087_v21 = vadd.f32 %v6086_v7, %v6085_v41 }
 0xeb4   : > { %7738 = vmatpush.msk.msra.mxu2 %vm13186_vm10, %v6933_v16  ;;  %7032 = vmatpush.msrb.mxu1 %v11919_v20  ;;  %v6661_v20 = vadd.f32 %v6660_v59, %v6659_v32 }
 0xeb5   : > { %v6391_v61 = vsel %vm2426_vm15, %v6087_v21, %v6390_v49 }
 0xeb6   : > { %7033 = vmatpush.msrb.mxu1 %v11922_v39  ;;  %v6667_v39 = vrot.slane %v6666_v52, 1  ;;  %v6971_v56 = vsel %vm2424_vm12, %v6661_v20, %v6970_v30  ;;  %vm13191_vm12 = vmmov %vm13182_vm0 }
 0xeb7   : > { %v6352_v45 = vpop.permute.xlu1 %6351 }
 0xeb8   : > { %7702 = vmatpush.msk.msra.mxu0 %vm13187_vm11, %v6352_v45  ;;  %7034 = vmatpush.msrb.mxu1 %v11936_v17  ;;  %v6668_v17 = vadd.f32 %v6667_v39, %v6666_v52  ;;  %vm7070_vm11 = vcmask 523264  }
 0xeb9   : > { %7703 = vmatmul.msk.f32.vlgmr.msra.gmra.mxu0 %vm5192_vm14, %v11890_v1 }
 0xeba   : > { %7035 = vmatpush.msrb.mxu1 %v11986_v13  ;;  %v6972_v1 = vsel %vm2426_vm15, %v6668_v17, %v6971_v56  ;;  %vm13192_vm15 = vmmov %vm13179_vm7 }
 0xebb   : > { %7705 = vmatmul.msk.f32.vlgmr.msra.gmra.mxu1 %vm5233_vm3, %v6391_v61  ;;  %7739 = vmatmul.msk.f32.vlgmr.msra.gmra.mxu2 %vm5192_vm14, %v12032_v55  ;;  %vm13193_vm14 = vmmov %vm13180_vm13 }
 0xebc   : > { %vm13199_vm7 = vmmov %vm13182_vm0 }
 0xebf   : > { %v6976_v25 = vpop.permute.xlu1 %6975 }
 0xec0   : > { %7740 = vmatpush.msk.msrb.mxu0 %vm13188_vm8, %v6976_v25  ;;  %vm13203_vm8 = vmmov %vm13197_vm2 }
 0xec2   : > { %6997 = vmatpush.msrb.mxu0 %v6974_v23 }
 0xec3   : > { %7741 = vmatmul.msk.f32.vlgmr.msrb.gmra.mxu0 %vm5233_vm3, %v6972_v1  ;;  %vm13194_vm3 = vmmov %vm13181_vm1 }
 0xf28   : > { %v4582_v13 = vpop.f32.mrf.mxu1 }
 0xf29   : > { %v4583_v10 = vadd.f32 %v8038_v53, %v4582_v13 }
 0xf2b   : > { %v4585_v28 = vadd.f32 %v4583_v10, %v13190_v0 }
 0xf2d   : > { %v4586_v19 = vsel %vm13191_vm12, %v4585_v28, 0.0 }
 0xf30   : > { %v5792_v33 = vpop.f32.mrf.mxu1 }
 0xf36   : > { %v5837_v55 = vpop.f32.mrf.mxu2  ;;  %v6374_v50 = vpop.f32.mrf.mxu0 }
 0xf37   : > { %v5838_v35 = vadd.f32 %v5837_v55, %v5792_v33 }
 0xf38   : > { %v6418_v36 = vpop.f32.mrf.mxu1 }
 0xf39   : > { %v6419_v16 = vadd.f32 %v6418_v36, %v6374_v50  ;;  %7003 = vrot.lane.b32.xlu1 %v5838_v35, %s8202_s22  ;;  %s13202_s22 = sld [smem:[#allocation21_spill]]  ;;  %v8209_v50 = vmov 64.0  }
 0xf3b   : > { %7007 = vrot.lane.b32.xlu0 %v6419_v16, %s8200_s16  ;;  %s13201_s16 = sld [smem:[#allocation18_spill]] }
 0xf3e   : > { %v6955_v22 = vpop.f32.mrf.mxu2 }
 0xf3f   : > { %v7117_v36 = vld [vmem:[%s13202_s22 + $0x38] sm:$0xff]  ;;  %v7116_v16 = vld [vmem:[%s13202_s22 + $0x30] sm:$0xff] }
 0xf40   : > { %v6999_v54 = vpop.f32.mrf.mxu0  ;;  %7133 = vmatpush.msra.mxu3 %v7117_v36 }
 0xf41   : > { %v7000_v38 = vadd.f32 %v6999_v54, %v6955_v22  ;;  %v8040_v59 = vld [vmem:[%s13201_s16] ss:$0 sm:$0xff]  ;;  %v7115_v22 = vld [vmem:[%s13202_s22 + $0x28] sm:$0xff]  ;;  %s13208_s16 = sld [smem:[#allocation22_spill]] }
 0xf42   : > { %7134 = vmatpush.msra.mxu3 %v7116_v16 }
 0xf43   : > { %7011 = vrot.lane.b32.xlu2 %v7000_v38, %s13170_s2  ;;  %s13205_s2 = sld [smem:[#allocation19_spill]] }
 0xf44   : > { %7135 = vmatpush.msra.mxu3 %v7115_v22 }
 0xf65   : > { %4587 = vadd.xlane.f32.xlu0 %v4586_v19 }
 0xf9d   : > { %v7012_v31 = vpop.permute.xlu2 %7011 }
 0xfab   : > { %v7004_v46 = vpop.permute.xlu1 %7003 }
 0xfac   : > { %v7014_v57 = vsel %vm13192_vm15, %v5256_v58, %v7004_v46 }
 0xfad   : > { %v7008_v51 = vpop.permute.xlu0 %7007 }
 0xfae   : > { %v7015_v3 = vsel %vm13193_vm14, %v7014_v57, %v7008_v51 }
 0xfaf   : > { %v7016_v5 = vsel %vm13194_vm3, %v7015_v3, %v7012_v31  ;;  %v7114_v31 = vld [vmem:[%s13202_s22 + $0x20] sm:$0xff]  ;;  %v7113_v3 = vld [vmem:[%s13202_s22 + $0x18] sm:$0xff] }
 0xfb0   : > { %7742 = vmatmul.msk.f32.vlgmr.msrb.gmra.mxu1 %vm13195_vm6, %v7016_v5  ;;  %7136 = vmatpush.msra.mxu3 %v7114_v31  ;;  %v7112_v5 = vld [vmem:[%s13202_s22 + $0x10] sm:$0xff]  ;;  %vm13211_vm6 = vmmov %vm13197_vm2 }
 0xfb2   : > { %7137 = vmatpush.msra.mxu3 %v7113_v3 }
 0xfb4   : > { %7138 = vmatpush.msra.mxu3 %v7112_v5 }
 0xfd8   : > { %v4588_v29 = vpop.xlane.xlu0 %4587 }
 0xfd9   : > { %v4589_v63 = vmul.f32 %v4588_v29, %v13196_v34  ;;  %v7111_v29 = vld [vmem:[%s13202_s22 + $0x8] sm:$0xff] }
 0xfda   : > { %7139 = vmatpush.msra.mxu3 %v7111_v29 }
 0xfdb   : > { %v4590_v60 = vsub.f32 %v4585_v28, %v4589_v63  ;;  %v7110_v63 = vld [vmem:[%s13202_s22] sm:$0xff] }
 0xfdc   : > { %7140 = vmatpush.msra.mxu3 %v7110_v63 }
 0xfdd   : > { %v4591_v8 = vmul.f32 %v4590_v60, %v4590_v60 }
 0xfdf   : > { %v4592_v9 = vsel %vm13198_vm5, %v4591_v8, 0.0  ;;  %vm13212_vm5 = vmmov %vm13197_vm2 }
0x102d   : > { %v7037_v47 = vpop.f32.mrf.mxu1 }
0x102e   : > { %v7038_v44 = vadd.f32 %v8038_v53, %v7037_v47  ;;  %v7149_v47 = vld [vmem:[%s13204_s9 + $0x18] sm:$0xff] }
0x102f   : > { %7169 = vmatpush.msrb.mxu2 %v7149_v47 }
0x1030   : > { %v7040_v43 = vadd.f32 %v7038_v44, %v13190_v0 }
0x1032   : > { %v7041_v37 = vsel %vm13197_vm2, %v7040_v43, 0.0 }
0x1033   : > { %7042 = vadd.xlane.f32.xlu1 %v7041_v37 }
0x103b   : > { %4593 = vadd.xlane.f32.xlu1 %v4592_v9 }
0x10a6   : > { %v7043_v62 = vpop.xlane.xlu1 %7042 }
0x10a7   : > { %v7044_v42 = vmul.f32 %v7043_v62, %v13196_v34 }
0x10a9   : > { %v7045_v6 = vsub.f32 %v7040_v43, %v7044_v42 }
0x10ab   : > { %v7046_v24 = vmul.f32 %v7045_v6, %v7045_v6 }
0x10ad   : > { %v7047_v11 = vsel %vm13199_vm7, %v7046_v24, 0.0  ;;  %v8041_v24 = vld [vmem:[%s13205_s2] ss:$0 sm:$0xff]  ;;  %s1083_s2 = sand.u32 1, %s8149_s10  }
0x10ae   : > { %7048 = vadd.xlane.f32.xlu2 %v7047_v11  ;;  %v4594_v40 = vpop.xlane.xlu1 %4593 }
0x10af   : > { %v4595_v30 = vmul.f32 %v4594_v40, %v13196_v34 }
0x10b1   : > { %v4596_v48 = vadd.f32 1e-05, %v4595_v30  ;;  %v8042_v30 = vld [vmem:[%s13206_s3] ss:$0 sm:$0xff]  ;;  %s7428_s3 = sshll.u32 %s1083_s2, 3 }
0x10b2   : > { %s1085_s5 = scalar_lea.vmem [#allocation2], %s7428_s3 }
0x10b3   : > { %8084 = vrsqrt.f32 %v4596_v48  ;;  %vm4603_vm1 = vweird.f32 %v4596_v48 }
0x10b9   : > { %v8085_v15 = vpop.eup %8084 }
0x10ba   : > { %v4598_v41 = vmul.f32 %v8085_v15, %v4596_v48  ;;  %vm4604_vm13 = vweird.f32 %v8085_v15 }
0x10bb   : > { %vm4605_vm0 = vmor %vm4603_vm1, %vm4604_vm13 }
0x10bc   : > { %v4599_v2 = vmul.f32 %v8085_v15, %v4598_v41  ;;  %v7148_v41 = vld [vmem:[%s13204_s9 + $0x10] sm:$0xff] }
0x10bd   : > { %7170 = vmatpush.msrb.mxu2 %v7148_v41 }
0x10be   : > { %v4600_v18 = vmul.f32 0.5, %v4599_v2  ;;  %v7147_v2 = vld [vmem:[%s13204_s9 + $0x8] sm:$0xff] }
0x10bf   : > { %7171 = vmatpush.msrb.mxu2 %v7147_v2 }
0x10c0   : > { %v4601_v32 = vsub.f32 1.5, %v4600_v18  ;;  %v7146_v18 = vld [vmem:[%s13204_s9] sm:$0xff] }
0x10c1   : > { %7172 = vmatpush.msrb.mxu2 %v7146_v18 }
0x10c2   : > { %v4602_v26 = vmul.f32 %v8085_v15, %v4601_v32  ;;  %v7185_v32 = vld [vmem:[%s13207_s8 + $0x38] sm:$0xff] }
0x10c3   : > { %7201 = vmatpush.msra.mxu0 %v7185_v32 }
0x10c4   : > { %v4606_v12 = vsel %vm4605_vm0, %v8085_v15, %v4602_v26  ;;  %v7184_v26 = vld [vmem:[%s13207_s8 + $0x30] sm:$0xff]  ;;  %vm13214_vm0 = vmmov %vm13197_vm2 }
0x10c5   : > { %v4607_v7 = vmul.f32 %v4606_v12, %v4590_v60  ;;  %v7183_v12 = vld [vmem:[%s13207_s8 + $0x28] sm:$0xff]  ;;  %7202 = vmatpush.msra.mxu0 %v7184_v26 }
0x10c7   : > { %v4612_v45 = vmul.f32 %v8039_v27, %v4607_v7  ;;  %v7182_v7 = vld [vmem:[%s13207_s8 + $0x20] sm:$0xff]  ;;  %7203 = vmatpush.msra.mxu0 %v7183_v12 }
0x10c9   : > { %v4617_v49 = vadd.f32 %v8040_v59, %v4612_v45  ;;  %7204 = vmatpush.msra.mxu0 %v7182_v7 }
0x1121   : > { %v7049_v52 = vpop.xlane.xlu2 %7048 }
0x1122   : > { %v7050_v21 = vmul.f32 %v7049_v52, %v13196_v34 }
0x1124   : > { %v7051_v61 = vadd.f32 1e-05, %v7050_v21  ;;  %v7180_v21 = vld [vmem:[%s13207_s8 + $0x10] sm:$0xff] }
0x1126   : > { %8086 = vrsqrt.f32 %v7051_v61  ;;  %vm7058_vm9 = vweird.f32 %v7051_v61 }
0x1127   : > { %8088 = vrcp.f32 %v8209_v50 }
0x112c   : > { %v8087_v20 = vpop.eup %8086 }
0x112d   : > { %v7053_v39 = vmul.f32 %v8087_v20, %v7051_v61  ;;  %vm7059_vm4 = vweird.f32 %v8087_v20  ;;  %v8089_v54 = vpop.eup %8088  ;;  %v7179_v61 = vld [vmem:[%s13207_s8 + $0x8] sm:$0xff] }
0x112e   : > { %vm7060_vm10 = vmor %vm7058_vm9, %vm7059_vm4  ;;  %v7075_v38 = vmul.f32 64.0, %v8089_v54  ;;  %vm7079_vm12 = vweird.f32 %v8089_v54 }
0x112f   : > { %v7054_v25 = vmul.f32 %v8087_v20, %v7053_v39 }
0x1130   : > { %v7076_v53 = vsub.f32 1.0, %v7075_v38 }
0x1131   : > { %v7055_v56 = vmul.f32 0.5, %v7054_v25 }
0x1132   : > { %v7077_v10 = vmul.f32 %v8089_v54, %v7076_v53 }
0x1133   : > { %v7056_v17 = vsub.f32 1.5, %v7055_v56 }
0x1134   : > { %v7078_v0 = vadd.f32 %v8089_v54, %v7077_v10 }
0x1135   : > { %v7057_v23 = vmul.f32 %v8087_v20, %v7056_v17 }
0x1136   : > { %v7080_v28 = vsel %vm7079_vm12, %v8089_v54, %v7078_v0 }
0x1137   : > { %v7061_v1 = vsel %vm7060_vm10, %v8087_v20, %v7057_v23  ;;  %v7178_v20 = vld [vmem:[%s13207_s8] sm:$0xff] }
0x1138   : > { %v7062_v13 = vmul.f32 %v7061_v1, %v7045_v6  ;;  %v8045_v23 = vld [vmem:[%s13210_s12] ss:$0 sm:$0xff] }
0x113a   : > { %v7063_v14 = vmul.f32 %v8039_v27, %v7062_v13  ;;  %v7181_v27 = vld [vmem:[%s13207_s8 + $0x18] sm:$0xff]  ;;  %s7260_s8 = sshll.u32 %s1085_s5, 4  ;;  %s7261_s8 = int_to_ptr.vmem [resolvable:$true] %s7260_s8 }
0x113b   : > { %7205 = vmatpush.msra.mxu0 %v7181_v27 }
0x113c   : > { %v7064_v4 = vadd.f32 %v8040_v59, %v7063_v14  ;;  %v8043_v59 = vld [vmem:[%s13208_s16] ss:$0 sm:$0xff]  ;;  %s7747_s16 = sshll.u32 %s8406_s0, 3  ;;  %s7248_s0 = scalar_lea.sflag [#allocation3], %s1083_s2 }
0x113d   : > { %7206 = vmatpush.msra.mxu0 %v7180_v21 }
0x113e   : > { %7066 = vrot.lane.b32.xlu2 %v7064_v4, %s8208_s23  ;;  %s13209_s23 = sld [smem:[#allocation24_spill]] }
0x113f   : > { %7207 = vmatpush.msra.mxu0 %v7179_v61 }
0x1141   : > { %7208 = vmatpush.msra.mxu0 %v7178_v20 }
0x1144   : > { %v8044_v39 = vld [vmem:[%s13209_s23] ss:$0 sm:$0xff]  ;;  %s7258_s23 = scalar_lea.hbm %s8383_s4, %s7747_s16  ;;  %s8115_s16 = scalar_lea.hbm %s8383_s4, 16 }
0x1145   : > { %s7262_s9 = sshll.u32 %s7258_s23, 4  ;;  %s7263_s9 = int_to_ptr.hbm [resolvable:$true] %s7262_s9 }
0x1146   : > { %s8109_s12 = sshra.s32 %s7263_s9, 4  ;;  %s8110_s12 = int_to_ptr.hbm [resolvable:$true] %s8109_s12 }
0x1147   : > { %p8116_p0 = scmp.lt.s32.totalorder %s8110_s12, %s8383_s4 }
0x1198   : > { %v7067_v33 = vpop.permute.xlu2 %7066 }
0x1199   : > { %v7069_v55 = vsel %vm13203_vm8, %v4617_v49, %v7067_v33 }
0x119a   : > { %v7071_v35 = vsel %vm7070_vm11, %v7069_v55, 0.0 }
0x119b   : > { %7072 = vadd.xlane.f32.xlu0 %v7071_v35 }
0x120e   : > { %v7073_v19 = vpop.xlane.xlu0 %7072 }
0x120f   : > { %v7081_v58 = vmul.f32 %v7080_v28, %v7073_v19 }
0x1211   : > { %v7082_v46 = vsub.f32 %v7069_v55, %v7081_v58  ;;  %v8046_v58 = vld [vmem:[%s13213_s6] ss:$0 sm:$0xff]  ;;  %s8111_s6 = scalar_lea.hbm %s8110_s12, 8 }
0x1212   : > { %p8112_p11 = scmp.ne.s32.totalorder %s8110_s12, %s8111_s6  ;;  %p8117_p1 = scmp.lt.s32.totalorder %s8115_s16, %s8111_s6 }
0x1213   : > { %v7083_v57 = vmul.f32 %v7082_v46, %v7082_v46 }
0x1214   : > { %p8113_p12 = pnand %p8112_p11, %p8423_p5  ;;  %p8118_p2 = por %p8117_p1, %p8116_p0 }
0x1215   : > { %v7084_v51 = vsel %vm7070_vm11, %v7083_v57, 0.0  ;;  %v8047_v57 = vld [vmem:[%s8378_s30] ss:$0 sm:$0xff] }
0x1216   : > { %7085 = vadd.xlane.f32.xlu1 %v7084_v51  ;;  %p8114_p13 = pneg %p8113_p12 }
0x1218   : > { %p8119_p3 = pnand %p8118_p2, %p8114_p13 }
0x1289   : > { %v7086_v44 = vpop.xlane.xlu1 %7085 }
0x128a   : > { %v7087_v43 = vmul.f32 %v7086_v44, %v7080_v28 }
0x128c   : > { %v7088_v60 = vadd.f32 1e-05, %v7087_v43 }
0x128e   : > { %8090 = vrsqrt.f32 %v7088_v60  ;;  %vm7095_vm14 = vweird.f32 %v7088_v60 }
0x1294   : > { %v8091_v37 = vpop.eup %8090 }
0x1295   : > { %v7090_v8 = vmul.f32 %v8091_v37, %v7088_v60  ;;  %vm7096_vm15 = vweird.f32 %v8091_v37 }
0x1296   : > { %vm7097_vm3 = vmor %vm7095_vm14, %vm7096_vm15 }
0x1297   : > { %v7091_v9 = vmul.f32 %v8091_v37, %v7090_v8 }
0x1299   : > { %v7092_v62 = vmul.f32 0.5, %v7091_v9 }
0x129b   : > { %v7093_v42 = vsub.f32 1.5, %v7092_v62 }
0x129d   : > { %v7094_v6 = vmul.f32 %v8091_v37, %v7093_v42 }
0x129f   : > { %v7098_v11 = vsel %vm7097_vm3, %v8091_v37, %v7094_v6 }
0x12a0   : > { %v7099_v40 = vmul.f32 %v7098_v11, %v7082_v46 }
0x12a2   : > { %v7104_v48 = vmul.f32 %v8041_v24, %v7099_v40 }
0x12a4   : > { %v7109_v15 = vadd.f32 %v8042_v30, %v7104_v48 }
0x12a6   : > { %7743 = vmatmul.msk.f32.vlgmr.msra.gmra.mxu3 %vm7070_vm11, %v7109_v15 }
0x1329   : > { %v7142_v45 = vpop.f32.mrf.mxu3 }
0x132a   : > { %v7143_v49 = vadd.f32 %v8043_v59, %v7142_v45 }
0x132c   : > { %v7145_v52 = vmax.f32 %v7143_v49, 0.0 }
0x132e   : > { %7744 = vmatmul.msk.f32.vlgmr.msrb.gmra.mxu2 %vm13211_vm6, %v7145_v52 }
0x13b1   : > { %v7174_v25 = vpop.f32.mrf.mxu2 }
0x13b2   : > { %v7175_v56 = vadd.f32 %v8044_v39, %v7174_v25 }
0x13b4   : > { %v7177_v17 = vmax.f32 %v7175_v56, 0.0 }
0x13b6   : > { %7745 = vmatmul.msk.f32.vlgmr.msra.gmra.mxu0 %vm7070_vm11, %v7177_v17 }
0x1433   : > { %v7210_v1 = vpop.f32.mrf.mxu0 }
0x1434   : > { %v7211_v13 = vadd.f32 %v8045_v23, %v7210_v1 }
0x1436   : > { %v7213_v14 = vadd.f32 %v7211_v13, %v7145_v52 }
0x1438   : > { %v7214_v4 = vsel %vm13197_vm2, %v7213_v14, 0.0 }
0x1439   : > { %7215 = vadd.xlane.f32.xlu0 %v7214_v4 }
0x14ac   : > { %v7216_v33 = vpop.xlane.xlu0 %7215 }
0x14ad   : > { %v7217_v55 = vmul.f32 %v7216_v33, %v13196_v34 }
0x14af   : > { %v7218_v35 = vsub.f32 %v7213_v14, %v7217_v55 }
0x14b1   : > { %v7219_v50 = vmul.f32 %v7218_v35, %v7218_v35 }
0x14b3   : > { %v7220_v36 = vsel %vm13212_vm5, %v7219_v50, 0.0 }
0x14b4   : > { %7221 = vadd.xlane.f32.xlu1 %v7220_v36 }
0x1527   : > { %v7222_v16 = vpop.xlane.xlu1 %7221 }
0x1528   : > { %v7223_v22 = vmul.f32 %v7222_v16, %v13196_v34 }
0x152a   : > { %v7224_v54 = vadd.f32 1e-05, %v7223_v22 }
0x152c   : > { %8092 = vrsqrt.f32 %v7224_v54  ;;  %vm7231_vm13 = vweird.f32 %v7224_v54 }
0x1532   : > { %v8093_v38 = vpop.eup %8092 }
0x1533   : > { %v7226_v53 = vmul.f32 %v8093_v38, %v7224_v54  ;;  %vm7232_vm7 = vweird.f32 %v8093_v38 }
0x1534   : > { %vm7233_vm1 = vmor %vm7231_vm13, %vm7232_vm7 }
0x1535   : > { %v7227_v10 = vmul.f32 %v8093_v38, %v7226_v53 }
0x1537   : > { %v7228_v0 = vmul.f32 0.5, %v7227_v10 }
0x1539   : > { %v7229_v28 = vsub.f32 1.5, %v7228_v0 }
0x153b   : > { %v7230_v19 = vmul.f32 %v8093_v38, %v7229_v28 }
0x153d   : > { %v7234_v46 = vsel %vm7233_vm1, %v8093_v38, %v7230_v19 }
0x153e   : > { %v7235_v34 = vmul.f32 %v7234_v46, %v7218_v35 }
0x1540   : > { %v7240_v51 = vmul.f32 %v8046_v58, %v7235_v34 }
0x1542   : > { %v7245_v31 = vadd.f32 %v8047_v57, %v7240_v51 }
0x1544   : > { %7246 = vst.msk [vmem:[%s1085_s5] sm:$0xff] %vm13214_vm0, %v7245_v31 }
0x1545   : > { %8122 = shalt.err (!%p8119_p3)
}
0x1546   : > { %7759 = dma.vmem_to_hbm [thread:$0]  (%p8423_p5), %s7261_s8, 128, %s7263_s9, %s7248_s0  }
0x1547 PF: > { %p7765_p4 = scmp.ge.s32.totalorder %s8157_s15, 2  ;;  %s7274_s5 = sand.u32 1, %s8145_s7  }
0x1548   : > { %s7275_s2 = scalar_lea.sflag [#allocation3], %s7274_s5 }
0x1549   : > { %p7762_p7 = pnand %p7765_p4, %p8427_p6 }
0x154b   : > { %p7763_p8 = pneg %p7762_p7 }
0x154d   : > { %8140 = dma.done.wait (%p7763_p8), %s7275_s2, 128  }
0x154e   : > { %8142 = vsyncadd (%p7763_p8), %s7275_s2, 4294967168  ;;  %p77_p9 = scmp.ge.s32.totalorder %s8410_s18, 4   ;;  %s13215_s7 = smov %s8149_s10 }
0x154f   : > { %s13216_s10 = smov %s8153_s11  ;;  %s13217_s11 = smov %s8421_s26 }
0x1550   : > { %s13218_s15 = smov %s8410_s18  ;;  %79 = sbr.rel (!%p77_p9) target bundleno = 65 (0x41), region = 238 }
0x1555   :  { %7281 = vsyncpa [#allocation3], 1 }
0x1556   :  { %7283 = vsyncpa [#allocation3 + $0x1], 1 }

</bundles_post_ra>
